<compile_context>
chip_gen: v7x
topology: tpu7x:2x2x1
jax: 0.10.0
libtpu: 0.0.40
codegen_flags: <defaults>
</compile_context>

<pallas_src>
import functools

import numpy as np

import jax
import jax.numpy as jnp
from jax.experimental import pallas as pl
from jax.experimental.pallas import tpu as pltpu

HIDDEN_LAYER = 512


def _round_up(v, m):
    return ((v + m - 1) // m) * m


# ---------------------------------------------------------------------------
# Fused forward kernel: conv1 -> conv2 -> conv3 -> head1 -> head2
# ---------------------------------------------------------------------------
def _fused_kernel(xs_ref, w1_ref, b1_ref, w2_ref, b2_ref, w3_ref, b3_ref,
                  wh1_ref, bh1_ref, wh2_ref, bh2_ref, o_ref):
    cdt = jnp.bfloat16

    # --- conv1: kernel 8, stride 4, on the space-to-depth'd (block=4) input ---
    # xs_ref: [B, HB, WB, 16*Cin] uint8, feature order (dh, dw, ci).
    B, HB, WB, _ = xs_ref.shape
    C1 = w1_ref.shape[-1]
    OH1, OW1 = HB - 1, WB - 1          # kernel spans exactly 2 stride blocks

    acc1 = jnp.zeros((B * OH1 * OW1, C1), jnp.float32)
    for bi in range(2):
        for bj in range(2):
            # Shifted slab: unit-stride read straight from the VMEM ref.
            slab = xs_ref[:, bi:bi + OH1, bj:bj + OW1, :].astype(jnp.float32)
            slab = slab.reshape(B * OH1 * OW1, slab.shape[-1]).astype(cdt)
            acc1 = acc1 + jnp.dot(slab, w1_ref[bi * 2 + bj],
                                  preferred_element_type=jnp.float32)
    h1 = jnp.maximum(acc1 + b1_ref[...], 0.0)      # [B*OH1*OW1, C1] f32
    h1 = h1.reshape(B, OH1, OW1, C1)               # layout-friendly split

    # --- conv2: kernel 4, stride 2 — per-output-position MXU accumulation ---
    KH2, KW2, _, C2 = w2_ref.shape
    OH2 = (OH1 - KH2) // 2 + 1
    OW2 = (OW1 - KW2) // 2 + 1
    w2s = {(i, j): w2_ref[i, j] for i in range(KH2) for j in range(KW2)}
    b2v = b2_ref[...]
    h2 = {}
    for a in range(OH2):
        for c in range(OW2):
            acc2 = jnp.zeros((B, C2), jnp.float32)
            for i in range(KH2):
                for j in range(KW2):
                    lhs = h1[:, 2 * a + i, 2 * c + j, :].astype(cdt)  # [B, C1]
                    acc2 = acc2 + jnp.dot(lhs, w2s[(i, j)],
                                          preferred_element_type=jnp.float32)
            h2[(a, c)] = jnp.maximum(acc2 + b2v, 0.0).astype(cdt)     # [B, C2]

    # --- conv3: kernel 3, stride 1 ---
    KH3, KW3, _, C3 = w3_ref.shape
    OH3 = OH2 - KH3 + 1
    OW3 = OW2 - KW3 + 1
    w3s = {(i, j): w3_ref[i, j] for i in range(KH3) for j in range(KW3)}
    b3v = b3_ref[...]
    pieces = []
    for a in range(OH3):
        for c in range(OW3):
            acc3 = jnp.zeros((B, C3), jnp.float32)
            for i in range(KH3):
                for j in range(KW3):
                    acc3 = acc3 + jnp.dot(h2[(a + i, c + j)], w3s[(i, j)],
                                          preferred_element_type=jnp.float32)
            pieces.append(jnp.maximum(acc3 + b3v, 0.0).astype(cdt))   # [B, C3]
    # NHWC flatten order (a, c, channel); head-1 weight rows were permuted to
    # match PyTorch's NCHW .view(B, -1) at parameter-prep time.
    conv_out = pieces[0] if len(pieces) == 1 else jnp.concatenate(pieces, -1)

    # --- fused actor||critic heads ---
    hid = jnp.maximum(
        jnp.dot(conv_out, wh1_ref[...], preferred_element_type=jnp.float32)
        + bh1_ref[...], 0.0)                                          # [B, 1024]
    out = jnp.dot(hid.astype(cdt), wh2_ref[...],
                  preferred_element_type=jnp.float32) + bh2_ref[...]  # [B, 128]
    o_ref[...] = out                                                  # lane-dense


def _resident_spec(shape):
    nd = len(shape)
    return pl.BlockSpec(shape, lambda i, _nd=nd: (0,) * _nd)


def _fused_forward(xs, prep):
    """xs: [B, HB, WB, 16*Cin] uint8 (space-to-depth input).  Returns the fused
    actor||critic logits [B, 128] f32 from a single pallas_call."""
    B, HB, WB, C16 = xs.shape
    cin = C16 // 16
    n_pad = prep["wh2"].shape[1]

    oh1, ow1 = HB - 1, WB - 1
    oh2, ow2 = (oh1 - 4) // 2 + 1, (ow1 - 4) // 2 + 1
    oh3, ow3 = oh2 - 2, ow2 - 2
    conv_out_size = 64 * oh3 * ow3

    args = (xs, prep["w1blk"], prep["b1"], prep["w2"], prep["b2"],
            prep["w3"], prep["b3"], prep["wh1"], prep["bh1"],
            prep["wh2"], prep["bh2"])
    in_specs = [_resident_spec(a.shape) for a in args]

    macs = (B * oh1 * ow1 * 64 * cin * 32
            + B * oh2 * ow2 * 16 * 32 * 64
            + B * oh3 * ow3 * 9 * 64 * 64
            + B * conv_out_size * 2 * HIDDEN_LAYER
            + B * 2 * HIDDEN_LAYER * n_pad)
    bytes_accessed = sum(int(np.prod(a.shape)) * a.dtype.itemsize for a in args)
    bytes_accessed += B * n_pad * 4
    cost = pl.CostEstimate(flops=2 * int(macs), transcendentals=0,
                           bytes_accessed=int(bytes_accessed))

    return pl.pallas_call(
        _fused_kernel,
        out_shape=jax.ShapeDtypeStruct((B, n_pad), jnp.float32),
        grid=(1,),
        in_specs=in_specs,
        out_specs=pl.BlockSpec((B, n_pad), lambda i: (0, 0)),
        compiler_params=pltpu.CompilerParams(
            dimension_semantics=("arbitrary",)),
        cost_estimate=cost,
    )(*args)


# ---------------------------------------------------------------------------
# Parameters (PyTorch-default-style uniform init, f32)
# ---------------------------------------------------------------------------
def conv_out_hw(h, w):
    h = (h - 8) // 4 + 1; w = (w - 8) // 4 + 1
    h = (h - 4) // 2 + 1; w = (w - 4) // 2 + 1
    h = (h - 3) // 1 + 1; w = (w - 3) // 1 + 1
    return h, w


def init_params(key, in_channels, n_actions, H, W):
    def u(k, shape, fan_in):
        bound = 1.0 / jnp.sqrt(jnp.float32(fan_in))
        return jax.random.uniform(k, shape, jnp.float32, -bound, bound)

    ks = jax.random.split(key, 14)
    oh, ow = conv_out_hw(H, W)
    conv_out_size = 64 * oh * ow
    return {
        "w1": u(ks[0], (8, 8, in_channels, 32), 8 * 8 * in_channels),
        "b1": u(ks[1], (32,), 8 * 8 * in_channels),
        "w2": u(ks[2], (4, 4, 32, 64), 4 * 4 * 32),
        "b2": u(ks[3], (64,), 4 * 4 * 32),
        "w3": u(ks[4], (3, 3, 64, 64), 3 * 3 * 64),
        "b3": u(ks[5], (64,), 3 * 3 * 64),
        "wa1": u(ks[6], (conv_out_size, HIDDEN_LAYER), conv_out_size),
        "ba1": u(ks[7], (HIDDEN_LAYER,), conv_out_size),
        "wa2": u(ks[8], (HIDDEN_LAYER, n_actions), HIDDEN_LAYER),
        "ba2": u(ks[9], (n_actions,), HIDDEN_LAYER),
        "wc1": u(ks[10], (conv_out_size, HIDDEN_LAYER), conv_out_size),
        "bc1": u(ks[11], (HIDDEN_LAYER,), conv_out_size),
        "wc2": u(ks[12], (HIDDEN_LAYER, 1), HIDDEN_LAYER),
        "bc2": u(ks[13], (1,), HIDDEN_LAYER),
    }


def prepare_pallas_params(params, n_actions, H, W):
    """One-time conversion of PyTorch-style params into kernel-ready matrices:
    conv1 weights carry the /256 scale and are regrouped into the 2x2 grid of
    4x4 stride blocks (matching the space-to-depth input); head-1 rows are
    permuted to PyTorch's NCHW flatten order and actor||critic fused to one
    lane-dense [K, 1024] bf16 matrix; head-2 is fused block-diagonally,
    zero-padded to 128 output lanes and cast to bf16."""
    oh1, ow1 = (H - 8) // 4 + 1, (W - 8) // 4 + 1
    oh2, ow2 = (oh1 - 4) // 2 + 1, (ow1 - 4) // 2 + 1
    oh3, ow3 = oh2 - 2, ow2 - 2
    c3 = 64
    cin = params["w1"].shape[2]

    # conv1: fold x/256 into the weights; block-regroup for the in-kernel
    # shifted-slab decomposition (rows ordered (dh, dw, ci) per block).
    w1 = params["w1"] / 256.0                                    # [8,8,cin,32]
    w1blk = (w1.reshape(2, 4, 2, 4, cin, 32)
               .transpose(0, 2, 1, 3, 4, 5)                      # (bi,bj,dh,dw,ci,co)
               .reshape(4, 16 * cin, 32)).astype(jnp.bfloat16)

    # head-1: NHWC(kernel) -> NCHW(PyTorch) flatten-order row permutation.
    perm = (jnp.arange(c3 * oh3 * ow3).reshape(c3, oh3, ow3)
              .transpose(1, 2, 0).reshape(-1))
    wh1 = jnp.concatenate([params["wa1"][perm], params["wc1"][perm]],
                          axis=1).astype(jnp.bfloat16)           # [K, 1024]
    bh1 = jnp.concatenate([params["ba1"], params["bc1"]]).astype(jnp.float32)

    # head-2: block-diagonal actor/critic, padded to 128 lanes, bf16 weights.
    n_out = n_actions + 1
    n_pad = _round_up(n_out, 128)
    wh2 = jnp.zeros((2 * HIDDEN_LAYER, n_pad), jnp.float32)
    wh2 = wh2.at[:HIDDEN_LAYER, :n_actions].set(params["wa2"])
    wh2 = wh2.at[HIDDEN_LAYER:, n_actions:n_out].set(params["wc2"])
    bh2 = jnp.zeros((n_pad,), jnp.float32)
    bh2 = bh2.at[:n_actions].set(params["ba2"])
    bh2 = bh2.at[n_actions:n_out].set(params["bc2"])

    return {
        "w1blk": w1blk,
        "b1": params["b1"].reshape(1, -1).astype(jnp.float32),
        "w2": params["w2"].astype(jnp.bfloat16),                 # [4,4,32,64]
        "b2": params["b2"].reshape(1, -1).astype(jnp.float32),
        "w3": params["w3"].astype(jnp.bfloat16),                 # [3,3,64,64]
        "b3": params["b3"].reshape(1, -1).astype(jnp.float32),
        "wh1": wh1,
        "bh1": bh1.reshape(1, -1),
        "wh2": wh2.astype(jnp.bfloat16),
        "bh2": bh2.reshape(1, -1),
    }


# ---------------------------------------------------------------------------
# Forward pass (matches AtariPGN.forward semantics)
# ---------------------------------------------------------------------------
def atari_pgn_forward(prep, x_nchw, n_actions):
    B, C, H, W = x_nchw.shape
    assert H % 4 == 0 and W % 4 == 0, "spatial dims must be multiples of the conv1 stride"
    # NCHW uint8 -> NHWC -> space-to-depth by the conv1 stride (block=4).
    # Pure uint8 permutation in XLA (same byte count as the raw frame, no
    # im2col duplication); the kernel reads the raw bytes and the x.float()/256
    # scale is folded into conv1's weights.
    x = jnp.transpose(x_nchw, (0, 2, 3, 1))
    HB, WB = H // 4, W // 4
    xs = (x.reshape(B, HB, 4, WB, 4, C)
            .transpose(0, 1, 3, 2, 4, 5)
            .reshape(B, HB, WB, 16 * C))                         # uint8
    out = _fused_forward(xs, prep)                               # [B, 128] f32
    actor = out[:, :n_actions]
    critic = out[:, n_actions:n_actions + 1]
    return actor, critic


# ---------------------------------------------------------------------------
# Pure-JAX f32 reference (for correctness check)
# ---------------------------------------------------------------------------
def reference_forward(params, x_nchw):
    fx = x_nchw.astype(jnp.float32) / 256.0
    x = jnp.transpose(fx, (0, 2, 3, 1))

    def conv(x, w, b, s):
        y = jax.lax.conv_general_dilated(
            x, w, (s, s), "VALID", dimension_numbers=("NHWC", "HWIO", "NHWC"))
        return jax.nn.relu(y + b)

    h = conv(x, params["w1"], params["b1"], 4)
    h = conv(h, params["w2"], params["b2"], 2)
    h = conv(h, params["w3"], params["b3"], 1)
    conv_out = jnp.transpose(h, (0, 3, 1, 2)).reshape(x_nchw.shape[0], -1)
    a = jax.nn.relu(conv_out @ params["wa1"] + params["ba1"])
    actor = a @ params["wa2"] + params["ba2"]
    c = jax.nn.relu(conv_out @ params["wc1"] + params["bc1"])
    critic = c @ params["wc2"] + params["bc2"]
    return actor, critic


if __name__ == "__main__":
    # Small Atari-like input: batch=2, 4 stacked frames, 36x36 spatial
    # (36 is the smallest spatial size the 8/4 -> 4/2 -> 3/1 conv stack admits
    # with a non-degenerate output; conv_out_size = 64).
    B, C, H, W = 2, 4, 36, 36
    N_ACTIONS = 6

    key = jax.random.PRNGKey(0)
    k_x, k_p = jax.random.split(key)
    x = jax.random.randint(k_x, (B, C, H, W), 0, 256, dtype=jnp.int32).astype(jnp.uint8)
    params = init_params(k_p, C, N_ACTIONS, H, W)
    prep = prepare_pallas_params(params, N_ACTIONS, H, W)

    fwd = jax.jit(functools.partial(atari_pgn_forward, n_actions=N_ACTIONS))
    actor, critic = jax.block_until_ready(fwd(prep, x))
    ref_actor, ref_critic = jax.block_until_ready(reference_forward(params, x))

    assert actor.shape == (B, N_ACTIONS) and critic.shape == (B, 1)
    assert jnp.all(jnp.isfinite(actor)) and jnp.all(jnp.isfinite(critic))
    assert jnp.allclose(actor, ref_actor, rtol=2e-2, atol=2e-2), (
        float(jnp.max(jnp.abs(actor - ref_actor))))
    assert jnp.allclose(critic, ref_critic, rtol=2e-2, atol=2e-2), (
        float(jnp.max(jnp.abs(critic - ref_critic))))

    print("KERNEL_OK")
</pallas_src>

<mosaic_0001>
module attributes {stable_mosaic.version = 11 : i64} {
  func.func @_fused_kernel(%arg0: i32, %arg1: memref<2x9x9x64xi8, #tpu.memory_space<vmem>>, %arg2: memref<4x64x32xbf16, #tpu.memory_space<vmem>>, %arg3: memref<1x32xf32, #tpu.memory_space<vmem>>, %arg4: memref<4x4x32x64xbf16, #tpu.memory_space<vmem>>, %arg5: memref<1x64xf32, #tpu.memory_space<vmem>>, %arg6: memref<3x3x64x64xbf16, #tpu.memory_space<vmem>>, %arg7: memref<1x64xf32, #tpu.memory_space<vmem>>, %arg8: memref<64x1024xbf16, #tpu.memory_space<vmem>>, %arg9: memref<1x1024xf32, #tpu.memory_space<vmem>>, %arg10: memref<1024x128xbf16, #tpu.memory_space<vmem>>, %arg11: memref<1x128xf32, #tpu.memory_space<vmem>>, %arg12: memref<2x128xf32, #tpu.memory_space<vmem>>) attributes {dimension_semantics = [#tpu.dimension_semantics<arbitrary>], iteration_bounds = array<i64: 1>, scalar_prefetch = 0 : i64, scratch_operands = 0 : i64, tpu.core_type = #tpu.core_type<tc>, window_params = [{pipeline_mode = #tpu.pipeline_mode<synchronous>, transform_indices = @transform_0, window_bounds = array<i64: 2, 9, 9, 64>}, {pipeline_mode = #tpu.pipeline_mode<synchronous>, transform_indices = @transform_1, window_bounds = array<i64: 4, 64, 32>}, {pipeline_mode = #tpu.pipeline_mode<synchronous>, transform_indices = @transform_2, window_bounds = array<i64: 1, 32>}, {pipeline_mode = #tpu.pipeline_mode<synchronous>, transform_indices = @transform_3, window_bounds = array<i64: 4, 4, 32, 64>}, {pipeline_mode = #tpu.pipeline_mode<synchronous>, transform_indices = @transform_4, window_bounds = array<i64: 1, 64>}, {pipeline_mode = #tpu.pipeline_mode<synchronous>, transform_indices = @transform_5, window_bounds = array<i64: 3, 3, 64, 64>}, {pipeline_mode = #tpu.pipeline_mode<synchronous>, transform_indices = @transform_6, window_bounds = array<i64: 1, 64>}, {pipeline_mode = #tpu.pipeline_mode<synchronous>, transform_indices = @transform_7, window_bounds = array<i64: 64, 1024>}, {pipeline_mode = #tpu.pipeline_mode<synchronous>, transform_indices = @transform_8, window_bounds = array<i64: 1, 1024>}, {pipeline_mode = #tpu.pipeline_mode<synchronous>, transform_indices = @transform_9, window_bounds = array<i64: 1024, 128>}, {pipeline_mode = #tpu.pipeline_mode<synchronous>, transform_indices = @transform_10, window_bounds = array<i64: 1, 128>}, {pipeline_mode = #tpu.pipeline_mode<synchronous>, transform_indices = @transform_11, window_bounds = array<i64: 2, 128>}]} {
    %cst = arith.constant 0.000000e+00 : f32
    %0 = vector.broadcast %cst : f32 to vector<128x32xf32>
    %c0 = arith.constant 0 : index
    %c0_0 = arith.constant 0 : index
    %c0_1 = arith.constant 0 : index
    %c0_2 = arith.constant 0 : index
    %1 = vector.load %arg1[%c0, %c0_0, %c0_1, %c0_2] : memref<2x9x9x64xi8, #tpu.memory_space<vmem>>, vector<2x8x8x64xi8>
    %2 = arith.uitofp %1 : vector<2x8x8x64xi8> to vector<2x8x8x64xf32>
    %3 = vector.shape_cast %2 : vector<2x8x8x64xf32> to vector<128x64xf32>
    %4 = arith.truncf %3 : vector<128x64xf32> to vector<128x64xbf16>
    %c0_3 = arith.constant 0 : index
    %c0_4 = arith.constant 0 : index
    %c0_5 = arith.constant 0 : index
    %5 = vector.load %arg2[%c0_3, %c0_4, %c0_5] : memref<4x64x32xbf16, #tpu.memory_space<vmem>>, vector<1x64x32xbf16>
    %6 = vector.shape_cast %5 : vector<1x64x32xbf16> to vector<64x32xbf16>
    %cst_6 = arith.constant dense<0.000000e+00> : vector<128x32xf32>
    %7 = tpu.matmul %4, %6, %cst_6 {dimension_numbers = #tpu.dot_dimension_numbers<[1], [0], [0], [1], [0, 0, 1, 1], [], []>} : vector<128x64xbf16>, vector<64x32xbf16>, vector<128x32xf32> -> vector<128x32xf32>
    %8 = arith.addf %0, %7 : vector<128x32xf32>
    %c0_7 = arith.constant 0 : index
    %c0_8 = arith.constant 0 : index
    %c1 = arith.constant 1 : index
    %c0_9 = arith.constant 0 : index
    %9 = vector.load %arg1[%c0_7, %c0_8, %c1, %c0_9] : memref<2x9x9x64xi8, #tpu.memory_space<vmem>>, vector<2x8x8x64xi8>
    %10 = arith.uitofp %9 : vector<2x8x8x64xi8> to vector<2x8x8x64xf32>
    %11 = vector.shape_cast %10 : vector<2x8x8x64xf32> to vector<128x64xf32>
    %12 = arith.truncf %11 : vector<128x64xf32> to vector<128x64xbf16>
    %c1_10 = arith.constant 1 : index
    %c0_11 = arith.constant 0 : index
    %c0_12 = arith.constant 0 : index
    %13 = vector.load %arg2[%c1_10, %c0_11, %c0_12] : memref<4x64x32xbf16, #tpu.memory_space<vmem>>, vector<1x64x32xbf16>
    %14 = vector.shape_cast %13 : vector<1x64x32xbf16> to vector<64x32xbf16>
    %cst_13 = arith.constant dense<0.000000e+00> : vector<128x32xf32>
    %15 = tpu.matmul %12, %14, %cst_13 {dimension_numbers = #tpu.dot_dimension_numbers<[1], [0], [0], [1], [0, 0, 1, 1], [], []>} : vector<128x64xbf16>, vector<64x32xbf16>, vector<128x32xf32> -> vector<128x32xf32>
    %16 = arith.addf %8, %15 : vector<128x32xf32>
    %c0_14 = arith.constant 0 : index
    %c1_15 = arith.constant 1 : index
    %c0_16 = arith.constant 0 : index
    %c0_17 = arith.constant 0 : index
    %17 = vector.load %arg1[%c0_14, %c1_15, %c0_16, %c0_17] : memref<2x9x9x64xi8, #tpu.memory_space<vmem>>, vector<2x8x8x64xi8>
    %18 = arith.uitofp %17 : vector<2x8x8x64xi8> to vector<2x8x8x64xf32>
    %19 = vector.shape_cast %18 : vector<2x8x8x64xf32> to vector<128x64xf32>
    %20 = arith.truncf %19 : vector<128x64xf32> to vector<128x64xbf16>
    %c2 = arith.constant 2 : index
    %c0_18 = arith.constant 0 : index
    %c0_19 = arith.constant 0 : index
    %21 = vector.load %arg2[%c2, %c0_18, %c0_19] : memref<4x64x32xbf16, #tpu.memory_space<vmem>>, vector<1x64x32xbf16>
    %22 = vector.shape_cast %21 : vector<1x64x32xbf16> to vector<64x32xbf16>
    %cst_20 = arith.constant dense<0.000000e+00> : vector<128x32xf32>
    %23 = tpu.matmul %20, %22, %cst_20 {dimension_numbers = #tpu.dot_dimension_numbers<[1], [0], [0], [1], [0, 0, 1, 1], [], []>} : vector<128x64xbf16>, vector<64x32xbf16>, vector<128x32xf32> -> vector<128x32xf32>
    %24 = arith.addf %16, %23 : vector<128x32xf32>
    %c0_21 = arith.constant 0 : index
    %c1_22 = arith.constant 1 : index
    %c1_23 = arith.constant 1 : index
    %c0_24 = arith.constant 0 : index
    %25 = vector.load %arg1[%c0_21, %c1_22, %c1_23, %c0_24] : memref<2x9x9x64xi8, #tpu.memory_space<vmem>>, vector<2x8x8x64xi8>
    %26 = arith.uitofp %25 : vector<2x8x8x64xi8> to vector<2x8x8x64xf32>
    %27 = vector.shape_cast %26 : vector<2x8x8x64xf32> to vector<128x64xf32>
    %28 = arith.truncf %27 : vector<128x64xf32> to vector<128x64xbf16>
    %c3 = arith.constant 3 : index
    %c0_25 = arith.constant 0 : index
    %c0_26 = arith.constant 0 : index
    %29 = vector.load %arg2[%c3, %c0_25, %c0_26] : memref<4x64x32xbf16, #tpu.memory_space<vmem>>, vector<1x64x32xbf16>
    %30 = vector.shape_cast %29 : vector<1x64x32xbf16> to vector<64x32xbf16>
    %cst_27 = arith.constant dense<0.000000e+00> : vector<128x32xf32>
    %31 = tpu.matmul %28, %30, %cst_27 {dimension_numbers = #tpu.dot_dimension_numbers<[1], [0], [0], [1], [0, 0, 1, 1], [], []>} : vector<128x64xbf16>, vector<64x32xbf16>, vector<128x32xf32> -> vector<128x32xf32>
    %32 = arith.addf %24, %31 : vector<128x32xf32>
    %c0_28 = arith.constant 0 : index
    %c0_29 = arith.constant 0 : index
    %33 = vector.load %arg3[%c0_28, %c0_29] : memref<1x32xf32, #tpu.memory_space<vmem>>, vector<1x32xf32>
    %34 = vector.broadcast %33 : vector<1x32xf32> to vector<128x32xf32>
    %35 = arith.addf %32, %34 : vector<128x32xf32>
    %cst_30 = arith.constant 0.000000e+00 : f32
    %36 = vector.broadcast %cst_30 : f32 to vector<128x32xf32>
    %37 = arith.maximumf %35, %36 : vector<128x32xf32>
    %38 = vector.shape_cast %37 : vector<128x32xf32> to vector<2x8x8x32xf32>
    %c0_31 = arith.constant 0 : index
    %c0_32 = arith.constant 0 : index
    %c0_33 = arith.constant 0 : index
    %c0_34 = arith.constant 0 : index
    %39 = vector.load %arg4[%c0_31, %c0_32, %c0_33, %c0_34] : memref<4x4x32x64xbf16, #tpu.memory_space<vmem>>, vector<1x1x32x64xbf16>
    %40 = vector.shape_cast %39 : vector<1x1x32x64xbf16> to vector<32x64xbf16>
    %c0_35 = arith.constant 0 : index
    %c1_36 = arith.constant 1 : index
    %c0_37 = arith.constant 0 : index
    %c0_38 = arith.constant 0 : index
    %41 = vector.load %arg4[%c0_35, %c1_36, %c0_37, %c0_38] : memref<4x4x32x64xbf16, #tpu.memory_space<vmem>>, vector<1x1x32x64xbf16>
    %42 = vector.shape_cast %41 : vector<1x1x32x64xbf16> to vector<32x64xbf16>
    %c0_39 = arith.constant 0 : index
    %c2_40 = arith.constant 2 : index
    %c0_41 = arith.constant 0 : index
    %c0_42 = arith.constant 0 : index
    %43 = vector.load %arg4[%c0_39, %c2_40, %c0_41, %c0_42] : memref<4x4x32x64xbf16, #tpu.memory_space<vmem>>, vector<1x1x32x64xbf16>
    %44 = vector.shape_cast %43 : vector<1x1x32x64xbf16> to vector<32x64xbf16>
    %c0_43 = arith.constant 0 : index
    %c3_44 = arith.constant 3 : index
    %c0_45 = arith.constant 0 : index
    %c0_46 = arith.constant 0 : index
    %45 = vector.load %arg4[%c0_43, %c3_44, %c0_45, %c0_46] : memref<4x4x32x64xbf16, #tpu.memory_space<vmem>>, vector<1x1x32x64xbf16>
    %46 = vector.shape_cast %45 : vector<1x1x32x64xbf16> to vector<32x64xbf16>
    %c1_47 = arith.constant 1 : index
    %c0_48 = arith.constant 0 : index
    %c0_49 = arith.constant 0 : index
    %c0_50 = arith.constant 0 : index
    %47 = vector.load %arg4[%c1_47, %c0_48, %c0_49, %c0_50] : memref<4x4x32x64xbf16, #tpu.memory_space<vmem>>, vector<1x1x32x64xbf16>
    %48 = vector.shape_cast %47 : vector<1x1x32x64xbf16> to vector<32x64xbf16>
    %c1_51 = arith.constant 1 : index
    %c1_52 = arith.constant 1 : index
    %c0_53 = arith.constant 0 : index
    %c0_54 = arith.constant 0 : index
    %49 = vector.load %arg4[%c1_51, %c1_52, %c0_53, %c0_54] : memref<4x4x32x64xbf16, #tpu.memory_space<vmem>>, vector<1x1x32x64xbf16>
    %50 = vector.shape_cast %49 : vector<1x1x32x64xbf16> to vector<32x64xbf16>
    %c1_55 = arith.constant 1 : index
    %c2_56 = arith.constant 2 : index
    %c0_57 = arith.constant 0 : index
    %c0_58 = arith.constant 0 : index
    %51 = vector.load %arg4[%c1_55, %c2_56, %c0_57, %c0_58] : memref<4x4x32x64xbf16, #tpu.memory_space<vmem>>, vector<1x1x32x64xbf16>
    %52 = vector.shape_cast %51 : vector<1x1x32x64xbf16> to vector<32x64xbf16>
    %c1_59 = arith.constant 1 : index
    %c3_60 = arith.constant 3 : index
    %c0_61 = arith.constant 0 : index
    %c0_62 = arith.constant 0 : index
    %53 = vector.load %arg4[%c1_59, %c3_60, %c0_61, %c0_62] : memref<4x4x32x64xbf16, #tpu.memory_space<vmem>>, vector<1x1x32x64xbf16>
    %54 = vector.shape_cast %53 : vector<1x1x32x64xbf16> to vector<32x64xbf16>
    %c2_63 = arith.constant 2 : index
    %c0_64 = arith.constant 0 : index
    %c0_65 = arith.constant 0 : index
    %c0_66 = arith.constant 0 : index
    %55 = vector.load %arg4[%c2_63, %c0_64, %c0_65, %c0_66] : memref<4x4x32x64xbf16, #tpu.memory_space<vmem>>, vector<1x1x32x64xbf16>
    %56 = vector.shape_cast %55 : vector<1x1x32x64xbf16> to vector<32x64xbf16>
    %c2_67 = arith.constant 2 : index
    %c1_68 = arith.constant 1 : index
    %c0_69 = arith.constant 0 : index
    %c0_70 = arith.constant 0 : index
    %57 = vector.load %arg4[%c2_67, %c1_68, %c0_69, %c0_70] : memref<4x4x32x64xbf16, #tpu.memory_space<vmem>>, vector<1x1x32x64xbf16>
    %58 = vector.shape_cast %57 : vector<1x1x32x64xbf16> to vector<32x64xbf16>
    %c2_71 = arith.constant 2 : index
    %c2_72 = arith.constant 2 : index
    %c0_73 = arith.constant 0 : index
    %c0_74 = arith.constant 0 : index
    %59 = vector.load %arg4[%c2_71, %c2_72, %c0_73, %c0_74] : memref<4x4x32x64xbf16, #tpu.memory_space<vmem>>, vector<1x1x32x64xbf16>
    %60 = vector.shape_cast %59 : vector<1x1x32x64xbf16> to vector<32x64xbf16>
    %c2_75 = arith.constant 2 : index
    %c3_76 = arith.constant 3 : index
    %c0_77 = arith.constant 0 : index
    %c0_78 = arith.constant 0 : index
    %61 = vector.load %arg4[%c2_75, %c3_76, %c0_77, %c0_78] : memref<4x4x32x64xbf16, #tpu.memory_space<vmem>>, vector<1x1x32x64xbf16>
    %62 = vector.shape_cast %61 : vector<1x1x32x64xbf16> to vector<32x64xbf16>
    %c3_79 = arith.constant 3 : index
    %c0_80 = arith.constant 0 : index
    %c0_81 = arith.constant 0 : index
    %c0_82 = arith.constant 0 : index
    %63 = vector.load %arg4[%c3_79, %c0_80, %c0_81, %c0_82] : memref<4x4x32x64xbf16, #tpu.memory_space<vmem>>, vector<1x1x32x64xbf16>
    %64 = vector.shape_cast %63 : vector<1x1x32x64xbf16> to vector<32x64xbf16>
    %c3_83 = arith.constant 3 : index
    %c1_84 = arith.constant 1 : index
    %c0_85 = arith.constant 0 : index
    %c0_86 = arith.constant 0 : index
    %65 = vector.load %arg4[%c3_83, %c1_84, %c0_85, %c0_86] : memref<4x4x32x64xbf16, #tpu.memory_space<vmem>>, vector<1x1x32x64xbf16>
    %66 = vector.shape_cast %65 : vector<1x1x32x64xbf16> to vector<32x64xbf16>
    %c3_87 = arith.constant 3 : index
    %c2_88 = arith.constant 2 : index
    %c0_89 = arith.constant 0 : index
    %c0_90 = arith.constant 0 : index
    %67 = vector.load %arg4[%c3_87, %c2_88, %c0_89, %c0_90] : memref<4x4x32x64xbf16, #tpu.memory_space<vmem>>, vector<1x1x32x64xbf16>
    %68 = vector.shape_cast %67 : vector<1x1x32x64xbf16> to vector<32x64xbf16>
    %c3_91 = arith.constant 3 : index
    %c3_92 = arith.constant 3 : index
    %c0_93 = arith.constant 0 : index
    %c0_94 = arith.constant 0 : index
    %69 = vector.load %arg4[%c3_91, %c3_92, %c0_93, %c0_94] : memref<4x4x32x64xbf16, #tpu.memory_space<vmem>>, vector<1x1x32x64xbf16>
    %70 = vector.shape_cast %69 : vector<1x1x32x64xbf16> to vector<32x64xbf16>
    %c0_95 = arith.constant 0 : index
    %c0_96 = arith.constant 0 : index
    %71 = vector.load %arg5[%c0_95, %c0_96] : memref<1x64xf32, #tpu.memory_space<vmem>>, vector<1x64xf32>
    %cst_97 = arith.constant 0.000000e+00 : f32
    %72 = vector.broadcast %cst_97 : f32 to vector<2x64xf32>
    %73 = vector.extract_strided_slice %38 {offsets = [0, 0, 0, 0], sizes = [2, 1, 1, 32], strides = [1, 1, 1, 1]} : vector<2x8x8x32xf32> to vector<2x1x1x32xf32>
    %74 = vector.shape_cast %73 : vector<2x1x1x32xf32> to vector<2x32xf32>
    %75 = arith.truncf %74 : vector<2x32xf32> to vector<2x32xbf16>
    %cst_98 = arith.constant dense<0.000000e+00> : vector<2x64xf32>
    %76 = tpu.matmul %75, %40, %cst_98 {dimension_numbers = #tpu.dot_dimension_numbers<[1], [0], [0], [1], [0, 0, 1, 1], [], []>} : vector<2x32xbf16>, vector<32x64xbf16>, vector<2x64xf32> -> vector<2x64xf32>
    %77 = arith.addf %72, %76 : vector<2x64xf32>
    %78 = vector.extract_strided_slice %38 {offsets = [0, 0, 1, 0], sizes = [2, 1, 1, 32], strides = [1, 1, 1, 1]} : vector<2x8x8x32xf32> to vector<2x1x1x32xf32>
    %79 = vector.shape_cast %78 : vector<2x1x1x32xf32> to vector<2x32xf32>
    %80 = arith.truncf %79 : vector<2x32xf32> to vector<2x32xbf16>
    %cst_99 = arith.constant dense<0.000000e+00> : vector<2x64xf32>
    %81 = tpu.matmul %80, %42, %cst_99 {dimension_numbers = #tpu.dot_dimension_numbers<[1], [0], [0], [1], [0, 0, 1, 1], [], []>} : vector<2x32xbf16>, vector<32x64xbf16>, vector<2x64xf32> -> vector<2x64xf32>
    %82 = arith.addf %77, %81 : vector<2x64xf32>
    %83 = vector.extract_strided_slice %38 {offsets = [0, 0, 2, 0], sizes = [2, 1, 1, 32], strides = [1, 1, 1, 1]} : vector<2x8x8x32xf32> to vector<2x1x1x32xf32>
    %84 = vector.shape_cast %83 : vector<2x1x1x32xf32> to vector<2x32xf32>
    %85 = arith.truncf %84 : vector<2x32xf32> to vector<2x32xbf16>
    %cst_100 = arith.constant dense<0.000000e+00> : vector<2x64xf32>
    %86 = tpu.matmul %85, %44, %cst_100 {dimension_numbers = #tpu.dot_dimension_numbers<[1], [0], [0], [1], [0, 0, 1, 1], [], []>} : vector<2x32xbf16>, vector<32x64xbf16>, vector<2x64xf32> -> vector<2x64xf32>
    %87 = arith.addf %82, %86 : vector<2x64xf32>
    %88 = vector.extract_strided_slice %38 {offsets = [0, 0, 3, 0], sizes = [2, 1, 1, 32], strides = [1, 1, 1, 1]} : vector<2x8x8x32xf32> to vector<2x1x1x32xf32>
    %89 = vector.shape_cast %88 : vector<2x1x1x32xf32> to vector<2x32xf32>
    %90 = arith.truncf %89 : vector<2x32xf32> to vector<2x32xbf16>
    %cst_101 = arith.constant dense<0.000000e+00> : vector<2x64xf32>
    %91 = tpu.matmul %90, %46, %cst_101 {dimension_numbers = #tpu.dot_dimension_numbers<[1], [0], [0], [1], [0, 0, 1, 1], [], []>} : vector<2x32xbf16>, vector<32x64xbf16>, vector<2x64xf32> -> vector<2x64xf32>
    %92 = arith.addf %87, %91 : vector<2x64xf32>
    %93 = vector.extract_strided_slice %38 {offsets = [0, 1, 0, 0], sizes = [2, 1, 1, 32], strides = [1, 1, 1, 1]} : vector<2x8x8x32xf32> to vector<2x1x1x32xf32>
    %94 = vector.shape_cast %93 : vector<2x1x1x32xf32> to vector<2x32xf32>
    %95 = arith.truncf %94 : vector<2x32xf32> to vector<2x32xbf16>
    %cst_102 = arith.constant dense<0.000000e+00> : vector<2x64xf32>
    %96 = tpu.matmul %95, %48, %cst_102 {dimension_numbers = #tpu.dot_dimension_numbers<[1], [0], [0], [1], [0, 0, 1, 1], [], []>} : vector<2x32xbf16>, vector<32x64xbf16>, vector<2x64xf32> -> vector<2x64xf32>
    %97 = arith.addf %92, %96 : vector<2x64xf32>
    %98 = vector.extract_strided_slice %38 {offsets = [0, 1, 1, 0], sizes = [2, 1, 1, 32], strides = [1, 1, 1, 1]} : vector<2x8x8x32xf32> to vector<2x1x1x32xf32>
    %99 = vector.shape_cast %98 : vector<2x1x1x32xf32> to vector<2x32xf32>
    %100 = arith.truncf %99 : vector<2x32xf32> to vector<2x32xbf16>
    %cst_103 = arith.constant dense<0.000000e+00> : vector<2x64xf32>
    %101 = tpu.matmul %100, %50, %cst_103 {dimension_numbers = #tpu.dot_dimension_numbers<[1], [0], [0], [1], [0, 0, 1, 1], [], []>} : vector<2x32xbf16>, vector<32x64xbf16>, vector<2x64xf32> -> vector<2x64xf32>
    %102 = arith.addf %97, %101 : vector<2x64xf32>
    %103 = vector.extract_strided_slice %38 {offsets = [0, 1, 2, 0], sizes = [2, 1, 1, 32], strides = [1, 1, 1, 1]} : vector<2x8x8x32xf32> to vector<2x1x1x32xf32>
    %104 = vector.shape_cast %103 : vector<2x1x1x32xf32> to vector<2x32xf32>
    %105 = arith.truncf %104 : vector<2x32xf32> to vector<2x32xbf16>
    %cst_104 = arith.constant dense<0.000000e+00> : vector<2x64xf32>
    %106 = tpu.matmul %105, %52, %cst_104 {dimension_numbers = #tpu.dot_dimension_numbers<[1], [0], [0], [1], [0, 0, 1, 1], [], []>} : vector<2x32xbf16>, vector<32x64xbf16>, vector<2x64xf32> -> vector<2x64xf32>
    %107 = arith.addf %102, %106 : vector<2x64xf32>
    %108 = vector.extract_strided_slice %38 {offsets = [0, 1, 3, 0], sizes = [2, 1, 1, 32], strides = [1, 1, 1, 1]} : vector<2x8x8x32xf32> to vector<2x1x1x32xf32>
    %109 = vector.shape_cast %108 : vector<2x1x1x32xf32> to vector<2x32xf32>
    %110 = arith.truncf %109 : vector<2x32xf32> to vector<2x32xbf16>
    %cst_105 = arith.constant dense<0.000000e+00> : vector<2x64xf32>
    %111 = tpu.matmul %110, %54, %cst_105 {dimension_numbers = #tpu.dot_dimension_numbers<[1], [0], [0], [1], [0, 0, 1, 1], [], []>} : vector<2x32xbf16>, vector<32x64xbf16>, vector<2x64xf32> -> vector<2x64xf32>
    %112 = arith.addf %107, %111 : vector<2x64xf32>
    %113 = vector.extract_strided_slice %38 {offsets = [0, 2, 0, 0], sizes = [2, 1, 1, 32], strides = [1, 1, 1, 1]} : vector<2x8x8x32xf32> to vector<2x1x1x32xf32>
    %114 = vector.shape_cast %113 : vector<2x1x1x32xf32> to vector<2x32xf32>
    %115 = arith.truncf %114 : vector<2x32xf32> to vector<2x32xbf16>
    %cst_106 = arith.constant dense<0.000000e+00> : vector<2x64xf32>
    %116 = tpu.matmul %115, %56, %cst_106 {dimension_numbers = #tpu.dot_dimension_numbers<[1], [0], [0], [1], [0, 0, 1, 1], [], []>} : vector<2x32xbf16>, vector<32x64xbf16>, vector<2x64xf32> -> vector<2x64xf32>
    %117 = arith.addf %112, %116 : vector<2x64xf32>
    %118 = vector.extract_strided_slice %38 {offsets = [0, 2, 1, 0], sizes = [2, 1, 1, 32], strides = [1, 1, 1, 1]} : vector<2x8x8x32xf32> to vector<2x1x1x32xf32>
    %119 = vector.shape_cast %118 : vector<2x1x1x32xf32> to vector<2x32xf32>
    %120 = arith.truncf %119 : vector<2x32xf32> to vector<2x32xbf16>
    %cst_107 = arith.constant dense<0.000000e+00> : vector<2x64xf32>
    %121 = tpu.matmul %120, %58, %cst_107 {dimension_numbers = #tpu.dot_dimension_numbers<[1], [0], [0], [1], [0, 0, 1, 1], [], []>} : vector<2x32xbf16>, vector<32x64xbf16>, vector<2x64xf32> -> vector<2x64xf32>
    %122 = arith.addf %117, %121 : vector<2x64xf32>
    %123 = vector.extract_strided_slice %38 {offsets = [0, 2, 2, 0], sizes = [2, 1, 1, 32], strides = [1, 1, 1, 1]} : vector<2x8x8x32xf32> to vector<2x1x1x32xf32>
    %124 = vector.shape_cast %123 : vector<2x1x1x32xf32> to vector<2x32xf32>
    %125 = arith.truncf %124 : vector<2x32xf32> to vector<2x32xbf16>
    %cst_108 = arith.constant dense<0.000000e+00> : vector<2x64xf32>
    %126 = tpu.matmul %125, %60, %cst_108 {dimension_numbers = #tpu.dot_dimension_numbers<[1], [0], [0], [1], [0, 0, 1, 1], [], []>} : vector<2x32xbf16>, vector<32x64xbf16>, vector<2x64xf32> -> vector<2x64xf32>
    %127 = arith.addf %122, %126 : vector<2x64xf32>
    %128 = vector.extract_strided_slice %38 {offsets = [0, 2, 3, 0], sizes = [2, 1, 1, 32], strides = [1, 1, 1, 1]} : vector<2x8x8x32xf32> to vector<2x1x1x32xf32>
    %129 = vector.shape_cast %128 : vector<2x1x1x32xf32> to vector<2x32xf32>
    %130 = arith.truncf %129 : vector<2x32xf32> to vector<2x32xbf16>
    %cst_109 = arith.constant dense<0.000000e+00> : vector<2x64xf32>
    %131 = tpu.matmul %130, %62, %cst_109 {dimension_numbers = #tpu.dot_dimension_numbers<[1], [0], [0], [1], [0, 0, 1, 1], [], []>} : vector<2x32xbf16>, vector<32x64xbf16>, vector<2x64xf32> -> vector<2x64xf32>
    %132 = arith.addf %127, %131 : vector<2x64xf32>
    %133 = vector.extract_strided_slice %38 {offsets = [0, 3, 0, 0], sizes = [2, 1, 1, 32], strides = [1, 1, 1, 1]} : vector<2x8x8x32xf32> to vector<2x1x1x32xf32>
    %134 = vector.shape_cast %133 : vector<2x1x1x32xf32> to vector<2x32xf32>
    %135 = arith.truncf %134 : vector<2x32xf32> to vector<2x32xbf16>
    %cst_110 = arith.constant dense<0.000000e+00> : vector<2x64xf32>
    %136 = tpu.matmul %135, %64, %cst_110 {dimension_numbers = #tpu.dot_dimension_numbers<[1], [0], [0], [1], [0, 0, 1, 1], [], []>} : vector<2x32xbf16>, vector<32x64xbf16>, vector<2x64xf32> -> vector<2x64xf32>
    %137 = arith.addf %132, %136 : vector<2x64xf32>
    %138 = vector.extract_strided_slice %38 {offsets = [0, 3, 1, 0], sizes = [2, 1, 1, 32], strides = [1, 1, 1, 1]} : vector<2x8x8x32xf32> to vector<2x1x1x32xf32>
    %139 = vector.shape_cast %138 : vector<2x1x1x32xf32> to vector<2x32xf32>
    %140 = arith.truncf %139 : vector<2x32xf32> to vector<2x32xbf16>
    %cst_111 = arith.constant dense<0.000000e+00> : vector<2x64xf32>
    %141 = tpu.matmul %140, %66, %cst_111 {dimension_numbers = #tpu.dot_dimension_numbers<[1], [0], [0], [1], [0, 0, 1, 1], [], []>} : vector<2x32xbf16>, vector<32x64xbf16>, vector<2x64xf32> -> vector<2x64xf32>
    %142 = arith.addf %137, %141 : vector<2x64xf32>
    %143 = vector.extract_strided_slice %38 {offsets = [0, 3, 2, 0], sizes = [2, 1, 1, 32], strides = [1, 1, 1, 1]} : vector<2x8x8x32xf32> to vector<2x1x1x32xf32>
    %144 = vector.shape_cast %143 : vector<2x1x1x32xf32> to vector<2x32xf32>
    %145 = arith.truncf %144 : vector<2x32xf32> to vector<2x32xbf16>
    %cst_112 = arith.constant dense<0.000000e+00> : vector<2x64xf32>
    %146 = tpu.matmul %145, %68, %cst_112 {dimension_numbers = #tpu.dot_dimension_numbers<[1], [0], [0], [1], [0, 0, 1, 1], [], []>} : vector<2x32xbf16>, vector<32x64xbf16>, vector<2x64xf32> -> vector<2x64xf32>
    %147 = arith.addf %142, %146 : vector<2x64xf32>
    %148 = vector.extract_strided_slice %38 {offsets = [0, 3, 3, 0], sizes = [2, 1, 1, 32], strides = [1, 1, 1, 1]} : vector<2x8x8x32xf32> to vector<2x1x1x32xf32>
    %149 = vector.shape_cast %148 : vector<2x1x1x32xf32> to vector<2x32xf32>
    %150 = arith.truncf %149 : vector<2x32xf32> to vector<2x32xbf16>
    %cst_113 = arith.constant dense<0.000000e+00> : vector<2x64xf32>
    %151 = tpu.matmul %150, %70, %cst_113 {dimension_numbers = #tpu.dot_dimension_numbers<[1], [0], [0], [1], [0, 0, 1, 1], [], []>} : vector<2x32xbf16>, vector<32x64xbf16>, vector<2x64xf32> -> vector<2x64xf32>
    %152 = arith.addf %147, %151 : vector<2x64xf32>
    %153 = vector.broadcast %71 : vector<1x64xf32> to vector<2x64xf32>
    %154 = arith.addf %152, %153 : vector<2x64xf32>
    %cst_114 = arith.constant 0.000000e+00 : f32
    %155 = vector.broadcast %cst_114 : f32 to vector<2x64xf32>
    %156 = arith.maximumf %154, %155 : vector<2x64xf32>
    %157 = arith.truncf %156 : vector<2x64xf32> to vector<2x64xbf16>
    %cst_115 = arith.constant 0.000000e+00 : f32
    %158 = vector.broadcast %cst_115 : f32 to vector<2x64xf32>
    %159 = vector.extract_strided_slice %38 {offsets = [0, 0, 2, 0], sizes = [2, 1, 1, 32], strides = [1, 1, 1, 1]} : vector<2x8x8x32xf32> to vector<2x1x1x32xf32>
    %160 = vector.shape_cast %159 : vector<2x1x1x32xf32> to vector<2x32xf32>
    %161 = arith.truncf %160 : vector<2x32xf32> to vector<2x32xbf16>
    %cst_116 = arith.constant dense<0.000000e+00> : vector<2x64xf32>
    %162 = tpu.matmul %161, %40, %cst_116 {dimension_numbers = #tpu.dot_dimension_numbers<[1], [0], [0], [1], [0, 0, 1, 1], [], []>} : vector<2x32xbf16>, vector<32x64xbf16>, vector<2x64xf32> -> vector<2x64xf32>
    %163 = arith.addf %158, %162 : vector<2x64xf32>
    %164 = vector.extract_strided_slice %38 {offsets = [0, 0, 3, 0], sizes = [2, 1, 1, 32], strides = [1, 1, 1, 1]} : vector<2x8x8x32xf32> to vector<2x1x1x32xf32>
    %165 = vector.shape_cast %164 : vector<2x1x1x32xf32> to vector<2x32xf32>
    %166 = arith.truncf %165 : vector<2x32xf32> to vector<2x32xbf16>
    %cst_117 = arith.constant dense<0.000000e+00> : vector<2x64xf32>
    %167 = tpu.matmul %166, %42, %cst_117 {dimension_numbers = #tpu.dot_dimension_numbers<[1], [0], [0], [1], [0, 0, 1, 1], [], []>} : vector<2x32xbf16>, vector<32x64xbf16>, vector<2x64xf32> -> vector<2x64xf32>
    %168 = arith.addf %163, %167 : vector<2x64xf32>
    %169 = vector.extract_strided_slice %38 {offsets = [0, 0, 4, 0], sizes = [2, 1, 1, 32], strides = [1, 1, 1, 1]} : vector<2x8x8x32xf32> to vector<2x1x1x32xf32>
    %170 = vector.shape_cast %169 : vector<2x1x1x32xf32> to vector<2x32xf32>
    %171 = arith.truncf %170 : vector<2x32xf32> to vector<2x32xbf16>
    %cst_118 = arith.constant dense<0.000000e+00> : vector<2x64xf32>
    %172 = tpu.matmul %171, %44, %cst_118 {dimension_numbers = #tpu.dot_dimension_numbers<[1], [0], [0], [1], [0, 0, 1, 1], [], []>} : vector<2x32xbf16>, vector<32x64xbf16>, vector<2x64xf32> -> vector<2x64xf32>
    %173 = arith.addf %168, %172 : vector<2x64xf32>
    %174 = vector.extract_strided_slice %38 {offsets = [0, 0, 5, 0], sizes = [2, 1, 1, 32], strides = [1, 1, 1, 1]} : vector<2x8x8x32xf32> to vector<2x1x1x32xf32>
    %175 = vector.shape_cast %174 : vector<2x1x1x32xf32> to vector<2x32xf32>
    %176 = arith.truncf %175 : vector<2x32xf32> to vector<2x32xbf16>
    %cst_119 = arith.constant dense<0.000000e+00> : vector<2x64xf32>
    %177 = tpu.matmul %176, %46, %cst_119 {dimension_numbers = #tpu.dot_dimension_numbers<[1], [0], [0], [1], [0, 0, 1, 1], [], []>} : vector<2x32xbf16>, vector<32x64xbf16>, vector<2x64xf32> -> vector<2x64xf32>
    %178 = arith.addf %173, %177 : vector<2x64xf32>
    %179 = vector.extract_strided_slice %38 {offsets = [0, 1, 2, 0], sizes = [2, 1, 1, 32], strides = [1, 1, 1, 1]} : vector<2x8x8x32xf32> to vector<2x1x1x32xf32>
    %180 = vector.shape_cast %179 : vector<2x1x1x32xf32> to vector<2x32xf32>
    %181 = arith.truncf %180 : vector<2x32xf32> to vector<2x32xbf16>
    %cst_120 = arith.constant dense<0.000000e+00> : vector<2x64xf32>
    %182 = tpu.matmul %181, %48, %cst_120 {dimension_numbers = #tpu.dot_dimension_numbers<[1], [0], [0], [1], [0, 0, 1, 1], [], []>} : vector<2x32xbf16>, vector<32x64xbf16>, vector<2x64xf32> -> vector<2x64xf32>
    %183 = arith.addf %178, %182 : vector<2x64xf32>
    %184 = vector.extract_strided_slice %38 {offsets = [0, 1, 3, 0], sizes = [2, 1, 1, 32], strides = [1, 1, 1, 1]} : vector<2x8x8x32xf32> to vector<2x1x1x32xf32>
    %185 = vector.shape_cast %184 : vector<2x1x1x32xf32> to vector<2x32xf32>
    %186 = arith.truncf %185 : vector<2x32xf32> to vector<2x32xbf16>
    %cst_121 = arith.constant dense<0.000000e+00> : vector<2x64xf32>
    %187 = tpu.matmul %186, %50, %cst_121 {dimension_numbers = #tpu.dot_dimension_numbers<[1], [0], [0], [1], [0, 0, 1, 1], [], []>} : vector<2x32xbf16>, vector<32x64xbf16>, vector<2x64xf32> -> vector<2x64xf32>
    %188 = arith.addf %183, %187 : vector<2x64xf32>
    %189 = vector.extract_strided_slice %38 {offsets = [0, 1, 4, 0], sizes = [2, 1, 1, 32], strides = [1, 1, 1, 1]} : vector<2x8x8x32xf32> to vector<2x1x1x32xf32>
    %190 = vector.shape_cast %189 : vector<2x1x1x32xf32> to vector<2x32xf32>
    %191 = arith.truncf %190 : vector<2x32xf32> to vector<2x32xbf16>
    %cst_122 = arith.constant dense<0.000000e+00> : vector<2x64xf32>
    %192 = tpu.matmul %191, %52, %cst_122 {dimension_numbers = #tpu.dot_dimension_numbers<[1], [0], [0], [1], [0, 0, 1, 1], [], []>} : vector<2x32xbf16>, vector<32x64xbf16>, vector<2x64xf32> -> vector<2x64xf32>
    %193 = arith.addf %188, %192 : vector<2x64xf32>
    %194 = vector.extract_strided_slice %38 {offsets = [0, 1, 5, 0], sizes = [2, 1, 1, 32], strides = [1, 1, 1, 1]} : vector<2x8x8x32xf32> to vector<2x1x1x32xf32>
    %195 = vector.shape_cast %194 : vector<2x1x1x32xf32> to vector<2x32xf32>
    %196 = arith.truncf %195 : vector<2x32xf32> to vector<2x32xbf16>
    %cst_123 = arith.constant dense<0.000000e+00> : vector<2x64xf32>
    %197 = tpu.matmul %196, %54, %cst_123 {dimension_numbers = #tpu.dot_dimension_numbers<[1], [0], [0], [1], [0, 0, 1, 1], [], []>} : vector<2x32xbf16>, vector<32x64xbf16>, vector<2x64xf32> -> vector<2x64xf32>
    %198 = arith.addf %193, %197 : vector<2x64xf32>
    %199 = vector.extract_strided_slice %38 {offsets = [0, 2, 2, 0], sizes = [2, 1, 1, 32], strides = [1, 1, 1, 1]} : vector<2x8x8x32xf32> to vector<2x1x1x32xf32>
    %200 = vector.shape_cast %199 : vector<2x1x1x32xf32> to vector<2x32xf32>
    %201 = arith.truncf %200 : vector<2x32xf32> to vector<2x32xbf16>
    %cst_124 = arith.constant dense<0.000000e+00> : vector<2x64xf32>
    %202 = tpu.matmul %201, %56, %cst_124 {dimension_numbers = #tpu.dot_dimension_numbers<[1], [0], [0], [1], [0, 0, 1, 1], [], []>} : vector<2x32xbf16>, vector<32x64xbf16>, vector<2x64xf32> -> vector<2x64xf32>
    %203 = arith.addf %198, %202 : vector<2x64xf32>
    %204 = vector.extract_strided_slice %38 {offsets = [0, 2, 3, 0], sizes = [2, 1, 1, 32], strides = [1, 1, 1, 1]} : vector<2x8x8x32xf32> to vector<2x1x1x32xf32>
    %205 = vector.shape_cast %204 : vector<2x1x1x32xf32> to vector<2x32xf32>
    %206 = arith.truncf %205 : vector<2x32xf32> to vector<2x32xbf16>
    %cst_125 = arith.constant dense<0.000000e+00> : vector<2x64xf32>
    %207 = tpu.matmul %206, %58, %cst_125 {dimension_numbers = #tpu.dot_dimension_numbers<[1], [0], [0], [1], [0, 0, 1, 1], [], []>} : vector<2x32xbf16>, vector<32x64xbf16>, vector<2x64xf32> -> vector<2x64xf32>
    %208 = arith.addf %203, %207 : vector<2x64xf32>
    %209 = vector.extract_strided_slice %38 {offsets = [0, 2, 4, 0], sizes = [2, 1, 1, 32], strides = [1, 1, 1, 1]} : vector<2x8x8x32xf32> to vector<2x1x1x32xf32>
    %210 = vector.shape_cast %209 : vector<2x1x1x32xf32> to vector<2x32xf32>
    %211 = arith.truncf %210 : vector<2x32xf32> to vector<2x32xbf16>
    %cst_126 = arith.constant dense<0.000000e+00> : vector<2x64xf32>
    %212 = tpu.matmul %211, %60, %cst_126 {dimension_numbers = #tpu.dot_dimension_numbers<[1], [0], [0], [1], [0, 0, 1, 1], [], []>} : vector<2x32xbf16>, vector<32x64xbf16>, vector<2x64xf32> -> vector<2x64xf32>
    %213 = arith.addf %208, %212 : vector<2x64xf32>
    %214 = vector.extract_strided_slice %38 {offsets = [0, 2, 5, 0], sizes = [2, 1, 1, 32], strides = [1, 1, 1, 1]} : vector<2x8x8x32xf32> to vector<2x1x1x32xf32>
    %215 = vector.shape_cast %214 : vector<2x1x1x32xf32> to vector<2x32xf32>
    %216 = arith.truncf %215 : vector<2x32xf32> to vector<2x32xbf16>
    %cst_127 = arith.constant dense<0.000000e+00> : vector<2x64xf32>
    %217 = tpu.matmul %216, %62, %cst_127 {dimension_numbers = #tpu.dot_dimension_numbers<[1], [0], [0], [1], [0, 0, 1, 1], [], []>} : vector<2x32xbf16>, vector<32x64xbf16>, vector<2x64xf32> -> vector<2x64xf32>
    %218 = arith.addf %213, %217 : vector<2x64xf32>
    %219 = vector.extract_strided_slice %38 {offsets = [0, 3, 2, 0], sizes = [2, 1, 1, 32], strides = [1, 1, 1, 1]} : vector<2x8x8x32xf32> to vector<2x1x1x32xf32>
    %220 = vector.shape_cast %219 : vector<2x1x1x32xf32> to vector<2x32xf32>
    %221 = arith.truncf %220 : vector<2x32xf32> to vector<2x32xbf16>
    %cst_128 = arith.constant dense<0.000000e+00> : vector<2x64xf32>
    %222 = tpu.matmul %221, %64, %cst_128 {dimension_numbers = #tpu.dot_dimension_numbers<[1], [0], [0], [1], [0, 0, 1, 1], [], []>} : vector<2x32xbf16>, vector<32x64xbf16>, vector<2x64xf32> -> vector<2x64xf32>
    %223 = arith.addf %218, %222 : vector<2x64xf32>
    %224 = vector.extract_strided_slice %38 {offsets = [0, 3, 3, 0], sizes = [2, 1, 1, 32], strides = [1, 1, 1, 1]} : vector<2x8x8x32xf32> to vector<2x1x1x32xf32>
    %225 = vector.shape_cast %224 : vector<2x1x1x32xf32> to vector<2x32xf32>
    %226 = arith.truncf %225 : vector<2x32xf32> to vector<2x32xbf16>
    %cst_129 = arith.constant dense<0.000000e+00> : vector<2x64xf32>
    %227 = tpu.matmul %226, %66, %cst_129 {dimension_numbers = #tpu.dot_dimension_numbers<[1], [0], [0], [1], [0, 0, 1, 1], [], []>} : vector<2x32xbf16>, vector<32x64xbf16>, vector<2x64xf32> -> vector<2x64xf32>
    %228 = arith.addf %223, %227 : vector<2x64xf32>
    %229 = vector.extract_strided_slice %38 {offsets = [0, 3, 4, 0], sizes = [2, 1, 1, 32], strides = [1, 1, 1, 1]} : vector<2x8x8x32xf32> to vector<2x1x1x32xf32>
    %230 = vector.shape_cast %229 : vector<2x1x1x32xf32> to vector<2x32xf32>
    %231 = arith.truncf %230 : vector<2x32xf32> to vector<2x32xbf16>
    %cst_130 = arith.constant dense<0.000000e+00> : vector<2x64xf32>
    %232 = tpu.matmul %231, %68, %cst_130 {dimension_numbers = #tpu.dot_dimension_numbers<[1], [0], [0], [1], [0, 0, 1, 1], [], []>} : vector<2x32xbf16>, vector<32x64xbf16>, vector<2x64xf32> -> vector<2x64xf32>
    %233 = arith.addf %228, %232 : vector<2x64xf32>
    %234 = vector.extract_strided_slice %38 {offsets = [0, 3, 5, 0], sizes = [2, 1, 1, 32], strides = [1, 1, 1, 1]} : vector<2x8x8x32xf32> to vector<2x1x1x32xf32>
    %235 = vector.shape_cast %234 : vector<2x1x1x32xf32> to vector<2x32xf32>
    %236 = arith.truncf %235 : vector<2x32xf32> to vector<2x32xbf16>
    %cst_131 = arith.constant dense<0.000000e+00> : vector<2x64xf32>
    %237 = tpu.matmul %236, %70, %cst_131 {dimension_numbers = #tpu.dot_dimension_numbers<[1], [0], [0], [1], [0, 0, 1, 1], [], []>} : vector<2x32xbf16>, vector<32x64xbf16>, vector<2x64xf32> -> vector<2x64xf32>
    %238 = arith.addf %233, %237 : vector<2x64xf32>
    %239 = vector.broadcast %71 : vector<1x64xf32> to vector<2x64xf32>
    %240 = arith.addf %238, %239 : vector<2x64xf32>
    %cst_132 = arith.constant 0.000000e+00 : f32
    %241 = vector.broadcast %cst_132 : f32 to vector<2x64xf32>
    %242 = arith.maximumf %240, %241 : vector<2x64xf32>
    %243 = arith.truncf %242 : vector<2x64xf32> to vector<2x64xbf16>
    %cst_133 = arith.constant 0.000000e+00 : f32
    %244 = vector.broadcast %cst_133 : f32 to vector<2x64xf32>
    %245 = vector.extract_strided_slice %38 {offsets = [0, 0, 4, 0], sizes = [2, 1, 1, 32], strides = [1, 1, 1, 1]} : vector<2x8x8x32xf32> to vector<2x1x1x32xf32>
    %246 = vector.shape_cast %245 : vector<2x1x1x32xf32> to vector<2x32xf32>
    %247 = arith.truncf %246 : vector<2x32xf32> to vector<2x32xbf16>
    %cst_134 = arith.constant dense<0.000000e+00> : vector<2x64xf32>
    %248 = tpu.matmul %247, %40, %cst_134 {dimension_numbers = #tpu.dot_dimension_numbers<[1], [0], [0], [1], [0, 0, 1, 1], [], []>} : vector<2x32xbf16>, vector<32x64xbf16>, vector<2x64xf32> -> vector<2x64xf32>
    %249 = arith.addf %244, %248 : vector<2x64xf32>
    %250 = vector.extract_strided_slice %38 {offsets = [0, 0, 5, 0], sizes = [2, 1, 1, 32], strides = [1, 1, 1, 1]} : vector<2x8x8x32xf32> to vector<2x1x1x32xf32>
    %251 = vector.shape_cast %250 : vector<2x1x1x32xf32> to vector<2x32xf32>
    %252 = arith.truncf %251 : vector<2x32xf32> to vector<2x32xbf16>
    %cst_135 = arith.constant dense<0.000000e+00> : vector<2x64xf32>
    %253 = tpu.matmul %252, %42, %cst_135 {dimension_numbers = #tpu.dot_dimension_numbers<[1], [0], [0], [1], [0, 0, 1, 1], [], []>} : vector<2x32xbf16>, vector<32x64xbf16>, vector<2x64xf32> -> vector<2x64xf32>
    %254 = arith.addf %249, %253 : vector<2x64xf32>
    %255 = vector.extract_strided_slice %38 {offsets = [0, 0, 6, 0], sizes = [2, 1, 1, 32], strides = [1, 1, 1, 1]} : vector<2x8x8x32xf32> to vector<2x1x1x32xf32>
    %256 = vector.shape_cast %255 : vector<2x1x1x32xf32> to vector<2x32xf32>
    %257 = arith.truncf %256 : vector<2x32xf32> to vector<2x32xbf16>
    %cst_136 = arith.constant dense<0.000000e+00> : vector<2x64xf32>
    %258 = tpu.matmul %257, %44, %cst_136 {dimension_numbers = #tpu.dot_dimension_numbers<[1], [0], [0], [1], [0, 0, 1, 1], [], []>} : vector<2x32xbf16>, vector<32x64xbf16>, vector<2x64xf32> -> vector<2x64xf32>
    %259 = arith.addf %254, %258 : vector<2x64xf32>
    %260 = vector.extract_strided_slice %38 {offsets = [0, 0, 7, 0], sizes = [2, 1, 1, 32], strides = [1, 1, 1, 1]} : vector<2x8x8x32xf32> to vector<2x1x1x32xf32>
    %261 = vector.shape_cast %260 : vector<2x1x1x32xf32> to vector<2x32xf32>
    %262 = arith.truncf %261 : vector<2x32xf32> to vector<2x32xbf16>
    %cst_137 = arith.constant dense<0.000000e+00> : vector<2x64xf32>
    %263 = tpu.matmul %262, %46, %cst_137 {dimension_numbers = #tpu.dot_dimension_numbers<[1], [0], [0], [1], [0, 0, 1, 1], [], []>} : vector<2x32xbf16>, vector<32x64xbf16>, vector<2x64xf32> -> vector<2x64xf32>
    %264 = arith.addf %259, %263 : vector<2x64xf32>
    %265 = vector.extract_strided_slice %38 {offsets = [0, 1, 4, 0], sizes = [2, 1, 1, 32], strides = [1, 1, 1, 1]} : vector<2x8x8x32xf32> to vector<2x1x1x32xf32>
    %266 = vector.shape_cast %265 : vector<2x1x1x32xf32> to vector<2x32xf32>
    %267 = arith.truncf %266 : vector<2x32xf32> to vector<2x32xbf16>
    %cst_138 = arith.constant dense<0.000000e+00> : vector<2x64xf32>
    %268 = tpu.matmul %267, %48, %cst_138 {dimension_numbers = #tpu.dot_dimension_numbers<[1], [0], [0], [1], [0, 0, 1, 1], [], []>} : vector<2x32xbf16>, vector<32x64xbf16>, vector<2x64xf32> -> vector<2x64xf32>
    %269 = arith.addf %264, %268 : vector<2x64xf32>
    %270 = vector.extract_strided_slice %38 {offsets = [0, 1, 5, 0], sizes = [2, 1, 1, 32], strides = [1, 1, 1, 1]} : vector<2x8x8x32xf32> to vector<2x1x1x32xf32>
    %271 = vector.shape_cast %270 : vector<2x1x1x32xf32> to vector<2x32xf32>
    %272 = arith.truncf %271 : vector<2x32xf32> to vector<2x32xbf16>
    %cst_139 = arith.constant dense<0.000000e+00> : vector<2x64xf32>
    %273 = tpu.matmul %272, %50, %cst_139 {dimension_numbers = #tpu.dot_dimension_numbers<[1], [0], [0], [1], [0, 0, 1, 1], [], []>} : vector<2x32xbf16>, vector<32x64xbf16>, vector<2x64xf32> -> vector<2x64xf32>
    %274 = arith.addf %269, %273 : vector<2x64xf32>
    %275 = vector.extract_strided_slice %38 {offsets = [0, 1, 6, 0], sizes = [2, 1, 1, 32], strides = [1, 1, 1, 1]} : vector<2x8x8x32xf32> to vector<2x1x1x32xf32>
    %276 = vector.shape_cast %275 : vector<2x1x1x32xf32> to vector<2x32xf32>
    %277 = arith.truncf %276 : vector<2x32xf32> to vector<2x32xbf16>
    %cst_140 = arith.constant dense<0.000000e+00> : vector<2x64xf32>
    %278 = tpu.matmul %277, %52, %cst_140 {dimension_numbers = #tpu.dot_dimension_numbers<[1], [0], [0], [1], [0, 0, 1, 1], [], []>} : vector<2x32xbf16>, vector<32x64xbf16>, vector<2x64xf32> -> vector<2x64xf32>
    %279 = arith.addf %274, %278 : vector<2x64xf32>
    %280 = vector.extract_strided_slice %38 {offsets = [0, 1, 7, 0], sizes = [2, 1, 1, 32], strides = [1, 1, 1, 1]} : vector<2x8x8x32xf32> to vector<2x1x1x32xf32>
    %281 = vector.shape_cast %280 : vector<2x1x1x32xf32> to vector<2x32xf32>
    %282 = arith.truncf %281 : vector<2x32xf32> to vector<2x32xbf16>
    %cst_141 = arith.constant dense<0.000000e+00> : vector<2x64xf32>
    %283 = tpu.matmul %282, %54, %cst_141 {dimension_numbers = #tpu.dot_dimension_numbers<[1], [0], [0], [1], [0, 0, 1, 1], [], []>} : vector<2x32xbf16>, vector<32x64xbf16>, vector<2x64xf32> -> vector<2x64xf32>
    %284 = arith.addf %279, %283 : vector<2x64xf32>
    %285 = vector.extract_strided_slice %38 {offsets = [0, 2, 4, 0], sizes = [2, 1, 1, 32], strides = [1, 1, 1, 1]} : vector<2x8x8x32xf32> to vector<2x1x1x32xf32>
    %286 = vector.shape_cast %285 : vector<2x1x1x32xf32> to vector<2x32xf32>
    %287 = arith.truncf %286 : vector<2x32xf32> to vector<2x32xbf16>
    %cst_142 = arith.constant dense<0.000000e+00> : vector<2x64xf32>
    %288 = tpu.matmul %287, %56, %cst_142 {dimension_numbers = #tpu.dot_dimension_numbers<[1], [0], [0], [1], [0, 0, 1, 1], [], []>} : vector<2x32xbf16>, vector<32x64xbf16>, vector<2x64xf32> -> vector<2x64xf32>
    %289 = arith.addf %284, %288 : vector<2x64xf32>
    %290 = vector.extract_strided_slice %38 {offsets = [0, 2, 5, 0], sizes = [2, 1, 1, 32], strides = [1, 1, 1, 1]} : vector<2x8x8x32xf32> to vector<2x1x1x32xf32>
    %291 = vector.shape_cast %290 : vector<2x1x1x32xf32> to vector<2x32xf32>
    %292 = arith.truncf %291 : vector<2x32xf32> to vector<2x32xbf16>
    %cst_143 = arith.constant dense<0.000000e+00> : vector<2x64xf32>
    %293 = tpu.matmul %292, %58, %cst_143 {dimension_numbers = #tpu.dot_dimension_numbers<[1], [0], [0], [1], [0, 0, 1, 1], [], []>} : vector<2x32xbf16>, vector<32x64xbf16>, vector<2x64xf32> -> vector<2x64xf32>
    %294 = arith.addf %289, %293 : vector<2x64xf32>
    %295 = vector.extract_strided_slice %38 {offsets = [0, 2, 6, 0], sizes = [2, 1, 1, 32], strides = [1, 1, 1, 1]} : vector<2x8x8x32xf32> to vector<2x1x1x32xf32>
    %296 = vector.shape_cast %295 : vector<2x1x1x32xf32> to vector<2x32xf32>
    %297 = arith.truncf %296 : vector<2x32xf32> to vector<2x32xbf16>
    %cst_144 = arith.constant dense<0.000000e+00> : vector<2x64xf32>
    %298 = tpu.matmul %297, %60, %cst_144 {dimension_numbers = #tpu.dot_dimension_numbers<[1], [0], [0], [1], [0, 0, 1, 1], [], []>} : vector<2x32xbf16>, vector<32x64xbf16>, vector<2x64xf32> -> vector<2x64xf32>
    %299 = arith.addf %294, %298 : vector<2x64xf32>
    %300 = vector.extract_strided_slice %38 {offsets = [0, 2, 7, 0], sizes = [2, 1, 1, 32], strides = [1, 1, 1, 1]} : vector<2x8x8x32xf32> to vector<2x1x1x32xf32>
    %301 = vector.shape_cast %300 : vector<2x1x1x32xf32> to vector<2x32xf32>
    %302 = arith.truncf %301 : vector<2x32xf32> to vector<2x32xbf16>
    %cst_145 = arith.constant dense<0.000000e+00> : vector<2x64xf32>
    %303 = tpu.matmul %302, %62, %cst_145 {dimension_numbers = #tpu.dot_dimension_numbers<[1], [0], [0], [1], [0, 0, 1, 1], [], []>} : vector<2x32xbf16>, vector<32x64xbf16>, vector<2x64xf32> -> vector<2x64xf32>
    %304 = arith.addf %299, %303 : vector<2x64xf32>
    %305 = vector.extract_strided_slice %38 {offsets = [0, 3, 4, 0], sizes = [2, 1, 1, 32], strides = [1, 1, 1, 1]} : vector<2x8x8x32xf32> to vector<2x1x1x32xf32>
    %306 = vector.shape_cast %305 : vector<2x1x1x32xf32> to vector<2x32xf32>
    %307 = arith.truncf %306 : vector<2x32xf32> to vector<2x32xbf16>
    %cst_146 = arith.constant dense<0.000000e+00> : vector<2x64xf32>
    %308 = tpu.matmul %307, %64, %cst_146 {dimension_numbers = #tpu.dot_dimension_numbers<[1], [0], [0], [1], [0, 0, 1, 1], [], []>} : vector<2x32xbf16>, vector<32x64xbf16>, vector<2x64xf32> -> vector<2x64xf32>
    %309 = arith.addf %304, %308 : vector<2x64xf32>
    %310 = vector.extract_strided_slice %38 {offsets = [0, 3, 5, 0], sizes = [2, 1, 1, 32], strides = [1, 1, 1, 1]} : vector<2x8x8x32xf32> to vector<2x1x1x32xf32>
    %311 = vector.shape_cast %310 : vector<2x1x1x32xf32> to vector<2x32xf32>
    %312 = arith.truncf %311 : vector<2x32xf32> to vector<2x32xbf16>
    %cst_147 = arith.constant dense<0.000000e+00> : vector<2x64xf32>
    %313 = tpu.matmul %312, %66, %cst_147 {dimension_numbers = #tpu.dot_dimension_numbers<[1], [0], [0], [1], [0, 0, 1, 1], [], []>} : vector<2x32xbf16>, vector<32x64xbf16>, vector<2x64xf32> -> vector<2x64xf32>
    %314 = arith.addf %309, %313 : vector<2x64xf32>
    %315 = vector.extract_strided_slice %38 {offsets = [0, 3, 6, 0], sizes = [2, 1, 1, 32], strides = [1, 1, 1, 1]} : vector<2x8x8x32xf32> to vector<2x1x1x32xf32>
    %316 = vector.shape_cast %315 : vector<2x1x1x32xf32> to vector<2x32xf32>
    %317 = arith.truncf %316 : vector<2x32xf32> to vector<2x32xbf16>
    %cst_148 = arith.constant dense<0.000000e+00> : vector<2x64xf32>
    %318 = tpu.matmul %317, %68, %cst_148 {dimension_numbers = #tpu.dot_dimension_numbers<[1], [0], [0], [1], [0, 0, 1, 1], [], []>} : vector<2x32xbf16>, vector<32x64xbf16>, vector<2x64xf32> -> vector<2x64xf32>
    %319 = arith.addf %314, %318 : vector<2x64xf32>
    %320 = vector.extract_strided_slice %38 {offsets = [0, 3, 7, 0], sizes = [2, 1, 1, 32], strides = [1, 1, 1, 1]} : vector<2x8x8x32xf32> to vector<2x1x1x32xf32>
    %321 = vector.shape_cast %320 : vector<2x1x1x32xf32> to vector<2x32xf32>
    %322 = arith.truncf %321 : vector<2x32xf32> to vector<2x32xbf16>
    %cst_149 = arith.constant dense<0.000000e+00> : vector<2x64xf32>
    %323 = tpu.matmul %322, %70, %cst_149 {dimension_numbers = #tpu.dot_dimension_numbers<[1], [0], [0], [1], [0, 0, 1, 1], [], []>} : vector<2x32xbf16>, vector<32x64xbf16>, vector<2x64xf32> -> vector<2x64xf32>
    %324 = arith.addf %319, %323 : vector<2x64xf32>
    %325 = vector.broadcast %71 : vector<1x64xf32> to vector<2x64xf32>
    %326 = arith.addf %324, %325 : vector<2x64xf32>
    %cst_150 = arith.constant 0.000000e+00 : f32
    %327 = vector.broadcast %cst_150 : f32 to vector<2x64xf32>
    %328 = arith.maximumf %326, %327 : vector<2x64xf32>
    %329 = arith.truncf %328 : vector<2x64xf32> to vector<2x64xbf16>
    %cst_151 = arith.constant 0.000000e+00 : f32
    %330 = vector.broadcast %cst_151 : f32 to vector<2x64xf32>
    %331 = vector.extract_strided_slice %38 {offsets = [0, 2, 0, 0], sizes = [2, 1, 1, 32], strides = [1, 1, 1, 1]} : vector<2x8x8x32xf32> to vector<2x1x1x32xf32>
    %332 = vector.shape_cast %331 : vector<2x1x1x32xf32> to vector<2x32xf32>
    %333 = arith.truncf %332 : vector<2x32xf32> to vector<2x32xbf16>
    %cst_152 = arith.constant dense<0.000000e+00> : vector<2x64xf32>
    %334 = tpu.matmul %333, %40, %cst_152 {dimension_numbers = #tpu.dot_dimension_numbers<[1], [0], [0], [1], [0, 0, 1, 1], [], []>} : vector<2x32xbf16>, vector<32x64xbf16>, vector<2x64xf32> -> vector<2x64xf32>
    %335 = arith.addf %330, %334 : vector<2x64xf32>
    %336 = vector.extract_strided_slice %38 {offsets = [0, 2, 1, 0], sizes = [2, 1, 1, 32], strides = [1, 1, 1, 1]} : vector<2x8x8x32xf32> to vector<2x1x1x32xf32>
    %337 = vector.shape_cast %336 : vector<2x1x1x32xf32> to vector<2x32xf32>
    %338 = arith.truncf %337 : vector<2x32xf32> to vector<2x32xbf16>
    %cst_153 = arith.constant dense<0.000000e+00> : vector<2x64xf32>
    %339 = tpu.matmul %338, %42, %cst_153 {dimension_numbers = #tpu.dot_dimension_numbers<[1], [0], [0], [1], [0, 0, 1, 1], [], []>} : vector<2x32xbf16>, vector<32x64xbf16>, vector<2x64xf32> -> vector<2x64xf32>
    %340 = arith.addf %335, %339 : vector<2x64xf32>
    %341 = vector.extract_strided_slice %38 {offsets = [0, 2, 2, 0], sizes = [2, 1, 1, 32], strides = [1, 1, 1, 1]} : vector<2x8x8x32xf32> to vector<2x1x1x32xf32>
    %342 = vector.shape_cast %341 : vector<2x1x1x32xf32> to vector<2x32xf32>
    %343 = arith.truncf %342 : vector<2x32xf32> to vector<2x32xbf16>
    %cst_154 = arith.constant dense<0.000000e+00> : vector<2x64xf32>
    %344 = tpu.matmul %343, %44, %cst_154 {dimension_numbers = #tpu.dot_dimension_numbers<[1], [0], [0], [1], [0, 0, 1, 1], [], []>} : vector<2x32xbf16>, vector<32x64xbf16>, vector<2x64xf32> -> vector<2x64xf32>
    %345 = arith.addf %340, %344 : vector<2x64xf32>
    %346 = vector.extract_strided_slice %38 {offsets = [0, 2, 3, 0], sizes = [2, 1, 1, 32], strides = [1, 1, 1, 1]} : vector<2x8x8x32xf32> to vector<2x1x1x32xf32>
    %347 = vector.shape_cast %346 : vector<2x1x1x32xf32> to vector<2x32xf32>
    %348 = arith.truncf %347 : vector<2x32xf32> to vector<2x32xbf16>
    %cst_155 = arith.constant dense<0.000000e+00> : vector<2x64xf32>
    %349 = tpu.matmul %348, %46, %cst_155 {dimension_numbers = #tpu.dot_dimension_numbers<[1], [0], [0], [1], [0, 0, 1, 1], [], []>} : vector<2x32xbf16>, vector<32x64xbf16>, vector<2x64xf32> -> vector<2x64xf32>
    %350 = arith.addf %345, %349 : vector<2x64xf32>
    %351 = vector.extract_strided_slice %38 {offsets = [0, 3, 0, 0], sizes = [2, 1, 1, 32], strides = [1, 1, 1, 1]} : vector<2x8x8x32xf32> to vector<2x1x1x32xf32>
    %352 = vector.shape_cast %351 : vector<2x1x1x32xf32> to vector<2x32xf32>
    %353 = arith.truncf %352 : vector<2x32xf32> to vector<2x32xbf16>
    %cst_156 = arith.constant dense<0.000000e+00> : vector<2x64xf32>
    %354 = tpu.matmul %353, %48, %cst_156 {dimension_numbers = #tpu.dot_dimension_numbers<[1], [0], [0], [1], [0, 0, 1, 1], [], []>} : vector<2x32xbf16>, vector<32x64xbf16>, vector<2x64xf32> -> vector<2x64xf32>
    %355 = arith.addf %350, %354 : vector<2x64xf32>
    %356 = vector.extract_strided_slice %38 {offsets = [0, 3, 1, 0], sizes = [2, 1, 1, 32], strides = [1, 1, 1, 1]} : vector<2x8x8x32xf32> to vector<2x1x1x32xf32>
    %357 = vector.shape_cast %356 : vector<2x1x1x32xf32> to vector<2x32xf32>
    %358 = arith.truncf %357 : vector<2x32xf32> to vector<2x32xbf16>
    %cst_157 = arith.constant dense<0.000000e+00> : vector<2x64xf32>
    %359 = tpu.matmul %358, %50, %cst_157 {dimension_numbers = #tpu.dot_dimension_numbers<[1], [0], [0], [1], [0, 0, 1, 1], [], []>} : vector<2x32xbf16>, vector<32x64xbf16>, vector<2x64xf32> -> vector<2x64xf32>
    %360 = arith.addf %355, %359 : vector<2x64xf32>
    %361 = vector.extract_strided_slice %38 {offsets = [0, 3, 2, 0], sizes = [2, 1, 1, 32], strides = [1, 1, 1, 1]} : vector<2x8x8x32xf32> to vector<2x1x1x32xf32>
    %362 = vector.shape_cast %361 : vector<2x1x1x32xf32> to vector<2x32xf32>
    %363 = arith.truncf %362 : vector<2x32xf32> to vector<2x32xbf16>
    %cst_158 = arith.constant dense<0.000000e+00> : vector<2x64xf32>
    %364 = tpu.matmul %363, %52, %cst_158 {dimension_numbers = #tpu.dot_dimension_numbers<[1], [0], [0], [1], [0, 0, 1, 1], [], []>} : vector<2x32xbf16>, vector<32x64xbf16>, vector<2x64xf32> -> vector<2x64xf32>
    %365 = arith.addf %360, %364 : vector<2x64xf32>
    %366 = vector.extract_strided_slice %38 {offsets = [0, 3, 3, 0], sizes = [2, 1, 1, 32], strides = [1, 1, 1, 1]} : vector<2x8x8x32xf32> to vector<2x1x1x32xf32>
    %367 = vector.shape_cast %366 : vector<2x1x1x32xf32> to vector<2x32xf32>
    %368 = arith.truncf %367 : vector<2x32xf32> to vector<2x32xbf16>
    %cst_159 = arith.constant dense<0.000000e+00> : vector<2x64xf32>
    %369 = tpu.matmul %368, %54, %cst_159 {dimension_numbers = #tpu.dot_dimension_numbers<[1], [0], [0], [1], [0, 0, 1, 1], [], []>} : vector<2x32xbf16>, vector<32x64xbf16>, vector<2x64xf32> -> vector<2x64xf32>
    %370 = arith.addf %365, %369 : vector<2x64xf32>
    %371 = vector.extract_strided_slice %38 {offsets = [0, 4, 0, 0], sizes = [2, 1, 1, 32], strides = [1, 1, 1, 1]} : vector<2x8x8x32xf32> to vector<2x1x1x32xf32>
    %372 = vector.shape_cast %371 : vector<2x1x1x32xf32> to vector<2x32xf32>
    %373 = arith.truncf %372 : vector<2x32xf32> to vector<2x32xbf16>
    %cst_160 = arith.constant dense<0.000000e+00> : vector<2x64xf32>
    %374 = tpu.matmul %373, %56, %cst_160 {dimension_numbers = #tpu.dot_dimension_numbers<[1], [0], [0], [1], [0, 0, 1, 1], [], []>} : vector<2x32xbf16>, vector<32x64xbf16>, vector<2x64xf32> -> vector<2x64xf32>
    %375 = arith.addf %370, %374 : vector<2x64xf32>
    %376 = vector.extract_strided_slice %38 {offsets = [0, 4, 1, 0], sizes = [2, 1, 1, 32], strides = [1, 1, 1, 1]} : vector<2x8x8x32xf32> to vector<2x1x1x32xf32>
    %377 = vector.shape_cast %376 : vector<2x1x1x32xf32> to vector<2x32xf32>
    %378 = arith.truncf %377 : vector<2x32xf32> to vector<2x32xbf16>
    %cst_161 = arith.constant dense<0.000000e+00> : vector<2x64xf32>
    %379 = tpu.matmul %378, %58, %cst_161 {dimension_numbers = #tpu.dot_dimension_numbers<[1], [0], [0], [1], [0, 0, 1, 1], [], []>} : vector<2x32xbf16>, vector<32x64xbf16>, vector<2x64xf32> -> vector<2x64xf32>
    %380 = arith.addf %375, %379 : vector<2x64xf32>
    %381 = vector.extract_strided_slice %38 {offsets = [0, 4, 2, 0], sizes = [2, 1, 1, 32], strides = [1, 1, 1, 1]} : vector<2x8x8x32xf32> to vector<2x1x1x32xf32>
    %382 = vector.shape_cast %381 : vector<2x1x1x32xf32> to vector<2x32xf32>
    %383 = arith.truncf %382 : vector<2x32xf32> to vector<2x32xbf16>
    %cst_162 = arith.constant dense<0.000000e+00> : vector<2x64xf32>
    %384 = tpu.matmul %383, %60, %cst_162 {dimension_numbers = #tpu.dot_dimension_numbers<[1], [0], [0], [1], [0, 0, 1, 1], [], []>} : vector<2x32xbf16>, vector<32x64xbf16>, vector<2x64xf32> -> vector<2x64xf32>
    %385 = arith.addf %380, %384 : vector<2x64xf32>
    %386 = vector.extract_strided_slice %38 {offsets = [0, 4, 3, 0], sizes = [2, 1, 1, 32], strides = [1, 1, 1, 1]} : vector<2x8x8x32xf32> to vector<2x1x1x32xf32>
    %387 = vector.shape_cast %386 : vector<2x1x1x32xf32> to vector<2x32xf32>
    %388 = arith.truncf %387 : vector<2x32xf32> to vector<2x32xbf16>
    %cst_163 = arith.constant dense<0.000000e+00> : vector<2x64xf32>
    %389 = tpu.matmul %388, %62, %cst_163 {dimension_numbers = #tpu.dot_dimension_numbers<[1], [0], [0], [1], [0, 0, 1, 1], [], []>} : vector<2x32xbf16>, vector<32x64xbf16>, vector<2x64xf32> -> vector<2x64xf32>
    %390 = arith.addf %385, %389 : vector<2x64xf32>
    %391 = vector.extract_strided_slice %38 {offsets = [0, 5, 0, 0], sizes = [2, 1, 1, 32], strides = [1, 1, 1, 1]} : vector<2x8x8x32xf32> to vector<2x1x1x32xf32>
    %392 = vector.shape_cast %391 : vector<2x1x1x32xf32> to vector<2x32xf32>
    %393 = arith.truncf %392 : vector<2x32xf32> to vector<2x32xbf16>
    %cst_164 = arith.constant dense<0.000000e+00> : vector<2x64xf32>
    %394 = tpu.matmul %393, %64, %cst_164 {dimension_numbers = #tpu.dot_dimension_numbers<[1], [0], [0], [1], [0, 0, 1, 1], [], []>} : vector<2x32xbf16>, vector<32x64xbf16>, vector<2x64xf32> -> vector<2x64xf32>
    %395 = arith.addf %390, %394 : vector<2x64xf32>
    %396 = vector.extract_strided_slice %38 {offsets = [0, 5, 1, 0], sizes = [2, 1, 1, 32], strides = [1, 1, 1, 1]} : vector<2x8x8x32xf32> to vector<2x1x1x32xf32>
    %397 = vector.shape_cast %396 : vector<2x1x1x32xf32> to vector<2x32xf32>
    %398 = arith.truncf %397 : vector<2x32xf32> to vector<2x32xbf16>
    %cst_165 = arith.constant dense<0.000000e+00> : vector<2x64xf32>
    %399 = tpu.matmul %398, %66, %cst_165 {dimension_numbers = #tpu.dot_dimension_numbers<[1], [0], [0], [1], [0, 0, 1, 1], [], []>} : vector<2x32xbf16>, vector<32x64xbf16>, vector<2x64xf32> -> vector<2x64xf32>
    %400 = arith.addf %395, %399 : vector<2x64xf32>
    %401 = vector.extract_strided_slice %38 {offsets = [0, 5, 2, 0], sizes = [2, 1, 1, 32], strides = [1, 1, 1, 1]} : vector<2x8x8x32xf32> to vector<2x1x1x32xf32>
    %402 = vector.shape_cast %401 : vector<2x1x1x32xf32> to vector<2x32xf32>
    %403 = arith.truncf %402 : vector<2x32xf32> to vector<2x32xbf16>
    %cst_166 = arith.constant dense<0.000000e+00> : vector<2x64xf32>
    %404 = tpu.matmul %403, %68, %cst_166 {dimension_numbers = #tpu.dot_dimension_numbers<[1], [0], [0], [1], [0, 0, 1, 1], [], []>} : vector<2x32xbf16>, vector<32x64xbf16>, vector<2x64xf32> -> vector<2x64xf32>
    %405 = arith.addf %400, %404 : vector<2x64xf32>
    %406 = vector.extract_strided_slice %38 {offsets = [0, 5, 3, 0], sizes = [2, 1, 1, 32], strides = [1, 1, 1, 1]} : vector<2x8x8x32xf32> to vector<2x1x1x32xf32>
    %407 = vector.shape_cast %406 : vector<2x1x1x32xf32> to vector<2x32xf32>
    %408 = arith.truncf %407 : vector<2x32xf32> to vector<2x32xbf16>
    %cst_167 = arith.constant dense<0.000000e+00> : vector<2x64xf32>
    %409 = tpu.matmul %408, %70, %cst_167 {dimension_numbers = #tpu.dot_dimension_numbers<[1], [0], [0], [1], [0, 0, 1, 1], [], []>} : vector<2x32xbf16>, vector<32x64xbf16>, vector<2x64xf32> -> vector<2x64xf32>
    %410 = arith.addf %405, %409 : vector<2x64xf32>
    %411 = vector.broadcast %71 : vector<1x64xf32> to vector<2x64xf32>
    %412 = arith.addf %410, %411 : vector<2x64xf32>
    %cst_168 = arith.constant 0.000000e+00 : f32
    %413 = vector.broadcast %cst_168 : f32 to vector<2x64xf32>
    %414 = arith.maximumf %412, %413 : vector<2x64xf32>
    %415 = arith.truncf %414 : vector<2x64xf32> to vector<2x64xbf16>
    %cst_169 = arith.constant 0.000000e+00 : f32
    %416 = vector.broadcast %cst_169 : f32 to vector<2x64xf32>
    %417 = vector.extract_strided_slice %38 {offsets = [0, 2, 2, 0], sizes = [2, 1, 1, 32], strides = [1, 1, 1, 1]} : vector<2x8x8x32xf32> to vector<2x1x1x32xf32>
    %418 = vector.shape_cast %417 : vector<2x1x1x32xf32> to vector<2x32xf32>
    %419 = arith.truncf %418 : vector<2x32xf32> to vector<2x32xbf16>
    %cst_170 = arith.constant dense<0.000000e+00> : vector<2x64xf32>
    %420 = tpu.matmul %419, %40, %cst_170 {dimension_numbers = #tpu.dot_dimension_numbers<[1], [0], [0], [1], [0, 0, 1, 1], [], []>} : vector<2x32xbf16>, vector<32x64xbf16>, vector<2x64xf32> -> vector<2x64xf32>
    %421 = arith.addf %416, %420 : vector<2x64xf32>
    %422 = vector.extract_strided_slice %38 {offsets = [0, 2, 3, 0], sizes = [2, 1, 1, 32], strides = [1, 1, 1, 1]} : vector<2x8x8x32xf32> to vector<2x1x1x32xf32>
    %423 = vector.shape_cast %422 : vector<2x1x1x32xf32> to vector<2x32xf32>
    %424 = arith.truncf %423 : vector<2x32xf32> to vector<2x32xbf16>
    %cst_171 = arith.constant dense<0.000000e+00> : vector<2x64xf32>
    %425 = tpu.matmul %424, %42, %cst_171 {dimension_numbers = #tpu.dot_dimension_numbers<[1], [0], [0], [1], [0, 0, 1, 1], [], []>} : vector<2x32xbf16>, vector<32x64xbf16>, vector<2x64xf32> -> vector<2x64xf32>
    %426 = arith.addf %421, %425 : vector<2x64xf32>
    %427 = vector.extract_strided_slice %38 {offsets = [0, 2, 4, 0], sizes = [2, 1, 1, 32], strides = [1, 1, 1, 1]} : vector<2x8x8x32xf32> to vector<2x1x1x32xf32>
    %428 = vector.shape_cast %427 : vector<2x1x1x32xf32> to vector<2x32xf32>
    %429 = arith.truncf %428 : vector<2x32xf32> to vector<2x32xbf16>
    %cst_172 = arith.constant dense<0.000000e+00> : vector<2x64xf32>
    %430 = tpu.matmul %429, %44, %cst_172 {dimension_numbers = #tpu.dot_dimension_numbers<[1], [0], [0], [1], [0, 0, 1, 1], [], []>} : vector<2x32xbf16>, vector<32x64xbf16>, vector<2x64xf32> -> vector<2x64xf32>
    %431 = arith.addf %426, %430 : vector<2x64xf32>
    %432 = vector.extract_strided_slice %38 {offsets = [0, 2, 5, 0], sizes = [2, 1, 1, 32], strides = [1, 1, 1, 1]} : vector<2x8x8x32xf32> to vector<2x1x1x32xf32>
    %433 = vector.shape_cast %432 : vector<2x1x1x32xf32> to vector<2x32xf32>
    %434 = arith.truncf %433 : vector<2x32xf32> to vector<2x32xbf16>
    %cst_173 = arith.constant dense<0.000000e+00> : vector<2x64xf32>
    %435 = tpu.matmul %434, %46, %cst_173 {dimension_numbers = #tpu.dot_dimension_numbers<[1], [0], [0], [1], [0, 0, 1, 1], [], []>} : vector<2x32xbf16>, vector<32x64xbf16>, vector<2x64xf32> -> vector<2x64xf32>
    %436 = arith.addf %431, %435 : vector<2x64xf32>
    %437 = vector.extract_strided_slice %38 {offsets = [0, 3, 2, 0], sizes = [2, 1, 1, 32], strides = [1, 1, 1, 1]} : vector<2x8x8x32xf32> to vector<2x1x1x32xf32>
    %438 = vector.shape_cast %437 : vector<2x1x1x32xf32> to vector<2x32xf32>
    %439 = arith.truncf %438 : vector<2x32xf32> to vector<2x32xbf16>
    %cst_174 = arith.constant dense<0.000000e+00> : vector<2x64xf32>
    %440 = tpu.matmul %439, %48, %cst_174 {dimension_numbers = #tpu.dot_dimension_numbers<[1], [0], [0], [1], [0, 0, 1, 1], [], []>} : vector<2x32xbf16>, vector<32x64xbf16>, vector<2x64xf32> -> vector<2x64xf32>
    %441 = arith.addf %436, %440 : vector<2x64xf32>
    %442 = vector.extract_strided_slice %38 {offsets = [0, 3, 3, 0], sizes = [2, 1, 1, 32], strides = [1, 1, 1, 1]} : vector<2x8x8x32xf32> to vector<2x1x1x32xf32>
    %443 = vector.shape_cast %442 : vector<2x1x1x32xf32> to vector<2x32xf32>
    %444 = arith.truncf %443 : vector<2x32xf32> to vector<2x32xbf16>
    %cst_175 = arith.constant dense<0.000000e+00> : vector<2x64xf32>
    %445 = tpu.matmul %444, %50, %cst_175 {dimension_numbers = #tpu.dot_dimension_numbers<[1], [0], [0], [1], [0, 0, 1, 1], [], []>} : vector<2x32xbf16>, vector<32x64xbf16>, vector<2x64xf32> -> vector<2x64xf32>
    %446 = arith.addf %441, %445 : vector<2x64xf32>
    %447 = vector.extract_strided_slice %38 {offsets = [0, 3, 4, 0], sizes = [2, 1, 1, 32], strides = [1, 1, 1, 1]} : vector<2x8x8x32xf32> to vector<2x1x1x32xf32>
    %448 = vector.shape_cast %447 : vector<2x1x1x32xf32> to vector<2x32xf32>
    %449 = arith.truncf %448 : vector<2x32xf32> to vector<2x32xbf16>
    %cst_176 = arith.constant dense<0.000000e+00> : vector<2x64xf32>
    %450 = tpu.matmul %449, %52, %cst_176 {dimension_numbers = #tpu.dot_dimension_numbers<[1], [0], [0], [1], [0, 0, 1, 1], [], []>} : vector<2x32xbf16>, vector<32x64xbf16>, vector<2x64xf32> -> vector<2x64xf32>
    %451 = arith.addf %446, %450 : vector<2x64xf32>
    %452 = vector.extract_strided_slice %38 {offsets = [0, 3, 5, 0], sizes = [2, 1, 1, 32], strides = [1, 1, 1, 1]} : vector<2x8x8x32xf32> to vector<2x1x1x32xf32>
    %453 = vector.shape_cast %452 : vector<2x1x1x32xf32> to vector<2x32xf32>
    %454 = arith.truncf %453 : vector<2x32xf32> to vector<2x32xbf16>
    %cst_177 = arith.constant dense<0.000000e+00> : vector<2x64xf32>
    %455 = tpu.matmul %454, %54, %cst_177 {dimension_numbers = #tpu.dot_dimension_numbers<[1], [0], [0], [1], [0, 0, 1, 1], [], []>} : vector<2x32xbf16>, vector<32x64xbf16>, vector<2x64xf32> -> vector<2x64xf32>
    %456 = arith.addf %451, %455 : vector<2x64xf32>
    %457 = vector.extract_strided_slice %38 {offsets = [0, 4, 2, 0], sizes = [2, 1, 1, 32], strides = [1, 1, 1, 1]} : vector<2x8x8x32xf32> to vector<2x1x1x32xf32>
    %458 = vector.shape_cast %457 : vector<2x1x1x32xf32> to vector<2x32xf32>
    %459 = arith.truncf %458 : vector<2x32xf32> to vector<2x32xbf16>
    %cst_178 = arith.constant dense<0.000000e+00> : vector<2x64xf32>
    %460 = tpu.matmul %459, %56, %cst_178 {dimension_numbers = #tpu.dot_dimension_numbers<[1], [0], [0], [1], [0, 0, 1, 1], [], []>} : vector<2x32xbf16>, vector<32x64xbf16>, vector<2x64xf32> -> vector<2x64xf32>
    %461 = arith.addf %456, %460 : vector<2x64xf32>
    %462 = vector.extract_strided_slice %38 {offsets = [0, 4, 3, 0], sizes = [2, 1, 1, 32], strides = [1, 1, 1, 1]} : vector<2x8x8x32xf32> to vector<2x1x1x32xf32>
    %463 = vector.shape_cast %462 : vector<2x1x1x32xf32> to vector<2x32xf32>
    %464 = arith.truncf %463 : vector<2x32xf32> to vector<2x32xbf16>
    %cst_179 = arith.constant dense<0.000000e+00> : vector<2x64xf32>
    %465 = tpu.matmul %464, %58, %cst_179 {dimension_numbers = #tpu.dot_dimension_numbers<[1], [0], [0], [1], [0, 0, 1, 1], [], []>} : vector<2x32xbf16>, vector<32x64xbf16>, vector<2x64xf32> -> vector<2x64xf32>
    %466 = arith.addf %461, %465 : vector<2x64xf32>
    %467 = vector.extract_strided_slice %38 {offsets = [0, 4, 4, 0], sizes = [2, 1, 1, 32], strides = [1, 1, 1, 1]} : vector<2x8x8x32xf32> to vector<2x1x1x32xf32>
    %468 = vector.shape_cast %467 : vector<2x1x1x32xf32> to vector<2x32xf32>
    %469 = arith.truncf %468 : vector<2x32xf32> to vector<2x32xbf16>
    %cst_180 = arith.constant dense<0.000000e+00> : vector<2x64xf32>
    %470 = tpu.matmul %469, %60, %cst_180 {dimension_numbers = #tpu.dot_dimension_numbers<[1], [0], [0], [1], [0, 0, 1, 1], [], []>} : vector<2x32xbf16>, vector<32x64xbf16>, vector<2x64xf32> -> vector<2x64xf32>
    %471 = arith.addf %466, %470 : vector<2x64xf32>
    %472 = vector.extract_strided_slice %38 {offsets = [0, 4, 5, 0], sizes = [2, 1, 1, 32], strides = [1, 1, 1, 1]} : vector<2x8x8x32xf32> to vector<2x1x1x32xf32>
    %473 = vector.shape_cast %472 : vector<2x1x1x32xf32> to vector<2x32xf32>
    %474 = arith.truncf %473 : vector<2x32xf32> to vector<2x32xbf16>
    %cst_181 = arith.constant dense<0.000000e+00> : vector<2x64xf32>
    %475 = tpu.matmul %474, %62, %cst_181 {dimension_numbers = #tpu.dot_dimension_numbers<[1], [0], [0], [1], [0, 0, 1, 1], [], []>} : vector<2x32xbf16>, vector<32x64xbf16>, vector<2x64xf32> -> vector<2x64xf32>
    %476 = arith.addf %471, %475 : vector<2x64xf32>
    %477 = vector.extract_strided_slice %38 {offsets = [0, 5, 2, 0], sizes = [2, 1, 1, 32], strides = [1, 1, 1, 1]} : vector<2x8x8x32xf32> to vector<2x1x1x32xf32>
    %478 = vector.shape_cast %477 : vector<2x1x1x32xf32> to vector<2x32xf32>
    %479 = arith.truncf %478 : vector<2x32xf32> to vector<2x32xbf16>
    %cst_182 = arith.constant dense<0.000000e+00> : vector<2x64xf32>
    %480 = tpu.matmul %479, %64, %cst_182 {dimension_numbers = #tpu.dot_dimension_numbers<[1], [0], [0], [1], [0, 0, 1, 1], [], []>} : vector<2x32xbf16>, vector<32x64xbf16>, vector<2x64xf32> -> vector<2x64xf32>
    %481 = arith.addf %476, %480 : vector<2x64xf32>
    %482 = vector.extract_strided_slice %38 {offsets = [0, 5, 3, 0], sizes = [2, 1, 1, 32], strides = [1, 1, 1, 1]} : vector<2x8x8x32xf32> to vector<2x1x1x32xf32>
    %483 = vector.shape_cast %482 : vector<2x1x1x32xf32> to vector<2x32xf32>
    %484 = arith.truncf %483 : vector<2x32xf32> to vector<2x32xbf16>
    %cst_183 = arith.constant dense<0.000000e+00> : vector<2x64xf32>
    %485 = tpu.matmul %484, %66, %cst_183 {dimension_numbers = #tpu.dot_dimension_numbers<[1], [0], [0], [1], [0, 0, 1, 1], [], []>} : vector<2x32xbf16>, vector<32x64xbf16>, vector<2x64xf32> -> vector<2x64xf32>
    %486 = arith.addf %481, %485 : vector<2x64xf32>
    %487 = vector.extract_strided_slice %38 {offsets = [0, 5, 4, 0], sizes = [2, 1, 1, 32], strides = [1, 1, 1, 1]} : vector<2x8x8x32xf32> to vector<2x1x1x32xf32>
    %488 = vector.shape_cast %487 : vector<2x1x1x32xf32> to vector<2x32xf32>
    %489 = arith.truncf %488 : vector<2x32xf32> to vector<2x32xbf16>
    %cst_184 = arith.constant dense<0.000000e+00> : vector<2x64xf32>
    %490 = tpu.matmul %489, %68, %cst_184 {dimension_numbers = #tpu.dot_dimension_numbers<[1], [0], [0], [1], [0, 0, 1, 1], [], []>} : vector<2x32xbf16>, vector<32x64xbf16>, vector<2x64xf32> -> vector<2x64xf32>
    %491 = arith.addf %486, %490 : vector<2x64xf32>
    %492 = vector.extract_strided_slice %38 {offsets = [0, 5, 5, 0], sizes = [2, 1, 1, 32], strides = [1, 1, 1, 1]} : vector<2x8x8x32xf32> to vector<2x1x1x32xf32>
    %493 = vector.shape_cast %492 : vector<2x1x1x32xf32> to vector<2x32xf32>
    %494 = arith.truncf %493 : vector<2x32xf32> to vector<2x32xbf16>
    %cst_185 = arith.constant dense<0.000000e+00> : vector<2x64xf32>
    %495 = tpu.matmul %494, %70, %cst_185 {dimension_numbers = #tpu.dot_dimension_numbers<[1], [0], [0], [1], [0, 0, 1, 1], [], []>} : vector<2x32xbf16>, vector<32x64xbf16>, vector<2x64xf32> -> vector<2x64xf32>
    %496 = arith.addf %491, %495 : vector<2x64xf32>
    %497 = vector.broadcast %71 : vector<1x64xf32> to vector<2x64xf32>
    %498 = arith.addf %496, %497 : vector<2x64xf32>
    %cst_186 = arith.constant 0.000000e+00 : f32
    %499 = vector.broadcast %cst_186 : f32 to vector<2x64xf32>
    %500 = arith.maximumf %498, %499 : vector<2x64xf32>
    %501 = arith.truncf %500 : vector<2x64xf32> to vector<2x64xbf16>
    %cst_187 = arith.constant 0.000000e+00 : f32
    %502 = vector.broadcast %cst_187 : f32 to vector<2x64xf32>
    %503 = vector.extract_strided_slice %38 {offsets = [0, 2, 4, 0], sizes = [2, 1, 1, 32], strides = [1, 1, 1, 1]} : vector<2x8x8x32xf32> to vector<2x1x1x32xf32>
    %504 = vector.shape_cast %503 : vector<2x1x1x32xf32> to vector<2x32xf32>
    %505 = arith.truncf %504 : vector<2x32xf32> to vector<2x32xbf16>
    %cst_188 = arith.constant dense<0.000000e+00> : vector<2x64xf32>
    %506 = tpu.matmul %505, %40, %cst_188 {dimension_numbers = #tpu.dot_dimension_numbers<[1], [0], [0], [1], [0, 0, 1, 1], [], []>} : vector<2x32xbf16>, vector<32x64xbf16>, vector<2x64xf32> -> vector<2x64xf32>
    %507 = arith.addf %502, %506 : vector<2x64xf32>
    %508 = vector.extract_strided_slice %38 {offsets = [0, 2, 5, 0], sizes = [2, 1, 1, 32], strides = [1, 1, 1, 1]} : vector<2x8x8x32xf32> to vector<2x1x1x32xf32>
    %509 = vector.shape_cast %508 : vector<2x1x1x32xf32> to vector<2x32xf32>
    %510 = arith.truncf %509 : vector<2x32xf32> to vector<2x32xbf16>
    %cst_189 = arith.constant dense<0.000000e+00> : vector<2x64xf32>
    %511 = tpu.matmul %510, %42, %cst_189 {dimension_numbers = #tpu.dot_dimension_numbers<[1], [0], [0], [1], [0, 0, 1, 1], [], []>} : vector<2x32xbf16>, vector<32x64xbf16>, vector<2x64xf32> -> vector<2x64xf32>
    %512 = arith.addf %507, %511 : vector<2x64xf32>
    %513 = vector.extract_strided_slice %38 {offsets = [0, 2, 6, 0], sizes = [2, 1, 1, 32], strides = [1, 1, 1, 1]} : vector<2x8x8x32xf32> to vector<2x1x1x32xf32>
    %514 = vector.shape_cast %513 : vector<2x1x1x32xf32> to vector<2x32xf32>
    %515 = arith.truncf %514 : vector<2x32xf32> to vector<2x32xbf16>
    %cst_190 = arith.constant dense<0.000000e+00> : vector<2x64xf32>
    %516 = tpu.matmul %515, %44, %cst_190 {dimension_numbers = #tpu.dot_dimension_numbers<[1], [0], [0], [1], [0, 0, 1, 1], [], []>} : vector<2x32xbf16>, vector<32x64xbf16>, vector<2x64xf32> -> vector<2x64xf32>
    %517 = arith.addf %512, %516 : vector<2x64xf32>
    %518 = vector.extract_strided_slice %38 {offsets = [0, 2, 7, 0], sizes = [2, 1, 1, 32], strides = [1, 1, 1, 1]} : vector<2x8x8x32xf32> to vector<2x1x1x32xf32>
    %519 = vector.shape_cast %518 : vector<2x1x1x32xf32> to vector<2x32xf32>
    %520 = arith.truncf %519 : vector<2x32xf32> to vector<2x32xbf16>
    %cst_191 = arith.constant dense<0.000000e+00> : vector<2x64xf32>
    %521 = tpu.matmul %520, %46, %cst_191 {dimension_numbers = #tpu.dot_dimension_numbers<[1], [0], [0], [1], [0, 0, 1, 1], [], []>} : vector<2x32xbf16>, vector<32x64xbf16>, vector<2x64xf32> -> vector<2x64xf32>
    %522 = arith.addf %517, %521 : vector<2x64xf32>
    %523 = vector.extract_strided_slice %38 {offsets = [0, 3, 4, 0], sizes = [2, 1, 1, 32], strides = [1, 1, 1, 1]} : vector<2x8x8x32xf32> to vector<2x1x1x32xf32>
    %524 = vector.shape_cast %523 : vector<2x1x1x32xf32> to vector<2x32xf32>
    %525 = arith.truncf %524 : vector<2x32xf32> to vector<2x32xbf16>
    %cst_192 = arith.constant dense<0.000000e+00> : vector<2x64xf32>
    %526 = tpu.matmul %525, %48, %cst_192 {dimension_numbers = #tpu.dot_dimension_numbers<[1], [0], [0], [1], [0, 0, 1, 1], [], []>} : vector<2x32xbf16>, vector<32x64xbf16>, vector<2x64xf32> -> vector<2x64xf32>
    %527 = arith.addf %522, %526 : vector<2x64xf32>
    %528 = vector.extract_strided_slice %38 {offsets = [0, 3, 5, 0], sizes = [2, 1, 1, 32], strides = [1, 1, 1, 1]} : vector<2x8x8x32xf32> to vector<2x1x1x32xf32>
    %529 = vector.shape_cast %528 : vector<2x1x1x32xf32> to vector<2x32xf32>
    %530 = arith.truncf %529 : vector<2x32xf32> to vector<2x32xbf16>
    %cst_193 = arith.constant dense<0.000000e+00> : vector<2x64xf32>
    %531 = tpu.matmul %530, %50, %cst_193 {dimension_numbers = #tpu.dot_dimension_numbers<[1], [0], [0], [1], [0, 0, 1, 1], [], []>} : vector<2x32xbf16>, vector<32x64xbf16>, vector<2x64xf32> -> vector<2x64xf32>
    %532 = arith.addf %527, %531 : vector<2x64xf32>
    %533 = vector.extract_strided_slice %38 {offsets = [0, 3, 6, 0], sizes = [2, 1, 1, 32], strides = [1, 1, 1, 1]} : vector<2x8x8x32xf32> to vector<2x1x1x32xf32>
    %534 = vector.shape_cast %533 : vector<2x1x1x32xf32> to vector<2x32xf32>
    %535 = arith.truncf %534 : vector<2x32xf32> to vector<2x32xbf16>
    %cst_194 = arith.constant dense<0.000000e+00> : vector<2x64xf32>
    %536 = tpu.matmul %535, %52, %cst_194 {dimension_numbers = #tpu.dot_dimension_numbers<[1], [0], [0], [1], [0, 0, 1, 1], [], []>} : vector<2x32xbf16>, vector<32x64xbf16>, vector<2x64xf32> -> vector<2x64xf32>
    %537 = arith.addf %532, %536 : vector<2x64xf32>
    %538 = vector.extract_strided_slice %38 {offsets = [0, 3, 7, 0], sizes = [2, 1, 1, 32], strides = [1, 1, 1, 1]} : vector<2x8x8x32xf32> to vector<2x1x1x32xf32>
    %539 = vector.shape_cast %538 : vector<2x1x1x32xf32> to vector<2x32xf32>
    %540 = arith.truncf %539 : vector<2x32xf32> to vector<2x32xbf16>
    %cst_195 = arith.constant dense<0.000000e+00> : vector<2x64xf32>
    %541 = tpu.matmul %540, %54, %cst_195 {dimension_numbers = #tpu.dot_dimension_numbers<[1], [0], [0], [1], [0, 0, 1, 1], [], []>} : vector<2x32xbf16>, vector<32x64xbf16>, vector<2x64xf32> -> vector<2x64xf32>
    %542 = arith.addf %537, %541 : vector<2x64xf32>
    %543 = vector.extract_strided_slice %38 {offsets = [0, 4, 4, 0], sizes = [2, 1, 1, 32], strides = [1, 1, 1, 1]} : vector<2x8x8x32xf32> to vector<2x1x1x32xf32>
    %544 = vector.shape_cast %543 : vector<2x1x1x32xf32> to vector<2x32xf32>
    %545 = arith.truncf %544 : vector<2x32xf32> to vector<2x32xbf16>
    %cst_196 = arith.constant dense<0.000000e+00> : vector<2x64xf32>
    %546 = tpu.matmul %545, %56, %cst_196 {dimension_numbers = #tpu.dot_dimension_numbers<[1], [0], [0], [1], [0, 0, 1, 1], [], []>} : vector<2x32xbf16>, vector<32x64xbf16>, vector<2x64xf32> -> vector<2x64xf32>
    %547 = arith.addf %542, %546 : vector<2x64xf32>
    %548 = vector.extract_strided_slice %38 {offsets = [0, 4, 5, 0], sizes = [2, 1, 1, 32], strides = [1, 1, 1, 1]} : vector<2x8x8x32xf32> to vector<2x1x1x32xf32>
    %549 = vector.shape_cast %548 : vector<2x1x1x32xf32> to vector<2x32xf32>
    %550 = arith.truncf %549 : vector<2x32xf32> to vector<2x32xbf16>
    %cst_197 = arith.constant dense<0.000000e+00> : vector<2x64xf32>
    %551 = tpu.matmul %550, %58, %cst_197 {dimension_numbers = #tpu.dot_dimension_numbers<[1], [0], [0], [1], [0, 0, 1, 1], [], []>} : vector<2x32xbf16>, vector<32x64xbf16>, vector<2x64xf32> -> vector<2x64xf32>
    %552 = arith.addf %547, %551 : vector<2x64xf32>
    %553 = vector.extract_strided_slice %38 {offsets = [0, 4, 6, 0], sizes = [2, 1, 1, 32], strides = [1, 1, 1, 1]} : vector<2x8x8x32xf32> to vector<2x1x1x32xf32>
    %554 = vector.shape_cast %553 : vector<2x1x1x32xf32> to vector<2x32xf32>
    %555 = arith.truncf %554 : vector<2x32xf32> to vector<2x32xbf16>
    %cst_198 = arith.constant dense<0.000000e+00> : vector<2x64xf32>
    %556 = tpu.matmul %555, %60, %cst_198 {dimension_numbers = #tpu.dot_dimension_numbers<[1], [0], [0], [1], [0, 0, 1, 1], [], []>} : vector<2x32xbf16>, vector<32x64xbf16>, vector<2x64xf32> -> vector<2x64xf32>
    %557 = arith.addf %552, %556 : vector<2x64xf32>
    %558 = vector.extract_strided_slice %38 {offsets = [0, 4, 7, 0], sizes = [2, 1, 1, 32], strides = [1, 1, 1, 1]} : vector<2x8x8x32xf32> to vector<2x1x1x32xf32>
    %559 = vector.shape_cast %558 : vector<2x1x1x32xf32> to vector<2x32xf32>
    %560 = arith.truncf %559 : vector<2x32xf32> to vector<2x32xbf16>
    %cst_199 = arith.constant dense<0.000000e+00> : vector<2x64xf32>
    %561 = tpu.matmul %560, %62, %cst_199 {dimension_numbers = #tpu.dot_dimension_numbers<[1], [0], [0], [1], [0, 0, 1, 1], [], []>} : vector<2x32xbf16>, vector<32x64xbf16>, vector<2x64xf32> -> vector<2x64xf32>
    %562 = arith.addf %557, %561 : vector<2x64xf32>
    %563 = vector.extract_strided_slice %38 {offsets = [0, 5, 4, 0], sizes = [2, 1, 1, 32], strides = [1, 1, 1, 1]} : vector<2x8x8x32xf32> to vector<2x1x1x32xf32>
    %564 = vector.shape_cast %563 : vector<2x1x1x32xf32> to vector<2x32xf32>
    %565 = arith.truncf %564 : vector<2x32xf32> to vector<2x32xbf16>
    %cst_200 = arith.constant dense<0.000000e+00> : vector<2x64xf32>
    %566 = tpu.matmul %565, %64, %cst_200 {dimension_numbers = #tpu.dot_dimension_numbers<[1], [0], [0], [1], [0, 0, 1, 1], [], []>} : vector<2x32xbf16>, vector<32x64xbf16>, vector<2x64xf32> -> vector<2x64xf32>
    %567 = arith.addf %562, %566 : vector<2x64xf32>
    %568 = vector.extract_strided_slice %38 {offsets = [0, 5, 5, 0], sizes = [2, 1, 1, 32], strides = [1, 1, 1, 1]} : vector<2x8x8x32xf32> to vector<2x1x1x32xf32>
    %569 = vector.shape_cast %568 : vector<2x1x1x32xf32> to vector<2x32xf32>
    %570 = arith.truncf %569 : vector<2x32xf32> to vector<2x32xbf16>
    %cst_201 = arith.constant dense<0.000000e+00> : vector<2x64xf32>
    %571 = tpu.matmul %570, %66, %cst_201 {dimension_numbers = #tpu.dot_dimension_numbers<[1], [0], [0], [1], [0, 0, 1, 1], [], []>} : vector<2x32xbf16>, vector<32x64xbf16>, vector<2x64xf32> -> vector<2x64xf32>
    %572 = arith.addf %567, %571 : vector<2x64xf32>
    %573 = vector.extract_strided_slice %38 {offsets = [0, 5, 6, 0], sizes = [2, 1, 1, 32], strides = [1, 1, 1, 1]} : vector<2x8x8x32xf32> to vector<2x1x1x32xf32>
    %574 = vector.shape_cast %573 : vector<2x1x1x32xf32> to vector<2x32xf32>
    %575 = arith.truncf %574 : vector<2x32xf32> to vector<2x32xbf16>
    %cst_202 = arith.constant dense<0.000000e+00> : vector<2x64xf32>
    %576 = tpu.matmul %575, %68, %cst_202 {dimension_numbers = #tpu.dot_dimension_numbers<[1], [0], [0], [1], [0, 0, 1, 1], [], []>} : vector<2x32xbf16>, vector<32x64xbf16>, vector<2x64xf32> -> vector<2x64xf32>
    %577 = arith.addf %572, %576 : vector<2x64xf32>
    %578 = vector.extract_strided_slice %38 {offsets = [0, 5, 7, 0], sizes = [2, 1, 1, 32], strides = [1, 1, 1, 1]} : vector<2x8x8x32xf32> to vector<2x1x1x32xf32>
    %579 = vector.shape_cast %578 : vector<2x1x1x32xf32> to vector<2x32xf32>
    %580 = arith.truncf %579 : vector<2x32xf32> to vector<2x32xbf16>
    %cst_203 = arith.constant dense<0.000000e+00> : vector<2x64xf32>
    %581 = tpu.matmul %580, %70, %cst_203 {dimension_numbers = #tpu.dot_dimension_numbers<[1], [0], [0], [1], [0, 0, 1, 1], [], []>} : vector<2x32xbf16>, vector<32x64xbf16>, vector<2x64xf32> -> vector<2x64xf32>
    %582 = arith.addf %577, %581 : vector<2x64xf32>
    %583 = vector.broadcast %71 : vector<1x64xf32> to vector<2x64xf32>
    %584 = arith.addf %582, %583 : vector<2x64xf32>
    %cst_204 = arith.constant 0.000000e+00 : f32
    %585 = vector.broadcast %cst_204 : f32 to vector<2x64xf32>
    %586 = arith.maximumf %584, %585 : vector<2x64xf32>
    %587 = arith.truncf %586 : vector<2x64xf32> to vector<2x64xbf16>
    %cst_205 = arith.constant 0.000000e+00 : f32
    %588 = vector.broadcast %cst_205 : f32 to vector<2x64xf32>
    %589 = vector.extract_strided_slice %38 {offsets = [0, 4, 0, 0], sizes = [2, 1, 1, 32], strides = [1, 1, 1, 1]} : vector<2x8x8x32xf32> to vector<2x1x1x32xf32>
    %590 = vector.shape_cast %589 : vector<2x1x1x32xf32> to vector<2x32xf32>
    %591 = arith.truncf %590 : vector<2x32xf32> to vector<2x32xbf16>
    %cst_206 = arith.constant dense<0.000000e+00> : vector<2x64xf32>
    %592 = tpu.matmul %591, %40, %cst_206 {dimension_numbers = #tpu.dot_dimension_numbers<[1], [0], [0], [1], [0, 0, 1, 1], [], []>} : vector<2x32xbf16>, vector<32x64xbf16>, vector<2x64xf32> -> vector<2x64xf32>
    %593 = arith.addf %588, %592 : vector<2x64xf32>
    %594 = vector.extract_strided_slice %38 {offsets = [0, 4, 1, 0], sizes = [2, 1, 1, 32], strides = [1, 1, 1, 1]} : vector<2x8x8x32xf32> to vector<2x1x1x32xf32>
    %595 = vector.shape_cast %594 : vector<2x1x1x32xf32> to vector<2x32xf32>
    %596 = arith.truncf %595 : vector<2x32xf32> to vector<2x32xbf16>
    %cst_207 = arith.constant dense<0.000000e+00> : vector<2x64xf32>
    %597 = tpu.matmul %596, %42, %cst_207 {dimension_numbers = #tpu.dot_dimension_numbers<[1], [0], [0], [1], [0, 0, 1, 1], [], []>} : vector<2x32xbf16>, vector<32x64xbf16>, vector<2x64xf32> -> vector<2x64xf32>
    %598 = arith.addf %593, %597 : vector<2x64xf32>
    %599 = vector.extract_strided_slice %38 {offsets = [0, 4, 2, 0], sizes = [2, 1, 1, 32], strides = [1, 1, 1, 1]} : vector<2x8x8x32xf32> to vector<2x1x1x32xf32>
    %600 = vector.shape_cast %599 : vector<2x1x1x32xf32> to vector<2x32xf32>
    %601 = arith.truncf %600 : vector<2x32xf32> to vector<2x32xbf16>
    %cst_208 = arith.constant dense<0.000000e+00> : vector<2x64xf32>
    %602 = tpu.matmul %601, %44, %cst_208 {dimension_numbers = #tpu.dot_dimension_numbers<[1], [0], [0], [1], [0, 0, 1, 1], [], []>} : vector<2x32xbf16>, vector<32x64xbf16>, vector<2x64xf32> -> vector<2x64xf32>
    %603 = arith.addf %598, %602 : vector<2x64xf32>
    %604 = vector.extract_strided_slice %38 {offsets = [0, 4, 3, 0], sizes = [2, 1, 1, 32], strides = [1, 1, 1, 1]} : vector<2x8x8x32xf32> to vector<2x1x1x32xf32>
    %605 = vector.shape_cast %604 : vector<2x1x1x32xf32> to vector<2x32xf32>
    %606 = arith.truncf %605 : vector<2x32xf32> to vector<2x32xbf16>
    %cst_209 = arith.constant dense<0.000000e+00> : vector<2x64xf32>
    %607 = tpu.matmul %606, %46, %cst_209 {dimension_numbers = #tpu.dot_dimension_numbers<[1], [0], [0], [1], [0, 0, 1, 1], [], []>} : vector<2x32xbf16>, vector<32x64xbf16>, vector<2x64xf32> -> vector<2x64xf32>
    %608 = arith.addf %603, %607 : vector<2x64xf32>
    %609 = vector.extract_strided_slice %38 {offsets = [0, 5, 0, 0], sizes = [2, 1, 1, 32], strides = [1, 1, 1, 1]} : vector<2x8x8x32xf32> to vector<2x1x1x32xf32>
    %610 = vector.shape_cast %609 : vector<2x1x1x32xf32> to vector<2x32xf32>
    %611 = arith.truncf %610 : vector<2x32xf32> to vector<2x32xbf16>
    %cst_210 = arith.constant dense<0.000000e+00> : vector<2x64xf32>
    %612 = tpu.matmul %611, %48, %cst_210 {dimension_numbers = #tpu.dot_dimension_numbers<[1], [0], [0], [1], [0, 0, 1, 1], [], []>} : vector<2x32xbf16>, vector<32x64xbf16>, vector<2x64xf32> -> vector<2x64xf32>
    %613 = arith.addf %608, %612 : vector<2x64xf32>
    %614 = vector.extract_strided_slice %38 {offsets = [0, 5, 1, 0], sizes = [2, 1, 1, 32], strides = [1, 1, 1, 1]} : vector<2x8x8x32xf32> to vector<2x1x1x32xf32>
    %615 = vector.shape_cast %614 : vector<2x1x1x32xf32> to vector<2x32xf32>
    %616 = arith.truncf %615 : vector<2x32xf32> to vector<2x32xbf16>
    %cst_211 = arith.constant dense<0.000000e+00> : vector<2x64xf32>
    %617 = tpu.matmul %616, %50, %cst_211 {dimension_numbers = #tpu.dot_dimension_numbers<[1], [0], [0], [1], [0, 0, 1, 1], [], []>} : vector<2x32xbf16>, vector<32x64xbf16>, vector<2x64xf32> -> vector<2x64xf32>
    %618 = arith.addf %613, %617 : vector<2x64xf32>
    %619 = vector.extract_strided_slice %38 {offsets = [0, 5, 2, 0], sizes = [2, 1, 1, 32], strides = [1, 1, 1, 1]} : vector<2x8x8x32xf32> to vector<2x1x1x32xf32>
    %620 = vector.shape_cast %619 : vector<2x1x1x32xf32> to vector<2x32xf32>
    %621 = arith.truncf %620 : vector<2x32xf32> to vector<2x32xbf16>
    %cst_212 = arith.constant dense<0.000000e+00> : vector<2x64xf32>
    %622 = tpu.matmul %621, %52, %cst_212 {dimension_numbers = #tpu.dot_dimension_numbers<[1], [0], [0], [1], [0, 0, 1, 1], [], []>} : vector<2x32xbf16>, vector<32x64xbf16>, vector<2x64xf32> -> vector<2x64xf32>
    %623 = arith.addf %618, %622 : vector<2x64xf32>
    %624 = vector.extract_strided_slice %38 {offsets = [0, 5, 3, 0], sizes = [2, 1, 1, 32], strides = [1, 1, 1, 1]} : vector<2x8x8x32xf32> to vector<2x1x1x32xf32>
    %625 = vector.shape_cast %624 : vector<2x1x1x32xf32> to vector<2x32xf32>
    %626 = arith.truncf %625 : vector<2x32xf32> to vector<2x32xbf16>
    %cst_213 = arith.constant dense<0.000000e+00> : vector<2x64xf32>
    %627 = tpu.matmul %626, %54, %cst_213 {dimension_numbers = #tpu.dot_dimension_numbers<[1], [0], [0], [1], [0, 0, 1, 1], [], []>} : vector<2x32xbf16>, vector<32x64xbf16>, vector<2x64xf32> -> vector<2x64xf32>
    %628 = arith.addf %623, %627 : vector<2x64xf32>
    %629 = vector.extract_strided_slice %38 {offsets = [0, 6, 0, 0], sizes = [2, 1, 1, 32], strides = [1, 1, 1, 1]} : vector<2x8x8x32xf32> to vector<2x1x1x32xf32>
    %630 = vector.shape_cast %629 : vector<2x1x1x32xf32> to vector<2x32xf32>
    %631 = arith.truncf %630 : vector<2x32xf32> to vector<2x32xbf16>
    %cst_214 = arith.constant dense<0.000000e+00> : vector<2x64xf32>
    %632 = tpu.matmul %631, %56, %cst_214 {dimension_numbers = #tpu.dot_dimension_numbers<[1], [0], [0], [1], [0, 0, 1, 1], [], []>} : vector<2x32xbf16>, vector<32x64xbf16>, vector<2x64xf32> -> vector<2x64xf32>
    %633 = arith.addf %628, %632 : vector<2x64xf32>
    %634 = vector.extract_strided_slice %38 {offsets = [0, 6, 1, 0], sizes = [2, 1, 1, 32], strides = [1, 1, 1, 1]} : vector<2x8x8x32xf32> to vector<2x1x1x32xf32>
    %635 = vector.shape_cast %634 : vector<2x1x1x32xf32> to vector<2x32xf32>
    %636 = arith.truncf %635 : vector<2x32xf32> to vector<2x32xbf16>
    %cst_215 = arith.constant dense<0.000000e+00> : vector<2x64xf32>
    %637 = tpu.matmul %636, %58, %cst_215 {dimension_numbers = #tpu.dot_dimension_numbers<[1], [0], [0], [1], [0, 0, 1, 1], [], []>} : vector<2x32xbf16>, vector<32x64xbf16>, vector<2x64xf32> -> vector<2x64xf32>
    %638 = arith.addf %633, %637 : vector<2x64xf32>
    %639 = vector.extract_strided_slice %38 {offsets = [0, 6, 2, 0], sizes = [2, 1, 1, 32], strides = [1, 1, 1, 1]} : vector<2x8x8x32xf32> to vector<2x1x1x32xf32>
    %640 = vector.shape_cast %639 : vector<2x1x1x32xf32> to vector<2x32xf32>
    %641 = arith.truncf %640 : vector<2x32xf32> to vector<2x32xbf16>
    %cst_216 = arith.constant dense<0.000000e+00> : vector<2x64xf32>
    %642 = tpu.matmul %641, %60, %cst_216 {dimension_numbers = #tpu.dot_dimension_numbers<[1], [0], [0], [1], [0, 0, 1, 1], [], []>} : vector<2x32xbf16>, vector<32x64xbf16>, vector<2x64xf32> -> vector<2x64xf32>
    %643 = arith.addf %638, %642 : vector<2x64xf32>
    %644 = vector.extract_strided_slice %38 {offsets = [0, 6, 3, 0], sizes = [2, 1, 1, 32], strides = [1, 1, 1, 1]} : vector<2x8x8x32xf32> to vector<2x1x1x32xf32>
    %645 = vector.shape_cast %644 : vector<2x1x1x32xf32> to vector<2x32xf32>
    %646 = arith.truncf %645 : vector<2x32xf32> to vector<2x32xbf16>
    %cst_217 = arith.constant dense<0.000000e+00> : vector<2x64xf32>
    %647 = tpu.matmul %646, %62, %cst_217 {dimension_numbers = #tpu.dot_dimension_numbers<[1], [0], [0], [1], [0, 0, 1, 1], [], []>} : vector<2x32xbf16>, vector<32x64xbf16>, vector<2x64xf32> -> vector<2x64xf32>
    %648 = arith.addf %643, %647 : vector<2x64xf32>
    %649 = vector.extract_strided_slice %38 {offsets = [0, 7, 0, 0], sizes = [2, 1, 1, 32], strides = [1, 1, 1, 1]} : vector<2x8x8x32xf32> to vector<2x1x1x32xf32>
    %650 = vector.shape_cast %649 : vector<2x1x1x32xf32> to vector<2x32xf32>
    %651 = arith.truncf %650 : vector<2x32xf32> to vector<2x32xbf16>
    %cst_218 = arith.constant dense<0.000000e+00> : vector<2x64xf32>
    %652 = tpu.matmul %651, %64, %cst_218 {dimension_numbers = #tpu.dot_dimension_numbers<[1], [0], [0], [1], [0, 0, 1, 1], [], []>} : vector<2x32xbf16>, vector<32x64xbf16>, vector<2x64xf32> -> vector<2x64xf32>
    %653 = arith.addf %648, %652 : vector<2x64xf32>
    %654 = vector.extract_strided_slice %38 {offsets = [0, 7, 1, 0], sizes = [2, 1, 1, 32], strides = [1, 1, 1, 1]} : vector<2x8x8x32xf32> to vector<2x1x1x32xf32>
    %655 = vector.shape_cast %654 : vector<2x1x1x32xf32> to vector<2x32xf32>
    %656 = arith.truncf %655 : vector<2x32xf32> to vector<2x32xbf16>
    %cst_219 = arith.constant dense<0.000000e+00> : vector<2x64xf32>
    %657 = tpu.matmul %656, %66, %cst_219 {dimension_numbers = #tpu.dot_dimension_numbers<[1], [0], [0], [1], [0, 0, 1, 1], [], []>} : vector<2x32xbf16>, vector<32x64xbf16>, vector<2x64xf32> -> vector<2x64xf32>
    %658 = arith.addf %653, %657 : vector<2x64xf32>
    %659 = vector.extract_strided_slice %38 {offsets = [0, 7, 2, 0], sizes = [2, 1, 1, 32], strides = [1, 1, 1, 1]} : vector<2x8x8x32xf32> to vector<2x1x1x32xf32>
    %660 = vector.shape_cast %659 : vector<2x1x1x32xf32> to vector<2x32xf32>
    %661 = arith.truncf %660 : vector<2x32xf32> to vector<2x32xbf16>
    %cst_220 = arith.constant dense<0.000000e+00> : vector<2x64xf32>
    %662 = tpu.matmul %661, %68, %cst_220 {dimension_numbers = #tpu.dot_dimension_numbers<[1], [0], [0], [1], [0, 0, 1, 1], [], []>} : vector<2x32xbf16>, vector<32x64xbf16>, vector<2x64xf32> -> vector<2x64xf32>
    %663 = arith.addf %658, %662 : vector<2x64xf32>
    %664 = vector.extract_strided_slice %38 {offsets = [0, 7, 3, 0], sizes = [2, 1, 1, 32], strides = [1, 1, 1, 1]} : vector<2x8x8x32xf32> to vector<2x1x1x32xf32>
    %665 = vector.shape_cast %664 : vector<2x1x1x32xf32> to vector<2x32xf32>
    %666 = arith.truncf %665 : vector<2x32xf32> to vector<2x32xbf16>
    %cst_221 = arith.constant dense<0.000000e+00> : vector<2x64xf32>
    %667 = tpu.matmul %666, %70, %cst_221 {dimension_numbers = #tpu.dot_dimension_numbers<[1], [0], [0], [1], [0, 0, 1, 1], [], []>} : vector<2x32xbf16>, vector<32x64xbf16>, vector<2x64xf32> -> vector<2x64xf32>
    %668 = arith.addf %663, %667 : vector<2x64xf32>
    %669 = vector.broadcast %71 : vector<1x64xf32> to vector<2x64xf32>
    %670 = arith.addf %668, %669 : vector<2x64xf32>
    %cst_222 = arith.constant 0.000000e+00 : f32
    %671 = vector.broadcast %cst_222 : f32 to vector<2x64xf32>
    %672 = arith.maximumf %670, %671 : vector<2x64xf32>
    %673 = arith.truncf %672 : vector<2x64xf32> to vector<2x64xbf16>
    %cst_223 = arith.constant 0.000000e+00 : f32
    %674 = vector.broadcast %cst_223 : f32 to vector<2x64xf32>
    %675 = vector.extract_strided_slice %38 {offsets = [0, 4, 2, 0], sizes = [2, 1, 1, 32], strides = [1, 1, 1, 1]} : vector<2x8x8x32xf32> to vector<2x1x1x32xf32>
    %676 = vector.shape_cast %675 : vector<2x1x1x32xf32> to vector<2x32xf32>
    %677 = arith.truncf %676 : vector<2x32xf32> to vector<2x32xbf16>
    %cst_224 = arith.constant dense<0.000000e+00> : vector<2x64xf32>
    %678 = tpu.matmul %677, %40, %cst_224 {dimension_numbers = #tpu.dot_dimension_numbers<[1], [0], [0], [1], [0, 0, 1, 1], [], []>} : vector<2x32xbf16>, vector<32x64xbf16>, vector<2x64xf32> -> vector<2x64xf32>
    %679 = arith.addf %674, %678 : vector<2x64xf32>
    %680 = vector.extract_strided_slice %38 {offsets = [0, 4, 3, 0], sizes = [2, 1, 1, 32], strides = [1, 1, 1, 1]} : vector<2x8x8x32xf32> to vector<2x1x1x32xf32>
    %681 = vector.shape_cast %680 : vector<2x1x1x32xf32> to vector<2x32xf32>
    %682 = arith.truncf %681 : vector<2x32xf32> to vector<2x32xbf16>
    %cst_225 = arith.constant dense<0.000000e+00> : vector<2x64xf32>
    %683 = tpu.matmul %682, %42, %cst_225 {dimension_numbers = #tpu.dot_dimension_numbers<[1], [0], [0], [1], [0, 0, 1, 1], [], []>} : vector<2x32xbf16>, vector<32x64xbf16>, vector<2x64xf32> -> vector<2x64xf32>
    %684 = arith.addf %679, %683 : vector<2x64xf32>
    %685 = vector.extract_strided_slice %38 {offsets = [0, 4, 4, 0], sizes = [2, 1, 1, 32], strides = [1, 1, 1, 1]} : vector<2x8x8x32xf32> to vector<2x1x1x32xf32>
    %686 = vector.shape_cast %685 : vector<2x1x1x32xf32> to vector<2x32xf32>
    %687 = arith.truncf %686 : vector<2x32xf32> to vector<2x32xbf16>
    %cst_226 = arith.constant dense<0.000000e+00> : vector<2x64xf32>
    %688 = tpu.matmul %687, %44, %cst_226 {dimension_numbers = #tpu.dot_dimension_numbers<[1], [0], [0], [1], [0, 0, 1, 1], [], []>} : vector<2x32xbf16>, vector<32x64xbf16>, vector<2x64xf32> -> vector<2x64xf32>
    %689 = arith.addf %684, %688 : vector<2x64xf32>
    %690 = vector.extract_strided_slice %38 {offsets = [0, 4, 5, 0], sizes = [2, 1, 1, 32], strides = [1, 1, 1, 1]} : vector<2x8x8x32xf32> to vector<2x1x1x32xf32>
    %691 = vector.shape_cast %690 : vector<2x1x1x32xf32> to vector<2x32xf32>
    %692 = arith.truncf %691 : vector<2x32xf32> to vector<2x32xbf16>
    %cst_227 = arith.constant dense<0.000000e+00> : vector<2x64xf32>
    %693 = tpu.matmul %692, %46, %cst_227 {dimension_numbers = #tpu.dot_dimension_numbers<[1], [0], [0], [1], [0, 0, 1, 1], [], []>} : vector<2x32xbf16>, vector<32x64xbf16>, vector<2x64xf32> -> vector<2x64xf32>
    %694 = arith.addf %689, %693 : vector<2x64xf32>
    %695 = vector.extract_strided_slice %38 {offsets = [0, 5, 2, 0], sizes = [2, 1, 1, 32], strides = [1, 1, 1, 1]} : vector<2x8x8x32xf32> to vector<2x1x1x32xf32>
    %696 = vector.shape_cast %695 : vector<2x1x1x32xf32> to vector<2x32xf32>
    %697 = arith.truncf %696 : vector<2x32xf32> to vector<2x32xbf16>
    %cst_228 = arith.constant dense<0.000000e+00> : vector<2x64xf32>
    %698 = tpu.matmul %697, %48, %cst_228 {dimension_numbers = #tpu.dot_dimension_numbers<[1], [0], [0], [1], [0, 0, 1, 1], [], []>} : vector<2x32xbf16>, vector<32x64xbf16>, vector<2x64xf32> -> vector<2x64xf32>
    %699 = arith.addf %694, %698 : vector<2x64xf32>
    %700 = vector.extract_strided_slice %38 {offsets = [0, 5, 3, 0], sizes = [2, 1, 1, 32], strides = [1, 1, 1, 1]} : vector<2x8x8x32xf32> to vector<2x1x1x32xf32>
    %701 = vector.shape_cast %700 : vector<2x1x1x32xf32> to vector<2x32xf32>
    %702 = arith.truncf %701 : vector<2x32xf32> to vector<2x32xbf16>
    %cst_229 = arith.constant dense<0.000000e+00> : vector<2x64xf32>
    %703 = tpu.matmul %702, %50, %cst_229 {dimension_numbers = #tpu.dot_dimension_numbers<[1], [0], [0], [1], [0, 0, 1, 1], [], []>} : vector<2x32xbf16>, vector<32x64xbf16>, vector<2x64xf32> -> vector<2x64xf32>
    %704 = arith.addf %699, %703 : vector<2x64xf32>
    %705 = vector.extract_strided_slice %38 {offsets = [0, 5, 4, 0], sizes = [2, 1, 1, 32], strides = [1, 1, 1, 1]} : vector<2x8x8x32xf32> to vector<2x1x1x32xf32>
    %706 = vector.shape_cast %705 : vector<2x1x1x32xf32> to vector<2x32xf32>
    %707 = arith.truncf %706 : vector<2x32xf32> to vector<2x32xbf16>
    %cst_230 = arith.constant dense<0.000000e+00> : vector<2x64xf32>
    %708 = tpu.matmul %707, %52, %cst_230 {dimension_numbers = #tpu.dot_dimension_numbers<[1], [0], [0], [1], [0, 0, 1, 1], [], []>} : vector<2x32xbf16>, vector<32x64xbf16>, vector<2x64xf32> -> vector<2x64xf32>
    %709 = arith.addf %704, %708 : vector<2x64xf32>
    %710 = vector.extract_strided_slice %38 {offsets = [0, 5, 5, 0], sizes = [2, 1, 1, 32], strides = [1, 1, 1, 1]} : vector<2x8x8x32xf32> to vector<2x1x1x32xf32>
    %711 = vector.shape_cast %710 : vector<2x1x1x32xf32> to vector<2x32xf32>
    %712 = arith.truncf %711 : vector<2x32xf32> to vector<2x32xbf16>
    %cst_231 = arith.constant dense<0.000000e+00> : vector<2x64xf32>
    %713 = tpu.matmul %712, %54, %cst_231 {dimension_numbers = #tpu.dot_dimension_numbers<[1], [0], [0], [1], [0, 0, 1, 1], [], []>} : vector<2x32xbf16>, vector<32x64xbf16>, vector<2x64xf32> -> vector<2x64xf32>
    %714 = arith.addf %709, %713 : vector<2x64xf32>
    %715 = vector.extract_strided_slice %38 {offsets = [0, 6, 2, 0], sizes = [2, 1, 1, 32], strides = [1, 1, 1, 1]} : vector<2x8x8x32xf32> to vector<2x1x1x32xf32>
    %716 = vector.shape_cast %715 : vector<2x1x1x32xf32> to vector<2x32xf32>
    %717 = arith.truncf %716 : vector<2x32xf32> to vector<2x32xbf16>
    %cst_232 = arith.constant dense<0.000000e+00> : vector<2x64xf32>
    %718 = tpu.matmul %717, %56, %cst_232 {dimension_numbers = #tpu.dot_dimension_numbers<[1], [0], [0], [1], [0, 0, 1, 1], [], []>} : vector<2x32xbf16>, vector<32x64xbf16>, vector<2x64xf32> -> vector<2x64xf32>
    %719 = arith.addf %714, %718 : vector<2x64xf32>
    %720 = vector.extract_strided_slice %38 {offsets = [0, 6, 3, 0], sizes = [2, 1, 1, 32], strides = [1, 1, 1, 1]} : vector<2x8x8x32xf32> to vector<2x1x1x32xf32>
    %721 = vector.shape_cast %720 : vector<2x1x1x32xf32> to vector<2x32xf32>
    %722 = arith.truncf %721 : vector<2x32xf32> to vector<2x32xbf16>
    %cst_233 = arith.constant dense<0.000000e+00> : vector<2x64xf32>
    %723 = tpu.matmul %722, %58, %cst_233 {dimension_numbers = #tpu.dot_dimension_numbers<[1], [0], [0], [1], [0, 0, 1, 1], [], []>} : vector<2x32xbf16>, vector<32x64xbf16>, vector<2x64xf32> -> vector<2x64xf32>
    %724 = arith.addf %719, %723 : vector<2x64xf32>
    %725 = vector.extract_strided_slice %38 {offsets = [0, 6, 4, 0], sizes = [2, 1, 1, 32], strides = [1, 1, 1, 1]} : vector<2x8x8x32xf32> to vector<2x1x1x32xf32>
    %726 = vector.shape_cast %725 : vector<2x1x1x32xf32> to vector<2x32xf32>
    %727 = arith.truncf %726 : vector<2x32xf32> to vector<2x32xbf16>
    %cst_234 = arith.constant dense<0.000000e+00> : vector<2x64xf32>
    %728 = tpu.matmul %727, %60, %cst_234 {dimension_numbers = #tpu.dot_dimension_numbers<[1], [0], [0], [1], [0, 0, 1, 1], [], []>} : vector<2x32xbf16>, vector<32x64xbf16>, vector<2x64xf32> -> vector<2x64xf32>
    %729 = arith.addf %724, %728 : vector<2x64xf32>
    %730 = vector.extract_strided_slice %38 {offsets = [0, 6, 5, 0], sizes = [2, 1, 1, 32], strides = [1, 1, 1, 1]} : vector<2x8x8x32xf32> to vector<2x1x1x32xf32>
    %731 = vector.shape_cast %730 : vector<2x1x1x32xf32> to vector<2x32xf32>
    %732 = arith.truncf %731 : vector<2x32xf32> to vector<2x32xbf16>
    %cst_235 = arith.constant dense<0.000000e+00> : vector<2x64xf32>
    %733 = tpu.matmul %732, %62, %cst_235 {dimension_numbers = #tpu.dot_dimension_numbers<[1], [0], [0], [1], [0, 0, 1, 1], [], []>} : vector<2x32xbf16>, vector<32x64xbf16>, vector<2x64xf32> -> vector<2x64xf32>
    %734 = arith.addf %729, %733 : vector<2x64xf32>
    %735 = vector.extract_strided_slice %38 {offsets = [0, 7, 2, 0], sizes = [2, 1, 1, 32], strides = [1, 1, 1, 1]} : vector<2x8x8x32xf32> to vector<2x1x1x32xf32>
    %736 = vector.shape_cast %735 : vector<2x1x1x32xf32> to vector<2x32xf32>
    %737 = arith.truncf %736 : vector<2x32xf32> to vector<2x32xbf16>
    %cst_236 = arith.constant dense<0.000000e+00> : vector<2x64xf32>
    %738 = tpu.matmul %737, %64, %cst_236 {dimension_numbers = #tpu.dot_dimension_numbers<[1], [0], [0], [1], [0, 0, 1, 1], [], []>} : vector<2x32xbf16>, vector<32x64xbf16>, vector<2x64xf32> -> vector<2x64xf32>
    %739 = arith.addf %734, %738 : vector<2x64xf32>
    %740 = vector.extract_strided_slice %38 {offsets = [0, 7, 3, 0], sizes = [2, 1, 1, 32], strides = [1, 1, 1, 1]} : vector<2x8x8x32xf32> to vector<2x1x1x32xf32>
    %741 = vector.shape_cast %740 : vector<2x1x1x32xf32> to vector<2x32xf32>
    %742 = arith.truncf %741 : vector<2x32xf32> to vector<2x32xbf16>
    %cst_237 = arith.constant dense<0.000000e+00> : vector<2x64xf32>
    %743 = tpu.matmul %742, %66, %cst_237 {dimension_numbers = #tpu.dot_dimension_numbers<[1], [0], [0], [1], [0, 0, 1, 1], [], []>} : vector<2x32xbf16>, vector<32x64xbf16>, vector<2x64xf32> -> vector<2x64xf32>
    %744 = arith.addf %739, %743 : vector<2x64xf32>
    %745 = vector.extract_strided_slice %38 {offsets = [0, 7, 4, 0], sizes = [2, 1, 1, 32], strides = [1, 1, 1, 1]} : vector<2x8x8x32xf32> to vector<2x1x1x32xf32>
    %746 = vector.shape_cast %745 : vector<2x1x1x32xf32> to vector<2x32xf32>
    %747 = arith.truncf %746 : vector<2x32xf32> to vector<2x32xbf16>
    %cst_238 = arith.constant dense<0.000000e+00> : vector<2x64xf32>
    %748 = tpu.matmul %747, %68, %cst_238 {dimension_numbers = #tpu.dot_dimension_numbers<[1], [0], [0], [1], [0, 0, 1, 1], [], []>} : vector<2x32xbf16>, vector<32x64xbf16>, vector<2x64xf32> -> vector<2x64xf32>
    %749 = arith.addf %744, %748 : vector<2x64xf32>
    %750 = vector.extract_strided_slice %38 {offsets = [0, 7, 5, 0], sizes = [2, 1, 1, 32], strides = [1, 1, 1, 1]} : vector<2x8x8x32xf32> to vector<2x1x1x32xf32>
    %751 = vector.shape_cast %750 : vector<2x1x1x32xf32> to vector<2x32xf32>
    %752 = arith.truncf %751 : vector<2x32xf32> to vector<2x32xbf16>
    %cst_239 = arith.constant dense<0.000000e+00> : vector<2x64xf32>
    %753 = tpu.matmul %752, %70, %cst_239 {dimension_numbers = #tpu.dot_dimension_numbers<[1], [0], [0], [1], [0, 0, 1, 1], [], []>} : vector<2x32xbf16>, vector<32x64xbf16>, vector<2x64xf32> -> vector<2x64xf32>
    %754 = arith.addf %749, %753 : vector<2x64xf32>
    %755 = vector.broadcast %71 : vector<1x64xf32> to vector<2x64xf32>
    %756 = arith.addf %754, %755 : vector<2x64xf32>
    %cst_240 = arith.constant 0.000000e+00 : f32
    %757 = vector.broadcast %cst_240 : f32 to vector<2x64xf32>
    %758 = arith.maximumf %756, %757 : vector<2x64xf32>
    %759 = arith.truncf %758 : vector<2x64xf32> to vector<2x64xbf16>
    %cst_241 = arith.constant 0.000000e+00 : f32
    %760 = vector.broadcast %cst_241 : f32 to vector<2x64xf32>
    %761 = vector.extract_strided_slice %38 {offsets = [0, 4, 4, 0], sizes = [2, 1, 1, 32], strides = [1, 1, 1, 1]} : vector<2x8x8x32xf32> to vector<2x1x1x32xf32>
    %762 = vector.shape_cast %761 : vector<2x1x1x32xf32> to vector<2x32xf32>
    %763 = arith.truncf %762 : vector<2x32xf32> to vector<2x32xbf16>
    %cst_242 = arith.constant dense<0.000000e+00> : vector<2x64xf32>
    %764 = tpu.matmul %763, %40, %cst_242 {dimension_numbers = #tpu.dot_dimension_numbers<[1], [0], [0], [1], [0, 0, 1, 1], [], []>} : vector<2x32xbf16>, vector<32x64xbf16>, vector<2x64xf32> -> vector<2x64xf32>
    %765 = arith.addf %760, %764 : vector<2x64xf32>
    %766 = vector.extract_strided_slice %38 {offsets = [0, 4, 5, 0], sizes = [2, 1, 1, 32], strides = [1, 1, 1, 1]} : vector<2x8x8x32xf32> to vector<2x1x1x32xf32>
    %767 = vector.shape_cast %766 : vector<2x1x1x32xf32> to vector<2x32xf32>
    %768 = arith.truncf %767 : vector<2x32xf32> to vector<2x32xbf16>
    %cst_243 = arith.constant dense<0.000000e+00> : vector<2x64xf32>
    %769 = tpu.matmul %768, %42, %cst_243 {dimension_numbers = #tpu.dot_dimension_numbers<[1], [0], [0], [1], [0, 0, 1, 1], [], []>} : vector<2x32xbf16>, vector<32x64xbf16>, vector<2x64xf32> -> vector<2x64xf32>
    %770 = arith.addf %765, %769 : vector<2x64xf32>
    %771 = vector.extract_strided_slice %38 {offsets = [0, 4, 6, 0], sizes = [2, 1, 1, 32], strides = [1, 1, 1, 1]} : vector<2x8x8x32xf32> to vector<2x1x1x32xf32>
    %772 = vector.shape_cast %771 : vector<2x1x1x32xf32> to vector<2x32xf32>
    %773 = arith.truncf %772 : vector<2x32xf32> to vector<2x32xbf16>
    %cst_244 = arith.constant dense<0.000000e+00> : vector<2x64xf32>
    %774 = tpu.matmul %773, %44, %cst_244 {dimension_numbers = #tpu.dot_dimension_numbers<[1], [0], [0], [1], [0, 0, 1, 1], [], []>} : vector<2x32xbf16>, vector<32x64xbf16>, vector<2x64xf32> -> vector<2x64xf32>
    %775 = arith.addf %770, %774 : vector<2x64xf32>
    %776 = vector.extract_strided_slice %38 {offsets = [0, 4, 7, 0], sizes = [2, 1, 1, 32], strides = [1, 1, 1, 1]} : vector<2x8x8x32xf32> to vector<2x1x1x32xf32>
    %777 = vector.shape_cast %776 : vector<2x1x1x32xf32> to vector<2x32xf32>
    %778 = arith.truncf %777 : vector<2x32xf32> to vector<2x32xbf16>
    %cst_245 = arith.constant dense<0.000000e+00> : vector<2x64xf32>
    %779 = tpu.matmul %778, %46, %cst_245 {dimension_numbers = #tpu.dot_dimension_numbers<[1], [0], [0], [1], [0, 0, 1, 1], [], []>} : vector<2x32xbf16>, vector<32x64xbf16>, vector<2x64xf32> -> vector<2x64xf32>
    %780 = arith.addf %775, %779 : vector<2x64xf32>
    %781 = vector.extract_strided_slice %38 {offsets = [0, 5, 4, 0], sizes = [2, 1, 1, 32], strides = [1, 1, 1, 1]} : vector<2x8x8x32xf32> to vector<2x1x1x32xf32>
    %782 = vector.shape_cast %781 : vector<2x1x1x32xf32> to vector<2x32xf32>
    %783 = arith.truncf %782 : vector<2x32xf32> to vector<2x32xbf16>
    %cst_246 = arith.constant dense<0.000000e+00> : vector<2x64xf32>
    %784 = tpu.matmul %783, %48, %cst_246 {dimension_numbers = #tpu.dot_dimension_numbers<[1], [0], [0], [1], [0, 0, 1, 1], [], []>} : vector<2x32xbf16>, vector<32x64xbf16>, vector<2x64xf32> -> vector<2x64xf32>
    %785 = arith.addf %780, %784 : vector<2x64xf32>
    %786 = vector.extract_strided_slice %38 {offsets = [0, 5, 5, 0], sizes = [2, 1, 1, 32], strides = [1, 1, 1, 1]} : vector<2x8x8x32xf32> to vector<2x1x1x32xf32>
    %787 = vector.shape_cast %786 : vector<2x1x1x32xf32> to vector<2x32xf32>
    %788 = arith.truncf %787 : vector<2x32xf32> to vector<2x32xbf16>
    %cst_247 = arith.constant dense<0.000000e+00> : vector<2x64xf32>
    %789 = tpu.matmul %788, %50, %cst_247 {dimension_numbers = #tpu.dot_dimension_numbers<[1], [0], [0], [1], [0, 0, 1, 1], [], []>} : vector<2x32xbf16>, vector<32x64xbf16>, vector<2x64xf32> -> vector<2x64xf32>
    %790 = arith.addf %785, %789 : vector<2x64xf32>
    %791 = vector.extract_strided_slice %38 {offsets = [0, 5, 6, 0], sizes = [2, 1, 1, 32], strides = [1, 1, 1, 1]} : vector<2x8x8x32xf32> to vector<2x1x1x32xf32>
    %792 = vector.shape_cast %791 : vector<2x1x1x32xf32> to vector<2x32xf32>
    %793 = arith.truncf %792 : vector<2x32xf32> to vector<2x32xbf16>
    %cst_248 = arith.constant dense<0.000000e+00> : vector<2x64xf32>
    %794 = tpu.matmul %793, %52, %cst_248 {dimension_numbers = #tpu.dot_dimension_numbers<[1], [0], [0], [1], [0, 0, 1, 1], [], []>} : vector<2x32xbf16>, vector<32x64xbf16>, vector<2x64xf32> -> vector<2x64xf32>
    %795 = arith.addf %790, %794 : vector<2x64xf32>
    %796 = vector.extract_strided_slice %38 {offsets = [0, 5, 7, 0], sizes = [2, 1, 1, 32], strides = [1, 1, 1, 1]} : vector<2x8x8x32xf32> to vector<2x1x1x32xf32>
    %797 = vector.shape_cast %796 : vector<2x1x1x32xf32> to vector<2x32xf32>
    %798 = arith.truncf %797 : vector<2x32xf32> to vector<2x32xbf16>
    %cst_249 = arith.constant dense<0.000000e+00> : vector<2x64xf32>
    %799 = tpu.matmul %798, %54, %cst_249 {dimension_numbers = #tpu.dot_dimension_numbers<[1], [0], [0], [1], [0, 0, 1, 1], [], []>} : vector<2x32xbf16>, vector<32x64xbf16>, vector<2x64xf32> -> vector<2x64xf32>
    %800 = arith.addf %795, %799 : vector<2x64xf32>
    %801 = vector.extract_strided_slice %38 {offsets = [0, 6, 4, 0], sizes = [2, 1, 1, 32], strides = [1, 1, 1, 1]} : vector<2x8x8x32xf32> to vector<2x1x1x32xf32>
    %802 = vector.shape_cast %801 : vector<2x1x1x32xf32> to vector<2x32xf32>
    %803 = arith.truncf %802 : vector<2x32xf32> to vector<2x32xbf16>
    %cst_250 = arith.constant dense<0.000000e+00> : vector<2x64xf32>
    %804 = tpu.matmul %803, %56, %cst_250 {dimension_numbers = #tpu.dot_dimension_numbers<[1], [0], [0], [1], [0, 0, 1, 1], [], []>} : vector<2x32xbf16>, vector<32x64xbf16>, vector<2x64xf32> -> vector<2x64xf32>
    %805 = arith.addf %800, %804 : vector<2x64xf32>
    %806 = vector.extract_strided_slice %38 {offsets = [0, 6, 5, 0], sizes = [2, 1, 1, 32], strides = [1, 1, 1, 1]} : vector<2x8x8x32xf32> to vector<2x1x1x32xf32>
    %807 = vector.shape_cast %806 : vector<2x1x1x32xf32> to vector<2x32xf32>
    %808 = arith.truncf %807 : vector<2x32xf32> to vector<2x32xbf16>
    %cst_251 = arith.constant dense<0.000000e+00> : vector<2x64xf32>
    %809 = tpu.matmul %808, %58, %cst_251 {dimension_numbers = #tpu.dot_dimension_numbers<[1], [0], [0], [1], [0, 0, 1, 1], [], []>} : vector<2x32xbf16>, vector<32x64xbf16>, vector<2x64xf32> -> vector<2x64xf32>
    %810 = arith.addf %805, %809 : vector<2x64xf32>
    %811 = vector.extract_strided_slice %38 {offsets = [0, 6, 6, 0], sizes = [2, 1, 1, 32], strides = [1, 1, 1, 1]} : vector<2x8x8x32xf32> to vector<2x1x1x32xf32>
    %812 = vector.shape_cast %811 : vector<2x1x1x32xf32> to vector<2x32xf32>
    %813 = arith.truncf %812 : vector<2x32xf32> to vector<2x32xbf16>
    %cst_252 = arith.constant dense<0.000000e+00> : vector<2x64xf32>
    %814 = tpu.matmul %813, %60, %cst_252 {dimension_numbers = #tpu.dot_dimension_numbers<[1], [0], [0], [1], [0, 0, 1, 1], [], []>} : vector<2x32xbf16>, vector<32x64xbf16>, vector<2x64xf32> -> vector<2x64xf32>
    %815 = arith.addf %810, %814 : vector<2x64xf32>
    %816 = vector.extract_strided_slice %38 {offsets = [0, 6, 7, 0], sizes = [2, 1, 1, 32], strides = [1, 1, 1, 1]} : vector<2x8x8x32xf32> to vector<2x1x1x32xf32>
    %817 = vector.shape_cast %816 : vector<2x1x1x32xf32> to vector<2x32xf32>
    %818 = arith.truncf %817 : vector<2x32xf32> to vector<2x32xbf16>
    %cst_253 = arith.constant dense<0.000000e+00> : vector<2x64xf32>
    %819 = tpu.matmul %818, %62, %cst_253 {dimension_numbers = #tpu.dot_dimension_numbers<[1], [0], [0], [1], [0, 0, 1, 1], [], []>} : vector<2x32xbf16>, vector<32x64xbf16>, vector<2x64xf32> -> vector<2x64xf32>
    %820 = arith.addf %815, %819 : vector<2x64xf32>
    %821 = vector.extract_strided_slice %38 {offsets = [0, 7, 4, 0], sizes = [2, 1, 1, 32], strides = [1, 1, 1, 1]} : vector<2x8x8x32xf32> to vector<2x1x1x32xf32>
    %822 = vector.shape_cast %821 : vector<2x1x1x32xf32> to vector<2x32xf32>
    %823 = arith.truncf %822 : vector<2x32xf32> to vector<2x32xbf16>
    %cst_254 = arith.constant dense<0.000000e+00> : vector<2x64xf32>
    %824 = tpu.matmul %823, %64, %cst_254 {dimension_numbers = #tpu.dot_dimension_numbers<[1], [0], [0], [1], [0, 0, 1, 1], [], []>} : vector<2x32xbf16>, vector<32x64xbf16>, vector<2x64xf32> -> vector<2x64xf32>
    %825 = arith.addf %820, %824 : vector<2x64xf32>
    %826 = vector.extract_strided_slice %38 {offsets = [0, 7, 5, 0], sizes = [2, 1, 1, 32], strides = [1, 1, 1, 1]} : vector<2x8x8x32xf32> to vector<2x1x1x32xf32>
    %827 = vector.shape_cast %826 : vector<2x1x1x32xf32> to vector<2x32xf32>
    %828 = arith.truncf %827 : vector<2x32xf32> to vector<2x32xbf16>
    %cst_255 = arith.constant dense<0.000000e+00> : vector<2x64xf32>
    %829 = tpu.matmul %828, %66, %cst_255 {dimension_numbers = #tpu.dot_dimension_numbers<[1], [0], [0], [1], [0, 0, 1, 1], [], []>} : vector<2x32xbf16>, vector<32x64xbf16>, vector<2x64xf32> -> vector<2x64xf32>
    %830 = arith.addf %825, %829 : vector<2x64xf32>
    %831 = vector.extract_strided_slice %38 {offsets = [0, 7, 6, 0], sizes = [2, 1, 1, 32], strides = [1, 1, 1, 1]} : vector<2x8x8x32xf32> to vector<2x1x1x32xf32>
    %832 = vector.shape_cast %831 : vector<2x1x1x32xf32> to vector<2x32xf32>
    %833 = arith.truncf %832 : vector<2x32xf32> to vector<2x32xbf16>
    %cst_256 = arith.constant dense<0.000000e+00> : vector<2x64xf32>
    %834 = tpu.matmul %833, %68, %cst_256 {dimension_numbers = #tpu.dot_dimension_numbers<[1], [0], [0], [1], [0, 0, 1, 1], [], []>} : vector<2x32xbf16>, vector<32x64xbf16>, vector<2x64xf32> -> vector<2x64xf32>
    %835 = arith.addf %830, %834 : vector<2x64xf32>
    %836 = vector.extract_strided_slice %38 {offsets = [0, 7, 7, 0], sizes = [2, 1, 1, 32], strides = [1, 1, 1, 1]} : vector<2x8x8x32xf32> to vector<2x1x1x32xf32>
    %837 = vector.shape_cast %836 : vector<2x1x1x32xf32> to vector<2x32xf32>
    %838 = arith.truncf %837 : vector<2x32xf32> to vector<2x32xbf16>
    %cst_257 = arith.constant dense<0.000000e+00> : vector<2x64xf32>
    %839 = tpu.matmul %838, %70, %cst_257 {dimension_numbers = #tpu.dot_dimension_numbers<[1], [0], [0], [1], [0, 0, 1, 1], [], []>} : vector<2x32xbf16>, vector<32x64xbf16>, vector<2x64xf32> -> vector<2x64xf32>
    %840 = arith.addf %835, %839 : vector<2x64xf32>
    %841 = vector.broadcast %71 : vector<1x64xf32> to vector<2x64xf32>
    %842 = arith.addf %840, %841 : vector<2x64xf32>
    %cst_258 = arith.constant 0.000000e+00 : f32
    %843 = vector.broadcast %cst_258 : f32 to vector<2x64xf32>
    %844 = arith.maximumf %842, %843 : vector<2x64xf32>
    %845 = arith.truncf %844 : vector<2x64xf32> to vector<2x64xbf16>
    %c0_259 = arith.constant 0 : index
    %c0_260 = arith.constant 0 : index
    %c0_261 = arith.constant 0 : index
    %c0_262 = arith.constant 0 : index
    %846 = vector.load %arg6[%c0_259, %c0_260, %c0_261, %c0_262] : memref<3x3x64x64xbf16, #tpu.memory_space<vmem>>, vector<1x1x64x64xbf16>
    %847 = vector.shape_cast %846 : vector<1x1x64x64xbf16> to vector<64x64xbf16>
    %c0_263 = arith.constant 0 : index
    %c1_264 = arith.constant 1 : index
    %c0_265 = arith.constant 0 : index
    %c0_266 = arith.constant 0 : index
    %848 = vector.load %arg6[%c0_263, %c1_264, %c0_265, %c0_266] : memref<3x3x64x64xbf16, #tpu.memory_space<vmem>>, vector<1x1x64x64xbf16>
    %849 = vector.shape_cast %848 : vector<1x1x64x64xbf16> to vector<64x64xbf16>
    %c0_267 = arith.constant 0 : index
    %c2_268 = arith.constant 2 : index
    %c0_269 = arith.constant 0 : index
    %c0_270 = arith.constant 0 : index
    %850 = vector.load %arg6[%c0_267, %c2_268, %c0_269, %c0_270] : memref<3x3x64x64xbf16, #tpu.memory_space<vmem>>, vector<1x1x64x64xbf16>
    %851 = vector.shape_cast %850 : vector<1x1x64x64xbf16> to vector<64x64xbf16>
    %c1_271 = arith.constant 1 : index
    %c0_272 = arith.constant 0 : index
    %c0_273 = arith.constant 0 : index
    %c0_274 = arith.constant 0 : index
    %852 = vector.load %arg6[%c1_271, %c0_272, %c0_273, %c0_274] : memref<3x3x64x64xbf16, #tpu.memory_space<vmem>>, vector<1x1x64x64xbf16>
    %853 = vector.shape_cast %852 : vector<1x1x64x64xbf16> to vector<64x64xbf16>
    %c1_275 = arith.constant 1 : index
    %c1_276 = arith.constant 1 : index
    %c0_277 = arith.constant 0 : index
    %c0_278 = arith.constant 0 : index
    %854 = vector.load %arg6[%c1_275, %c1_276, %c0_277, %c0_278] : memref<3x3x64x64xbf16, #tpu.memory_space<vmem>>, vector<1x1x64x64xbf16>
    %855 = vector.shape_cast %854 : vector<1x1x64x64xbf16> to vector<64x64xbf16>
    %c1_279 = arith.constant 1 : index
    %c2_280 = arith.constant 2 : index
    %c0_281 = arith.constant 0 : index
    %c0_282 = arith.constant 0 : index
    %856 = vector.load %arg6[%c1_279, %c2_280, %c0_281, %c0_282] : memref<3x3x64x64xbf16, #tpu.memory_space<vmem>>, vector<1x1x64x64xbf16>
    %857 = vector.shape_cast %856 : vector<1x1x64x64xbf16> to vector<64x64xbf16>
    %c2_283 = arith.constant 2 : index
    %c0_284 = arith.constant 0 : index
    %c0_285 = arith.constant 0 : index
    %c0_286 = arith.constant 0 : index
    %858 = vector.load %arg6[%c2_283, %c0_284, %c0_285, %c0_286] : memref<3x3x64x64xbf16, #tpu.memory_space<vmem>>, vector<1x1x64x64xbf16>
    %859 = vector.shape_cast %858 : vector<1x1x64x64xbf16> to vector<64x64xbf16>
    %c2_287 = arith.constant 2 : index
    %c1_288 = arith.constant 1 : index
    %c0_289 = arith.constant 0 : index
    %c0_290 = arith.constant 0 : index
    %860 = vector.load %arg6[%c2_287, %c1_288, %c0_289, %c0_290] : memref<3x3x64x64xbf16, #tpu.memory_space<vmem>>, vector<1x1x64x64xbf16>
    %861 = vector.shape_cast %860 : vector<1x1x64x64xbf16> to vector<64x64xbf16>
    %c2_291 = arith.constant 2 : index
    %c2_292 = arith.constant 2 : index
    %c0_293 = arith.constant 0 : index
    %c0_294 = arith.constant 0 : index
    %862 = vector.load %arg6[%c2_291, %c2_292, %c0_293, %c0_294] : memref<3x3x64x64xbf16, #tpu.memory_space<vmem>>, vector<1x1x64x64xbf16>
    %863 = vector.shape_cast %862 : vector<1x1x64x64xbf16> to vector<64x64xbf16>
    %c0_295 = arith.constant 0 : index
    %c0_296 = arith.constant 0 : index
    %864 = vector.load %arg7[%c0_295, %c0_296] : memref<1x64xf32, #tpu.memory_space<vmem>>, vector<1x64xf32>
    %cst_297 = arith.constant 0.000000e+00 : f32
    %865 = vector.broadcast %cst_297 : f32 to vector<2x64xf32>
    %cst_298 = arith.constant dense<0.000000e+00> : vector<2x64xf32>
    %866 = tpu.matmul %157, %847, %cst_298 {dimension_numbers = #tpu.dot_dimension_numbers<[1], [0], [0], [1], [0, 0, 1, 1], [], []>} : vector<2x64xbf16>, vector<64x64xbf16>, vector<2x64xf32> -> vector<2x64xf32>
    %867 = arith.addf %865, %866 : vector<2x64xf32>
    %cst_299 = arith.constant dense<0.000000e+00> : vector<2x64xf32>
    %868 = tpu.matmul %243, %849, %cst_299 {dimension_numbers = #tpu.dot_dimension_numbers<[1], [0], [0], [1], [0, 0, 1, 1], [], []>} : vector<2x64xbf16>, vector<64x64xbf16>, vector<2x64xf32> -> vector<2x64xf32>
    %869 = arith.addf %867, %868 : vector<2x64xf32>
    %cst_300 = arith.constant dense<0.000000e+00> : vector<2x64xf32>
    %870 = tpu.matmul %329, %851, %cst_300 {dimension_numbers = #tpu.dot_dimension_numbers<[1], [0], [0], [1], [0, 0, 1, 1], [], []>} : vector<2x64xbf16>, vector<64x64xbf16>, vector<2x64xf32> -> vector<2x64xf32>
    %871 = arith.addf %869, %870 : vector<2x64xf32>
    %cst_301 = arith.constant dense<0.000000e+00> : vector<2x64xf32>
    %872 = tpu.matmul %415, %853, %cst_301 {dimension_numbers = #tpu.dot_dimension_numbers<[1], [0], [0], [1], [0, 0, 1, 1], [], []>} : vector<2x64xbf16>, vector<64x64xbf16>, vector<2x64xf32> -> vector<2x64xf32>
    %873 = arith.addf %871, %872 : vector<2x64xf32>
    %cst_302 = arith.constant dense<0.000000e+00> : vector<2x64xf32>
    %874 = tpu.matmul %501, %855, %cst_302 {dimension_numbers = #tpu.dot_dimension_numbers<[1], [0], [0], [1], [0, 0, 1, 1], [], []>} : vector<2x64xbf16>, vector<64x64xbf16>, vector<2x64xf32> -> vector<2x64xf32>
    %875 = arith.addf %873, %874 : vector<2x64xf32>
    %cst_303 = arith.constant dense<0.000000e+00> : vector<2x64xf32>
    %876 = tpu.matmul %587, %857, %cst_303 {dimension_numbers = #tpu.dot_dimension_numbers<[1], [0], [0], [1], [0, 0, 1, 1], [], []>} : vector<2x64xbf16>, vector<64x64xbf16>, vector<2x64xf32> -> vector<2x64xf32>
    %877 = arith.addf %875, %876 : vector<2x64xf32>
    %cst_304 = arith.constant dense<0.000000e+00> : vector<2x64xf32>
    %878 = tpu.matmul %673, %859, %cst_304 {dimension_numbers = #tpu.dot_dimension_numbers<[1], [0], [0], [1], [0, 0, 1, 1], [], []>} : vector<2x64xbf16>, vector<64x64xbf16>, vector<2x64xf32> -> vector<2x64xf32>
    %879 = arith.addf %877, %878 : vector<2x64xf32>
    %cst_305 = arith.constant dense<0.000000e+00> : vector<2x64xf32>
    %880 = tpu.matmul %759, %861, %cst_305 {dimension_numbers = #tpu.dot_dimension_numbers<[1], [0], [0], [1], [0, 0, 1, 1], [], []>} : vector<2x64xbf16>, vector<64x64xbf16>, vector<2x64xf32> -> vector<2x64xf32>
    %881 = arith.addf %879, %880 : vector<2x64xf32>
    %cst_306 = arith.constant dense<0.000000e+00> : vector<2x64xf32>
    %882 = tpu.matmul %845, %863, %cst_306 {dimension_numbers = #tpu.dot_dimension_numbers<[1], [0], [0], [1], [0, 0, 1, 1], [], []>} : vector<2x64xbf16>, vector<64x64xbf16>, vector<2x64xf32> -> vector<2x64xf32>
    %883 = arith.addf %881, %882 : vector<2x64xf32>
    %884 = vector.broadcast %864 : vector<1x64xf32> to vector<2x64xf32>
    %885 = arith.addf %883, %884 : vector<2x64xf32>
    %cst_307 = arith.constant 0.000000e+00 : f32
    %886 = vector.broadcast %cst_307 : f32 to vector<2x64xf32>
    %887 = arith.maximumf %885, %886 : vector<2x64xf32>
    %888 = arith.truncf %887 : vector<2x64xf32> to vector<2x64xbf16>
    %c0_308 = arith.constant 0 : index
    %c0_309 = arith.constant 0 : index
    %889 = vector.load %arg8[%c0_308, %c0_309] : memref<64x1024xbf16, #tpu.memory_space<vmem>>, vector<64x1024xbf16>
    %cst_310 = arith.constant dense<0.000000e+00> : vector<2x1024xf32>
    %890 = tpu.matmul %888, %889, %cst_310 {dimension_numbers = #tpu.dot_dimension_numbers<[1], [0], [0], [1], [0, 0, 1, 1], [], []>} : vector<2x64xbf16>, vector<64x1024xbf16>, vector<2x1024xf32> -> vector<2x1024xf32>
    %c0_311 = arith.constant 0 : index
    %c0_312 = arith.constant 0 : index
    %891 = vector.load %arg9[%c0_311, %c0_312] : memref<1x1024xf32, #tpu.memory_space<vmem>>, vector<1x1024xf32>
    %892 = vector.broadcast %891 : vector<1x1024xf32> to vector<2x1024xf32>
    %893 = arith.addf %890, %892 : vector<2x1024xf32>
    %cst_313 = arith.constant 0.000000e+00 : f32
    %894 = vector.broadcast %cst_313 : f32 to vector<2x1024xf32>
    %895 = arith.maximumf %893, %894 : vector<2x1024xf32>
    %896 = arith.truncf %895 : vector<2x1024xf32> to vector<2x1024xbf16>
    %c0_314 = arith.constant 0 : index
    %c0_315 = arith.constant 0 : index
    %897 = vector.load %arg10[%c0_314, %c0_315] : memref<1024x128xbf16, #tpu.memory_space<vmem>>, vector<1024x128xbf16>
    %cst_316 = arith.constant dense<0.000000e+00> : vector<2x128xf32>
    %898 = tpu.matmul %896, %897, %cst_316 {dimension_numbers = #tpu.dot_dimension_numbers<[1], [0], [0], [1], [0, 0, 1, 1], [], []>} : vector<2x1024xbf16>, vector<1024x128xbf16>, vector<2x128xf32> -> vector<2x128xf32>
    %c0_317 = arith.constant 0 : index
    %c0_318 = arith.constant 0 : index
    %899 = vector.load %arg11[%c0_317, %c0_318] : memref<1x128xf32, #tpu.memory_space<vmem>>, vector<1x128xf32>
    %900 = vector.broadcast %899 : vector<1x128xf32> to vector<2x128xf32>
    %901 = arith.addf %898, %900 : vector<2x128xf32>
    %c0_319 = arith.constant 0 : index
    %c0_320 = arith.constant 0 : index
    %902 = vector.load %arg12[%c0_319, %c0_320] : memref<2x128xf32, #tpu.memory_space<vmem>>, vector<2x128xf32>
    tpu.vector_store %arg12[%c0_319, %c0_320], %901 {strides = array<i32>} : memref<2x128xf32, #tpu.memory_space<vmem>>, vector<2x128xf32>,
    return
  }
  func.func @transform_0(%arg0: i32) -> (i32, i32, i32, i32) {
    %c0_i32 = arith.constant 0 : i32
    %c0_i32_0 = arith.constant 0 : i32
    %c0_i32_1 = arith.constant 0 : i32
    %c0_i32_2 = arith.constant 0 : i32
    %c0_i32_3 = arith.constant 0 : i32
    return %c0_i32, %c0_i32_0, %c0_i32_1, %c0_i32_2 : i32, i32, i32, i32
  }
  func.func @transform_1(%arg0: i32) -> (i32, i32, i32) {
    %c0_i32 = arith.constant 0 : i32
    %c0_i32_0 = arith.constant 0 : i32
    %c0_i32_1 = arith.constant 0 : i32
    %c0_i32_2 = arith.constant 0 : i32
    return %c0_i32, %c0_i32_0, %c0_i32_1 : i32, i32, i32
  }
  func.func @transform_2(%arg0: i32) -> (i32, i32) {
    %c0_i32 = arith.constant 0 : i32
    %c0_i32_0 = arith.constant 0 : i32
    %c0_i32_1 = arith.constant 0 : i32
    return %c0_i32, %c0_i32_0 : i32, i32
  }
  func.func @transform_3(%arg0: i32) -> (i32, i32, i32, i32) {
    %c0_i32 = arith.constant 0 : i32
    %c0_i32_0 = arith.constant 0 : i32
    %c0_i32_1 = arith.constant 0 : i32
    %c0_i32_2 = arith.constant 0 : i32
    %c0_i32_3 = arith.constant 0 : i32
    return %c0_i32, %c0_i32_0, %c0_i32_1, %c0_i32_2 : i32, i32, i32, i32
  }
  func.func @transform_4(%arg0: i32) -> (i32, i32) {
    %c0_i32 = arith.constant 0 : i32
    %c0_i32_0 = arith.constant 0 : i32
    %c0_i32_1 = arith.constant 0 : i32
    return %c0_i32, %c0_i32_0 : i32, i32
  }
  func.func @transform_5(%arg0: i32) -> (i32, i32, i32, i32) {
    %c0_i32 = arith.constant 0 : i32
    %c0_i32_0 = arith.constant 0 : i32
    %c0_i32_1 = arith.constant 0 : i32
    %c0_i32_2 = arith.constant 0 : i32
    %c0_i32_3 = arith.constant 0 : i32
    return %c0_i32, %c0_i32_0, %c0_i32_1, %c0_i32_2 : i32, i32, i32, i32
  }
  func.func @transform_6(%arg0: i32) -> (i32, i32) {
    %c0_i32 = arith.constant 0 : i32
    %c0_i32_0 = arith.constant 0 : i32
    %c0_i32_1 = arith.constant 0 : i32
    return %c0_i32, %c0_i32_0 : i32, i32
  }
  func.func @transform_7(%arg0: i32) -> (i32, i32) {
    %c0_i32 = arith.constant 0 : i32
    %c0_i32_0 = arith.constant 0 : i32
    %c0_i32_1 = arith.constant 0 : i32
    return %c0_i32, %c0_i32_0 : i32, i32
  }
  func.func @transform_8(%arg0: i32) -> (i32, i32) {
    %c0_i32 = arith.constant 0 : i32
    %c0_i32_0 = arith.constant 0 : i32
    %c0_i32_1 = arith.constant 0 : i32
    return %c0_i32, %c0_i32_0 : i32, i32
  }
  func.func @transform_9(%arg0: i32) -> (i32, i32) {
    %c0_i32 = arith.constant 0 : i32
    %c0_i32_0 = arith.constant 0 : i32
    %c0_i32_1 = arith.constant 0 : i32
    return %c0_i32, %c0_i32_0 : i32, i32
  }
  func.func @transform_10(%arg0: i32) -> (i32, i32) {
    %c0_i32 = arith.constant 0 : i32
    %c0_i32_0 = arith.constant 0 : i32
    %c0_i32_1 = arith.constant 0 : i32
    return %c0_i32, %c0_i32_0 : i32, i32
  }
  func.func @transform_11(%arg0: i32) -> (i32, i32) {
    %c0_i32 = arith.constant 0 : i32
    %c0_i32_0 = arith.constant 0 : i32
    %c0_i32_1 = arith.constant 0 : i32
    return %c0_i32, %c0_i32_0 : i32, i32
  }
}

</mosaic_0001>

<bundles_post_ra>
// kernel: atari_pgn_forward.1
= control target key start
LH: loop header
LB: loop body
LE: loop exit
PB: predicated region body
PF: predicated region fallthrough
CT: control target
= control target key end

     0   :  { %vm215_vm0 = vcmask 1046528   ;;  %vm321_vm1 = vcmask 523264   ;;  %vm12551_vm2 = vmmov 0   ;;  %vm1359_vm3 = vcmask 1041409   ;;  %s15939_s1 = inlined_call_operand.vmem [shape: bf16[4,64,32], index: 1, kind: input, shape index: {}]   ;;  %s15940_s0 = inlined_call_operand.vmem [shape: u8[2,9,9,64], index: 0, kind: input, shape index: {}]   ;;  %s15941_s3 = inlined_call_operand.vmem [shape: bf16[4,4,32,64], index: 3, kind: input, shape index: {}]   ;;  %s15942_s2 = inlined_call_operand.vmem [shape: f32[1,32], index: 2, kind: input, shape index: {}]   ;;  %s15943_s5 = inlined_call_operand.vmem [shape: bf16[3,3,64,64], index: 5, kind: input, shape index: {}]   ;;  %s15944_s4 = inlined_call_operand.vmem [shape: f32[1,64], index: 4, kind: input, shape index: {}]   ;;  %s15945_s7 = inlined_call_operand.vmem [shape: bf16[64,1024], index: 7, kind: input, shape index: {}]   ;;  %s15946_s9 = inlined_call_operand.vmem [shape: bf16[1024,128], index: 9, kind: input, shape index: {}]   ;;  %s15947_s6 = inlined_call_operand.vmem [shape: f32[1,64], index: 6, kind: input, shape index: {}]   ;;  %s15948_s8 = inlined_call_operand.vmem [shape: f32[1,1024], index: 8, kind: input, shape index: {}]   ;;  %s15949_s10 = inlined_call_operand.vmem [shape: f32[1,128], index: 10, kind: input, shape index: {}]   ;;  %s15950_s11 = inlined_call_operand.vmem [shape: f32[2,128], index: 11, kind: output, shape index: {}]  }
   0x1   :  { %v12335_v0 = vld [vmem:[%s15939_s1 + $0x20] sm:$0xff]   ;;  %v12336_v1 = vld [vmem:[%s15939_s1 + $0x28] sm:$0xff]   ;;  %v12337_v2 = vld [vmem:[%s15939_s1 + $0x30] sm:$0xff]   ;;  %vm1374_vm4 = vcmask 261120  }
   0x2   :  { %10928 = vmatprep.subr.bf16.mxu0 %v12335_v0  ;;  %v39_v3 = vld [vmem:[%s15940_s0] ss:$4 sps:$2 sm:$0xf]   ;;  %v119_v4 = vld [vmem:[%s15940_s0 + $0x2] sm:$0x1]  ;;  %v12338_v19 = vld [vmem:[%s15939_s1 + $0x38] sm:$0xff]  }
   0x3   :  { %10929 = vmatpush3.bf16.msra.mxu0 %v12335_v0  ;;  %v55_v5 = vunpack.c.0.s8 %v39_v3  ;;  %v56_v6 = vunpack.c.1.s8 %v39_v3  ;;  %v120_v7 = vld [vmem:[%s15940_s0 + $0x6] sm:$0x1]  ;;  %v135_v8 = vunpack.c.0.s8 %v119_v4  ;;  %v41_v9 = vld [vmem:[%s15940_s0 + $0x8] ss:$4 sps:$2 sm:$0xf]  }
   0x4   :  { %10930 = vmatprep.subr.bf16.mxu0 %v12336_v1  ;;  %v136_v10 = vunpack.c.0.s8 %v120_v7  ;;  %v57_v11 = vunpack.c.0.s8 %v41_v9  ;;  %v58_v12 = vunpack.c.1.s8 %v41_v9  ;;  %v121_v13 = vld [vmem:[%s15940_s0 + $0xa] sm:$0x1]  ;;  %v122_v14 = vld [vmem:[%s15940_s0 + $0xe] sm:$0x1]  ;;  %v123_v33 = vld [vmem:[%s15940_s0 + $0x12] sm:$0x1] }
   0x5   :  { %v12640_v15 = vand.u32 255, %v55_v5  ;;  %v12642_v16 = vand.u32 255, %v56_v6  ;;  %v151_v17 = vand.u32 255, %v135_v8  ;;  %v137_v18 = vunpack.c.0.s8 %v121_v13  ;;  %v43_v32 = vld [vmem:[%s15940_s0 + $0x10] ss:$4 sps:$2 sm:$0xf]  }
   0x6   :  { %v152_v20 = vand.u32 255, %v136_v10  ;;  %v12647_v21 = vand.u32 255, %v57_v11  ;;  %v12649_v22 = vand.u32 255, %v58_v12  ;;  %v138_v23 = vunpack.c.0.s8 %v122_v14  ;;  %v12339_v38 = vld [vmem:[%s15939_s1] sm:$0xff]   ;;  %v124_v39 = vld [vmem:[%s15940_s0 + $0x16] sm:$0x1] }
   0x7   :  { %10931 = vmatpush3.bf16.msra.mxu0 %v12336_v1  ;;  %v87_v24 = vcvt.s32.f32 %v12640_v15  ;;  %v88_v25 = vcvt.s32.f32 %v12642_v16  ;;  %v167_v26 = vcvt.s32.f32 %v151_v17  ;;  %v153_v27 = vand.u32 255, %v137_v18  ;;  %v45_v47 = vld [vmem:[%s15940_s0 + $0x18] ss:$4 sps:$2 sm:$0xf]   ;;  %v125_v56 = vld [vmem:[%s15940_s0 + $0x1a] sm:$0x1] }
   0x8   :  { %10932 = vmatprep.subr.bf16.mxu0 %v12337_v2  ;;  %v168_v28 = vcvt.s32.f32 %v152_v20  ;;  %v89_v29 = vcvt.s32.f32 %v12647_v21  ;;  %v90_v30 = vcvt.s32.f32 %v12649_v22  ;;  %v154_v31 = vand.u32 255, %v138_v23  ;;  %v126_v61 = vld [vmem:[%s15940_s0 + $0x1e] sm:$0x1]  ;;  %v47_v7 = vld [vmem:[%s15940_s0 + $0x24] ss:$4 sps:$2 sm:$0xf]  }
   0x9   :  { %v216_v34 = vrot.slane %v87_v24, 1  ;;  %v217_v35 = vrot.slane %v167_v26, 1  ;;  %v219_v36 = vrot.slane %v88_v25, 1  ;;  %v169_v37 = vcvt.s32.f32 %v153_v27  ;;  %v127_v12 = vld [vmem:[%s15940_s0 + $0x26] sm:$0x1]  ;;  %v12341_v13 = vld [vmem:[%s15939_s1 + $0x10] sm:$0xff]  }
   0xa   :  { %v220_v40 = vrot.slane %v168_v28, 1  ;;  %v170_v41 = vcvt.s32.f32 %v154_v31  ;;  %v222_v42 = vrot.slane %v89_v29, 1  ;;  %v225_v45 = vrot.slane %v90_v30, 1  ;;  %v49_v20 = vld [vmem:[%s15940_s0 + $0x2c] ss:$4 sps:$2 sm:$0xf]  }
   0xb   :  { %10933 = vmatpush3.bf16.msra.mxu0 %v12337_v2  ;;  %v218_v43 = vsel %vm215_vm0, %v216_v34, %v217_v35  ;;  %v223_v44 = vrot.slane %v169_v37, 1  ;;  %v59_v46 = vunpack.c.0.s8 %v43_v32  ;;  %v60_v50 = vunpack.c.1.s8 %v43_v32  ;;  %v12340_v2 = vld [vmem:[%s15939_s1 + $0x8] sm:$0xff]   ;;  %v12345_v16 = vld [vmem:[%s15939_s1 + $0x50] sm:$0xff]  }
   0xc   :  { %10934 = vmatprep.subr.bf16.mxu0 %v12338_v19  ;;  %v221_v48 = vsel %vm215_vm0, %v219_v36, %v220_v40  ;;  %v226_v49 = vrot.slane %v170_v41, 1  ;;  %v139_v51 = vunpack.c.0.s8 %v123_v33  ;;  %v140_v55 = vunpack.c.0.s8 %v124_v39  ;;  %v128_v31 = vld [vmem:[%s15940_s0 + $0x2a] sm:$0x1] }
   0xd   :  { %v280_v52 = vpack.c.bf16 %v221_v48, %v218_v43  ;;  %v224_v53 = vsel %vm215_vm0, %v222_v42, %v223_v44  ;;  %v12681_v54 = vand.u32 255, %v59_v46  ;;  %v12687_v58 = vand.u32 255, %v60_v50  ;;  %v129_v44 = vld [vmem:[%s15940_s0 + $0x2e] sm:$0x1] }
   0xe   :  { %v227_v57 = vsel %vm215_vm0, %v225_v45, %v226_v49  ;;  %v155_v59 = vand.u32 255, %v139_v51  ;;  %v61_v60 = vunpack.c.0.s8 %v45_v47  ;;  %v156_v0 = vand.u32 255, %v140_v55  ;;  %v12342_v49 = vld [vmem:[%s15939_s1 + $0x18] sm:$0xff]   ;;  %v130_v55 = vld [vmem:[%s15940_s0 + $0x32] sm:$0x1]  ;;  %v12344_v15 = vld [vmem:[%s15939_s1 + $0x48] sm:$0xff]  }
   0xf   :  { %10935 = vmatpush3.bf16.msra.mxu0 %v12338_v19  ;;  %10936 = vmatprep.mubr.msk.bf16.mxu0 %vm321_vm1, %v280_v52  ;;  %v281_v62 = vpack.c.bf16 %v227_v57, %v224_v53  ;;  %v91_v63 = vcvt.s32.f32 %v12681_v54  ;;  %v62_v1 = vunpack.c.1.s8 %v45_v47  ;;  %v92_v3 = vcvt.s32.f32 %v12687_v58  ;;  %v12858_v54 = vld [vmem:[%s15939_s1 + $0x60] sm:$0xff]  }
  0x10   :  { %10952 = vmatprep.subr.bf16.mxu0 %v12339_v38  ;;  %v171_v4 = vcvt.s32.f32 %v155_v59  ;;  %v12698_v5 = vand.u32 255, %v61_v60  ;;  %v141_v6 = vunpack.c.0.s8 %v125_v56  ;;  %v172_v8 = vcvt.s32.f32 %v156_v0 }
  0x11   :  { %v228_v9 = vrot.slane %v91_v63, 1  ;;  %v12706_v10 = vand.u32 255, %v62_v1  ;;  %v142_v11 = vunpack.c.0.s8 %v126_v61  ;;  %v231_v17 = vrot.slane %v92_v3, 1  ;;  %v51_v61 = vld [vmem:[%s15940_s0 + $0x34] ss:$4 sps:$2 sm:$0xf]  }
  0x12   :  { %10937 = vmatmul.mubr.msk.bf16.vlgmr.msra.gmra.mrb[0].mxu0 %vm321_vm1, %v281_v62  ;;  %v229_v14 = vrot.slane %v171_v4, 1  ;;  %v93_v18 = vcvt.s32.f32 %v12698_v5  ;;  %v157_v19 = vand.u32 255, %v141_v6  ;;  %v232_v23 = vrot.slane %v172_v8, 1 }
  0x13   :  { %10953 = vmatpush3.bf16.msra.mxu0 %v12339_v38  ;;  %v94_v26 = vcvt.s32.f32 %v12706_v10  ;;  %v158_v27 = vand.u32 255, %v142_v11  ;;  %v63_v28 = vunpack.c.0.s8 %v47_v7  ;;  %v64_v35 = vunpack.c.1.s8 %v47_v7  ;;  %v132_v11 = vld [vmem:[%s15940_s0 + $0x3a] sm:$0x1] }
  0x14   :  { %10954 = vmatprep.subr.bf16.mxu0 %v12340_v2  ;;  %v230_v32 = vsel %vm215_vm0, %v228_v9, %v229_v14  ;;  %v173_v33 = vcvt.s32.f32 %v157_v19  ;;  %v234_v34 = vrot.slane %v93_v18, 1  ;;  %v233_v36 = vsel %vm215_vm0, %v231_v17, %v232_v23  ;;  %v131_v9 = vld [vmem:[%s15940_s0 + $0x36] sm:$0x1] }
  0x15   :  { %v174_v37 = vcvt.s32.f32 %v158_v27  ;;  %v237_v38 = vrot.slane %v94_v26, 1  ;;  %v12730_v39 = vand.u32 255, %v63_v28  ;;  %v282_v40 = vpack.c.bf16 %v233_v36, %v230_v32 }
  0x16   :  { %v235_v41 = vrot.slane %v173_v33, 1  ;;  %v12732_v42 = vand.u32 255, %v64_v35  ;;  %v143_v43 = vunpack.c.0.s8 %v127_v12  ;;  %v144_v47 = vunpack.c.0.s8 %v128_v31  ;;  %v12769_v12 = vld [vmem:[%s15939_s1 + $0x40] sm:$0xff]  }
  0x17   :  { %10955 = vmatpush3.bf16.msra.mxu0 %v12340_v2  ;;  %v238_v45 = vrot.slane %v174_v37, 1  ;;  %v95_v46 = vcvt.s32.f32 %v12730_v39  ;;  %v65_v48 = vunpack.c.0.s8 %v49_v20  ;;  %10940 = vmatprep.mubr.msk.bf16.mxu0 %vm321_vm1, %v282_v40  ;;  %v66_v53 = vunpack.c.1.s8 %v49_v20  ;;  %v53_v35 = vld [vmem:[%s15940_s0 + $0x3c] ss:$4 sps:$2 sm:$0xf]  }
  0x18   :  { %10956 = vmatprep.subr.bf16.mxu0 %v12341_v13  ;;  %v236_v50 = vsel %vm215_vm0, %v234_v34, %v235_v41  ;;  %v96_v51 = vcvt.s32.f32 %v12732_v42  ;;  %v159_v52 = vand.u32 255, %v143_v43  ;;  %v160_v57 = vand.u32 255, %v144_v47  ;;  %v133_v47 = vld [vmem:[%s15940_s0 + $0x3e] sm:$0x1] }
  0x19   :  { %v239_v56 = vsel %vm215_vm0, %v237_v38, %v238_v45  ;;  %v240_v59 = vrot.slane %v95_v46, 1  ;;  %v12750_v60 = vand.u32 255, %v65_v48  ;;  %v12757_v2 = vand.u32 255, %v66_v53  ;;  %v134_v48 = vld [vmem:[%s15940_s0 + $0x42] sm:$0x1] }
  0x1a   :  { %v283_v62 = vpack.c.bf16 %v239_v56, %v236_v50  ;;  %v175_v0 = vcvt.s32.f32 %v159_v52  ;;  %v243_v1 = vrot.slane %v96_v51, 1  ;;  %v176_v4 = vcvt.s32.f32 %v160_v57 }
  0x1b   :  { %10957 = vmatpush3.bf16.msra.mxu0 %v12341_v13  ;;  %v97_v6 = vcvt.s32.f32 %v12750_v60  ;;  %v145_v7 = vunpack.c.0.s8 %v129_v44  ;;  %v146_v8 = vunpack.c.0.s8 %v130_v55  ;;  %v98_v14 = vcvt.s32.f32 %v12757_v2  ;;  %v9784_v2 = vld [vmem:[%s15940_s0 + $0x1c] ss:$4 sps:$2 sm:$0xf]  }
  0x1c   :  { %10958 = vmatprep.subr.bf16.mxu0 %v12342_v49  ;;  %10941 = vmatmul.mubr.msk.bf16.gmra.mrb[4].mxu0 %vm321_vm1, %v283_v62  ;;  %v241_v13 = vrot.slane %v175_v0, 1  ;;  %v67_v17 = vunpack.c.0.s8 %v51_v61  ;;  %v68_v19 = vunpack.c.1.s8 %v51_v61  ;;  %v244_v20 = vrot.slane %v176_v4, 1 }
  0x1d   :  { %v161_v23 = vand.u32 255, %v145_v7  ;;  %v162_v27 = vand.u32 255, %v146_v8  ;;  %v246_v28 = vrot.slane %v97_v6, 1  ;;  %v249_v32 = vrot.slane %v98_v14, 1 }
  0x1e   :  { %v242_v31 = vsel %vm215_vm0, %v240_v59, %v241_v13  ;;  %v12778_v33 = vand.u32 255, %v67_v17  ;;  %v12780_v34 = vand.u32 255, %v68_v19  ;;  %v245_v36 = vsel %vm215_vm0, %v243_v1, %v244_v20 }
  0x1f   :  { %10959 = vmatpush3.bf16.msra.mxu0 %v12342_v49  ;;  %v177_v37 = vcvt.s32.f32 %v161_v23  ;;  %v178_v38 = vcvt.s32.f32 %v162_v27  ;;  %v147_v40 = vunpack.c.0.s8 %v131_v9  ;;  %v284_v41 = vpack.c.bf16 %v245_v36, %v242_v31 }
  0x20   :  { %10976 = vmatprep.subr.bf16.mxu0 %v12769_v12  ;;  %v99_v43 = vcvt.s32.f32 %v12778_v33  ;;  %v100_v44 = vcvt.s32.f32 %v12780_v34  ;;  %v148_v45 = vunpack.c.0.s8 %v132_v11  ;;  %v69_v53 = vunpack.c.0.s8 %v53_v35  ;;  %v9786_v34 = vld [vmem:[%s15940_s0 + $0x28] ss:$4 sps:$2 sm:$0xf]  }
  0x21   :  { %v247_v49 = vrot.slane %v177_v37, 1  ;;  %v250_v50 = vrot.slane %v178_v38, 1  ;;  %v163_v52 = vand.u32 255, %v147_v40  ;;  %10944 = vmatprep.mubr.msk.bf16.mxu0 %vm321_vm1, %v284_v41  ;;  %v70_v59 = vunpack.c.1.s8 %v53_v35 }
  0x22   :  { %v164_v55 = vand.u32 255, %v148_v45  ;;  %v252_v56 = vrot.slane %v99_v43, 1  ;;  %v255_v57 = vrot.slane %v100_v44, 1  ;;  %v12802_v1 = vand.u32 255, %v69_v53 }
  0x23   :  { %v248_v61 = vsel %vm215_vm0, %v246_v28, %v247_v49  ;;  %v251_v62 = vsel %vm215_vm0, %v249_v32, %v250_v50  ;;  %v179_v0 = vcvt.s32.f32 %v163_v52  ;;  %v12804_v8 = vand.u32 255, %v70_v59 }
  0x24   :  { %v285_v4 = vpack.c.bf16 %v251_v62, %v248_v61  ;;  %v180_v7 = vcvt.s32.f32 %v164_v55  ;;  %v149_v9 = vunpack.c.0.s8 %v133_v47  ;;  %v101_v13 = vcvt.s32.f32 %v12802_v1  ;;  %v9814_v62 = vld [vmem:[%s15940_s0 + $0x4] ss:$4 sps:$2 sm:$0xf]  }
  0x25   :  { %v253_v11 = vrot.slane %v179_v0, 1  ;;  %v150_v17 = vunpack.c.0.s8 %v134_v48  ;;  %v102_v20 = vcvt.s32.f32 %v12804_v8  ;;  %v103_v48 = vpack.c.bf16 %v88_v25, %v87_v24  ;;  %v12346_v24 = vld [vmem:[%s15939_s1 + $0x58] sm:$0xff]   ;;  %v9778_v25 = vld [vmem:[%s15940_s0 + $0x4] ss:$4 sps:$2 sm:$0xf]  }
  0x26   :  { %10945 = vmatmul.mubr.msk.bf16.gmra.mrb[8].mxu0 %vm321_vm1, %v285_v4  ;;  %v256_v19 = vrot.slane %v180_v7, 1  ;;  %v165_v23 = vand.u32 255, %v149_v9  ;;  %v258_v35 = vrot.slane %v101_v13, 1  ;;  %v104_v50 = vpack.c.bf16 %v90_v30, %v89_v29  ;;  %v9815_v0 = vld [vmem:[%s15940_s0 + $0x6] sm:$0x1] }
  0x27   :  { %v254_v27 = vsel %vm215_vm0, %v252_v56, %v253_v11  ;;  %v166_v28 = vand.u32 255, %v150_v17  ;;  %v261_v38 = vrot.slane %v102_v20, 1  ;;  %v105_v52 = vpack.c.bf16 %v92_v3, %v91_v63  ;;  %v9780_v63 = vld [vmem:[%s15940_s0 + $0xc] ss:$4 sps:$2 sm:$0xf]  }
  0x28   :  { %v257_v31 = vsel %vm215_vm0, %v255_v57, %v256_v19  ;;  %v181_v32 = vcvt.s32.f32 %v165_v23  ;;  %v106_v21 = vpack.c.bf16 %v94_v26, %v93_v18  ;;  %v107_v22 = vpack.c.bf16 %v96_v51, %v95_v46  ;;  %v9782_v18 = vld [vmem:[%s15940_s0 + $0x14] ss:$4 sps:$2 sm:$0xf]   ;;  %v9817_v7 = vld [vmem:[%s15940_s0 + $0xa] sm:$0x1] }
  0x29   :  { %v286_v36 = vpack.c.bf16 %v257_v31, %v254_v27  ;;  %v182_v37 = vcvt.s32.f32 %v166_v28  ;;  %v605_v29 = vunpack.c.0.s8 %v9778_v25  ;;  %v606_v30 = vunpack.c.1.s8 %v9778_v25  ;;  %v9788_v56 = vld [vmem:[%s15940_s0 + $0x30] ss:$4 sps:$2 sm:$0xf]   ;;  %v9790_v17 = vld [vmem:[%s15940_s0 + $0x38] ss:$4 sps:$2 sm:$0xf]  }
  0x2a   :  { %v259_v40 = vrot.slane %v181_v32, 1  ;;  %v108_v58 = vpack.c.bf16 %v98_v14, %v97_v6  ;;  %v109_v3 = vpack.c.bf16 %v100_v44, %v99_v43  ;;  %v607_v26 = vunpack.c.0.s8 %v9780_v63 }
  0x2b   :  { %10948 = vmatprep.mubr.msk.bf16.mxu0 %vm321_vm1, %v286_v36  ;;  %v262_v41 = vrot.slane %v182_v37, 1  ;;  %v621_v5 = vand.u32 255, %v605_v29  ;;  %v622_v10 = vand.u32 255, %v606_v30  ;;  %v608_v39 = vunpack.c.1.s8 %v9780_v63 }
  0x2c   :  { %v260_v45 = vsel %vm215_vm0, %v258_v35, %v259_v40  ;;  %v609_v42 = vunpack.c.0.s8 %v9782_v18  ;;  %v610_v60 = vunpack.c.1.s8 %v9782_v18  ;;  %v623_v6 = vand.u32 255, %v607_v26  ;;  %v9822_v18 = vld [vmem:[%s15940_s0 + $0x14] ss:$4 sps:$2 sm:$0xf]  }
  0x2d   :  { %v263_v47 = vsel %vm215_vm0, %v261_v38, %v262_v41  ;;  %v637_v46 = vcvt.s32.f32 %v621_v5  ;;  %v638_v51 = vcvt.s32.f32 %v622_v10  ;;  %v110_v14 = vpack.c.bf16 %v102_v20, %v101_v13  ;;  %v12349_v26 = vld [vmem:[%s15939_s1 + $0x70] sm:$0xff]  }
  0x2e   :  { %v287_v49 = vpack.c.bf16 %v263_v47, %v260_v45  ;;  %v625_v33 = vand.u32 255, %v609_v42  ;;  %v626_v44 = vand.u32 255, %v610_v60  ;;  %v611_v53 = vunpack.c.0.s8 %v9784_v2  ;;  %v9792_v47 = vld [vmem:[%s15940_s0 + $0x40] ss:$4 sps:$2 sm:$0xf]  }
  0x2f   :  { %v653_v43 = vpack.c.bf16 %v638_v51, %v637_v46  ;;  %v612_v55 = vunpack.c.1.s8 %v9784_v2  ;;  %v639_v57 = vcvt.s32.f32 %v623_v6  ;;  %v613_v61 = vunpack.c.0.s8 %v9786_v34 }
  0x30   :  { %10949 = vmatmul.mubr.msk.bf16.gmra.mrb[12].mxu0 %vm321_vm1, %v287_v49  ;;  %v614_v1 = vunpack.c.1.s8 %v9786_v34  ;;  %v615_v4 = vunpack.c.0.s8 %v9788_v56  ;;  %v641_v8 = vcvt.s32.f32 %v625_v33  ;;  %v642_v9 = vcvt.s32.f32 %v626_v44 }
  0x31   :  { %10960 = vmatprep.mubr.msk.bf16.mxu0 %vm321_vm1, %v103_v48  ;;  %v627_v11 = vand.u32 255, %v611_v53  ;;  %v628_v13 = vand.u32 255, %v612_v55  ;;  %v863_v19 = vunpack.c.0.s8 %v9814_v62  ;;  %v864_v20 = vunpack.c.0.s8 %v9815_v0  ;;  %v12348_v48 = vld [vmem:[%s15939_s1 + $0x68] sm:$0xff]  }
  0x32   :  { %v629_v27 = vand.u32 255, %v613_v61  ;;  %v865_v28 = vunpack.c.1.s8 %v9814_v62  ;;  %v866_v31 = vunpack.c.0.s8 %v9817_v7  ;;  %v630_v32 = vand.u32 255, %v614_v1  ;;  %v12350_v61 = vld [vmem:[%s15939_s1 + $0x78] sm:$0xff]  }
  0x33   :  { %v616_v35 = vunpack.c.1.s8 %v9788_v56  ;;  %v12902_v36 = vand.u32 255, %v615_v4  ;;  %v617_v37 = vunpack.c.0.s8 %v9790_v17  ;;  %v655_v38 = vpack.c.bf16 %v642_v9, %v641_v8 }
  0x34   :  { %v643_v40 = vcvt.s32.f32 %v627_v11  ;;  %v644_v41 = vcvt.s32.f32 %v628_v13  ;;  %v618_v45 = vunpack.c.1.s8 %v9790_v17  ;;  %v895_v49 = vand.u32 255, %v863_v19 }
  0x35   :  { %v632_v25 = vand.u32 255, %v616_v35  ;;  %v647_v29 = vcvt.s32.f32 %v12902_v36  ;;  %v633_v30 = vand.u32 255, %v617_v37  ;;  %v619_v5 = vunpack.c.0.s8 %v9792_v47 }
  0x36   :  { %v656_v63 = vpack.c.bf16 %v644_v41, %v643_v40  ;;  %v620_v10 = vunpack.c.1.s8 %v9792_v47  ;;  %v871_v44 = vunpack.c.0.s8 %v9822_v18  ;;  %v873_v13 = vunpack.c.1.s8 %v9822_v18 }
  0x37   :  { %v648_v33 = vcvt.s32.f32 %v632_v25  ;;  %v649_v34 = vcvt.s32.f32 %v633_v30  ;;  %v12935_v55 = vand.u32 255, %v619_v5 }
  0x38   :  { %10961 = vmatmul.mubr.msk.bf16.vlgmr.msra.gmra.mrb[0].mxu0 %vm321_vm1, %v104_v50  ;;  %v896_v50 = vand.u32 255, %v864_v20  ;;  %v12937_v56 = vand.u32 255, %v620_v10  ;;  %v903_v19 = vand.u32 255, %v871_v44 }
  0x39   :  { %10977 = vmatpush3.bf16.msra.mxu0 %v12769_v12  ;;  %10964 = vmatprep.mubr.msk.bf16.mxu0 %vm321_vm1, %v105_v52  ;;  %v624_v12 = vand.u32 255, %v608_v39  ;;  %v9818_v52 = vld [vmem:[%s15940_s0 + $0xc] ss:$4 sps:$2 sm:$0xf]   ;;  %v927_v39 = vcvt.s32.f32 %v895_v49  ;;  %v658_v20 = vpack.c.bf16 %v648_v33, %v647_v29  ;;  %v9831_v49 = vld [vmem:[%s15940_s0 + $0x2a] sm:$0x1] }
  0x3a   :  { %10978 = vmatprep.subr.bf16.mxu0 %v12344_v15  ;;  %v928_v42 = vcvt.s32.f32 %v896_v50  ;;  %v867_v46 = vunpack.c.0.s8 %v9818_v52  ;;  %v869_v6 = vunpack.c.1.s8 %v9818_v52  ;;  %v652_v35 = vcvt.s32.f32 %v12937_v56 }
  0x3b   :  { %v640_v59 = vcvt.s32.f32 %v624_v12  ;;  %v991_v62 = vrot.slane %v927_v39, 1  ;;  %v905_v50 = vand.u32 255, %v873_v13 }
  0x3c   :  { %v992_v0 = vrot.slane %v928_v42, 1  ;;  %v899_v1 = vand.u32 255, %v867_v46  ;;  %v901_v9 = vand.u32 255, %v869_v6 }
  0x3d   :  { %10979 = vmatpush3.bf16.msra.mxu0 %v12344_v15  ;;  %v654_v23 = vpack.c.bf16 %v640_v59, %v639_v57  ;;  %v645_v15 = vcvt.s32.f32 %v629_v27  ;;  %v9826_v59 = vld [vmem:[%s15940_s0 + $0x1c] ss:$4 sps:$2 sm:$0xf]   ;;  %v937_v39 = vcvt.s32.f32 %v905_v50 }
  0x3e   :  { %10980 = vmatprep.subr.bf16.mxu0 %v12345_v16  ;;  %v12953_v36 = vsel %vm215_vm0, %v991_v62, %v992_v0  ;;  %v931_v37 = vcvt.s32.f32 %v899_v1  ;;  %v9835_v62 = vld [vmem:[%s15940_s0 + $0x32] sm:$0x1]  ;;  %v9837_v0 = vld [vmem:[%s15940_s0 + $0x36] sm:$0x1] }
  0x40   :  { %10965 = vmatmul.mubr.msk.bf16.gmra.mrb[4].mxu0 %vm321_vm1, %v106_v21  ;;  %v898_v21 = vand.u32 255, %v866_v31  ;;  %v875_v31 = vunpack.c.0.s8 %v9826_v59  ;;  %v997_v30 = vrot.slane %v931_v37, 1 }
  0x41   :  { %10968 = vmatprep.mubr.msk.bf16.mxu0 %vm321_vm1, %v107_v22  ;;  %10981 = vmatpush3.bf16.msra.mxu0 %v12345_v16  ;;  %v897_v16 = vand.u32 255, %v865_v28  ;;  %v9819_v22 = vld [vmem:[%s15940_s0 + $0xe] sm:$0x1]  ;;  %v9827_v28 = vld [vmem:[%s15940_s0 + $0x1e] sm:$0x1] }
  0x42   :  { %10982 = vmatprep.subr.bf16.mxu0 %v12346_v24  ;;  %v868_v51 = vunpack.c.0.s8 %v9819_v22  ;;  %v930_v2 = vcvt.s32.f32 %v898_v21  ;;  %v9833_v21 = vld [vmem:[%s15940_s0 + $0x2e] sm:$0x1]  ;;  %v907_v29 = vand.u32 255, %v875_v31 }
  0x43   :  { %v929_v60 = vcvt.s32.f32 %v897_v16  ;;  %v876_v16 = vunpack.c.0.s8 %v9827_v28  ;;  %v884_v28 = vunpack.c.0.s8 %v9835_v62 }
  0x44   :  { %v900_v4 = vand.u32 255, %v868_v51  ;;  %v995_v8 = vrot.slane %v930_v2, 1  ;;  %v939_v6 = vcvt.s32.f32 %v907_v29 }
  0x45   :  { %10983 = vmatpush3.bf16.msra.mxu0 %v12346_v24  ;;  %v646_v24 = vcvt.s32.f32 %v630_v32  ;;  %v994_v7 = vrot.slane %v929_v60, 1  ;;  %v908_v51 = vand.u32 255, %v876_v16  ;;  %v916_v16 = vand.u32 255, %v884_v28 }
  0x46   :  { %11000 = vmatprep.subr.bf16.mxu0 %v12858_v54  ;;  %v932_v41 = vcvt.s32.f32 %v900_v4 }
  0x47   :  { %v12959_v40 = vsel %vm215_vm0, %v994_v7, %v995_v8  ;;  %v1009_v8 = vrot.slane %v939_v6, 1 }
  0x48   :  { %10969 = vmatmul.mubr.msk.bf16.gmra.mrb[8].mxu0 %vm321_vm1, %v108_v58  ;;  %v9821_v58 = vld [vmem:[%s15940_s0 + $0x12] sm:$0x1]  ;;  %v998_v5 = vrot.slane %v932_v41, 1 }
  0x49   :  { %10972 = vmatprep.mubr.msk.bf16.mxu0 %vm321_vm1, %v109_v3  ;;  %v634_v3 = vand.u32 255, %v618_v45  ;;  %v870_v12 = vunpack.c.0.s8 %v9821_v58  ;;  %v933_v45 = vcvt.s32.f32 %v901_v9  ;;  %v9838_v9 = vld [vmem:[%s15940_s0 + $0x38] ss:$4 sps:$2 sm:$0xf]  }
  0x4a   :  { %v999_v44 = vsel %vm215_vm0, %v997_v30, %v998_v5  ;;  %v887_v37 = vunpack.c.0.s8 %v9838_v9  ;;  %v9842_v30 = vld [vmem:[%s15940_s0 + $0x40] ss:$4 sps:$2 sm:$0xf]   ;;  %v9843_v5 = vld [vmem:[%s15940_s0 + $0x42] sm:$0x1] }
  0x4b   :  { %v650_v53 = vcvt.s32.f32 %v634_v3  ;;  %v902_v11 = vand.u32 255, %v870_v12  ;;  %v1000_v10 = vrot.slane %v933_v45, 1  ;;  %v889_v45 = vunpack.c.1.s8 %v9838_v9 }
  0x4d   :  { %v659_v32 = vpack.c.bf16 %v650_v53, %v649_v34  ;;  %v934_v47 = vcvt.s32.f32 %v902_v11  ;;  %v9839_v11 = vld [vmem:[%s15940_s0 + $0x3a] sm:$0x1] }
  0x4f   :  { %v1001_v18 = vrot.slane %v934_v47, 1 }
  0x50   :  { %10973 = vmatmul.mubr.msk.bf16.gmra.mrb[12].mxu0 %vm321_vm1, %v110_v14  ;;  %v657_v14 = vpack.c.bf16 %v646_v24, %v645_v15  ;;  %v935_v15 = vcvt.s32.f32 %v903_v19  ;;  %v877_v24 = vunpack.c.1.s8 %v9826_v59 }
  0x51   :  { %10984 = vmatprep.mubr.msk.bf16.mxu0 %vm321_vm1, %v653_v43  ;;  %v9825_v43 = vld [vmem:[%s15940_s0 + $0x1a] sm:$0x1]  ;;  %v1002_v56 = vsel %vm215_vm0, %v1000_v10, %v1001_v18 }
  0x52   :  { %v874_v17 = vunpack.c.0.s8 %v9825_v43  ;;  %v1003_v46 = vrot.slane %v935_v15, 1  ;;  %v909_v60 = vand.u32 255, %v877_v24  ;;  %v1055_v43 = vpack.c.bf16 %v12959_v40, %v12953_v36 }
  0x53   :  { %v1056_v24 = vpack.c.bf16 %v1002_v56, %v999_v44 }
  0x54   :  { %v906_v52 = vand.u32 255, %v874_v17  ;;  %v941_v4 = vcvt.s32.f32 %v909_v60 }
  0x56   :  { %v938_v42 = vcvt.s32.f32 %v906_v52  ;;  %v1012_v40 = vrot.slane %v941_v4, 1 }
  0x58   :  { %10985 = vmatmul.mubr.msk.bf16.vlgmr.msra.gmra.mrb[0].mxu0 %vm321_vm1, %v654_v23  ;;  %v651_v23 = vcvt.s32.f32 %v12935_v55  ;;  %v9834_v55 = vld [vmem:[%s15940_s0 + $0x30] ss:$4 sps:$2 sm:$0xf]   ;;  %v1007_v59 = vrot.slane %v938_v42, 1  ;;  %v9845_v42 = vld [vmem:[%s15940_s0 + $0x46] sm:$0x1] }
  0x59   :  { %11001 = vmatpush3.bf16.msra.mxu0 %v12858_v54  ;;  %10988 = vmatprep.mubr.msk.bf16.mxu0 %vm321_vm1, %v655_v38  ;;  %v9823_v54 = vld [vmem:[%s15940_s0 + $0x16] sm:$0x1]  ;;  %v9829_v38 = vld [vmem:[%s15940_s0 + $0x22] sm:$0x1]  ;;  %v885_v31 = vunpack.c.1.s8 %v9834_v55  ;;  %v894_v44 = vunpack.c.0.s8 %v9845_v42 }
  0x5a   :  { %11002 = vmatprep.subr.bf16.mxu0 %v12348_v48  ;;  %v872_v57 = vunpack.c.0.s8 %v9823_v54  ;;  %v878_v25 = vunpack.c.0.s8 %v9829_v38  ;;  %v660_v34 = vpack.c.bf16 %v652_v35, %v651_v23  ;;  %v9841_v23 = vld [vmem:[%s15940_s0 + $0x3e] sm:$0x1]  ;;  %v888_v38 = vunpack.c.0.s8 %v9839_v11 }
  0x5b   :  { %v890_v47 = vunpack.c.0.s8 %v9841_v23  ;;  %v926_v11 = vand.u32 255, %v894_v44 }
  0x5c   :  { %v904_v27 = vand.u32 255, %v872_v57  ;;  %v910_v2 = vand.u32 255, %v878_v25  ;;  %v1006_v57 = vrot.slane %v937_v39, 1  ;;  %v919_v25 = vand.u32 255, %v887_v37 }
  0x5d   :  { %11003 = vmatpush3.bf16.msra.mxu0 %v12348_v48  ;;  %v9830_v48 = vld [vmem:[%s15940_s0 + $0x28] ss:$4 sps:$2 sm:$0xf]   ;;  %v920_v29 = vand.u32 255, %v888_v38 }
  0x5e   :  { %11004 = vmatprep.subr.bf16.mxu0 %v12349_v26  ;;  %v936_v22 = vcvt.s32.f32 %v904_v27  ;;  %v879_v58 = vunpack.c.0.s8 %v9830_v48  ;;  %v881_v3 = vunpack.c.1.s8 %v9830_v48  ;;  %v942_v7 = vcvt.s32.f32 %v910_v2 }
  0x5f   :  { %v1008_v35 = vsel %vm215_vm0, %v1006_v57, %v1007_v59  ;;  %v951_v2 = vcvt.s32.f32 %v919_v25  ;;  %v952_v6 = vcvt.s32.f32 %v920_v29 }
  0x60   :  { %10989 = vmatmul.mubr.msk.bf16.gmra.mrb[4].mxu0 %vm321_vm1, %v656_v63  ;;  %v880_v63 = vunpack.c.0.s8 %v9831_v49  ;;  %v1004_v54 = vrot.slane %v936_v22, 1  ;;  %v911_v12 = vand.u32 255, %v879_v58  ;;  %v913_v33 = vand.u32 255, %v881_v3 }
  0x61   :  { %10992 = vmatprep.mubr.msk.bf16.mxu0 %vm321_vm1, %v657_v14  ;;  %11005 = vmatpush3.bf16.msra.mxu0 %v12349_v26  ;;  %v882_v26 = vunpack.c.0.s8 %v9833_v21  ;;  %v1013_v41 = vrot.slane %v942_v7, 1  ;;  %v917_v21 = vand.u32 255, %v885_v31  ;;  %v922_v3 = vand.u32 255, %v890_v47 }
  0x62   :  { %11006 = vmatprep.subr.bf16.mxu0 %v12350_v61  ;;  %v912_v14 = vand.u32 255, %v880_v63  ;;  %v1005_v1 = vsel %vm215_vm0, %v1003_v46, %v1004_v54  ;;  %v943_v13 = vcvt.s32.f32 %v911_v12  ;;  %v945_v19 = vcvt.s32.f32 %v913_v33 }
  0x63   :  { %v914_v53 = vand.u32 255, %v882_v26  ;;  %v1057_v58 = vpack.c.bf16 %v1008_v35, %v1005_v1  ;;  %v921_v63 = vand.u32 255, %v889_v45  ;;  %v1014_v18 = vsel %vm215_vm0, %v1012_v40, %v1013_v41 }
  0x64   :  { %v944_v17 = vcvt.s32.f32 %v912_v14  ;;  %v1015_v48 = vrot.slane %v943_v13, 1  ;;  %v1018_v50 = vrot.slane %v945_v19, 1  ;;  %v949_v54 = vcvt.s32.f32 %v917_v21 }
  0x65   :  { %11007 = vmatpush3.bf16.msra.mxu0 %v12350_v61  ;;  %v940_v61 = vcvt.s32.f32 %v908_v51  ;;  %v946_v27 = vcvt.s32.f32 %v914_v53  ;;  %v948_v51 = vcvt.s32.f32 %v916_v16  ;;  %v891_v12 = vunpack.c.0.s8 %v9842_v30 }
  0x66   :  { %v1016_v49 = vrot.slane %v944_v17, 1  ;;  %v892_v14 = vunpack.c.0.s8 %v9843_v5  ;;  %v953_v33 = vcvt.s32.f32 %v921_v63  ;;  %v1024_v59 = vrot.slane %v949_v54, 1 }
  0x67   :  { %v1010_v36 = vrot.slane %v940_v61, 1  ;;  %v1019_v15 = vrot.slane %v946_v27, 1  ;;  %v1022_v57 = vrot.slane %v948_v51, 1  ;;  %v1027_v62 = vrot.slane %v951_v2, 1 }
  0x68   :  { %10993 = vmatmul.mubr.msk.bf16.gmra.mrb[8].mxu0 %vm321_vm1, %v658_v20  ;;  %v883_v20 = vunpack.c.0.s8 %v9834_v55  ;;  %v1017_v26 = vsel %vm215_vm0, %v1015_v48, %v1016_v49  ;;  %v923_v1 = vand.u32 255, %v891_v12  ;;  %v924_v4 = vand.u32 255, %v892_v14  ;;  %v12351_v48 = vld [vmem:[%s15941_s3 + $0x10] sm:$0xff]  }
  0x69   :  { %10996 = vmatprep.mubr.msk.bf16.mxu0 %vm321_vm1, %v659_v32  ;;  %v886_v32 = vunpack.c.0.s8 %v9837_v0  ;;  %v1011_v10 = vsel %vm215_vm0, %v1009_v8, %v1010_v36  ;;  %v1020_v46 = vsel %vm215_vm0, %v1018_v50, %v1019_v15  ;;  %v1028_v0 = vrot.slane %v952_v6, 1  ;;  %v13032_v50 = vld [vmem:[%s15941_s3] sm:$0xff]   ;;  %v13043_v15 = vld [vmem:[%s15941_s3 + $0x8] sm:$0xff]  }
  0x6a   :  { %v915_v52 = vand.u32 255, %v883_v20  ;;  %v1058_v53 = vpack.c.bf16 %v1014_v18, %v1011_v10  ;;  %v1059_v55 = vpack.c.bf16 %v1020_v46, %v1017_v26  ;;  %v1030_v7 = vrot.slane %v953_v33, 1 }
  0x6b   :  { %v918_v22 = vand.u32 255, %v886_v32  ;;  %v1029_v19 = vsel %vm215_vm0, %v1027_v62, %v1028_v0  ;;  %v955_v20 = vcvt.s32.f32 %v923_v1  ;;  %v956_v27 = vcvt.s32.f32 %v924_v4 }
  0x6c   :  { %v947_v39 = vcvt.s32.f32 %v915_v52  ;;  %v958_v31 = vcvt.s32.f32 %v926_v11  ;;  %v15952_v49 = vmov 0.0   ;;  %v12353_v52 = vld [vmem:[%s15941_s3 + $0x18] sm:$0xff]  }
  0x6d   :  { %v950_v60 = vcvt.s32.f32 %v918_v22  ;;  %v1033_v36 = vrot.slane %v955_v20, 1  ;;  %v1034_v37 = vrot.slane %v956_v27, 1  ;;  %11024 = vmatprep.subr.bf16.mxu1 %v15952_v49  ;;  %11160 = vmatprep.subr.bf16.mxu0 %v15952_v49 }
  0x6e   :  { %v1021_v56 = vrot.slane %v947_v39, 1  ;;  %v1037_v40 = vrot.slane %v958_v31, 1  ;;  %11025 = vmatpush3.bf16.msra.mxu1 %v12351_v48  ;;  %11028 = vmatprep.mubr.msk.bf16.mxu1 %vm12551_vm2, %v15952_v49 }
  0x6f   :  { %v1025_v61 = vrot.slane %v950_v60, 1  ;;  %v1035_v41 = vsel %vm215_vm0, %v1033_v36, %v1034_v37  ;;  %11026 = vmatprep.subr.bf16.mxu1 %v15952_v49 }
  0x70   :  { %10997 = vmatmul.mubr.msk.bf16.gmra.mrb[12].mxu0 %vm321_vm1, %v660_v34  ;;  %v954_v34 = vcvt.s32.f32 %v922_v3  ;;  %v1023_v13 = vsel %vm215_vm0, %v1021_v56, %v1022_v57 }
  0x71   :  { %11008 = vmatprep.mubr.msk.bf16.mxu0 %vm321_vm1, %v1055_v43  ;;  %v893_v43 = vunpack.c.1.s8 %v9842_v30  ;;  %v1026_v17 = vsel %vm215_vm0, %v1024_v59, %v1025_v61 }
  0x72   :  { %v1031_v8 = vrot.slane %v954_v34, 1  ;;  %v1060_v32 = vpack.c.bf16 %v1026_v17, %v1023_v13  ;;  %11027 = vmatpush3.bf16.msra.mxu1 %v12353_v52 }
  0x73   :  { %v925_v9 = vand.u32 255, %v893_v43  ;;  %11032 = vmatprep.subr.bf16.mxu1 %v15952_v49 }
  0x74   :  { %v1032_v23 = vsel %vm215_vm0, %v1030_v7, %v1031_v8 }
  0x75   :  { %v957_v28 = vcvt.s32.f32 %v925_v9  ;;  %v1061_v35 = vpack.c.bf16 %v1032_v23, %v1029_v19 }
  0x77   :  { %v1036_v38 = vrot.slane %v957_v28, 1 }
  0x78   :  { %11009 = vmatmul.mubr.msk.bf16.vlgmr.msra.gmra.mrb[0].mxu0 %vm321_vm1, %v1056_v24  ;;  %v13055_v24 = vld [vmem:[%s15942_s2] ss:$0 sm:$0xff] }
  0x79   :  { %11012 = vmatprep.mubr.msk.bf16.mxu0 %vm321_vm1, %v1057_v58  ;;  %v1038_v45 = vsel %vm215_vm0, %v1036_v38, %v1037_v40  ;;  %11161 = vmatpush3.bf16.msra.mxu0 %v13032_v50 }
  0x7a   :  { %v1062_v47 = vpack.c.bf16 %v1038_v45, %v1035_v41  ;;  %11162 = vmatprep.subr.bf16.mxu0 %v15952_v49 }
  0x7d   :  { %11163 = vmatpush3.bf16.msra.mxu0 %v13043_v15 }
  0x7e   :  { %11176 = vmatprep.subr.bf16.mxu0 %v15952_v49 }
  0x80   :  { %11013 = vmatmul.mubr.msk.bf16.gmra.mrb[4].mxu0 %vm321_vm1, %v1058_v53 }
  0x81   :  { %11016 = vmatprep.mubr.msk.bf16.mxu0 %vm321_vm1, %v1059_v55 }
  0x88   :  { %11017 = vmatmul.mubr.msk.bf16.gmra.mrb[8].mxu0 %vm321_vm1, %v1060_v32 }
  0x89   :  { %11020 = vmatprep.mubr.msk.bf16.mxu0 %vm321_vm1, %v1061_v35 }
  0x90   :  { %11021 = vmatmul.mubr.msk.bf16.gmra.mrb[12].mxu0 %vm321_vm1, %v1062_v47 }
  0x91   :  { %11164 = vmatprep.mubr.msk.bf16.mxu0 %vm12551_vm2, %v15952_v49 }
 0x14b   :  { %v11010_v16 = vpop.f32.mrb[0].mxu0 }
 0x14c   :  { %v1154_v21 = vpop.f32.mrb[1].mxu0  ;;  %v1242_v29 = vadd.f32 %v11010_v16, %v13055_v24 }
 0x14d   :  { %v11011_v22 = vpop.f32.mrb[2].mxu0  ;;  %v1240_v30 = vadd.f32 %v13055_v24, %v1154_v21 }
 0x14e   :  { %v1157_v25 = vpop.f32.mrb[3].mxu0  ;;  %v1243_v63 = vadd.f32 %v11011_v22, %v13055_v24  ;;  %v1258_v10 = vmax.f32 %v1242_v29, 0.0 }
 0x14f   :  { %v1241_v18 = vadd.f32 %v13055_v24, %v1157_v25  ;;  %v1256_v42 = vmax.f32 %v1240_v30, 0.0 }
 0x150   :  { %v1259_v60 = vmax.f32 %v1243_v63, 0.0  ;;  %v1840_v2 = vpack.c.bf16 %v1258_v10, %v1258_v10  ;;  %v13118_v63 = vld [vmem:[%s15941_s3 + $0x30] sm:$0xff]  }
 0x151   :  { %v1257_v6 = vmax.f32 %v1241_v18, 0.0  ;;  %v1352_v12 = vpack.c.bf16 %v1256_v42, %v1256_v42 }
 0x152   :  { %v2084_v33 = vpack.c.bf16 %v1259_v60, %v1259_v60  ;;  %v13073_v43 = vunpack.c.l.b16 %v1840_v2 }
 0x153   :  { %v11014_v58 = vpop.f32.mrb[4].mxu0  ;;  %v1596_v44 = vpack.c.bf16 %v1257_v6, %v1257_v6  ;;  %v13076_v56 = vunpack.c.l.b16 %v1352_v12 }
 0x154   :  { %v13061_v3 = vadd.f32 %v11014_v58, %v13055_v24  ;;  %v1170_v5 = vpop.f32.mrb[5].mxu0  ;;  %v13080_v0 = vunpack.c.l.b16 %v2084_v33  ;;  %v2024_v9 = vrot.slane %v13073_v43, 3  ;;  %v2821_v19 = vrot.slane %v13073_v43, 5 }
 0x155   :  { %v13065_v26 = vadd.f32 %v13055_v24, %v1170_v5  ;;  %v11015_v39 = vpop.f32.mrb[6].mxu0  ;;  %v13083_v4 = vunpack.c.l.b16 %v1596_v44  ;;  %v1358_v13 = vrot.slane %v13076_v56, 1  ;;  %v1476_v17 = vrot.slane %v13076_v56, 2 }
 0x156   :  { %v13068_v46 = vadd.f32 %v11015_v39, %v13055_v24  ;;  %v1173_v51 = vpop.f32.mrb[7].mxu0  ;;  %v1262_v11 = vmax.f32 %v13061_v3, 0.0  ;;  %v2465_v31 = vrot.slane %v13076_v56, 5  ;;  %v1536_v38 = vrot.slane %v13076_v56, 3 }
 0x157   :  { %v13071_v54 = vadd.f32 %v13055_v24, %v1173_v51  ;;  %v1260_v32 = vmax.f32 %v13065_v26, 0.0  ;;  %v1780_v48 = vrot.slane %v13083_v4, 3  ;;  %v1661_v6 = vrot.slane %v13083_v4, 1 }
 0x158   :  { %v13127_v26 = vpack.c.bf16 %v1262_v11, %v1262_v11  ;;  %v1720_v12 = vrot.slane %v13083_v4, 2  ;;  %v2268_v44 = vrot.slane %v13080_v0, 3  ;;  %v3130_v39 = vrot.slane %v13076_v56, 6 }
 0x159   :  { %v1261_v42 = vmax.f32 %v13071_v54, 0.0  ;;  %v4089_v60 = vpack.c.bf16 %v1260_v32, %v1260_v32 }
 0x15b   :  { %v11018_v14 = vpop.f32.mrb[8].mxu0  ;;  %v13173_v11 = vunpack.c.l.b16 %v4089_v60  ;;  %v3534_v60 = vrot.slane %v13073_v43, 7 }
 0x15c   :  { %v1186_v34 = vpop.f32.mrb[9].mxu0  ;;  %v1250_v59 = vadd.f32 %v11018_v14, %v13055_v24  ;;  %v13147_v14 = vld [vmem:[%s15941_s3 + $0x38] sm:$0xff]  }
 0x15d   :  { %v1248_v53 = vadd.f32 %v13055_v24, %v1186_v34  ;;  %v11019_v55 = vpop.f32.mrb[10].mxu0 }
 0x15e   :  { %v1189_v57 = vpop.f32.mrb[11].mxu0  ;;  %v1251_v1 = vadd.f32 %v11019_v55, %v13055_v24  ;;  %v1266_v20 = vmax.f32 %v1250_v59, 0.0  ;;  %v2999_v55 = vrot.slane %v13080_v0, 5  ;;  %v1905_v59 = vrot.slane %v13073_v43, 1 }
 0x15f   :  { %v1264_v61 = vmax.f32 %v1248_v53, 0.0  ;;  %v1249_v62 = vadd.f32 %v13055_v24, %v1189_v57  ;;  %v2417_v57 = vrot.slane %v13076_v56, 4 }
 0x160   :  { %v1267_v35 = vmax.f32 %v1251_v1, 0.0  ;;  %v1841_v29 = vpack.c.bf16 %v1266_v20, %v1266_v20  ;;  %v3178_v20 = vrot.slane %v13076_v56, 7 }
 0x161   :  { %v1353_v7 = vpack.c.bf16 %v1264_v61, %v1264_v61  ;;  %v1265_v8 = vmax.f32 %v1249_v62, 0.0  ;;  %v4285_v61 = vpack.c.bf16 %v1261_v42, %v1261_v42  ;;  %v13164_v62 = vld [vmem:[%s15941_s3 + $0x20] sm:$0xff]  }
 0x162   :  { %v2085_v5 = vpack.c.bf16 %v1267_v35, %v1267_v35  ;;  %v13141_v54 = vunpack.c.l.b16 %v1841_v29  ;;  %v1964_v35 = vrot.slane %v13073_v43, 2 }
 0x163   :  { %v13090_v23 = vunpack.c.l.b16 %v1353_v7  ;;  %v1597_v27 = vpack.c.bf16 %v1265_v8, %v1265_v8  ;;  %v11022_v28 = vpop.f32.mrb[12].mxu0 }
 0x164   :  { %v13095_v36 = vadd.f32 %v11022_v28, %v13055_v24  ;;  %v1202_v37 = vpop.f32.mrb[13].mxu0  ;;  %v13154_v53 = vunpack.c.l.b16 %v2085_v5  ;;  %v13184_v28 = vld [vmem:[%s15941_s3 + $0x50] sm:$0xff]   ;;  %v2025_v32 = vrot.slane %v13141_v54, 2 }
 0x165   :  { %v13099_v40 = vadd.f32 %v13055_v24, %v1202_v37  ;;  %v11023_v41 = vpop.f32.mrb[14].mxu0  ;;  %v1360_v45 = vsel %vm1359_vm3, %v13090_v23, %v1358_v13  ;;  %v1477_v47 = vrot.slane %v13090_v23, 1  ;;  %v13105_v52 = vunpack.c.l.b16 %v1597_v27 }
 0x166   :  { %v13108_v16 = vadd.f32 %v11023_v41, %v13055_v24  ;;  %v1205_v21 = vpop.f32.mrb[15].mxu0  ;;  %v1361_v22 = vpack.c.b16 %v1360_v45, %v1360_v45  ;;  %v1418_v25 = vrot.slane %v13090_v23, 7  ;;  %v2466_v3 = vrot.slane %v13090_v23, 4 }
 0x167   :  { %v13112_v30 = vadd.f32 %v13055_v24, %v1205_v21  ;;  %v1478_v58 = vsel %vm1359_vm3, %v1477_v47, %v1476_v17  ;;  %v2643_v24 = vrot.slane %v13083_v4, 5  ;;  %v1781_v2 = vrot.slane %v13105_v52, 2  ;;  %v13204_v47 = vld [vmem:[%s15941_s3 + $0x28] sm:$0xff]  }
 0x168   :  { %11029 = vmatmul.mubr.msk.bf16.vlgmr.msra.gmra.mrb[0].mxu1 %vm1374_vm4, %v1361_v22  ;;  %v13122_v10 = vpack.c.b16 %v1478_v58, %v1478_v58  ;;  %v1419_v18 = vsel %vm1359_vm3, %v1418_v25, %v13076_v56  ;;  %v2467_v51 = vsel %vm1359_vm3, %v2466_v3, %v2465_v31  ;;  %v1537_v33 = vrot.slane %v13090_v23, 2  ;;  %v13396_v56 = vld [vmem:[%s15941_s3 + $0x48] sm:$0xff]  }
 0x169   :  { %11033 = vmatpush3.bf16.msra.mxu1 %v13032_v50  ;;  %11036 = vmatprep.mubr.msk.bf16.mxu1 %vm12551_vm2, %v15952_v49  ;;  %v2644_v34 = vrot.slane %v13105_v52, 4  ;;  %v1782_v1 = vsel %vm1359_vm3, %v1781_v2, %v1780_v48  ;;  %v1268_v13 = vmax.f32 %v13099_v40, 0.0  ;;  %v1420_v17 = vpack.c.b16 %v1419_v18, %v1419_v18 }
 0x16a   :  { %11165 = vmatmul.mubr.msk.bf16.vlgmr.msra.gmra.mrb[16].mxu0 %vm1374_vm4, %v13122_v10  ;;  %11034 = vmatprep.subr.bf16.mxu1 %v15952_v49  ;;  %v13168_v7 = vsel %vm1359_vm3, %v1537_v33, %v1536_v38  ;;  %v13179_v27 = vpack.c.b16 %v2467_v51, %v2467_v51  ;;  %v1602_v31 = vrot.slane %v13105_v52, 7  ;;  %v13193_v37 = vsel %vm1359_vm3, %v13105_v52, %v1661_v6 }
 0x16b   :  { %11177 = vmatpush3.bf16.msra.mxu0 %v13118_v63  ;;  %11180 = vmatprep.mubr.msk.bf16.mxu0 %vm12551_vm2, %v15952_v49  ;;  %v13171_v8 = vsel %vm1359_vm3, %v2644_v34, %v2643_v24  ;;  %v2822_v38 = vrot.slane %v13141_v54, 4  ;;  %v1721_v40 = vrot.slane %v13105_v52, 1  ;;  %v2269_v41 = vrot.slane %v13154_v53, 2 }
 0x16c   :  { %11178 = vmatprep.subr.bf16.mxu0 %v15952_v49  ;;  %15959 = vst [vmem:[#allocation2_spill] sm:$0xff] %v13179_v27  ;;  %v13198_v45 = vunpack.c.l.b16 %v4285_v61  ;;  %v13210_v48 = vsel %vm1359_vm3, %v1602_v31, %v13083_v4  ;;  %v13215_v21 = vsel %vm1359_vm3, %v2025_v32, %v2024_v9  ;;  %v3000_v22 = vrot.slane %v13154_v53, 4  ;;  %v13232_v9 = vld [vmem:[%s15941_s3 + $0x58] sm:$0xff]  }
 0x16d   :  { %11035 = vmatpush3.bf16.msra.mxu1 %v13043_v15  ;;  %v4090_v25 = vpack.c.bf16 %v1268_v13, %v1268_v13  ;;  %v1269_v29 = vmax.f32 %v13112_v30, 0.0  ;;  %v13225_v58 = vsel %vm1359_vm3, %v2822_v38, %v2821_v19  ;;  %v1846_v3 = vrot.slane %v13141_v54, 7 }
 0x16e   :  { %11040 = vmatprep.subr.bf16.mxu1 %v15952_v49  ;;  %v13237_v30 = vsel %vm1359_vm3, %v1721_v40, %v1720_v12  ;;  %v13240_v5 = vsel %vm1359_vm3, %v2269_v41, %v2268_v44  ;;  %v2418_v19 = vrot.slane %v13090_v23, 3  ;;  %v3356_v18 = vrot.slane %v13083_v4, 7 }
 0x16f   :  { %11179 = vmatpush3.bf16.msra.mxu0 %v13147_v14  ;;  %v13246_v24 = vsel %vm1359_vm3, %v3000_v22, %v2999_v55  ;;  %v13250_v42 = vsel %vm1359_vm3, %v1846_v3, %v13073_v43  ;;  %v2149_v51 = vrot.slane %v13080_v0, 1  ;;  %v13260_v6 = vsel %vm1359_vm3, %v13141_v54, %v1905_v59 }
 0x170   :  { %11037 = vmatmul.mubr.msk.bf16.vlgmr.msra.gmra.mrb[4].mxu1 %vm1374_vm4, %v1420_v17  ;;  %11192 = vmatprep.subr.bf16.mxu0 %v15952_v49  ;;  %v13256_v2 = vsel %vm1359_vm3, %v2418_v19, %v2417_v57  ;;  %v2208_v12 = vrot.slane %v13080_v0, 2  ;;  %v3712_v33 = vrot.slane %v13080_v0, 7  ;;  %v13264_v34 = vunpack.c.l.b16 %v4090_v25  ;;  %v13273_v57 = vld [vmem:[%s15941_s3 + $0x70] sm:$0xff]   ;;  %v13320_v19 = vld [vmem:[%s15941_s3 + $0x78] sm:$0xff]  }
 0x171   :  { %11041 = vmatpush3.bf16.msra.mxu1 %v13164_v62  ;;  %11044 = vmatprep.mubr.msk.bf16.mxu1 %vm12551_vm2, %v15952_v49  ;;  %v4286_v44 = vpack.c.bf16 %v1269_v29, %v1269_v29  ;;  %v3179_v55 = vrot.slane %v13090_v23, 6  ;;  %v1965_v61 = vrot.slane %v13141_v54, 1  ;;  %v3357_v59 = vrot.slane %v13105_v52, 6 }
 0x172   :  { %11181 = vmatmul.mubr.msk.bf16.vlgmr.msra.gmra.mrb[20].mxu0 %vm1374_vm4, %v13179_v27  ;;  %11042 = vmatprep.subr.bf16.mxu1 %v15952_v49  ;;  %v2090_v13 = vrot.slane %v13154_v53, 7  ;;  %v13279_v17 = vsel %vm1359_vm3, %v13154_v53, %v2149_v51  ;;  %v3535_v31 = vrot.slane %v13141_v54, 6  ;;  %v13285_v32 = vpack.c.b16 %v1782_v1, %v1782_v1 }
 0x173   :  { %11193 = vmatpush3.bf16.msra.mxu0 %v13184_v28  ;;  %11196 = vmatprep.mubr.msk.bf16.mxu0 %vm12551_vm2, %v15952_v49  ;;  %v13288_v38 = vsel %vm1359_vm3, %v3179_v55, %v3178_v20  ;;  %v13291_v40 = vsel %vm1359_vm3, %v1965_v61, %v1964_v35  ;;  %v2209_v41 = vrot.slane %v13154_v53, 1  ;;  %v13298_v22 = vsel %vm1359_vm3, %v3357_v59, %v3356_v18 }
 0x174   :  { %11194 = vmatprep.subr.bf16.mxu0 %v15952_v49  ;;  %v2595_v1 = vrot.slane %v13083_v4, 4  ;;  %v4142_v20 = vrot.slane %v13173_v11, 1  ;;  %v13303_v25 = vunpack.c.l.b16 %v4286_v44  ;;  %v13310_v35 = vsel %vm1359_vm3, %v2090_v13, %v13080_v0 }
 0x175   :  { %11043 = vmatpush3.bf16.msra.mxu1 %v13204_v47  ;;  %v13313_v29 = vsel %vm1359_vm3, %v3535_v31, %v3534_v60  ;;  %v2596_v3 = vrot.slane %v13105_v52, 3  ;;  %v13325_v18 = vsel %vm1359_vm3, %v2209_v41, %v2208_v12  ;;  %v2773_v51 = vrot.slane %v13073_v43, 4  ;;  %v13347_v31 = vld [vmem:[%s15941_s3 + $0x40] sm:$0xff]  }
 0x176   :  { %11048 = vmatprep.subr.bf16.mxu1 %v15952_v49  ;;  %v2774_v60 = vrot.slane %v13141_v54, 3  ;;  %v4237_v44 = vrot.slane %v13173_v11, 3  ;;  %v13339_v59 = vsel %vm1359_vm3, %v13264_v34, %v4142_v20  ;;  %v4338_v12 = vrot.slane %v13198_v45, 1 }
 0x177   :  { %11195 = vmatpush3.bf16.msra.mxu0 %v13232_v9  ;;  %v13335_v61 = vsel %vm1359_vm3, %v2596_v3, %v2595_v1  ;;  %15960 = vst [vmem:[#allocation3_spill] sm:$0xff] %v13339_v59  ;;  %v1270_v13 = vmax.f32 %v13095_v36, 0.0  ;;  %v2951_v41 = vrot.slane %v13080_v0, 4  ;;  %v13357_v1 = vpack.c.b16 %v13168_v7, %v13168_v7 }
 0x178   :  { %11045 = vmatmul.mubr.msk.bf16.vlgmr.msra.gmra.mrb[8].mxu1 %vm1374_vm4, %v13122_v10  ;;  %11208 = vmatprep.subr.bf16.mxu0 %v15952_v49  ;;  %v3713_v10 = vrot.slane %v13154_v53, 6  ;;  %v4238_v36 = vrot.slane %v13264_v34, 2  ;;  %v13362_v20 = vsel %vm1359_vm3, %v13303_v25, %v4338_v12  ;;  %v2952_v3 = vrot.slane %v13154_v53, 3 }
 0x179   :  { %11049 = vmatpush3.bf16.msra.mxu1 %v13118_v63  ;;  %11052 = vmatprep.mubr.msk.bf16.mxu1 %vm12551_vm2, %v15952_v49  ;;  %15962 = vst [vmem:[#allocation5_spill] sm:$0xff] %v13362_v20  ;;  %v4434_v7 = vrot.slane %v13303_v25, 2  ;;  %v3131_v12 = vrot.slane %v13090_v23, 5  ;;  %v3308_v20 = vrot.slane %v13083_v4, 6  ;;  %v13390_v59 = vunpack.c.l.b16 %v13127_v26 }
 0x17a   :  { %11197 = vmatmul.mubr.msk.bf16.vlgmr.msra.gmra.mrb[24].mxu0 %vm1374_vm4, %v13285_v32  ;;  %11050 = vmatprep.subr.bf16.mxu1 %v15952_v49  ;;  %v13332_v55 = vsel %vm1359_vm3, %v3713_v10, %v3712_v33  ;;  %v13350_v33 = vsel %vm1359_vm3, %v2774_v60, %v2773_v51  ;;  %v4433_v10 = vrot.slane %v13198_v45, 3  ;;  %v13368_v51 = vpack.c.b16 %v13171_v8, %v13171_v8  ;;  %v13373_v60 = vld [vmem:[%s15941_s3 + $0x90] sm:$0xff]  }
 0x17b   :  { %11209 = vmatpush3.bf16.msra.mxu0 %v13273_v57  ;;  %11212 = vmatprep.mubr.msk.bf16.mxu0 %vm12551_vm2, %v15952_v49  ;;  %15961 = vst [vmem:[#allocation4_spill] sm:$0xff] %v13350_v33  ;;  %v13382_v27 = vsel %vm1359_vm3, %v4238_v36, %v4237_v44  ;;  %v13385_v8 = vsel %vm1359_vm3, %v2952_v3, %v2951_v41  ;;  %v3309_v33 = vrot.slane %v13105_v52, 5  ;;  %v3486_v26 = vrot.slane %v13073_v43, 6 }
 0x17c   :  { %11210 = vmatprep.subr.bf16.mxu0 %v15952_v49  ;;  %15963 = vst [vmem:[#allocation6_spill] sm:$0xff] %v13385_v8  ;;  %v13401_v23 = vsel %vm1359_vm3, %v4434_v7, %v4433_v10  ;;  %v13407_v4 = vsel %vm1359_vm3, %v3131_v12, %v3130_v39  ;;  %v3487_v44 = vrot.slane %v13141_v54, 5  ;;  %v6181_v41 = vpack.c.bf16 %v1270_v13, %v1270_v13  ;;  %v13419_v10 = vld [vmem:[%s15941_s3 + $0x98] sm:$0xff]  }
 0x17d   :  { %11051 = vmatpush3.bf16.msra.mxu1 %v13147_v14  ;;  %15964 = vst [vmem:[#allocation7_spill] sm:$0xff] %v13401_v23  ;;  %15965 = vst [vmem:[#allocation8_spill] sm:$0xff] %v13407_v4  ;;  %v13410_v52 = vsel %vm1359_vm3, %v3309_v33, %v3308_v20  ;;  %v1271_v36 = vmax.f32 %v13108_v16, 0.0  ;;  %v4940_v39 = vrot.slane %v13173_v11, 5  ;;  %v4941_v33 = vrot.slane %v13264_v34, 4 }
 0x17e   :  { %11056 = vmatprep.subr.bf16.mxu1 %v15952_v49  ;;  %15966 = vst [vmem:[#allocation9_spill] sm:$0xff] %v13410_v52  ;;  %v15967_v43 = vmax.f32 %v13068_v46, 0.0  ;;  %v13430_v16 = vsel %vm1359_vm3, %v3487_v44, %v3486_v26  ;;  %v3664_v13 = vrot.slane %v13080_v0, 6  ;;  %v3665_v20 = vrot.slane %v13154_v53, 5 }
 0x17f   :  { %11211 = vmatpush3.bf16.msra.mxu0 %v13320_v19  ;;  %15968 = vst [vmem:[#allocation10_spill] sm:$0xff] %v13430_v16  ;;  %v13436_v3 = vsel %vm1359_vm3, %v4941_v33, %v4940_v39  ;;  %v5118_v7 = vrot.slane %v13198_v45, 5  ;;  %v5119_v46 = vrot.slane %v13303_v25, 4  ;;  %v4095_v12 = vrot.slane %v13264_v34, 7 }
 0x180   :  { %11053 = vmatmul.mubr.msk.bf16.vlgmr.msra.gmra.mrb[12].mxu1 %vm1374_vm4, %v13357_v1  ;;  %11224 = vmatprep.subr.bf16.mxu0 %v15952_v49  ;;  %v6376_v54 = vpack.c.bf16 %v15967_v43, %v15967_v43  ;;  %15969 = vst [vmem:[#allocation11_spill] sm:$0xff] %v13436_v3  ;;  %v1604_v26 = vpack.c.b16 %v13210_v48, %v13210_v48  ;;  %v4189_v53 = vrot.slane %v13173_v11, 2  ;;  %v4190_v44 = vrot.slane %v13264_v34, 1  ;;  %v13455_v43 = vld [vmem:[%s15941_s3 + $0xb0] sm:$0xff]  }
 0x181   :  { %11057 = vmatpush3.bf16.msra.mxu1 %v13347_v31  ;;  %11060 = vmatprep.mubr.msk.bf16.mxu1 %vm12551_vm2, %v15952_v49  ;;  %v13445_v0 = vsel %vm1359_vm3, %v3665_v20, %v3664_v13  ;;  %v13449_v39 = vunpack.c.l.b16 %v6181_v41  ;;  %v6377_v33 = vpack.c.bf16 %v1271_v36, %v1271_v36  ;;  %v13462_v48 = vsel %vm1359_vm3, %v4095_v12, %v13173_v11 }
 0x182   :  { %11213 = vmatmul.mubr.msk.bf16.vlgmr.msra.gmra.mrb[28].mxu0 %vm1374_vm4, %v13368_v51  ;;  %11058 = vmatprep.subr.bf16.mxu1 %v15952_v49  ;;  %15970 = vst [vmem:[#allocation12_spill] sm:$0xff] %v13445_v0  ;;  %15972 = vst [vmem:[#allocation14_spill] sm:$0xff] %v13462_v48  ;;  %v15973_v13 = vmov 0.0   ;;  %v13468_v41 = vpack.c.b16 %v13215_v21, %v13215_v21  ;;  %v13471_v36 = vsel %vm1359_vm3, %v4190_v44, %v4189_v53  ;;  %v5625_v20 = vrot.slane %v13173_v11, 7 }
 0x183   :  { %11225 = vmatpush3.bf16.msra.mxu0 %v13373_v60  ;;  %11228 = vmatprep.mubr.msk.bf16.mxu0 %vm12551_vm2, %v15952_v49  ;;  %15974 = vst [vmem:[#allocation15_spill] sm:$0xff] %v13471_v36  ;;  %v4291_v12 = vrot.slane %v13303_v25, 7  ;;  %v4386_v21 = vrot.slane %v13303_v25, 1  ;;  %v5804_v44 = vrot.slane %v13303_v25, 6  ;;  %v6233_v36 = vrot.slane %v13390_v59, 1 }
 0x184   :  { %11226 = vmatprep.subr.bf16.mxu0 %v15952_v49  ;;  %v13492_v48 = vunpack.c.l.b16 %v6377_v33  ;;  %v6329_v33 = vrot.slane %v13449_v39, 2  ;;  %v7717_v23 = vrot.slane %v13449_v39, 6 }
 0x185   :  { %11059 = vmatpush3.bf16.msra.mxu1 %v13396_v56  ;;  %v13516_v0 = vsel %vm1359_vm3, %v13449_v39, %v6233_v36  ;;  %v6328_v36 = vrot.slane %v13390_v59, 3 }
 0x186   :  { %11064 = vmatprep.subr.bf16.mxu1 %v15952_v49  ;;  %v13458_v49 = vsel %vm1359_vm3, %v5119_v46, %v5118_v7  ;;  %v5626_v7 = vrot.slane %v13264_v34, 6  ;;  %v13475_v46 = vunpack.c.l.b16 %v6376_v54  ;;  %v5803_v54 = vrot.slane %v13198_v45, 7  ;;  %15979 = vst [vmem:[#allocation20_spill] sm:$0xff] %v13516_v0 }
 0x187   :  { %11227 = vmatpush3.bf16.msra.mxu0 %v13419_v10  ;;  %15971 = vst [vmem:[#allocation13_spill] sm:$0xff] %v13458_v49  ;;  %v13498_v49 = vld [vmem:[%s15941_s3 + $0xb8] sm:$0xff]   ;;  %v5071_v0 = vrot.slane %v13303_v25, 3  ;;  %v6525_v3 = vrot.slane %v13492_v48, 2  ;;  %v13552_v16 = vsel %vm1359_vm3, %v6329_v33, %v6328_v36  ;;  %v13567_v33 = vld [vmem:[%s15941_s3 + $0x68] sm:$0xff]   ;;  %v7031_v36 = vrot.slane %v13390_v59, 5 }
 0x188   :  { %11061 = vmatmul.mubr.msk.bf16.vlgmr.msra.gmra.mrb[16].mxu1 %vm1374_vm4, %v1604_v26  ;;  %11240 = vmatprep.subr.bf16.mxu0 %v15973_v13  ;;  %v4385_v26 = vrot.slane %v13198_v45, 2  ;;  %v13487_v53 = vsel %vm1359_vm3, %v5626_v7, %v5625_v20  ;;  %v13504_v20 = vsel %vm1359_vm3, %v4291_v12, %v13198_v45  ;;  %v1663_v12 = vpack.c.b16 %v13193_v37, %v13193_v37 }
 0x189   :  { %11065 = vmatpush3.bf16.msra.mxu1 %v13184_v28  ;;  %11068 = vmatprep.mubr.msk.bf16.mxu1 %vm12551_vm2, %v15973_v13  ;;  %15975 = vst [vmem:[#allocation16_spill] sm:$0xff] %v13487_v53  ;;  %15976 = vst [vmem:[#allocation17_spill] sm:$0xff] %v13504_v20  ;;  %v13512_v53 = vsel %vm1359_vm3, %v5804_v44, %v5803_v54  ;;  %v4892_v54 = vrot.slane %v13173_v11, 4  ;;  %v4893_v44 = vrot.slane %v13264_v34, 3  ;;  %v6429_v37 = vrot.slane %v13475_v46, 1 }
 0x18a   :  { %11229 = vmatmul.mubr.msk.bf16.vlgmr.msra.gmra.mrb[32].mxu0 %vm1374_vm4, %v13468_v41  ;;  %11066 = vmatprep.subr.bf16.mxu1 %v15973_v13  ;;  %v13507_v7 = vsel %vm1359_vm3, %v4386_v21, %v4385_v26  ;;  %15978 = vst [vmem:[#allocation19_spill] sm:$0xff] %v13512_v53  ;;  %v13524_v26 = vld [vmem:[%s15941_s3 + $0x60] sm:$0xff]   ;;  %v13528_v21 = vpack.c.b16 %v13225_v58, %v13225_v58  ;;  %v13541_v58 = vld [vmem:[%s15941_s3 + $0xd0] sm:$0xff]   ;;  %v6524_v20 = vrot.slane %v13475_v46, 3  ;;  %15981 = vst [vmem:[#allocation22_spill] sm:$0xff] %v13552_v16 }
 0x18b   :  { %11241 = vmatpush3.bf16.msra.mxu0 %v13455_v43  ;;  %11244 = vmatprep.mubr.msk.bf16.mxu0 %vm12551_vm2, %v15973_v13  ;;  %15977 = vst [vmem:[#allocation18_spill] sm:$0xff] %v13507_v7  ;;  %v13544_v53 = vsel %vm1359_vm3, %v4893_v44, %v4892_v54  ;;  %v5070_v7 = vrot.slane %v13198_v45, 4  ;;  %v13556_v52 = vsel %vm1359_vm3, %v13492_v48, %v6429_v37  ;;  %v5577_v54 = vrot.slane %v13173_v11, 6 }
 0x18c   :  { %11242 = vmatprep.subr.bf16.mxu0 %v15973_v13  ;;  %15980 = vst [vmem:[#allocation21_spill] sm:$0xff] %v13544_v53  ;;  %15982 = vst [vmem:[#allocation23_spill] sm:$0xff] %v13556_v52  ;;  %v5578_v44 = vrot.slane %v13264_v34, 5  ;;  %v7716_v53 = vrot.slane %v13390_v59, 7  ;;  %v7161_v4 = vrot.slane %v13475_v46, 4  ;;  %v13578_v34 = vsel %vm1359_vm3, %v6525_v3, %v6524_v20 }
 0x18d   :  { %11067 = vmatpush3.bf16.msra.mxu1 %v13232_v9  ;;  %v13572_v11 = vsel %vm1359_vm3, %v5071_v0, %v5070_v7  ;;  %15984 = vst [vmem:[#allocation25_spill] sm:$0xff] %v13578_v34  ;;  %v7032_v37 = vrot.slane %v13449_v39, 4  ;;  %v6984_v52 = vrot.slane %v13449_v39, 3  ;;  %v7162_v0 = vrot.slane %v13492_v48, 3  ;;  %v13591_v7 = vld [vmem:[%s15941_s3 + $0xd8] sm:$0xff]  }
 0x18e   :  { %11072 = vmatprep.subr.bf16.mxu1 %v15973_v13  ;;  %15983 = vst [vmem:[#allocation24_spill] sm:$0xff] %v13572_v11  ;;  %v5755_v3 = vrot.slane %v13198_v45, 6  ;;  %v5756_v20 = vrot.slane %v13303_v25, 5  ;;  %v6186_v34 = vrot.slane %v13449_v39, 7  ;;  %v7895_v11 = vrot.slane %v13492_v48, 6 }
 0x18f   :  { %11243 = vmatpush3.bf16.msra.mxu0 %v13498_v49  ;;  %v6280_v45 = vrot.slane %v13390_v59, 2  ;;  %v6281_v25 = vrot.slane %v13449_v39, 1  ;;  %v7847_v8 = vrot.slane %v13492_v48, 5 }
 0x190   :  { %11069 = vmatmul.mubr.msk.bf16.vlgmr.msra.gmra.mrb[20].mxu1 %vm1374_vm4, %v1663_v12  ;;  %11256 = vmatprep.subr.bf16.mxu0 %v15973_v13  ;;  %v13581_v12 = vsel %vm1359_vm3, %v5578_v44, %v5577_v54  ;;  %v13599_v54 = vsel %vm1359_vm3, %v7032_v37, %v7031_v36  ;;  %v7209_v44 = vrot.slane %v13475_v46, 5  ;;  %v13607_v16 = vsel %vm1359_vm3, %v5756_v20, %v5755_v3 }
 0x191   :  { %11073 = vmatpush3.bf16.msra.mxu1 %v13524_v26  ;;  %11076 = vmatprep.mubr.msk.bf16.mxu1 %vm12551_vm2, %v15973_v13  ;;  %15985 = vst [vmem:[#allocation26_spill] sm:$0xff] %v13581_v12  ;;  %15986 = vst [vmem:[#allocation27_spill] sm:$0xff] %v13599_v54  ;;  %v7210_v12 = vrot.slane %v13492_v48, 4  ;;  %v13614_v36 = vpack.c.b16 %v13237_v30, %v13237_v30  ;;  %v13621_v54 = vsel %vm1359_vm3, %v6186_v34, %v13390_v59  ;;  %v13633_v30 = vld [vmem:[%s15941_s3 + $0xf0] sm:$0xff]  }
 0x192   :  { %11245 = vmatmul.mubr.msk.bf16.vlgmr.msra.gmra.mrb[36].mxu0 %vm1374_vm4, %v13528_v21  ;;  %11074 = vmatprep.subr.bf16.mxu1 %v15973_v13  ;;  %15987 = vst [vmem:[#allocation28_spill] sm:$0xff] %v13607_v16  ;;  %15988 = vst [vmem:[#allocation29_spill] sm:$0xff] %v13621_v54  ;;  %v13624_v3 = vsel %vm1359_vm3, %v7717_v23, %v7716_v53  ;;  %v7894_v20 = vrot.slane %v13475_v46, 7  ;;  %v7669_v16 = vrot.slane %v13449_v39, 5  ;;  %v6382_v39 = vrot.slane %v13492_v48, 7 }
 0x193   :  { %11257 = vmatpush3.bf16.msra.mxu0 %v13541_v58  ;;  %11260 = vmatprep.mubr.msk.bf16.mxu0 %vm12551_vm2, %v15973_v13  ;;  %v13617_v37 = vsel %vm1359_vm3, %v7210_v12, %v7209_v44  ;;  %15989 = vst [vmem:[#allocation30_spill] sm:$0xff] %v13624_v3  ;;  %v13636_v12 = vsel %vm1359_vm3, %v6281_v25, %v6280_v45  ;;  %v6476_v53 = vrot.slane %v13475_v46, 2  ;;  %v6477_v34 = vrot.slane %v13492_v48, 1 }
 0x194   :  { %11258 = vmatprep.subr.bf16.mxu0 %v15973_v13  ;;  %15990 = vst [vmem:[#allocation31_spill] sm:$0xff] %v13636_v12  ;;  %v13643_v23 = vpack.c.b16 %v13240_v5, %v13240_v5  ;;  %v13652_v44 = vsel %vm1359_vm3, %v7895_v11, %v7894_v20  ;;  %v15992_v45 = vrot.slane %v13390_v59, 4  ;;  %v13660_v5 = vsel %vm1359_vm3, %v7162_v0, %v7161_v4  ;;  %v16017_v12 = vld [vmem:[#allocation18_spill] sm:$0xff] }
 0x195   :  { %11075 = vmatpush3.bf16.msra.mxu1 %v13567_v33  ;;  %15991 = vst [vmem:[#allocation32_spill] sm:$0xff] %v13652_v44  ;;  %15994 = vst [vmem:[#allocation34_spill] sm:$0xff] %v13660_v5  ;;  %v7668_v3 = vrot.slane %v13390_v59, 6  ;;  %v7846_v48 = vrot.slane %v13475_v46, 6  ;;  %v13669_v11 = vsel %vm1359_vm3, %v6382_v39, %v13475_v46  ;;  %v13672_v20 = vsel %vm1359_vm3, %v6477_v34, %v6476_v53  ;;  %v13678_v59 = vld [vmem:[%s15941_s3 + $0xf8] sm:$0xff]   ;;  %v13693_v46 = vld [vmem:[%s15941_s3 + $0x80] sm:$0xff]  }
 0x196   :  { %11080 = vmatprep.subr.bf16.mxu1 %v15973_v13  ;;  %v13657_v25 = vsel %vm1359_vm3, %v6984_v52, %v15992_v45  ;;  %15995 = vst [vmem:[#allocation35_spill] sm:$0xff] %v13669_v11  ;;  %15996 = vst [vmem:[#allocation36_spill] sm:$0xff] %v13672_v20  ;;  %v13850_v0 = vpack.c.b16 %v13279_v17, %v13279_v17  ;;  %v13864_v39 = vld [vmem:[%s15941_s3 + $0xe8] sm:$0xff]   ;;  %v13879_v17 = vpack.c.b16 %v13325_v18, %v13325_v18  ;;  %v13908_v18 = vld [vmem:[%s15941_s3 + $0x10] sm:$0xff]  }
 0x197   :  { %11259 = vmatpush3.bf16.msra.mxu0 %v13591_v7  ;;  %15993 = vst [vmem:[#allocation33_spill] sm:$0xff] %v13657_v25  ;;  %v13684_v4 = vsel %vm1359_vm3, %v7669_v16, %v7668_v3  ;;  %v13687_v52 = vsel %vm1359_vm3, %v7847_v8, %v7846_v48  ;;  %v13702_v8 = vpack.c.b16 %v13246_v24, %v13246_v24  ;;  %v13708_v16 = vld [vmem:[%s15941_s3 + $0x88] sm:$0xff]   ;;  %v13928_v53 = vld [vmem:[%s15941_s3 + $0x18] sm:$0xff]  }
 0x198   :  { %11077 = vmatmul.mubr.msk.bf16.vlgmr.msra.gmra.mrb[24].mxu1 %vm1374_vm4, %v13614_v36  ;;  %11272 = vmatprep.subr.bf16.mxu0 %v15973_v13  ;;  %15997 = vst [vmem:[#allocation37_spill] sm:$0xff] %v13684_v4  ;;  %15998 = vst [vmem:[#allocation38_spill] sm:$0xff] %v13687_v52  ;;  %v13723_v24 = vpack.c.b16 %v13250_v42, %v13250_v42  ;;  %v13752_v42 = vpack.c.b16 %v13260_v6, %v13260_v6  ;;  %v13935_v34 = vld [vmem:[%s15941_s3 + $0x8] sm:$0xff]   ;;  %v14358_v52 = vld [vmem:[%s15941_s3 + $0x78] sm:$0xff]  }
 0x199   :  { %11081 = vmatpush3.bf16.msra.mxu1 %v13273_v57  ;;  %11084 = vmatprep.mubr.msk.bf16.mxu1 %vm12551_vm2, %v15973_v13  ;;  %v13778_v6 = vpack.c.b16 %v13291_v40, %v13291_v40  ;;  %v3359_v40 = vpack.c.b16 %v13298_v22, %v13298_v22  ;;  %v13825_v22 = vpack.c.b16 %v13310_v35, %v13310_v35  ;;  %v13845_v35 = vld [vmem:[%s15941_s3 + $0xe0] sm:$0xff]   ;;  %v16013_v5 = vld [vmem:[#allocation15_spill] sm:$0xff]  ;;  %v16015_v20 = vld [vmem:[#allocation17_spill] sm:$0xff] }
 0x19a   :  { %11261 = vmatmul.mubr.msk.bf16.vlgmr.msra.gmra.mrb[40].mxu0 %vm1374_vm4, %v13643_v23  ;;  %11082 = vmatprep.subr.bf16.mxu1 %v15973_v13  ;;  %v13858_v3 = vpack.c.b16 %v13313_v29, %v13313_v29  ;;  %v13903_v29 = vpack.c.b16 %v13332_v55, %v13332_v55  ;;  %v13919_v55 = vld [vmem:[%s15941_s3] sm:$0xff]   ;;  %v14035_v45 = vpack.c.b16 %v13382_v27, %v13382_v27  ;;  %v16002_v27 = vld [vmem:[#allocation5_spill] sm:$0xff] }
 0x19b   :  { %11273 = vmatpush3.bf16.msra.mxu0 %v13633_v30  ;;  %11276 = vmatprep.mubr.msk.bf16.mxu0 %vm12551_vm2, %v15973_v13  ;;  %v14055_v48 = vpack.c.b16 %v16002_v27, %v16002_v27  ;;  %v14119_v27 = vld [vmem:[%s15941_s3 + $0x38] sm:$0xff]   ;;  %v14417_v25 = vpack.c.b16 %v16013_v5, %v16013_v5  ;;  %v14441_v5 = vld [vmem:[%s15941_s3 + $0xd0] sm:$0xff]   ;;  %v14453_v11 = vpack.c.b16 %v16015_v20, %v16015_v20 }
 0x19c   :  { %11274 = vmatprep.subr.bf16.mxu0 %v15973_v13  ;;  %v14485_v54 = vpack.c.b16 %v16017_v12, %v16017_v12 }
 0x19d   :  { %11083 = vmatpush3.bf16.msra.mxu1 %v13320_v19 }
 0x19e   :  { %11088 = vmatprep.subr.bf16.mxu1 %v15973_v13  ;;  %16018 = vst [vmem:[#allocation5_spill] sm:$0xff] %v14485_v54 }
 0x19f   :  { %11275 = vmatpush3.bf16.msra.mxu0 %v13678_v59 }
 0x1a0   :  { %11085 = vmatmul.mubr.msk.bf16.vlgmr.msra.gmra.mrb[28].mxu1 %vm1374_vm4, %v13285_v32  ;;  %11288 = vmatprep.subr.bf16.mxu0 %v15973_v13  ;;  %v13764_v32 = vld [vmem:[%s15941_s3 + $0xa8] sm:$0xff]  }
 0x1a1   :  { %11089 = vmatpush3.bf16.msra.mxu1 %v13693_v46  ;;  %11092 = vmatprep.mubr.msk.bf16.mxu1 %vm12551_vm2, %v15973_v13 }
 0x1a2   :  { %11277 = vmatmul.mubr.msk.bf16.vlgmr.msra.gmra.mrb[44].mxu0 %vm1374_vm4, %v13702_v8  ;;  %11090 = vmatprep.subr.bf16.mxu1 %v15973_v13 }
 0x1a3   :  { %11289 = vmatpush3.bf16.msra.mxu0 %v13032_v50  ;;  %11292 = vmatprep.mubr.msk.bf16.mxu0 %vm12551_vm2, %v15973_v13  ;;  %v13731_v50 = vpack.c.b16 %v13256_v2, %v13256_v2  ;;  %v3181_v2 = vpack.c.b16 %v13288_v38, %v13288_v38  ;;  %v13798_v38 = vld [vmem:[%s15941_s3 + $0xc0] sm:$0xff]  }
 0x1a4   :  { %11290 = vmatprep.subr.bf16.mxu0 %v15973_v13 }
 0x1a5   :  { %11091 = vmatpush3.bf16.msra.mxu1 %v13708_v16 }
 0x1a6   :  { %11096 = vmatprep.subr.bf16.mxu1 %v15973_v13 }
 0x1a7   :  { %11291 = vmatpush3.bf16.msra.mxu0 %v13043_v15  ;;  %v13747_v15 = vld [vmem:[%s15941_s3 + $0xa0] sm:$0xff]  }
 0x1a8   :  { %11093 = vmatmul.mubr.msk.bf16.vlgmr.msra.gmra.mrb[32].mxu1 %vm1374_vm4, %v13723_v24  ;;  %11304 = vmatprep.subr.bf16.mxu0 %v15973_v13 }
 0x1a9   :  { %11097 = vmatpush3.bf16.msra.mxu1 %v13373_v60  ;;  %11100 = vmatprep.mubr.msk.bf16.mxu1 %vm12551_vm2, %v15973_v13 }
 0x1aa   :  { %11293 = vmatmul.mubr.msk.bf16.vlgmr.msra.gmra.mrb[48].mxu0 %vm1374_vm4, %v13731_v50  ;;  %11098 = vmatprep.subr.bf16.mxu1 %v15973_v13 }
 0x1ab   :  { %11305 = vmatpush3.bf16.msra.mxu0 %v13118_v63  ;;  %11308 = vmatprep.mubr.msk.bf16.mxu0 %vm12551_vm2, %v15973_v13 }
 0x1ac   :  { %11306 = vmatprep.subr.bf16.mxu0 %v15973_v13 }
 0x1ad   :  { %11099 = vmatpush3.bf16.msra.mxu1 %v13419_v10 }
 0x1ae   :  { %11104 = vmatprep.subr.bf16.mxu1 %v15973_v13 }
 0x1af   :  { %11307 = vmatpush3.bf16.msra.mxu0 %v13147_v14 }
 0x1b0   :  { %11101 = vmatmul.mubr.msk.bf16.vlgmr.msra.gmra.mrb[36].mxu1 %vm1374_vm4, %v13752_v42  ;;  %11320 = vmatprep.subr.bf16.mxu0 %v15973_v13 }
 0x1b1   :  { %11105 = vmatpush3.bf16.msra.mxu1 %v13747_v15  ;;  %11108 = vmatprep.mubr.msk.bf16.mxu1 %vm12551_vm2, %v15973_v13 }
 0x1b2   :  { %11309 = vmatmul.mubr.msk.bf16.vlgmr.msra.gmra.mrb[52].mxu0 %vm1374_vm4, %v3181_v2  ;;  %11106 = vmatprep.subr.bf16.mxu1 %v15973_v13  ;;  %v16004_v2 = vld [vmem:[#allocation7_spill] sm:$0xff] }
 0x1b3   :  { %11321 = vmatpush3.bf16.msra.mxu0 %v13184_v28  ;;  %11324 = vmatprep.mubr.msk.bf16.mxu0 %vm12551_vm2, %v15973_v13 }
 0x1b4   :  { %11322 = vmatprep.subr.bf16.mxu0 %v15973_v13 }
 0x1b5   :  { %11107 = vmatpush3.bf16.msra.mxu1 %v13764_v32 }
 0x1b6   :  { %11112 = vmatprep.subr.bf16.mxu1 %v15973_v13 }
 0x1b7   :  { %11323 = vmatpush3.bf16.msra.mxu0 %v13232_v9 }
 0x1b8   :  { %11109 = vmatmul.mubr.msk.bf16.vlgmr.msra.gmra.mrb[40].mxu1 %vm1374_vm4, %v13778_v6  ;;  %11336 = vmatprep.subr.bf16.mxu0 %v15973_v13 }
 0x1b9   :  { %11113 = vmatpush3.bf16.msra.mxu1 %v13455_v43  ;;  %11116 = vmatprep.mubr.msk.bf16.mxu1 %vm12551_vm2, %v15973_v13 }
 0x1ba   :  { %11325 = vmatmul.mubr.msk.bf16.vlgmr.msra.gmra.mrb[56].mxu0 %vm1374_vm4, %v13368_v51  ;;  %11114 = vmatprep.subr.bf16.mxu1 %v15973_v13  ;;  %v13811_v51 = vld [vmem:[%s15941_s3 + $0xc8] sm:$0xff]  }
 0x1bb   :  { %11337 = vmatpush3.bf16.msra.mxu0 %v13273_v57  ;;  %11340 = vmatprep.mubr.msk.bf16.mxu0 %vm12551_vm2, %v15973_v13 }
 0x1bc   :  { %11338 = vmatprep.subr.bf16.mxu0 %v15973_v13 }
 0x1bd   :  { %11115 = vmatpush3.bf16.msra.mxu1 %v13498_v49 }
 0x1be   :  { %11120 = vmatprep.subr.bf16.mxu1 %v15973_v13 }
 0x1bf   :  { %11339 = vmatpush3.bf16.msra.mxu0 %v13320_v19 }
 0x1c0   :  { %11117 = vmatmul.mubr.msk.bf16.vlgmr.msra.gmra.mrb[44].mxu1 %vm1374_vm4, %v13468_v41  ;;  %11352 = vmatprep.subr.bf16.mxu0 %v15973_v13 }
 0x1c1   :  { %11121 = vmatpush3.bf16.msra.mxu1 %v13798_v38  ;;  %11124 = vmatprep.mubr.msk.bf16.mxu1 %vm12551_vm2, %v15973_v13 }
 0x1c2   :  { %11341 = vmatmul.mubr.msk.bf16.vlgmr.msra.gmra.mrb[60].mxu0 %vm1374_vm4, %v3359_v40  ;;  %11122 = vmatprep.subr.bf16.mxu1 %v15973_v13  ;;  %v14079_v40 = vpack.c.b16 %v16004_v2, %v16004_v2 }
 0x1c3   :  { %11353 = vmatpush3.bf16.msra.mxu0 %v13373_v60  ;;  %11356 = vmatprep.mubr.msk.bf16.mxu0 %vm12551_vm2, %v15973_v13 }
 0x1c4   :  { %11354 = vmatprep.subr.bf16.mxu0 %v15973_v13 }
 0x1c5   :  { %11123 = vmatpush3.bf16.msra.mxu1 %v13811_v51 }
 0x1c6   :  { %11128 = vmatprep.subr.bf16.mxu1 %v15973_v13 }
 0x1c7   :  { %11355 = vmatpush3.bf16.msra.mxu0 %v13419_v10 }
 0x1c8   :  { %11125 = vmatmul.mubr.msk.bf16.vlgmr.msra.gmra.mrb[48].mxu1 %vm1374_vm4, %v13825_v22  ;;  %11368 = vmatprep.subr.bf16.mxu0 %v15973_v13 }
 0x1c9   :  { %11129 = vmatpush3.bf16.msra.mxu1 %v13541_v58  ;;  %11132 = vmatprep.mubr.msk.bf16.mxu1 %vm12551_vm2, %v15973_v13 }
 0x1ca   :  { %11357 = vmatmul.mubr.msk.bf16.vlgmr.msra.gmra.mrb[64].mxu0 %vm1374_vm4, %v13528_v21  ;;  %11130 = vmatprep.subr.bf16.mxu1 %v15973_v13 }
 0x1cb   :  { %11369 = vmatpush3.bf16.msra.mxu0 %v13455_v43  ;;  %11372 = vmatprep.mubr.msk.bf16.mxu0 %vm12551_vm2, %v15973_v13 }
 0x1cc   :  { %11370 = vmatprep.subr.bf16.mxu0 %v15973_v13 }
 0x1cd   :  { %11131 = vmatpush3.bf16.msra.mxu1 %v13591_v7 }
 0x1ce   :  { %11136 = vmatprep.subr.bf16.mxu1 %v15973_v13 }
 0x1cf   :  { %11371 = vmatpush3.bf16.msra.mxu0 %v13498_v49 }
 0x1d0   :  { %11133 = vmatmul.mubr.msk.bf16.vlgmr.msra.gmra.mrb[52].mxu1 %vm1374_vm4, %v13850_v0  ;;  %11384 = vmatprep.subr.bf16.mxu0 %v15973_v13 }
 0x1d1   :  { %11137 = vmatpush3.bf16.msra.mxu1 %v13845_v35  ;;  %11140 = vmatprep.mubr.msk.bf16.mxu1 %vm12551_vm2, %v15973_v13 }
 0x1d2   :  { %11373 = vmatmul.mubr.msk.bf16.vlgmr.msra.gmra.mrb[68].mxu0 %vm1374_vm4, %v13858_v3  ;;  %11138 = vmatprep.subr.bf16.mxu1 %v15973_v13 }
 0x1d3   :  { %11385 = vmatpush3.bf16.msra.mxu0 %v13541_v58  ;;  %11388 = vmatprep.mubr.msk.bf16.mxu0 %vm12551_vm2, %v15973_v13 }
 0x1d4   :  { %11386 = vmatprep.subr.bf16.mxu0 %v15973_v13 }
 0x1d5   :  { %11139 = vmatpush3.bf16.msra.mxu1 %v13864_v39 }
 0x1d6   :  { %11144 = vmatprep.subr.bf16.mxu1 %v15973_v13 }
 0x1d7   :  { %11387 = vmatpush3.bf16.msra.mxu0 %v13591_v7 }
 0x1d8   :  { %11141 = vmatmul.mubr.msk.bf16.vlgmr.msra.gmra.mrb[56].mxu1 %vm1374_vm4, %v13879_v17  ;;  %11400 = vmatprep.subr.bf16.mxu0 %v15973_v13 }
 0x1d9   :  { %11145 = vmatpush3.bf16.msra.mxu1 %v13633_v30  ;;  %11148 = vmatprep.mubr.msk.bf16.mxu1 %vm12551_vm2, %v15973_v13 }
 0x1da   :  { %11389 = vmatmul.mubr.msk.bf16.vlgmr.msra.gmra.mrb[72].mxu0 %vm1374_vm4, %v13702_v8  ;;  %11146 = vmatprep.subr.bf16.mxu1 %v15973_v13 }
 0x1db   :  { %11401 = vmatpush3.bf16.msra.mxu0 %v13633_v30  ;;  %11404 = vmatprep.mubr.msk.bf16.mxu0 %vm12551_vm2, %v15973_v13 }
 0x1dc   :  { %11402 = vmatprep.subr.bf16.mxu0 %v15973_v13 }
 0x1dd   :  { %11147 = vmatpush3.bf16.msra.mxu1 %v13678_v59 }
 0x1de   :  { %11152 = vmatprep.subr.bf16.mxu1 %v15973_v13 }
 0x1df   :  { %11403 = vmatpush3.bf16.msra.mxu0 %v13678_v59 }
 0x1e0   :  { %11149 = vmatmul.mubr.msk.bf16.vlgmr.msra.gmra.mrb[60].mxu1 %vm1374_vm4, %v13643_v23  ;;  %11416 = vmatprep.subr.bf16.mxu0 %v15973_v13 }
 0x1e1   :  { %11153 = vmatpush3.bf16.msra.mxu1 %v13908_v18  ;;  %11156 = vmatprep.mubr.msk.bf16.mxu1 %vm12551_vm2, %v15973_v13 }
 0x1e2   :  { %11405 = vmatmul.mubr.msk.bf16.vlgmr.msra.gmra.mrb[76].mxu0 %vm1374_vm4, %v13903_v29  ;;  %11154 = vmatprep.subr.bf16.mxu1 %v15973_v13 }
 0x1e3   :  { %11417 = vmatpush3.bf16.msra.mxu0 %v13919_v55  ;;  %11420 = vmatprep.mubr.msk.bf16.mxu0 %vm12551_vm2, %v15973_v13 }
 0x1e4   :  { %11418 = vmatprep.subr.bf16.mxu0 %v15973_v13 }
 0x1e5   :  { %11155 = vmatpush3.bf16.msra.mxu1 %v13928_v53 }
 0x1e6   :  { %11168 = vmatprep.subr.bf16.mxu1 %v15973_v13 }
 0x1e7   :  { %11419 = vmatpush3.bf16.msra.mxu0 %v13935_v34 }
 0x1e8   :  { %11157 = vmatmul.mubr.msk.bf16.vlgmr.msra.gmra.mrb[64].mxu1 %vm1374_vm4, %v13357_v1  ;;  %11432 = vmatprep.subr.bf16.mxu0 %v15973_v13  ;;  %v16000_v1 = vld [vmem:[#allocation4_spill] sm:$0xff] }
 0x1e9   :  { %11169 = vmatpush3.bf16.msra.mxu1 %v13164_v62  ;;  %11172 = vmatprep.mubr.msk.bf16.mxu1 %vm12551_vm2, %v15973_v13  ;;  %16016 = vst [vmem:[#allocation4_spill] sm:$0xff] %v14453_v11 }
 0x1ea   :  { %11421 = vmatmul.mubr.msk.bf16.vlgmr.msra.gmra.mrb[80].mxu0 %vm1374_vm4, %v13723_v24  ;;  %11170 = vmatprep.subr.bf16.mxu1 %v15973_v13  ;;  %v16003_v24 = vld [vmem:[#allocation6_spill] sm:$0xff] }
 0x1eb   :  { %11433 = vmatpush3.bf16.msra.mxu0 %v13118_v63  ;;  %11436 = vmatprep.mubr.msk.bf16.mxu0 %vm12551_vm2, %v15973_v13  ;;  %v13987_v63 = vpack.c.b16 %v13335_v61, %v13335_v61 }
 0x1ec   :  { %11434 = vmatprep.subr.bf16.mxu0 %v15973_v13 }
 0x1ed   :  { %11171 = vmatpush3.bf16.msra.mxu1 %v13204_v47 }
 0x1ee   :  { %11184 = vmatprep.subr.bf16.mxu1 %v15973_v13 }
 0x1ef   :  { %11435 = vmatpush3.bf16.msra.mxu0 %v13147_v14  ;;  %v15999_v14 = vld [vmem:[#allocation3_spill] sm:$0xff] }
 0x1f0   :  { %11173 = vmatmul.mubr.msk.bf16.vlgmr.msra.gmra.mrb[68].mxu1 %vm1374_vm4, %v13731_v50  ;;  %11448 = vmatprep.subr.bf16.mxu0 %v15973_v13  ;;  %v14011_v61 = vpack.c.b16 %v15999_v14, %v15999_v14  ;;  %16001 = vst [vmem:[#allocation3_spill] sm:$0xff] %v14035_v45  ;;  %v14071_v50 = vpack.c.b16 %v16003_v24, %v16003_v24  ;;  %v14106_v14 = vld [vmem:[%s15941_s3 + $0x30] sm:$0xff]  }
 0x1f1   :  { %11185 = vmatpush3.bf16.msra.mxu1 %v13347_v31  ;;  %11188 = vmatprep.mubr.msk.bf16.mxu1 %vm12551_vm2, %v15973_v13 }
 0x1f2   :  { %11437 = vmatmul.mubr.msk.bf16.vlgmr.msra.gmra.mrb[84].mxu0 %vm1374_vm4, %v13468_v41  ;;  %11186 = vmatprep.subr.bf16.mxu1 %v15973_v13 }
 0x1f3   :  { %11449 = vmatpush3.bf16.msra.mxu0 %v13184_v28  ;;  %11452 = vmatprep.mubr.msk.bf16.mxu0 %vm12551_vm2, %v15973_v13 }
 0x1f4   :  { %11450 = vmatprep.subr.bf16.mxu0 %v15973_v13 }
 0x1f5   :  { %11187 = vmatpush3.bf16.msra.mxu1 %v13396_v56 }
 0x1f6   :  { %11200 = vmatprep.subr.bf16.mxu1 %v15973_v13 }
 0x1f7   :  { %11451 = vmatpush3.bf16.msra.mxu0 %v13232_v9 }
 0x1f8   :  { %11189 = vmatmul.mubr.msk.bf16.vlgmr.msra.gmra.mrb[72].mxu1 %vm1374_vm4, %v13614_v36  ;;  %11464 = vmatprep.subr.bf16.mxu0 %v15973_v13  ;;  %v14027_v36 = vpack.c.b16 %v16000_v1, %v16000_v1 }
 0x1f9   :  { %11201 = vmatpush3.bf16.msra.mxu1 %v13524_v26  ;;  %11204 = vmatprep.mubr.msk.bf16.mxu1 %vm12551_vm2, %v15973_v13 }
 0x1fa   :  { %11453 = vmatmul.mubr.msk.bf16.vlgmr.msra.gmra.mrb[88].mxu0 %vm1374_vm4, %v13850_v0  ;;  %11202 = vmatprep.subr.bf16.mxu1 %v15973_v13  ;;  %v16005_v0 = vld [vmem:[#allocation2_spill] sm:$0xff] }
 0x1fb   :  { %11465 = vmatpush3.bf16.msra.mxu0 %v13273_v57  ;;  %11468 = vmatprep.mubr.msk.bf16.mxu0 %vm12551_vm2, %v15973_v13 }
 0x1fc   :  { %11466 = vmatprep.subr.bf16.mxu0 %v15973_v13 }
 0x1fd   :  { %11203 = vmatpush3.bf16.msra.mxu1 %v13567_v33 }
 0x1fe   :  { %11216 = vmatprep.subr.bf16.mxu1 %v15973_v13 }
 0x1ff   :  { %11467 = vmatpush3.bf16.msra.mxu0 %v13320_v19 }
 0x200   :  { %11205 = vmatmul.mubr.msk.bf16.vlgmr.msra.gmra.mrb[76].mxu1 %vm1374_vm4, %v13987_v63  ;;  %11480 = vmatprep.subr.bf16.mxu0 %v15973_v13 }
 0x201   :  { %11217 = vmatpush3.bf16.msra.mxu1 %v13693_v46  ;;  %11220 = vmatprep.mubr.msk.bf16.mxu1 %vm12551_vm2, %v15973_v13 }
 0x202   :  { %11469 = vmatmul.mubr.msk.bf16.vlgmr.msra.gmra.mrb[92].mxu0 %vm1374_vm4, %v13643_v23  ;;  %11218 = vmatprep.subr.bf16.mxu1 %v15973_v13 }
 0x203   :  { %11481 = vmatpush3.bf16.msra.mxu0 %v13373_v60  ;;  %11484 = vmatprep.mubr.msk.bf16.mxu0 %vm12551_vm2, %v15973_v13 }
 0x204   :  { %11482 = vmatprep.subr.bf16.mxu0 %v15973_v13 }
 0x205   :  { %11219 = vmatpush3.bf16.msra.mxu1 %v13708_v16 }
 0x206   :  { %11232 = vmatprep.subr.bf16.mxu1 %v15973_v13 }
 0x207   :  { %11483 = vmatpush3.bf16.msra.mxu0 %v13419_v10 }
 0x208   :  { %11221 = vmatmul.mubr.msk.bf16.vlgmr.msra.gmra.mrb[80].mxu1 %vm1374_vm4, %v13778_v6  ;;  %11496 = vmatprep.subr.bf16.mxu0 %v15973_v13 }
 0x209   :  { %11233 = vmatpush3.bf16.msra.mxu1 %v13747_v15  ;;  %11236 = vmatprep.mubr.msk.bf16.mxu1 %vm12551_vm2, %v15973_v13 }
 0x20a   :  { %11485 = vmatmul.mubr.msk.bf16.vlgmr.msra.gmra.mrb[96].mxu0 %vm1374_vm4, %v14011_v61  ;;  %11234 = vmatprep.subr.bf16.mxu1 %v15973_v13 }
 0x20b   :  { %11497 = vmatpush3.bf16.msra.mxu0 %v13455_v43  ;;  %11500 = vmatprep.mubr.msk.bf16.mxu0 %vm12551_vm2, %v15973_v13 }
 0x20c   :  { %11498 = vmatprep.subr.bf16.mxu0 %v15973_v13 }
 0x20d   :  { %11235 = vmatpush3.bf16.msra.mxu1 %v13764_v32 }
 0x20e   :  { %11248 = vmatprep.subr.bf16.mxu1 %v15973_v13 }
 0x20f   :  { %11499 = vmatpush3.bf16.msra.mxu0 %v13498_v49 }
 0x210   :  { %11237 = vmatmul.mubr.msk.bf16.vlgmr.msra.gmra.mrb[84].mxu1 %vm1374_vm4, %v14027_v36  ;;  %11512 = vmatprep.subr.bf16.mxu0 %v15973_v13 }
 0x211   :  { %11249 = vmatpush3.bf16.msra.mxu1 %v13798_v38  ;;  %11252 = vmatprep.mubr.msk.bf16.mxu1 %vm12551_vm2, %v15973_v13 }
 0x212   :  { %11501 = vmatmul.mubr.msk.bf16.vlgmr.msra.gmra.mrb[100].mxu0 %vm1374_vm4, %v14035_v45  ;;  %11250 = vmatprep.subr.bf16.mxu1 %v15973_v13 }
 0x213   :  { %11513 = vmatpush3.bf16.msra.mxu0 %v13541_v58  ;;  %11516 = vmatprep.mubr.msk.bf16.mxu0 %vm12551_vm2, %v15973_v13 }
 0x214   :  { %11514 = vmatprep.subr.bf16.mxu0 %v15973_v13 }
 0x215   :  { %11251 = vmatpush3.bf16.msra.mxu1 %v13811_v51 }
 0x216   :  { %11264 = vmatprep.subr.bf16.mxu1 %v15973_v13 }
 0x217   :  { %11515 = vmatpush3.bf16.msra.mxu0 %v13591_v7 }
 0x218   :  { %11253 = vmatmul.mubr.msk.bf16.vlgmr.msra.gmra.mrb[88].mxu1 %vm1374_vm4, %v13879_v17  ;;  %11528 = vmatprep.subr.bf16.mxu0 %v15973_v13 }
 0x219   :  { %11265 = vmatpush3.bf16.msra.mxu1 %v13845_v35  ;;  %11268 = vmatprep.mubr.msk.bf16.mxu1 %vm12551_vm2, %v15973_v13 }
 0x21a   :  { %11517 = vmatmul.mubr.msk.bf16.vlgmr.msra.gmra.mrb[104].mxu0 %vm1374_vm4, %v14055_v48  ;;  %11266 = vmatprep.subr.bf16.mxu1 %v15973_v13 }
 0x21b   :  { %11529 = vmatpush3.bf16.msra.mxu0 %v13633_v30  ;;  %11532 = vmatprep.mubr.msk.bf16.mxu0 %vm12551_vm2, %v15973_v13 }
 0x21c   :  { %11530 = vmatprep.subr.bf16.mxu0 %v15973_v13 }
 0x21d   :  { %11267 = vmatpush3.bf16.msra.mxu1 %v13864_v39 }
 0x21e   :  { %11280 = vmatprep.subr.bf16.mxu1 %v15973_v13 }
 0x21f   :  { %11531 = vmatpush3.bf16.msra.mxu0 %v13678_v59 }
 0x220   :  { %11269 = vmatmul.mubr.msk.bf16.vlgmr.msra.gmra.mrb[92].mxu1 %vm1374_vm4, %v14071_v50  ;;  %11544 = vmatprep.subr.bf16.mxu0 %v15973_v13 }
 0x221   :  { %11281 = vmatpush3.bf16.msra.mxu1 %v13908_v18  ;;  %11284 = vmatprep.mubr.msk.bf16.mxu1 %vm12551_vm2, %v15973_v13 }
 0x222   :  { %11533 = vmatmul.mubr.msk.bf16.vlgmr.msra.gmra.mrb[108].mxu0 %vm1374_vm4, %v14079_v40  ;;  %11282 = vmatprep.subr.bf16.mxu1 %v15973_v13 }
 0x223   :  { %11545 = vmatpush3.bf16.msra.mxu0 %v13919_v55  ;;  %11548 = vmatprep.mubr.msk.bf16.mxu0 %vm12551_vm2, %v15973_v13 }
 0x224   :  { %11546 = vmatprep.subr.bf16.mxu0 %v15973_v13 }
 0x225   :  { %11283 = vmatpush3.bf16.msra.mxu1 %v13928_v53 }
 0x226   :  { %11296 = vmatprep.subr.bf16.mxu1 %v15973_v13 }
 0x227   :  { %11547 = vmatpush3.bf16.msra.mxu0 %v13935_v34 }
 0x228   :  { %11285 = vmatmul.mubr.msk.bf16.vlgmr.msra.gmra.mrb[96].mxu1 %vm1374_vm4, %v16005_v0  ;;  %11560 = vmatprep.subr.bf16.mxu0 %v15973_v13 }
 0x229   :  { %11297 = vmatpush3.bf16.msra.mxu1 %v13164_v62  ;;  %11300 = vmatprep.mubr.msk.bf16.mxu1 %vm12551_vm2, %v15973_v13  ;;  %v16006_v62 = vld [vmem:[#allocation8_spill] sm:$0xff] }
 0x22a   :  { %11549 = vmatmul.mubr.msk.bf16.vlgmr.msra.gmra.mrb[112].mxu0 %vm1374_vm4, %v13778_v6  ;;  %11298 = vmatprep.subr.bf16.mxu1 %v15973_v13  ;;  %v3133_v1 = vpack.c.b16 %v16006_v62, %v16006_v62 }
 0x22b   :  { %11561 = vmatpush3.bf16.msra.mxu0 %v14106_v14  ;;  %11564 = vmatprep.mubr.msk.bf16.mxu0 %vm12551_vm2, %v15973_v13 }
 0x22c   :  { %11562 = vmatprep.subr.bf16.mxu0 %v15973_v13 }
 0x22d   :  { %11299 = vmatpush3.bf16.msra.mxu1 %v13204_v47 }
 0x22e   :  { %11312 = vmatprep.subr.bf16.mxu1 %v15973_v13 }
 0x22f   :  { %11563 = vmatpush3.bf16.msra.mxu0 %v14119_v27 }
 0x230   :  { %11301 = vmatmul.mubr.msk.bf16.vlgmr.msra.gmra.mrb[100].mxu1 %vm1374_vm4, %v3133_v1  ;;  %11576 = vmatprep.subr.bf16.mxu0 %v15973_v13 }
 0x231   :  { %11313 = vmatpush3.bf16.msra.mxu1 %v13347_v31  ;;  %11316 = vmatprep.mubr.msk.bf16.mxu1 %vm12551_vm2, %v15973_v13 }
 0x232   :  { %11565 = vmatmul.mubr.msk.bf16.vlgmr.msra.gmra.mrb[116].mxu0 %vm1374_vm4, %v13528_v21  ;;  %11314 = vmatprep.subr.bf16.mxu1 %v15973_v13 }
 0x233   :  { %11577 = vmatpush3.bf16.msra.mxu0 %v13184_v28  ;;  %11580 = vmatprep.mubr.msk.bf16.mxu0 %vm12551_vm2, %v15973_v13 }
 0x234   :  { %11578 = vmatprep.subr.bf16.mxu0 %v15973_v13 }
 0x235   :  { %11315 = vmatpush3.bf16.msra.mxu1 %v13396_v56 }
 0x236   :  { %11328 = vmatprep.subr.bf16.mxu1 %v15973_v13 }
 0x237   :  { %11579 = vmatpush3.bf16.msra.mxu0 %v13232_v9 }
 0x238   :  { %11317 = vmatmul.mubr.msk.bf16.vlgmr.msra.gmra.mrb[104].mxu1 %vm1374_vm4, %v13987_v63  ;;  %11592 = vmatprep.subr.bf16.mxu0 %v15973_v13 }
 0x239   :  { %11329 = vmatpush3.bf16.msra.mxu1 %v13524_v26  ;;  %11332 = vmatprep.mubr.msk.bf16.mxu1 %vm12551_vm2, %v15973_v13 }
 0x23a   :  { %11581 = vmatmul.mubr.msk.bf16.vlgmr.msra.gmra.mrb[120].mxu0 %vm1374_vm4, %v13643_v23  ;;  %11330 = vmatprep.subr.bf16.mxu1 %v15973_v13  ;;  %v16007_v23 = vld [vmem:[#allocation9_spill] sm:$0xff] }
 0x23b   :  { %11593 = vmatpush3.bf16.msra.mxu0 %v13273_v57  ;;  %v1412_v28 = vpop.f32.mrb[0].mxu1  ;;  %11596 = vmatprep.mubr.msk.bf16.mxu0 %vm12551_vm2, %v15973_v13  ;;  %v3311_v63 = vpack.c.b16 %v16007_v23, %v16007_v23 }
 0x23c   :  { %v11030_v47 = vpop.f32.mrb[1].mxu1  ;;  %11594 = vmatprep.subr.bf16.mxu0 %v15973_v13 }
 0x23d   :  { %11331 = vmatpush3.bf16.msra.mxu1 %v13567_v33  ;;  %v1415_v9 = vpop.f32.mrb[2].mxu1  ;;  %v14151_v31 = vpop.f32.mrb[16].mxu0 }
 0x23e   :  { %v11031_v56 = vpop.f32.mrb[3].mxu1  ;;  %v11166_v26 = vpop.f32.mrb[17].mxu0  ;;  %11344 = vmatprep.subr.bf16.mxu1 %v15973_v13 }
 0x23f   :  { %11595 = vmatpush3.bf16.msra.mxu0 %v13320_v19  ;;  %v2414_v57 = vpop.f32.mrb[18].mxu0 }
 0x240   :  { %v11167_v24 = vpop.f32.mrb[19].mxu0  ;;  %11333 = vmatmul.mubr.msk.bf16.vlgmr.msra.gmra.mrb[108].mxu1 %vm1374_vm4, %v3311_v63  ;;  %11608 = vmatprep.subr.bf16.mxu0 %v15973_v13 }
 0x241   :  { %11345 = vmatpush3.bf16.msra.mxu1 %v13693_v46  ;;  %11348 = vmatprep.mubr.msk.bf16.mxu1 %vm12551_vm2, %v15973_v13 }
 0x242   :  { %11597 = vmatmul.mubr.msk.bf16.vlgmr.msra.gmra.mrb[124].mxu0 %vm1374_vm4, %v13702_v8  ;;  %11346 = vmatprep.subr.bf16.mxu1 %v15973_v13 }
 0x243   :  { %11609 = vmatpush3.bf16.msra.mxu0 %v13373_v60  ;;  %v1470_v2 = vpop.f32.mrb[4].mxu1  ;;  %11612 = vmatprep.mubr.msk.bf16.mxu0 %vm12551_vm2, %v15973_v13 }
 0x244   :  { %v1471_v19 = vadd.f32 %v1470_v2, %v1412_v28  ;;  %v11038_v0 = vpop.f32.mrb[5].mxu1  ;;  %11610 = vmatprep.subr.bf16.mxu0 %v15973_v13  ;;  %v16008_v2 = vld [vmem:[#allocation10_spill] sm:$0xff] }
 0x245   :  { %11347 = vmatpush3.bf16.msra.mxu1 %v13708_v16  ;;  %v1473_v62 = vpop.f32.mrb[6].mxu1  ;;  %v14170_v1 = vpop.f32.mrb[20].mxu0 }
 0x246   :  { %v11039_v47 = vpop.f32.mrb[7].mxu1  ;;  %v11182_v9 = vpop.f32.mrb[21].mxu0  ;;  %11360 = vmatprep.subr.bf16.mxu1 %v15973_v13  ;;  %v16009_v62 = vld [vmem:[#allocation11_spill] sm:$0xff] }
 0x247   :  { %11611 = vmatpush3.bf16.msra.mxu0 %v13419_v10  ;;  %v2509_v60 = vpop.f32.mrb[22].mxu0  ;;  %v14201_v47 = vpack.c.b16 %v16009_v62, %v16009_v62 }
 0x248   :  { %v11183_v56 = vpop.f32.mrb[23].mxu0  ;;  %11349 = vmatmul.mubr.msk.bf16.vlgmr.msra.gmra.mrb[112].mxu1 %vm1374_vm4, %v14027_v36  ;;  %11624 = vmatprep.subr.bf16.mxu0 %v15973_v13 }
 0x249   :  { %11361 = vmatpush3.bf16.msra.mxu1 %v13747_v15  ;;  %11364 = vmatprep.mubr.msk.bf16.mxu1 %vm12551_vm2, %v15973_v13 }
 0x24a   :  { %11613 = vmatmul.mubr.msk.bf16.vlgmr.msra.gmra.mrb[128].mxu0 %vm1374_vm4, %v14035_v45  ;;  %11362 = vmatprep.subr.bf16.mxu1 %v15973_v13 }
 0x24b   :  { %11625 = vmatpush3.bf16.msra.mxu0 %v13455_v43  ;;  %v1529_v10 = vpop.f32.mrb[8].mxu1  ;;  %11628 = vmatprep.mubr.msk.bf16.mxu0 %vm12551_vm2, %v15973_v13  ;;  %v14193_v43 = vpack.c.b16 %v16008_v2, %v16008_v2 }
 0x24c   :  { %v1535_v28 = vadd.f32 %v1529_v10, %v1471_v19  ;;  %v11046_v26 = vpop.f32.mrb[9].mxu1  ;;  %11626 = vmatprep.subr.bf16.mxu0 %v15973_v13 }
 0x24d   :  { %11363 = vmatpush3.bf16.msra.mxu1 %v13764_v32  ;;  %v1532_v23 = vpop.f32.mrb[10].mxu1  ;;  %v14188_v63 = vpop.f32.mrb[24].mxu0 }
 0x24e   :  { %v11047_v57 = vpop.f32.mrb[11].mxu1  ;;  %v11198_v24 = vpop.f32.mrb[25].mxu0  ;;  %11376 = vmatprep.subr.bf16.mxu1 %v15973_v13 }
 0x24f   :  { %11627 = vmatpush3.bf16.msra.mxu0 %v13498_v49  ;;  %v2591_v0 = vpop.f32.mrb[26].mxu0 }
 0x250   :  { %v11199_v19 = vpop.f32.mrb[27].mxu0  ;;  %11365 = vmatmul.mubr.msk.bf16.vlgmr.msra.gmra.mrb[116].mxu1 %vm1374_vm4, %v14193_v43  ;;  %11640 = vmatprep.subr.bf16.mxu0 %v15973_v13 }
 0x251   :  { %11377 = vmatpush3.bf16.msra.mxu1 %v13798_v38  ;;  %11380 = vmatprep.mubr.msk.bf16.mxu1 %vm12551_vm2, %v15973_v13 }
 0x252   :  { %11629 = vmatmul.mubr.msk.bf16.vlgmr.msra.gmra.mrb[132].mxu0 %vm1374_vm4, %v14201_v47  ;;  %11378 = vmatprep.subr.bf16.mxu1 %v15973_v13 }
 0x253   :  { %11641 = vmatpush3.bf16.msra.mxu0 %v13541_v58  ;;  %v1589_v49 = vpop.f32.mrb[12].mxu1  ;;  %11644 = vmatprep.mubr.msk.bf16.mxu0 %vm12551_vm2, %v15973_v13 }
 0x254   :  { %v1595_v9 = vadd.f32 %v1589_v49, %v1535_v28  ;;  %v11054_v60 = vpop.f32.mrb[13].mxu1  ;;  %11642 = vmatprep.subr.bf16.mxu0 %v15973_v13  ;;  %v16010_v49 = vld [vmem:[#allocation12_spill] sm:$0xff] }
 0x255   :  { %11379 = vmatpush3.bf16.msra.mxu1 %v13811_v51  ;;  %v1592_v56 = vpop.f32.mrb[14].mxu1  ;;  %v14214_v10 = vpop.f32.mrb[28].mxu0 }
 0x256   :  { %v11055_v26 = vpop.f32.mrb[15].mxu1  ;;  %v11214_v23 = vpop.f32.mrb[29].mxu0  ;;  %11392 = vmatprep.subr.bf16.mxu1 %v15973_v13  ;;  %v16011_v56 = vld [vmem:[#allocation13_spill] sm:$0xff] }
 0x257   :  { %11643 = vmatpush3.bf16.msra.mxu0 %v13591_v7  ;;  %v2687_v58 = vpop.f32.mrb[30].mxu0  ;;  %v14245_v26 = vpack.c.b16 %v16011_v56, %v16011_v56 }
 0x258   :  { %v11215_v57 = vpop.f32.mrb[31].mxu0  ;;  %11381 = vmatmul.mubr.msk.bf16.vlgmr.msra.gmra.mrb[120].mxu1 %vm1374_vm4, %v14071_v50  ;;  %11656 = vmatprep.subr.bf16.mxu0 %v15973_v13 }
 0x259   :  { %11393 = vmatpush3.bf16.msra.mxu1 %v13845_v35  ;;  %11396 = vmatprep.mubr.msk.bf16.mxu1 %vm12551_vm2, %v15973_v13 }
 0x25a   :  { %11645 = vmatmul.mubr.msk.bf16.vlgmr.msra.gmra.mrb[136].mxu0 %vm1374_vm4, %v14079_v40  ;;  %11394 = vmatprep.subr.bf16.mxu1 %v15973_v13 }
 0x25b   :  { %11657 = vmatpush3.bf16.msra.mxu0 %v13633_v30  ;;  %v1654_v7 = vpop.f32.mrb[16].mxu1  ;;  %11660 = vmatprep.mubr.msk.bf16.mxu0 %vm12551_vm2, %v15973_v13  ;;  %v14237_v30 = vpack.c.b16 %v16010_v49, %v16010_v49 }
 0x25c   :  { %v1660_v28 = vadd.f32 %v1654_v7, %v1595_v9  ;;  %v11062_v24 = vpop.f32.mrb[17].mxu1  ;;  %11658 = vmatprep.subr.bf16.mxu0 %v15973_v13 }
 0x25d   :  { %11395 = vmatpush3.bf16.msra.mxu1 %v13864_v39  ;;  %v1657_v2 = vpop.f32.mrb[18].mxu1  ;;  %v14232_v0 = vpop.f32.mrb[32].mxu0 }
 0x25e   :  { %v11063_v19 = vpop.f32.mrb[19].mxu1  ;;  %v11230_v62 = vpop.f32.mrb[33].mxu0  ;;  %11408 = vmatprep.subr.bf16.mxu1 %v15973_v13 }
 0x25f   :  { %11659 = vmatpush3.bf16.msra.mxu0 %v13678_v59  ;;  %v2769_v60 = vpop.f32.mrb[34].mxu0 }
 0x260   :  { %v11231_v9 = vpop.f32.mrb[35].mxu0  ;;  %11397 = vmatmul.mubr.msk.bf16.vlgmr.msra.gmra.mrb[124].mxu1 %vm1374_vm4, %v14237_v30  ;;  %11672 = vmatprep.subr.bf16.mxu0 %v15973_v13 }
 0x261   :  { %11409 = vmatpush3.bf16.msra.mxu1 %v13908_v18  ;;  %11412 = vmatprep.mubr.msk.bf16.mxu1 %vm12551_vm2, %v15973_v13  ;;  %v14283_v9 = vld [vmem:[%s15941_s3 + $0x28] sm:$0xff]  }
 0x262   :  { %11661 = vmatmul.mubr.msk.bf16.vlgmr.msra.gmra.mrb[140].mxu0 %vm1374_vm4, %v14245_v26  ;;  %11410 = vmatprep.subr.bf16.mxu1 %v15973_v13 }
 0x263   :  { %11673 = vmatpush3.bf16.msra.mxu0 %v13919_v55  ;;  %v1713_v59 = vpop.f32.mrb[20].mxu1  ;;  %11676 = vmatprep.mubr.msk.bf16.mxu0 %vm12551_vm2, %v15973_v13 }
 0x264   :  { %v1719_v23 = vadd.f32 %v1713_v59, %v1660_v28  ;;  %v11070_v58 = vpop.f32.mrb[21].mxu1  ;;  %11674 = vmatprep.subr.bf16.mxu0 %v15973_v13  ;;  %v14268_v28 = vld [vmem:[%s15941_s3 + $0x20] sm:$0xff]  }
 0x265   :  { %11411 = vmatpush3.bf16.msra.mxu1 %v13928_v53  ;;  %v1716_v57 = vpop.f32.mrb[22].mxu1  ;;  %v14258_v7 = vpop.f32.mrb[36].mxu0 }
 0x266   :  { %v11071_v24 = vpop.f32.mrb[23].mxu1  ;;  %v11246_v2 = vpop.f32.mrb[37].mxu0  ;;  %11424 = vmatprep.subr.bf16.mxu1 %v15973_v13 }
 0x267   :  { %11675 = vmatpush3.bf16.msra.mxu0 %v13935_v34  ;;  %v2865_v19 = vpop.f32.mrb[38].mxu0  ;;  %v14296_v2 = vld [vmem:[%s15941_s3 + $0x40] sm:$0xff]  }
 0x268   :  { %v11247_v62 = vpop.f32.mrb[39].mxu0  ;;  %11413 = vmatmul.mubr.msk.bf16.vlgmr.msra.gmra.mrb[128].mxu1 %vm1374_vm4, %v13752_v42  ;;  %11688 = vmatprep.subr.bf16.mxu0 %v15973_v13 }
 0x269   :  { %11425 = vmatpush3.bf16.msra.mxu1 %v14268_v28  ;;  %11428 = vmatprep.mubr.msk.bf16.mxu1 %vm12551_vm2, %v15973_v13 }
 0x26a   :  { %11677 = vmatmul.mubr.msk.bf16.vlgmr.msra.gmra.mrb[144].mxu0 %vm1374_vm4, %v14027_v36  ;;  %11426 = vmatprep.subr.bf16.mxu1 %v15973_v13 }
 0x26b   :  { %11689 = vmatpush3.bf16.msra.mxu0 %v14106_v14  ;;  %v1773_v42 = vpop.f32.mrb[24].mxu1  ;;  %11692 = vmatprep.mubr.msk.bf16.mxu0 %vm12551_vm2, %v15973_v13 }
 0x26c   :  { %v1779_v49 = vadd.f32 %v1773_v42, %v1719_v23  ;;  %v11078_v60 = vpop.f32.mrb[25].mxu1  ;;  %11690 = vmatprep.subr.bf16.mxu0 %v15973_v13 }
 0x26d   :  { %11427 = vmatpush3.bf16.msra.mxu1 %v14283_v9  ;;  %v1776_v56 = vpop.f32.mrb[26].mxu1  ;;  %v14286_v59 = vpop.f32.mrb[40].mxu0 }
 0x26e   :  { %v11079_v58 = vpop.f32.mrb[27].mxu1  ;;  %v11262_v57 = vpop.f32.mrb[41].mxu0  ;;  %11440 = vmatprep.subr.bf16.mxu1 %v15973_v13 }
 0x26f   :  { %11691 = vmatpush3.bf16.msra.mxu0 %v14119_v27  ;;  %v2947_v23 = vpop.f32.mrb[42].mxu0 }
 0x270   :  { %v11263_v24 = vpop.f32.mrb[43].mxu0  ;;  %11429 = vmatmul.mubr.msk.bf16.vlgmr.msra.gmra.mrb[132].mxu1 %vm1374_vm4, %v13778_v6  ;;  %11704 = vmatprep.subr.bf16.mxu0 %v15973_v13  ;;  %v14307_v6 = vld [vmem:[%s15941_s3 + $0x50] sm:$0xff]  }
 0x271   :  { %11441 = vmatpush3.bf16.msra.mxu1 %v14296_v2  ;;  %11444 = vmatprep.mubr.msk.bf16.mxu1 %vm12551_vm2, %v15973_v13 }
 0x272   :  { %11693 = vmatmul.mubr.msk.bf16.vlgmr.msra.gmra.mrb[148].mxu0 %vm1374_vm4, %v13858_v3  ;;  %11442 = vmatprep.subr.bf16.mxu1 %v15973_v13  ;;  %v14316_v3 = vld [vmem:[%s15941_s3 + $0x48] sm:$0xff]  }
 0x273   :  { %11705 = vmatpush3.bf16.msra.mxu0 %v14307_v6  ;;  %v1833_v19 = vpop.f32.mrb[28].mxu1  ;;  %11708 = vmatprep.mubr.msk.bf16.mxu0 %vm12551_vm2, %v15973_v13 }
 0x274   :  { %v1839_v62 = vadd.f32 %v1833_v19, %v1779_v49  ;;  %v11086_v42 = vpop.f32.mrb[29].mxu1  ;;  %11706 = vmatprep.subr.bf16.mxu0 %v15973_v13  ;;  %v14325_v49 = vld [vmem:[%s15941_s3 + $0x58] sm:$0xff]   ;;  %v14334_v19 = vld [vmem:[%s15941_s3 + $0x60] sm:$0xff]  }
 0x275   :  { %11443 = vmatpush3.bf16.msra.mxu1 %v14316_v3  ;;  %v1836_v60 = vpop.f32.mrb[30].mxu1  ;;  %v14319_v56 = vpop.f32.mrb[44].mxu0 }
 0x276   :  { %v11087_v58 = vpop.f32.mrb[31].mxu1  ;;  %v11278_v57 = vpop.f32.mrb[45].mxu0  ;;  %11456 = vmatprep.subr.bf16.mxu1 %v15973_v13 }
 0x277   :  { %11707 = vmatpush3.bf16.msra.mxu0 %v14325_v49  ;;  %v3043_v23 = vpop.f32.mrb[46].mxu0 }
 0x278   :  { %v11279_v24 = vpop.f32.mrb[47].mxu0  ;;  %11445 = vmatmul.mubr.msk.bf16.vlgmr.msra.gmra.mrb[136].mxu1 %vm1374_vm4, %v13825_v22  ;;  %11720 = vmatprep.subr.bf16.mxu0 %v15973_v13  ;;  %v14345_v22 = vld [vmem:[%s15941_s3 + $0x70] sm:$0xff]  }
 0x279   :  { %11457 = vmatpush3.bf16.msra.mxu1 %v14334_v19  ;;  %11460 = vmatprep.mubr.msk.bf16.mxu1 %vm12551_vm2, %v15973_v13 }
 0x27a   :  { %11709 = vmatmul.mubr.msk.bf16.vlgmr.msra.gmra.mrb[152].mxu0 %vm1374_vm4, %v13702_v8  ;;  %11458 = vmatprep.subr.bf16.mxu1 %v15973_v13 }
 0x27b   :  { %11721 = vmatpush3.bf16.msra.mxu0 %v14345_v22  ;;  %v1898_v42 = vpop.f32.mrb[32].mxu1  ;;  %11724 = vmatprep.mubr.msk.bf16.mxu0 %vm12551_vm2, %v15973_v13 }
 0x27c   :  { %v1904_v60 = vadd.f32 %v1898_v42, %v1839_v62  ;;  %v11094_v58 = vpop.f32.mrb[33].mxu1  ;;  %11722 = vmatprep.subr.bf16.mxu0 %v15973_v13 }
 0x27d   :  { %11459 = vmatpush3.bf16.msra.mxu1 %v13567_v33  ;;  %v1901_v8 = vpop.f32.mrb[34].mxu1  ;;  %v14352_v57 = vpop.f32.mrb[48].mxu0  ;;  %v14373_v33 = vld [vmem:[%s15941_s3 + $0x90] sm:$0xff]  }
 0x27e   :  { %v11095_v23 = vpop.f32.mrb[35].mxu1  ;;  %v11294_v24 = vpop.f32.mrb[49].mxu0  ;;  %11472 = vmatprep.subr.bf16.mxu1 %v15973_v13 }
 0x27f   :  { %11723 = vmatpush3.bf16.msra.mxu0 %v14358_v52  ;;  %v3127_v62 = vpop.f32.mrb[50].mxu0 }
 0x280   :  { %v11295_v42 = vpop.f32.mrb[51].mxu0  ;;  %11461 = vmatmul.mubr.msk.bf16.vlgmr.msra.gmra.mrb[140].mxu1 %vm1374_vm4, %v13879_v17  ;;  %11736 = vmatprep.subr.bf16.mxu0 %v15973_v13 }
 0x281   :  { %11473 = vmatpush3.bf16.msra.mxu1 %v13693_v46  ;;  %11476 = vmatprep.mubr.msk.bf16.mxu1 %vm12551_vm2, %v15973_v13  ;;  %v16012_v42 = vld [vmem:[#allocation14_spill] sm:$0xff] }
 0x282   :  { %11725 = vmatmul.mubr.msk.bf16.vlgmr.msra.gmra.mrb[156].mxu0 %vm1374_vm4, %v13903_v29  ;;  %11474 = vmatprep.subr.bf16.mxu1 %v15973_v13  ;;  %v14385_v4 = vpack.c.b16 %v16012_v42, %v16012_v42 }
 0x283   :  { %11737 = vmatpush3.bf16.msra.mxu0 %v14373_v33  ;;  %v1957_v58 = vpop.f32.mrb[36].mxu1  ;;  %11740 = vmatprep.mubr.msk.bf16.mxu0 %vm12551_vm2, %v15973_v13 }
 0x284   :  { %v1963_v46 = vadd.f32 %v1957_v58, %v1904_v60  ;;  %v11102_v8 = vpop.f32.mrb[37].mxu1  ;;  %11738 = vmatprep.subr.bf16.mxu0 %v15973_v13  ;;  %v14390_v60 = vld [vmem:[%s15941_s3 + $0x98] sm:$0xff]  }
 0x285   :  { %11475 = vmatpush3.bf16.msra.mxu1 %v13708_v16  ;;  %v1960_v29 = vpop.f32.mrb[38].mxu1  ;;  %v14380_v23 = vpop.f32.mrb[52].mxu0  ;;  %v14405_v8 = vld [vmem:[%s15941_s3 + $0xb0] sm:$0xff]  }
 0x286   :  { %v11103_v24 = vpop.f32.mrb[39].mxu1  ;;  %v11310_v62 = vpop.f32.mrb[53].mxu0  ;;  %11488 = vmatprep.subr.bf16.mxu1 %v15973_v13 }
 0x287   :  { %11739 = vmatpush3.bf16.msra.mxu0 %v14390_v60  ;;  %v3222_v58 = vpop.f32.mrb[54].mxu0 }
 0x288   :  { %v11311_v16 = vpop.f32.mrb[55].mxu0  ;;  %11477 = vmatmul.mubr.msk.bf16.vlgmr.msra.gmra.mrb[144].mxu1 %vm1374_vm4, %v14385_v4  ;;  %11752 = vmatprep.subr.bf16.mxu0 %v15973_v13 }
 0x289   :  { %11489 = vmatpush3.bf16.msra.mxu1 %v13747_v15  ;;  %11492 = vmatprep.mubr.msk.bf16.mxu1 %vm12551_vm2, %v15973_v13 }
 0x28a   :  { %11741 = vmatmul.mubr.msk.bf16.vlgmr.msra.gmra.mrb[160].mxu0 %vm1374_vm4, %v14201_v47  ;;  %11490 = vmatprep.subr.bf16.mxu1 %v15973_v13 }
 0x28b   :  { %11753 = vmatpush3.bf16.msra.mxu0 %v14405_v8  ;;  %v2017_v29 = vpop.f32.mrb[40].mxu1  ;;  %11756 = vmatprep.mubr.msk.bf16.mxu0 %vm12551_vm2, %v15973_v13 }
 0x28c   :  { %v2023_v15 = vadd.f32 %v2017_v29, %v1963_v46  ;;  %v11110_v24 = vpop.f32.mrb[41].mxu1  ;;  %11754 = vmatprep.subr.bf16.mxu0 %v15973_v13  ;;  %v14422_v46 = vld [vmem:[%s15941_s3 + $0xb8] sm:$0xff]  }
 0x28d   :  { %11491 = vmatpush3.bf16.msra.mxu1 %v13764_v32  ;;  %v2020_v62 = vpop.f32.mrb[42].mxu1  ;;  %v14412_v42 = vpop.f32.mrb[56].mxu0  ;;  %v16014_v24 = vld [vmem:[#allocation16_spill] sm:$0xff] }
 0x28e   :  { %v11111_v58 = vpop.f32.mrb[43].mxu1  ;;  %v11326_v16 = vpop.f32.mrb[57].mxu0  ;;  %11504 = vmatprep.subr.bf16.mxu1 %v15973_v13  ;;  %v14430_v62 = vpack.c.b16 %v16014_v24, %v16014_v24 }
 0x28f   :  { %11755 = vmatpush3.bf16.msra.mxu0 %v14422_v46  ;;  %v3304_v29 = vpop.f32.mrb[58].mxu0 }
 0x290   :  { %v11327_v32 = vpop.f32.mrb[59].mxu0  ;;  %11493 = vmatmul.mubr.msk.bf16.vlgmr.msra.gmra.mrb[148].mxu1 %vm1374_vm4, %v14417_v25  ;;  %11768 = vmatprep.subr.bf16.mxu0 %v15973_v13 }
 0x291   :  { %11505 = vmatpush3.bf16.msra.mxu1 %v13798_v38  ;;  %11508 = vmatprep.mubr.msk.bf16.mxu1 %vm12551_vm2, %v15973_v13 }
 0x292   :  { %11757 = vmatmul.mubr.msk.bf16.vlgmr.msra.gmra.mrb[164].mxu0 %vm1374_vm4, %v14430_v62  ;;  %11506 = vmatprep.subr.bf16.mxu1 %v15973_v13 }
 0x293   :  { %11769 = vmatpush3.bf16.msra.mxu0 %v14441_v5  ;;  %v2077_v58 = vpop.f32.mrb[44].mxu1  ;;  %11772 = vmatprep.mubr.msk.bf16.mxu0 %vm12551_vm2, %v15973_v13 }
 0x294   :  { %v2083_v38 = vadd.f32 %v2077_v58, %v2023_v15  ;;  %v11118_v16 = vpop.f32.mrb[45].mxu1  ;;  %11770 = vmatprep.subr.bf16.mxu0 %v15973_v13  ;;  %v14458_v15 = vld [vmem:[%s15941_s3 + $0xd8] sm:$0xff]  }
 0x295   :  { %11507 = vmatpush3.bf16.msra.mxu1 %v13811_v51  ;;  %v2080_v29 = vpop.f32.mrb[46].mxu1  ;;  %v14448_v32 = vpop.f32.mrb[60].mxu0 }
 0x296   :  { %v11119_v24 = vpop.f32.mrb[47].mxu1  ;;  %v11342_v44 = vpop.f32.mrb[61].mxu0  ;;  %11520 = vmatprep.subr.bf16.mxu1 %v15973_v13 }
 0x297   :  { %11771 = vmatpush3.bf16.msra.mxu0 %v14458_v15  ;;  %v3400_v58 = vpop.f32.mrb[62].mxu0  ;;  %v14473_v44 = vld [vmem:[%s15941_s3 + $0xf0] sm:$0xff]  }
 0x298   :  { %v11343_v51 = vpop.f32.mrb[63].mxu0  ;;  %11509 = vmatmul.mubr.msk.bf16.vlgmr.msra.gmra.mrb[152].mxu1 %vm1374_vm4, %v14453_v11  ;;  %11784 = vmatprep.subr.bf16.mxu0 %v15973_v13 }
 0x299   :  { %11521 = vmatpush3.bf16.msra.mxu1 %v13845_v35  ;;  %11524 = vmatprep.mubr.msk.bf16.mxu1 %vm12551_vm2, %v15973_v13 }
 0x29a   :  { %11773 = vmatmul.mubr.msk.bf16.vlgmr.msra.gmra.mrb[168].mxu0 %vm1374_vm4, %v14245_v26  ;;  %11522 = vmatprep.subr.bf16.mxu1 %v15973_v13 }
 0x29b   :  { %11785 = vmatpush3.bf16.msra.mxu0 %v14473_v44  ;;  %v2142_v20 = vpop.f32.mrb[48].mxu1  ;;  %11788 = vmatprep.mubr.msk.bf16.mxu0 %vm12551_vm2, %v15973_v13 }
 0x29c   :  { %v2148_v35 = vadd.f32 %v2142_v20, %v2083_v38  ;;  %v11126_v16 = vpop.f32.mrb[49].mxu1  ;;  %11786 = vmatprep.subr.bf16.mxu0 %v15973_v13  ;;  %v14490_v38 = vld [vmem:[%s15941_s3 + $0xf8] sm:$0xff]  }
 0x29d   :  { %11523 = vmatpush3.bf16.msra.mxu1 %v13864_v39  ;;  %v2145_v29 = vpop.f32.mrb[50].mxu1  ;;  %v14480_v24 = vpop.f32.mrb[64].mxu0  ;;  %v16019_v16 = vld [vmem:[#allocation19_spill] sm:$0xff] }
 0x29e   :  { %v11127_v58 = vpop.f32.mrb[51].mxu1  ;;  %v11358_v51 = vpop.f32.mrb[65].mxu0  ;;  %11536 = vmatprep.subr.bf16.mxu1 %v15973_v13  ;;  %v14498_v29 = vpack.c.b16 %v16019_v16, %v16019_v16 }
 0x29f   :  { %11787 = vmatpush3.bf16.msra.mxu0 %v14490_v38  ;;  %v3482_v20 = vpop.f32.mrb[66].mxu0 }
 0x2a0   :  { %v11359_v39 = vpop.f32.mrb[67].mxu0  ;;  %11525 = vmatmul.mubr.msk.bf16.vlgmr.msra.gmra.mrb[156].mxu1 %vm1374_vm4, %v14485_v54  ;;  %11800 = vmatprep.subr.bf16.mxu0 %v15973_v13  ;;  %16020 = vst [vmem:[#allocation6_spill] sm:$0xff] %v14498_v29 }
 0x2a1   :  { %11537 = vmatpush3.bf16.msra.mxu1 %v13908_v18  ;;  %11540 = vmatprep.mubr.msk.bf16.mxu1 %vm12551_vm2, %v15973_v13 }
 0x2a2   :  { %11789 = vmatmul.mubr.msk.bf16.vlgmr.msra.gmra.mrb[172].mxu0 %vm1374_vm4, %v14498_v29  ;;  %11538 = vmatprep.subr.bf16.mxu1 %v15973_v13 }
 0x2a3   :  { %11801 = vmatpush3.bf16.msra.mxu0 %v13919_v55  ;;  %v2201_v12 = vpop.f32.mrb[52].mxu1  ;;  %11804 = vmatprep.mubr.msk.bf16.mxu0 %vm12551_vm2, %v15973_v13 }
 0x2a4   :  { %v2207_v58 = vadd.f32 %v2201_v12, %v2148_v35  ;;  %v11134_v51 = vpop.f32.mrb[53].mxu1  ;;  %11802 = vmatprep.subr.bf16.mxu0 %v15973_v13 }
 0x2a5   :  { %11539 = vmatpush3.bf16.msra.mxu1 %v13928_v53  ;;  %v2204_v18 = vpop.f32.mrb[54].mxu1  ;;  %v14511_v20 = vpop.f32.mrb[68].mxu0 }
 0x2a6   :  { %v11135_v39 = vpop.f32.mrb[55].mxu1  ;;  %v11374_v16 = vpop.f32.mrb[69].mxu0  ;;  %11552 = vmatprep.subr.bf16.mxu1 %v15973_v13 }
 0x2a7   :  { %11803 = vmatpush3.bf16.msra.mxu0 %v13935_v34  ;;  %v3578_v55 = vpop.f32.mrb[70].mxu0 }
 0x2a8   :  { %v11375_v29 = vpop.f32.mrb[71].mxu0  ;;  %11541 = vmatmul.mubr.msk.bf16.vlgmr.msra.gmra.mrb[160].mxu1 %vm1374_vm4, %v13468_v41  ;;  %11816 = vmatprep.subr.bf16.mxu0 %v15973_v13 }
 0x2a9   :  { %11553 = vmatpush3.bf16.msra.mxu1 %v14268_v28  ;;  %11556 = vmatprep.mubr.msk.bf16.mxu1 %vm12551_vm2, %v15973_v13 }
 0x2aa   :  { %11805 = vmatmul.mubr.msk.bf16.vlgmr.msra.gmra.mrb[176].mxu0 %vm1374_vm4, %v14385_v4  ;;  %11554 = vmatprep.subr.bf16.mxu1 %v15973_v13 }
 0x2ab   :  { %11817 = vmatpush3.bf16.msra.mxu0 %v14106_v14  ;;  %v2261_v53 = vpop.f32.mrb[56].mxu1  ;;  %11820 = vmatprep.mubr.msk.bf16.mxu0 %vm12551_vm2, %v15973_v13 }
 0x2ac   :  { %v2267_v34 = vadd.f32 %v2261_v53, %v2207_v58  ;;  %v11142_v41 = vpop.f32.mrb[57].mxu1  ;;  %11818 = vmatprep.subr.bf16.mxu0 %v15973_v13 }
 0x2ad   :  { %11555 = vmatpush3.bf16.msra.mxu1 %v14283_v9  ;;  %v2264_v35 = vpop.f32.mrb[58].mxu1  ;;  %v14529_v29 = vpop.f32.mrb[72].mxu0 }
 0x2ae   :  { %v11143_v12 = vpop.f32.mrb[59].mxu1  ;;  %v11390_v51 = vpop.f32.mrb[73].mxu0  ;;  %11568 = vmatprep.subr.bf16.mxu1 %v15973_v13 }
 0x2af   :  { %11819 = vmatpush3.bf16.msra.mxu0 %v14119_v27  ;;  %v3660_v4 = vpop.f32.mrb[74].mxu0  ;;  %v14570_v12 = vld [vmem:[%s15941_s3 + $0x68] sm:$0xff]  }
 0x2b0   :  { %v11391_v14 = vpop.f32.mrb[75].mxu0  ;;  %11557 = vmatmul.mubr.msk.bf16.vlgmr.msra.gmra.mrb[164].mxu1 %vm1374_vm4, %v14027_v36  ;;  %11832 = vmatprep.subr.bf16.mxu0 %v15973_v13 }
 0x2b1   :  { %11569 = vmatpush3.bf16.msra.mxu1 %v14296_v2  ;;  %11572 = vmatprep.mubr.msk.bf16.mxu1 %vm12551_vm2, %v15973_v13 }
 0x2b2   :  { %11821 = vmatmul.mubr.msk.bf16.vlgmr.msra.gmra.mrb[180].mxu0 %vm1374_vm4, %v14035_v45  ;;  %11570 = vmatprep.subr.bf16.mxu1 %v15973_v13 }
 0x2b3   :  { %11833 = vmatpush3.bf16.msra.mxu0 %v14307_v6  ;;  %v2321_v27 = vpop.f32.mrb[60].mxu1  ;;  %11836 = vmatprep.mubr.msk.bf16.mxu0 %vm12551_vm2, %v15973_v13 }
 0x2b4   :  { %v14545_v58 = vadd.f32 %v2321_v27, %v2267_v34  ;;  %v11150_v36 = vpop.f32.mrb[61].mxu1  ;;  %11834 = vmatprep.subr.bf16.mxu0 %v15973_v13 }
 0x2b5   :  { %11571 = vmatpush3.bf16.msra.mxu1 %v14316_v3  ;;  %v2324_v18 = vpop.f32.mrb[62].mxu1  ;;  %v14549_v39 = vpop.f32.mrb[76].mxu0  ;;  %v14583_v36 = vld [vmem:[%s15941_s3 + $0x80] sm:$0xff]  }
 0x2b6   :  { %16021 = vst [vmem:[#allocation7_spill] sm:$0xff] %v14545_v58  ;;  %16022 = vst [vmem:[#allocation2_spill] sm:$0xff] %v14549_v39  ;;  %v11151_v16 = vpop.f32.mrb[63].mxu1  ;;  %v11406_v55 = vpop.f32.mrb[77].mxu0  ;;  %11584 = vmatprep.subr.bf16.mxu1 %v15973_v13 }
 0x2b7   :  { %11835 = vmatpush3.bf16.msra.mxu0 %v14325_v49  ;;  %v3756_v53 = vpop.f32.mrb[78].mxu0 }
 0x2b8   :  { %v11407_v41 = vpop.f32.mrb[79].mxu0  ;;  %11573 = vmatmul.mubr.msk.bf16.vlgmr.msra.gmra.mrb[168].mxu1 %vm1374_vm4, %v13879_v17  ;;  %11848 = vmatprep.subr.bf16.mxu0 %v15973_v13  ;;  %v14598_v53 = vld [vmem:[%s15941_s3 + $0x88] sm:$0xff]  }
 0x2b9   :  { %11585 = vmatpush3.bf16.msra.mxu1 %v14334_v19  ;;  %11588 = vmatprep.mubr.msk.bf16.mxu1 %vm12551_vm2, %v15973_v13 }
 0x2ba   :  { %11837 = vmatmul.mubr.msk.bf16.vlgmr.msra.gmra.mrb[184].mxu0 %vm1374_vm4, %v14055_v48  ;;  %11586 = vmatprep.subr.bf16.mxu1 %v15973_v13 }
 0x2bb   :  { %11849 = vmatpush3.bf16.msra.mxu0 %v14345_v22  ;;  %v2371_v34 = vpop.f32.mrb[64].mxu1  ;;  %11852 = vmatprep.mubr.msk.bf16.mxu0 %vm12551_vm2, %v15973_v13 }
 0x2bc   :  { %v2412_v17 = vadd.f32 %v14151_v31, %v2371_v34  ;;  %v11158_v35 = vpop.f32.mrb[65].mxu1  ;;  %11850 = vmatprep.subr.bf16.mxu0 %v15973_v13 }
 0x2bd   :  { %11587 = vmatpush3.bf16.msra.mxu1 %v14570_v12  ;;  %v2374_v48 = vpop.f32.mrb[66].mxu1  ;;  %v14573_v51 = vpop.f32.mrb[80].mxu0 }
 0x2be   :  { %16023 = vst [vmem:[#allocation8_spill] sm:$0xff] %v14573_v51  ;;  %v11159_v4 = vpop.f32.mrb[67].mxu1  ;;  %v11422_v14 = vpop.f32.mrb[81].mxu0  ;;  %11600 = vmatprep.subr.bf16.mxu1 %v15973_v13 }
 0x2bf   :  { %11851 = vmatpush3.bf16.msra.mxu0 %v14358_v52  ;;  %v3840_v31 = vpop.f32.mrb[82].mxu0 }
 0x2c0   :  { %v11423_v27 = vpop.f32.mrb[83].mxu0  ;;  %11589 = vmatmul.mubr.msk.bf16.vlgmr.msra.gmra.mrb[172].mxu1 %vm1374_vm4, %v14071_v50  ;;  %11864 = vmatprep.subr.bf16.mxu0 %v15973_v13  ;;  %v16025_v31 = vld [vmem:[#allocation20_spill] sm:$0xff] }
 0x2c1   :  { %11601 = vmatpush3.bf16.msra.mxu1 %v14583_v36  ;;  %11604 = vmatprep.mubr.msk.bf16.mxu1 %vm12551_vm2, %v15973_v13  ;;  %v6235_v27 = vpack.c.b16 %v16025_v31, %v16025_v31  ;;  %v16027_v31 = vld [vmem:[#allocation21_spill] sm:$0xff] }
 0x2c2   :  { %11853 = vmatmul.mubr.msk.bf16.vlgmr.msra.gmra.mrb[188].mxu0 %vm1374_vm4, %v14079_v40  ;;  %11602 = vmatprep.subr.bf16.mxu1 %v15973_v13 }
 0x2c3   :  { %11865 = vmatpush3.bf16.msra.mxu0 %v14373_v33  ;;  %v2458_v18 = vpop.f32.mrb[68].mxu1  ;;  %11868 = vmatprep.mubr.msk.bf16.mxu0 %vm12551_vm2, %v15973_v13 }
 0x2c4   :  { %v2464_v16 = vadd.f32 %v2458_v18, %v2412_v17  ;;  %v11174_v55 = vpop.f32.mrb[69].mxu1  ;;  %11866 = vmatprep.subr.bf16.mxu0 %v15973_v13  ;;  %v14614_v18 = vld [vmem:[%s15941_s3 + $0xa0] sm:$0xff]  }
 0x2c5   :  { %11603 = vmatpush3.bf16.msra.mxu1 %v14598_v53  ;;  %v2461_v41 = vpop.f32.mrb[70].mxu1  ;;  %v14601_v34 = vpop.f32.mrb[84].mxu0 }
 0x2c6   :  { %16024 = vst [vmem:[#allocation9_spill] sm:$0xff] %v14601_v34  ;;  %v11175_v35 = vpop.f32.mrb[71].mxu1  ;;  %v11438_v48 = vpop.f32.mrb[85].mxu0  ;;  %11616 = vmatprep.subr.bf16.mxu1 %v15973_v13  ;;  %v2512_v4 = vadd.f32 %v14170_v1, %v2464_v16  ;;  %v14628_v41 = vld [vmem:[%s15941_s3 + $0xa8] sm:$0xff]   ;;  %v16032_v34 = vld [vmem:[#allocation24_spill] sm:$0xff] }
 0x2c7   :  { %11867 = vmatpush3.bf16.msra.mxu0 %v14390_v60  ;;  %v3921_v17 = vpop.f32.mrb[86].mxu0 }
 0x2c8   :  { %v11439_v14 = vpop.f32.mrb[87].mxu0  ;;  %11605 = vmatmul.mubr.msk.bf16.vlgmr.msra.gmra.mrb[176].mxu1 %vm1374_vm4, %v14417_v25  ;;  %11880 = vmatprep.subr.bf16.mxu0 %v15973_v13 }
 0x2c9   :  { %11617 = vmatpush3.bf16.msra.mxu1 %v14614_v18  ;;  %11620 = vmatprep.mubr.msk.bf16.mxu1 %vm12551_vm2, %v15973_v13 }
 0x2ca   :  { %11869 = vmatmul.mubr.msk.bf16.vlgmr.msra.gmra.mrb[192].mxu0 %vm1374_vm4, %v6235_v27  ;;  %11618 = vmatprep.subr.bf16.mxu1 %v15973_v13 }
 0x2cb   :  { %11881 = vmatpush3.bf16.msra.mxu0 %v14405_v8  ;;  %v2547_v1 = vpop.f32.mrb[72].mxu1  ;;  %11884 = vmatprep.mubr.msk.bf16.mxu0 %vm12551_vm2, %v15973_v13 }
 0x2cc   :  { %v2553_v16 = vadd.f32 %v2547_v1, %v2512_v4  ;;  %v11190_v55 = vpop.f32.mrb[73].mxu1  ;;  %11882 = vmatprep.subr.bf16.mxu0 %v15973_v13  ;;  %v14636_v4 = vpack.c.b16 %v16027_v31, %v16027_v31 }
 0x2cd   :  { %11619 = vmatpush3.bf16.msra.mxu1 %v14628_v41  ;;  %v2550_v35 = vpop.f32.mrb[74].mxu1  ;;  %v14631_v48 = vpop.f32.mrb[88].mxu0 }
 0x2ce   :  { %16026 = vst [vmem:[#allocation10_spill] sm:$0xff] %v14631_v48  ;;  %v11191_v17 = vpop.f32.mrb[75].mxu1  ;;  %v11454_v14 = vpop.f32.mrb[89].mxu0  ;;  %11632 = vmatprep.subr.bf16.mxu1 %v15973_v13  ;;  %v2594_v27 = vadd.f32 %v14188_v63, %v2553_v16  ;;  %v16028_v35 = vld [vmem:[#allocation22_spill] sm:$0xff] }
 0x2cf   :  { %11883 = vmatpush3.bf16.msra.mxu0 %v14422_v46  ;;  %v4003_v1 = vpop.f32.mrb[90].mxu0  ;;  %v14645_v17 = vpack.c.b16 %v16028_v35, %v16028_v35  ;;  %v14650_v14 = vld [vmem:[%s15941_s3 + $0xc0] sm:$0xff]  }
 0x2d0   :  { %v11455_v55 = vpop.f32.mrb[91].mxu0  ;;  %11621 = vmatmul.mubr.msk.bf16.vlgmr.msra.gmra.mrb[180].mxu1 %vm1374_vm4, %v14636_v4  ;;  %11896 = vmatprep.subr.bf16.mxu0 %v15973_v13  ;;  %v14665_v1 = vld [vmem:[%s15941_s3 + $0xc8] sm:$0xff]  }
 0x2d1   :  { %11633 = vmatpush3.bf16.msra.mxu1 %v14650_v14  ;;  %11636 = vmatprep.mubr.msk.bf16.mxu1 %vm12551_vm2, %v15973_v13 }
 0x2d2   :  { %11885 = vmatmul.mubr.msk.bf16.vlgmr.msra.gmra.mrb[196].mxu0 %vm1374_vm4, %v14645_v17  ;;  %11634 = vmatprep.subr.bf16.mxu1 %v15973_v13 }
 0x2d3   :  { %11897 = vmatpush3.bf16.msra.mxu0 %v14441_v5  ;;  %v2636_v63 = vpop.f32.mrb[76].mxu1  ;;  %11900 = vmatprep.mubr.msk.bf16.mxu0 %vm12551_vm2, %v15973_v13 }
 0x2d4   :  { %v2642_v16 = vadd.f32 %v2636_v63, %v2594_v27  ;;  %v11206_v31 = vpop.f32.mrb[77].mxu1  ;;  %11898 = vmatprep.subr.bf16.mxu0 %v15973_v13 }
 0x2d5   :  { %11635 = vmatpush3.bf16.msra.mxu1 %v14665_v1  ;;  %v2639_v55 = vpop.f32.mrb[78].mxu1  ;;  %v14668_v35 = vpop.f32.mrb[92].mxu0  ;;  %v16030_v31 = vld [vmem:[#allocation23_spill] sm:$0xff] }
 0x2d6   :  { %16029 = vst [vmem:[#allocation11_spill] sm:$0xff] %v14668_v35  ;;  %v11207_v45 = vpop.f32.mrb[79].mxu1  ;;  %v11470_v58 = vpop.f32.mrb[93].mxu0  ;;  %11648 = vmatprep.subr.bf16.mxu1 %v15973_v13  ;;  %v2690_v48 = vadd.f32 %v14214_v10, %v2642_v16  ;;  %v6431_v55 = vpack.c.b16 %v16030_v31, %v16030_v31 }
 0x2d7   :  { %11899 = vmatpush3.bf16.msra.mxu0 %v14458_v15  ;;  %v4085_v27 = vpop.f32.mrb[94].mxu0  ;;  %v14681_v45 = vld [vmem:[%s15941_s3 + $0xe0] sm:$0xff]  }
 0x2d8   :  { %v11471_v63 = vpop.f32.mrb[95].mxu0  ;;  %11637 = vmatmul.mubr.msk.bf16.vlgmr.msra.gmra.mrb[184].mxu1 %vm1374_vm4, %v14485_v54  ;;  %11912 = vmatprep.subr.bf16.mxu0 %v15973_v13  ;;  %v14695_v27 = vld [vmem:[%s15941_s3 + $0xe8] sm:$0xff]  }
 0x2d9   :  { %11649 = vmatpush3.bf16.msra.mxu1 %v14681_v45  ;;  %11652 = vmatprep.mubr.msk.bf16.mxu1 %vm12551_vm2, %v15973_v13 }
 0x2da   :  { %11901 = vmatmul.mubr.msk.bf16.vlgmr.msra.gmra.mrb[200].mxu0 %vm1374_vm4, %v6431_v55  ;;  %11650 = vmatprep.subr.bf16.mxu1 %v15973_v13 }
 0x2db   :  { %11913 = vmatpush3.bf16.msra.mxu0 %v14473_v44  ;;  %v2725_v10 = vpop.f32.mrb[80].mxu1  ;;  %11916 = vmatprep.mubr.msk.bf16.mxu0 %vm12551_vm2, %v15973_v13 }
 0x2dc   :  { %v2731_v58 = vadd.f32 %v2725_v10, %v2690_v48  ;;  %v11222_v16 = vpop.f32.mrb[81].mxu1  ;;  %11914 = vmatprep.subr.bf16.mxu0 %v15973_v13  ;;  %v14703_v48 = vpack.c.b16 %v16032_v34, %v16032_v34  ;;  %v14717_v34 = vld [vmem:[%s15941_s3 + $0x10] sm:$0xff]  }
 0x2dd   :  { %11651 = vmatpush3.bf16.msra.mxu1 %v14695_v27  ;;  %v2728_v63 = vpop.f32.mrb[82].mxu1  ;;  %v14698_v31 = vpop.f32.mrb[96].mxu0 }
 0x2de   :  { %16031 = vst [vmem:[#allocation12_spill] sm:$0xff] %v14698_v31  ;;  %v11223_v55 = vpop.f32.mrb[83].mxu1  ;;  %v11486_v35 = vpop.f32.mrb[97].mxu0  ;;  %11664 = vmatprep.subr.bf16.mxu1 %v15973_v13  ;;  %v2772_v10 = vadd.f32 %v14232_v0, %v2731_v58  ;;  %v16033_v63 = vld [vmem:[#allocation25_spill] sm:$0xff] }
 0x2df   :  { %11915 = vmatpush3.bf16.msra.mxu0 %v14490_v38  ;;  %v4185_v16 = vpop.f32.mrb[98].mxu0  ;;  %v14712_v35 = vpack.c.b16 %v16033_v63, %v16033_v63 }
 0x2e0   :  { %v11487_v54 = vpop.f32.mrb[99].mxu0  ;;  %11653 = vmatmul.mubr.msk.bf16.vlgmr.msra.gmra.mrb[188].mxu1 %vm1374_vm4, %v14703_v48  ;;  %11928 = vmatprep.subr.bf16.mxu0 %v15973_v13  ;;  %v14737_v16 = vld [vmem:[%s15941_s3 + $0x18] sm:$0xff]  }
 0x2e1   :  { %11665 = vmatpush3.bf16.msra.mxu1 %v14717_v34  ;;  %11668 = vmatprep.mubr.msk.bf16.mxu1 %vm12551_vm2, %v15973_v13  ;;  %v14728_v54 = vld [vmem:[%s15941_s3] sm:$0xff]  }
 0x2e2   :  { %11917 = vmatmul.mubr.msk.bf16.vlgmr.msra.gmra.mrb[204].mxu0 %vm1374_vm4, %v14712_v35  ;;  %11666 = vmatprep.subr.bf16.mxu1 %v15973_v13 }
 0x2e3   :  { %11929 = vmatpush3.bf16.msra.mxu0 %v14728_v54  ;;  %v2814_v0 = vpop.f32.mrb[84].mxu1  ;;  %11932 = vmatprep.mubr.msk.bf16.mxu0 %vm12551_vm2, %v15973_v13 }
 0x2e4   :  { %v2820_v58 = vadd.f32 %v2814_v0, %v2772_v10  ;;  %v11238_v55 = vpop.f32.mrb[85].mxu1  ;;  %11930 = vmatprep.subr.bf16.mxu0 %v15973_v13  ;;  %v14747_v10 = vld [vmem:[%s15941_s3 + $0x8] sm:$0xff]  }
 0x2e5   :  { %11667 = vmatpush3.bf16.msra.mxu1 %v14737_v16  ;;  %v2817_v63 = vpop.f32.mrb[86].mxu1  ;;  %v14740_v31 = vpop.f32.mrb[100].mxu0 }
 0x2e6   :  { %16034 = vst [vmem:[#allocation13_spill] sm:$0xff] %v14740_v31  ;;  %v11239_v51 = vpop.f32.mrb[87].mxu1  ;;  %v11502_v11 = vpop.f32.mrb[101].mxu0  ;;  %11680 = vmatprep.subr.bf16.mxu1 %v15973_v13  ;;  %v2868_v39 = vadd.f32 %v14258_v7, %v2820_v58  ;;  %v14776_v31 = vld [vmem:[%s15941_s3 + $0x38] sm:$0xff]  }
 0x2e7   :  { %11931 = vmatpush3.bf16.msra.mxu0 %v14747_v10  ;;  %v4281_v0 = vpop.f32.mrb[102].mxu0  ;;  %v14762_v11 = vld [vmem:[%s15941_s3 + $0x30] sm:$0xff]  }
 0x2e8   :  { %v11503_v55 = vpop.f32.mrb[103].mxu0  ;;  %11669 = vmatmul.mubr.msk.bf16.vlgmr.msra.gmra.mrb[192].mxu1 %vm1374_vm4, %v13528_v21  ;;  %11944 = vmatprep.subr.bf16.mxu0 %v15973_v13 }
 0x2e9   :  { %11681 = vmatpush3.bf16.msra.mxu1 %v14268_v28  ;;  %11684 = vmatprep.mubr.msk.bf16.mxu1 %vm12551_vm2, %v15973_v13 }
 0x2ea   :  { %11933 = vmatmul.mubr.msk.bf16.vlgmr.msra.gmra.mrb[208].mxu0 %vm1374_vm4, %v14417_v25  ;;  %11682 = vmatprep.subr.bf16.mxu1 %v15973_v13 }
 0x2eb   :  { %11945 = vmatpush3.bf16.msra.mxu0 %v14762_v11  ;;  %v2903_v21 = vpop.f32.mrb[88].mxu1  ;;  %11948 = vmatprep.mubr.msk.bf16.mxu0 %vm12551_vm2, %v15973_v13 }
 0x2ec   :  { %v2909_v7 = vadd.f32 %v2903_v21, %v2868_v39  ;;  %v11254_v28 = vpop.f32.mrb[89].mxu1  ;;  %11946 = vmatprep.subr.bf16.mxu0 %v15973_v13 }
 0x2ed   :  { %11683 = vmatpush3.bf16.msra.mxu1 %v14283_v9  ;;  %v2906_v51 = vpop.f32.mrb[90].mxu1  ;;  %v14769_v58 = vpop.f32.mrb[104].mxu0 }
 0x2ee   :  { %v11255_v63 = vpop.f32.mrb[91].mxu1  ;;  %v11518_v0 = vpop.f32.mrb[105].mxu0  ;;  %11696 = vmatprep.subr.bf16.mxu1 %v15973_v13  ;;  %v2950_v55 = vadd.f32 %v14286_v59, %v2909_v7 }
 0x2ef   :  { %11947 = vmatpush3.bf16.msra.mxu0 %v14776_v31  ;;  %v4381_v39 = vpop.f32.mrb[106].mxu0 }
 0x2f0   :  { %v11519_v21 = vpop.f32.mrb[107].mxu0  ;;  %11685 = vmatmul.mubr.msk.bf16.vlgmr.msra.gmra.mrb[196].mxu1 %vm1374_vm4, %v14193_v43  ;;  %11960 = vmatprep.subr.bf16.mxu0 %v15973_v13 }
 0x2f1   :  { %11697 = vmatpush3.bf16.msra.mxu1 %v14296_v2  ;;  %11700 = vmatprep.mubr.msk.bf16.mxu1 %vm12551_vm2, %v15973_v13 }
 0x2f2   :  { %11949 = vmatmul.mubr.msk.bf16.vlgmr.msra.gmra.mrb[212].mxu0 %vm1374_vm4, %v14201_v47  ;;  %11698 = vmatprep.subr.bf16.mxu1 %v15973_v13 }
 0x2f3   :  { %11961 = vmatpush3.bf16.msra.mxu0 %v14307_v6  ;;  %v2992_v9 = vpop.f32.mrb[92].mxu1  ;;  %11964 = vmatprep.mubr.msk.bf16.mxu0 %vm12551_vm2, %v15973_v13 }
 0x2f4   :  { %v2998_v59 = vadd.f32 %v2992_v9, %v2950_v55  ;;  %v11270_v43 = vpop.f32.mrb[93].mxu1  ;;  %11962 = vmatprep.subr.bf16.mxu0 %v15973_v13 }
 0x2f5   :  { %11699 = vmatpush3.bf16.msra.mxu1 %v14316_v3  ;;  %v2995_v2 = vpop.f32.mrb[94].mxu1  ;;  %v14793_v7 = vpop.f32.mrb[108].mxu0 }
 0x2f6   :  { %v14796_v28 = vadd.f32 %v14319_v56, %v2998_v59  ;;  %v11271_v51 = vpop.f32.mrb[95].mxu1  ;;  %v11534_v63 = vpop.f32.mrb[109].mxu0  ;;  %11712 = vmatprep.subr.bf16.mxu1 %v15973_v13 }
 0x2f7   :  { %11963 = vmatpush3.bf16.msra.mxu0 %v14325_v49  ;;  %v4477_v6 = vpop.f32.mrb[110].mxu0 }
 0x2f8   :  { %v11535_v0 = vpop.f32.mrb[111].mxu0  ;;  %11701 = vmatmul.mubr.msk.bf16.vlgmr.msra.gmra.mrb[200].mxu1 %vm1374_vm4, %v14071_v50  ;;  %11976 = vmatprep.subr.bf16.mxu0 %v15973_v13 }
 0x2f9   :  { %11713 = vmatpush3.bf16.msra.mxu1 %v14334_v19  ;;  %11716 = vmatprep.mubr.msk.bf16.mxu1 %vm12551_vm2, %v15973_v13 }
 0x2fa   :  { %11965 = vmatmul.mubr.msk.bf16.vlgmr.msra.gmra.mrb[216].mxu0 %vm1374_vm4, %v14079_v40  ;;  %11714 = vmatprep.subr.bf16.mxu1 %v15973_v13 }
 0x2fb   :  { %11977 = vmatpush3.bf16.msra.mxu0 %v14345_v22  ;;  %v3084_v3 = vpop.f32.mrb[96].mxu1  ;;  %11980 = vmatprep.mubr.msk.bf16.mxu0 %vm12551_vm2, %v15973_v13 }
 0x2fc   :  { %v11286_v56 = vpop.f32.mrb[97].mxu1  ;;  %11978 = vmatprep.subr.bf16.mxu0 %v15973_v13  ;;  %v3125_v50 = vadd.f32 %v14352_v57, %v3084_v3 }
 0x2fd   :  { %11715 = vmatpush3.bf16.msra.mxu1 %v14570_v12  ;;  %v3087_v49 = vpop.f32.mrb[98].mxu1  ;;  %v14815_v19 = vpop.f32.mrb[112].mxu0 }
 0x2fe   :  { %v11287_v55 = vpop.f32.mrb[99].mxu1  ;;  %v11550_v40 = vpop.f32.mrb[113].mxu0  ;;  %11728 = vmatprep.subr.bf16.mxu1 %v15973_v13 }
 0x2ff   :  { %11979 = vmatpush3.bf16.msra.mxu0 %v14358_v52  ;;  %v4561_v22 = vpop.f32.mrb[114].mxu0  ;;  %v16036_v40 = vld [vmem:[#allocation27_spill] sm:$0xff] }
 0x300   :  { %v11551_v39 = vpop.f32.mrb[115].mxu0  ;;  %11717 = vmatmul.mubr.msk.bf16.vlgmr.msra.gmra.mrb[204].mxu1 %vm1374_vm4, %v14237_v30  ;;  %11992 = vmatprep.subr.bf16.mxu0 %v15973_v13  ;;  %v14866_v22 = vpack.c.b16 %v16036_v40, %v16036_v40 }
 0x301   :  { %11729 = vmatpush3.bf16.msra.mxu1 %v14583_v36  ;;  %11732 = vmatprep.mubr.msk.bf16.mxu1 %vm12551_vm2, %v15973_v13 }
 0x302   :  { %11981 = vmatmul.mubr.msk.bf16.vlgmr.msra.gmra.mrb[220].mxu0 %vm1374_vm4, %v14245_v26  ;;  %11730 = vmatprep.subr.bf16.mxu1 %v15973_v13 }
 0x303   :  { %11993 = vmatpush3.bf16.msra.mxu0 %v14373_v33  ;;  %v3171_v52 = vpop.f32.mrb[100].mxu1  ;;  %11996 = vmatprep.mubr.msk.bf16.mxu0 %vm12551_vm2, %v15973_v13 }
 0x304   :  { %v3177_v57 = vadd.f32 %v3171_v52, %v3125_v50  ;;  %v11302_v30 = vpop.f32.mrb[101].mxu1  ;;  %11994 = vmatprep.subr.bf16.mxu0 %v15973_v13 }
 0x305   :  { %11731 = vmatpush3.bf16.msra.mxu1 %v14598_v53  ;;  %v3174_v21 = vpop.f32.mrb[102].mxu1  ;;  %v14833_v9 = vpop.f32.mrb[116].mxu0 }
 0x306   :  { %v11303_v59 = vpop.f32.mrb[103].mxu1  ;;  %v11566_v43 = vpop.f32.mrb[117].mxu0  ;;  %11744 = vmatprep.subr.bf16.mxu1 %v15973_v13  ;;  %v3225_v2 = vadd.f32 %v14380_v23, %v3177_v57 }
 0x307   :  { %11995 = vmatpush3.bf16.msra.mxu0 %v14390_v60  ;;  %v4642_v33 = vpop.f32.mrb[118].mxu0 }
 0x308   :  { %v11567_v51 = vpop.f32.mrb[119].mxu0  ;;  %11733 = vmatmul.mubr.msk.bf16.vlgmr.msra.gmra.mrb[208].mxu1 %vm1374_vm4, %v14636_v4  ;;  %12008 = vmatprep.subr.bf16.mxu0 %v15973_v13 }
 0x309   :  { %11745 = vmatpush3.bf16.msra.mxu1 %v14614_v18  ;;  %11748 = vmatprep.mubr.msk.bf16.mxu1 %vm12551_vm2, %v15973_v13 }
 0x30a   :  { %11997 = vmatmul.mubr.msk.bf16.vlgmr.msra.gmra.mrb[224].mxu0 %vm1374_vm4, %v14645_v17  ;;  %11746 = vmatprep.subr.bf16.mxu1 %v15973_v13  ;;  %v16035_v17 = vld [vmem:[#allocation26_spill] sm:$0xff] }
 0x30b   :  { %12009 = vmatpush3.bf16.msra.mxu0 %v14405_v8  ;;  %v3260_v23 = vpop.f32.mrb[104].mxu1  ;;  %12012 = vmatprep.mubr.msk.bf16.mxu0 %vm12551_vm2, %v15973_v13  ;;  %v14857_v8 = vpack.c.b16 %v16035_v17, %v16035_v17 }
 0x30c   :  { %v3266_v60 = vadd.f32 %v3260_v23, %v3225_v2  ;;  %v11318_v63 = vpop.f32.mrb[105].mxu1  ;;  %12010 = vmatprep.subr.bf16.mxu0 %v15973_v13 }
 0x30d   :  { %11747 = vmatpush3.bf16.msra.mxu1 %v14628_v41  ;;  %v3263_v6 = vpop.f32.mrb[106].mxu1  ;;  %v14852_v0 = vpop.f32.mrb[120].mxu0 }
 0x30e   :  { %v11319_v3 = vpop.f32.mrb[107].mxu1  ;;  %v11582_v56 = vpop.f32.mrb[121].mxu0  ;;  %11760 = vmatprep.subr.bf16.mxu1 %v15973_v13  ;;  %v3307_v50 = vadd.f32 %v14412_v42, %v3266_v60 }
 0x30f   :  { %12011 = vmatpush3.bf16.msra.mxu0 %v14422_v46  ;;  %v4724_v49 = vpop.f32.mrb[122].mxu0  ;;  %v14912_v56 = vpack.c.b16 %v13617_v37, %v13617_v37 }
 0x310   :  { %v11583_v55 = vpop.f32.mrb[123].mxu0  ;;  %11749 = vmatmul.mubr.msk.bf16.vlgmr.msra.gmra.mrb[212].mxu1 %vm1374_vm4, %v14857_v8  ;;  %12024 = vmatprep.subr.bf16.mxu0 %v15973_v13 }
 0x311   :  { %11761 = vmatpush3.bf16.msra.mxu1 %v14650_v14  ;;  %11764 = vmatprep.mubr.msk.bf16.mxu1 %vm12551_vm2, %v15973_v13 }
 0x312   :  { %12013 = vmatmul.mubr.msk.bf16.vlgmr.msra.gmra.mrb[228].mxu0 %vm1374_vm4, %v14866_v22  ;;  %11762 = vmatprep.subr.bf16.mxu1 %v15973_v13 }
 0x313   :  { %12025 = vmatpush3.bf16.msra.mxu0 %v14441_v5  ;;  %v3349_v42 = vpop.f32.mrb[108].mxu1  ;;  %12028 = vmatprep.mubr.msk.bf16.mxu0 %vm12551_vm2, %v15973_v13 }
 0x314   :  { %v3355_v46 = vadd.f32 %v3349_v42, %v3307_v50  ;;  %v11334_v39 = vpop.f32.mrb[109].mxu1  ;;  %12026 = vmatprep.subr.bf16.mxu0 %v15973_v13 }
 0x315   :  { %11763 = vmatpush3.bf16.msra.mxu1 %v14665_v1  ;;  %v3352_v52 = vpop.f32.mrb[110].mxu1  ;;  %v14879_v57 = vpop.f32.mrb[124].mxu0  ;;  %v14951_v39 = vld [vmem:[%s15941_s3 + $0x28] sm:$0xff]  }
 0x316   :  { %v11335_v30 = vpop.f32.mrb[111].mxu1  ;;  %v11598_v21 = vpop.f32.mrb[125].mxu0  ;;  %11776 = vmatprep.subr.bf16.mxu1 %v15973_v13  ;;  %v3403_v59 = vadd.f32 %v14448_v32, %v3355_v46  ;;  %v14936_v46 = vld [vmem:[%s15941_s3 + $0x20] sm:$0xff]  }
 0x317   :  { %12027 = vmatpush3.bf16.msra.mxu0 %v14458_v15  ;;  %v4806_v5 = vpop.f32.mrb[126].mxu0 }
 0x318   :  { %v11599_v43 = vpop.f32.mrb[127].mxu0  ;;  %11765 = vmatmul.mubr.msk.bf16.vlgmr.msra.gmra.mrb[216].mxu1 %vm1374_vm4, %v14703_v48  ;;  %12040 = vmatprep.subr.bf16.mxu0 %v15973_v13 }
 0x319   :  { %11777 = vmatpush3.bf16.msra.mxu1 %v14681_v45  ;;  %11780 = vmatprep.mubr.msk.bf16.mxu1 %vm12551_vm2, %v15973_v13 }
 0x31a   :  { %12029 = vmatmul.mubr.msk.bf16.vlgmr.msra.gmra.mrb[232].mxu0 %vm1374_vm4, %v14712_v35  ;;  %11778 = vmatprep.subr.bf16.mxu1 %v15973_v13  ;;  %v16037_v35 = vld [vmem:[#allocation28_spill] sm:$0xff] }
 0x31b   :  { %12041 = vmatpush3.bf16.msra.mxu0 %v14473_v44  ;;  %v3438_v32 = vpop.f32.mrb[112].mxu1  ;;  %12044 = vmatprep.mubr.msk.bf16.mxu0 %vm12551_vm2, %v15973_v13  ;;  %v14903_v44 = vpack.c.b16 %v16037_v35, %v16037_v35 }
 0x31c   :  { %v3444_v15 = vadd.f32 %v3438_v32, %v3403_v59  ;;  %v11350_v2 = vpop.f32.mrb[113].mxu1  ;;  %12042 = vmatprep.subr.bf16.mxu0 %v15973_v13  ;;  %v14965_v32 = vld [vmem:[%s15941_s3 + $0x40] sm:$0xff]  }
 0x31d   :  { %11779 = vmatpush3.bf16.msra.mxu1 %v14695_v27  ;;  %v3441_v33 = vpop.f32.mrb[114].mxu1  ;;  %v14898_v51 = vpop.f32.mrb[128].mxu0  ;;  %v14982_v2 = vld [vmem:[%s15941_s3 + $0x48] sm:$0xff]  }
 0x31e   :  { %v11351_v23 = vpop.f32.mrb[115].mxu1  ;;  %v11614_v60 = vpop.f32.mrb[129].mxu0  ;;  %11792 = vmatprep.subr.bf16.mxu1 %v15973_v13  ;;  %v3485_v63 = vadd.f32 %v14480_v24, %v3444_v15 }
 0x31f   :  { %12043 = vmatpush3.bf16.msra.mxu0 %v14490_v38  ;;  %v4888_v6 = vpop.f32.mrb[130].mxu0  ;;  %v16038_v23 = vld [vmem:[#allocation2_spill] sm:$0xff] }
 0x320   :  { %v11615_v3 = vpop.f32.mrb[131].mxu0  ;;  %11781 = vmatmul.mubr.msk.bf16.vlgmr.msra.gmra.mrb[220].mxu1 %vm1374_vm4, %v14903_v44  ;;  %12056 = vmatprep.subr.bf16.mxu0 %v15973_v13  ;;  %v12526_v6 = vld [vmem:[%s15941_s3 + $0x58] sm:$0xff]  }
 0x321   :  { %11793 = vmatpush3.bf16.msra.mxu1 %v14717_v34  ;;  %11796 = vmatprep.mubr.msk.bf16.mxu1 %vm12551_vm2, %v15973_v13 }
 0x322   :  { %12045 = vmatmul.mubr.msk.bf16.vlgmr.msra.gmra.mrb[236].mxu0 %vm1374_vm4, %v14912_v56  ;;  %11794 = vmatprep.subr.bf16.mxu1 %v15973_v13 }
 0x323   :  { %12057 = vmatpush3.bf16.msra.mxu0 %v14728_v54  ;;  %v3527_v24 = vpop.f32.mrb[116].mxu1  ;;  %12060 = vmatprep.mubr.msk.bf16.mxu0 %vm12551_vm2, %v15973_v13 }
 0x324   :  { %v3533_v38 = vadd.f32 %v3527_v24, %v3485_v63  ;;  %v11366_v17 = vpop.f32.mrb[117].mxu1  ;;  %12058 = vmatprep.subr.bf16.mxu0 %v15973_v13 }
 0x325   :  { %11795 = vmatpush3.bf16.msra.mxu1 %v14737_v16  ;;  %v3530_v37 = vpop.f32.mrb[118].mxu1  ;;  %v14925_v50 = vpop.f32.mrb[132].mxu0  ;;  %v15000_v17 = vld [vmem:[%s15941_s3 + $0x60] sm:$0xff]  }
 0x326   :  { %v11367_v49 = vpop.f32.mrb[119].mxu1  ;;  %v11630_v55 = vpop.f32.mrb[133].mxu0  ;;  %11808 = vmatprep.subr.bf16.mxu1 %v15973_v13  ;;  %v3581_v40 = vadd.f32 %v14511_v20, %v3533_v38  ;;  %v16039_v38 = vld [vmem:[#allocation4_spill] sm:$0xff] }
 0x327   :  { %12059 = vmatpush3.bf16.msra.mxu0 %v14747_v10  ;;  %v4984_v54 = vpop.f32.mrb[134].mxu0  ;;  %v12528_v37 = vld [vmem:[%s15941_s3 + $0x70] sm:$0xff]  }
 0x328   :  { %v11631_v42 = vpop.f32.mrb[135].mxu0  ;;  %11797 = vmatmul.mubr.msk.bf16.vlgmr.msra.gmra.mrb[224].mxu1 %vm1374_vm4, %v14011_v61  ;;  %12072 = vmatprep.subr.bf16.mxu0 %v15973_v13  ;;  %v16040_v55 = vld [vmem:[#allocation8_spill] sm:$0xff] }
 0x329   :  { %11809 = vmatpush3.bf16.msra.mxu1 %v14936_v46  ;;  %11812 = vmatprep.mubr.msk.bf16.mxu1 %vm12551_vm2, %v15973_v13 }
 0x32a   :  { %12061 = vmatmul.mubr.msk.bf16.vlgmr.msra.gmra.mrb[240].mxu0 %vm1374_vm4, %v14636_v4  ;;  %11810 = vmatprep.subr.bf16.mxu1 %v15973_v13 }
 0x32b   :  { %12073 = vmatpush3.bf16.msra.mxu0 %v14762_v11  ;;  %v3616_v61 = vpop.f32.mrb[120].mxu1  ;;  %12076 = vmatprep.mubr.msk.bf16.mxu0 %vm12551_vm2, %v15973_v13 }
 0x32c   :  { %v3622_v20 = vadd.f32 %v3616_v61, %v3581_v40  ;;  %v11382_v10 = vpop.f32.mrb[121].mxu1  ;;  %12074 = vmatprep.subr.bf16.mxu0 %v15973_v13 }
 0x32d   :  { %11811 = vmatpush3.bf16.msra.mxu1 %v14951_v39  ;;  %v3619_v52 = vpop.f32.mrb[122].mxu1  ;;  %v14954_v30 = vpop.f32.mrb[136].mxu0  ;;  %v12529_v10 = vld [vmem:[%s15941_s3 + $0x78] sm:$0xff]  }
 0x32e   :  { %v11383_v21 = vpop.f32.mrb[123].mxu1  ;;  %v11646_v11 = vpop.f32.mrb[137].mxu0  ;;  %11824 = vmatprep.subr.bf16.mxu1 %v15973_v13  ;;  %v3663_v59 = vadd.f32 %v14529_v29, %v3622_v20 }
 0x32f   :  { %12075 = vmatpush3.bf16.msra.mxu0 %v14776_v31  ;;  %v5066_v5 = vpop.f32.mrb[138].mxu0  ;;  %v16041_v11 = vld [vmem:[#allocation5_spill] sm:$0xff] }
 0x330   :  { %v11647_v43 = vpop.f32.mrb[139].mxu0  ;;  %11813 = vmatmul.mubr.msk.bf16.vlgmr.msra.gmra.mrb[228].mxu1 %vm1374_vm4, %v14417_v25  ;;  %12088 = vmatprep.subr.bf16.mxu0 %v15973_v13  ;;  %v12524_v25 = vld [vmem:[%s15941_s3 + $0x50] sm:$0xff]  }
 0x331   :  { %11825 = vmatpush3.bf16.msra.mxu1 %v14965_v32  ;;  %11828 = vmatprep.mubr.msk.bf16.mxu1 %vm12551_vm2, %v15973_v13 }
 0x332   :  { %12077 = vmatmul.mubr.msk.bf16.vlgmr.msra.gmra.mrb[244].mxu0 %vm1374_vm4, %v14430_v62  ;;  %11826 = vmatprep.subr.bf16.mxu1 %v15973_v13 }
 0x333   :  { %12089 = vmatpush3.bf16.msra.mxu0 %v12524_v25  ;;  %v3705_v29 = vpop.f32.mrb[124].mxu1  ;;  %12092 = vmatprep.mubr.msk.bf16.mxu0 %vm12551_vm2, %v15973_v13 }
 0x334   :  { %v3711_v31 = vadd.f32 %v3705_v29, %v3663_v59  ;;  %v11398_v15 = vpop.f32.mrb[125].mxu1  ;;  %12090 = vmatprep.subr.bf16.mxu0 %v15973_v13  ;;  %v12530_v59 = vld [vmem:[%s15941_s3 + $0x90] sm:$0xff]  }
 0x335   :  { %11827 = vmatpush3.bf16.msra.mxu1 %v14982_v2  ;;  %v3708_v62 = vpop.f32.mrb[126].mxu1  ;;  %v14985_v33 = vpop.f32.mrb[140].mxu0 }
 0x336   :  { %v14988_v60 = vadd.f32 %v16038_v23, %v3711_v31  ;;  %v11399_v35 = vpop.f32.mrb[127].mxu1  ;;  %v11662_v63 = vpop.f32.mrb[141].mxu0  ;;  %11840 = vmatprep.subr.bf16.mxu1 %v15973_v13  ;;  %v16043_v62 = vld [vmem:[#allocation29_spill] sm:$0xff] }
 0x337   :  { %12091 = vmatpush3.bf16.msra.mxu0 %v12526_v6  ;;  %v5162_v3 = vpop.f32.mrb[142].mxu0  ;;  %v6188_v23 = vpack.c.b16 %v16043_v62, %v16043_v62  ;;  %v16044_v35 = vld [vmem:[#allocation9_spill] sm:$0xff]  ;;  %v16048_v62 = vld [vmem:[#allocation35_spill] sm:$0xff] }
 0x338   :  { %v11663_v24 = vpop.f32.mrb[143].mxu0  ;;  %11829 = vmatmul.mubr.msk.bf16.vlgmr.msra.gmra.mrb[232].mxu1 %vm1374_vm4, %v16039_v38  ;;  %12104 = vmatprep.subr.bf16.mxu0 %v15973_v13  ;;  %v12531_v6 = vld [vmem:[%s15941_s3 + $0x98] sm:$0xff]  }
 0x339   :  { %11841 = vmatpush3.bf16.msra.mxu1 %v15000_v17  ;;  %11844 = vmatprep.mubr.msk.bf16.mxu1 %vm12551_vm2, %v15973_v13 }
 0x33a   :  { %12093 = vmatmul.mubr.msk.bf16.vlgmr.msra.gmra.mrb[248].mxu0 %vm1374_vm4, %v14245_v26  ;;  %11842 = vmatprep.subr.bf16.mxu1 %v15973_v13 }
 0x33b   :  { %12105 = vmatpush3.bf16.msra.mxu0 %v12528_v37  ;;  %v3797_v49 = vpop.f32.mrb[128].mxu1  ;;  %12108 = vmatprep.mubr.msk.bf16.mxu0 %vm12551_vm2, %v15973_v13 }
 0x33c   :  { %v3838_v40 = vadd.f32 %v16040_v55, %v3797_v49  ;;  %v11414_v54 = vpop.f32.mrb[129].mxu1  ;;  %12106 = vmatprep.subr.bf16.mxu0 %v15973_v13 }
 0x33d   :  { %11843 = vmatpush3.bf16.msra.mxu1 %v14570_v12  ;;  %v3800_v42 = vpop.f32.mrb[130].mxu1  ;;  %v15016_v26 = vpop.f32.mrb[144].mxu0  ;;  %v16042_v12 = vld [vmem:[#allocation6_spill] sm:$0xff]  ;;  %v16045_v54 = vld [vmem:[#allocation31_spill] sm:$0xff] }
 0x33e   :  { %v11415_v61 = vpop.f32.mrb[131].mxu1  ;;  %v11678_v20 = vpop.f32.mrb[145].mxu0  ;;  %11856 = vmatprep.subr.bf16.mxu1 %v15973_v13  ;;  %v15067_v42 = vpack.c.b16 %v16045_v54, %v16045_v54  ;;  %v16051_v54 = vld [vmem:[#allocation12_spill] sm:$0xff] }
 0x33f   :  { %12107 = vmatpush3.bf16.msra.mxu0 %v12529_v10  ;;  %v5246_v52 = vpop.f32.mrb[146].mxu0  ;;  %v16046_v61 = vld [vmem:[#allocation10_spill] sm:$0xff]  ;;  %v12533_v10 = vld [vmem:[%s15941_s3 + $0xb8] sm:$0xff]  }
 0x340   :  { %v11679_v21 = vpop.f32.mrb[147].mxu0  ;;  %11845 = vmatmul.mubr.msk.bf16.vlgmr.msra.gmra.mrb[236].mxu1 %vm1374_vm4, %v16041_v11  ;;  %12120 = vmatprep.subr.bf16.mxu0 %v15973_v13 }
 0x341   :  { %11857 = vmatpush3.bf16.msra.mxu1 %v14583_v36  ;;  %11860 = vmatprep.mubr.msk.bf16.mxu1 %vm12551_vm2, %v15973_v13  ;;  %v16047_v21 = vld [vmem:[#allocation30_spill] sm:$0xff] }
 0x342   :  { %12109 = vmatmul.mubr.msk.bf16.vlgmr.msra.gmra.mrb[252].mxu0 %vm1374_vm4, %v16042_v12  ;;  %11858 = vmatprep.subr.bf16.mxu1 %v15973_v13  ;;  %v7719_v12 = vpack.c.b16 %v16047_v21, %v16047_v21 }
 0x343   :  { %12121 = vmatpush3.bf16.msra.mxu0 %v12530_v59  ;;  %v3877_v5 = vpop.f32.mrb[132].mxu1  ;;  %12124 = vmatprep.mubr.msk.bf16.mxu0 %vm12551_vm2, %v15973_v13  ;;  %v12534_v59 = vld [vmem:[%s15941_s3 + $0xd0] sm:$0xff]  }
 0x344   :  { %v3883_v43 = vadd.f32 %v3877_v5, %v3838_v40  ;;  %v11430_v25 = vpop.f32.mrb[133].mxu1  ;;  %12122 = vmatprep.subr.bf16.mxu0 %v15973_v13 }
 0x345   :  { %11859 = vmatpush3.bf16.msra.mxu1 %v14598_v53  ;;  %v3880_v36 = vpop.f32.mrb[134].mxu1  ;;  %v15038_v29 = vpop.f32.mrb[148].mxu0  ;;  %v12532_v53 = vld [vmem:[%s15941_s3 + $0xb0] sm:$0xff]  }
 0x346   :  { %v11431_v31 = vpop.f32.mrb[135].mxu1  ;;  %v11694_v15 = vpop.f32.mrb[149].mxu0  ;;  %11872 = vmatprep.subr.bf16.mxu1 %v15973_v13  ;;  %v3924_v63 = vadd.f32 %v16044_v35, %v3883_v43  ;;  %v16049_v35 = vld [vmem:[#allocation11_spill] sm:$0xff] }
 0x347   :  { %12123 = vmatpush3.bf16.msra.mxu0 %v12531_v6  ;;  %v5327_v3 = vpop.f32.mrb[150].mxu0  ;;  %v12535_v6 = vld [vmem:[%s15941_s3 + $0xd8] sm:$0xff]  }
 0x348   :  { %v11695_v24 = vpop.f32.mrb[151].mxu0  ;;  %11861 = vmatmul.mubr.msk.bf16.vlgmr.msra.gmra.mrb[240].mxu1 %vm1374_vm4, %v6188_v23  ;;  %12136 = vmatprep.subr.bf16.mxu0 %v15973_v13  ;;  %v6384_v23 = vpack.c.b16 %v16048_v62, %v16048_v62  ;;  %v16053_v62 = vld [vmem:[#allocation13_spill] sm:$0xff] }
 0x349   :  { %11873 = vmatpush3.bf16.msra.mxu1 %v14614_v18  ;;  %11876 = vmatprep.mubr.msk.bf16.mxu1 %vm12551_vm2, %v15973_v13 }
 0x34a   :  { %12125 = vmatmul.mubr.msk.bf16.vlgmr.msra.gmra.mrb[0].mxu0 %vm1374_vm4, %v14866_v22  ;;  %11874 = vmatprep.subr.bf16.mxu1 %v15973_v13 }
 0x34b   :  { %12137 = vmatpush3.bf16.msra.mxu0 %v12532_v53  ;;  %v3959_v38 = vpop.f32.mrb[136].mxu1  ;;  %12140 = vmatprep.mubr.msk.bf16.mxu0 %vm12551_vm2, %v15973_v13 }
 0x34c   :  { %v3965_v37 = vadd.f32 %v3959_v38, %v3924_v63  ;;  %v11446_v49 = vpop.f32.mrb[137].mxu1  ;;  %12138 = vmatprep.subr.bf16.mxu0 %v15973_v13 }
 0x34d   :  { %11875 = vmatpush3.bf16.msra.mxu1 %v14628_v41  ;;  %v3962_v18 = vpop.f32.mrb[138].mxu1  ;;  %v15062_v55 = vpop.f32.mrb[152].mxu0 }
 0x34e   :  { %v11447_v22 = vpop.f32.mrb[139].mxu1  ;;  %v11710_v40 = vpop.f32.mrb[153].mxu0  ;;  %11888 = vmatprep.subr.bf16.mxu1 %v15973_v13  ;;  %v4006_v20 = vadd.f32 %v16046_v61, %v3965_v37 }
 0x34f   :  { %12139 = vmatpush3.bf16.msra.mxu0 %v12533_v10  ;;  %v5409_v52 = vpop.f32.mrb[154].mxu0  ;;  %v16050_v22 = vld [vmem:[#allocation36_spill] sm:$0xff] }
 0x350   :  { %v11711_v41 = vpop.f32.mrb[155].mxu0  ;;  %11877 = vmatmul.mubr.msk.bf16.vlgmr.msra.gmra.mrb[244].mxu1 %vm1374_vm4, %v15067_v42  ;;  %12152 = vmatprep.subr.bf16.mxu0 %v15973_v13  ;;  %v15119_v40 = vpack.c.b16 %v16050_v22, %v16050_v22 }
 0x351   :  { %11889 = vmatpush3.bf16.msra.mxu1 %v14650_v14  ;;  %11892 = vmatprep.mubr.msk.bf16.mxu1 %vm12551_vm2, %v15973_v13  ;;  %v16052_v41 = vld [vmem:[#allocation32_spill] sm:$0xff] }
 0x352   :  { %12141 = vmatmul.mubr.msk.bf16.vlgmr.msra.gmra.mrb[4].mxu0 %vm1374_vm4, %v7719_v12  ;;  %11890 = vmatprep.subr.bf16.mxu1 %v15973_v13  ;;  %v7897_v21 = vpack.c.b16 %v16052_v41, %v16052_v41  ;;  %v12388_v41 = vld [vmem:[%s15943_s5 + $0x68] sm:$0xff]  }
 0x353   :  { %12153 = vmatpush3.bf16.msra.mxu0 %v12534_v59  ;;  %v4041_v5 = vpop.f32.mrb[140].mxu1  ;;  %12156 = vmatprep.mubr.msk.bf16.mxu0 %vm12551_vm2, %v15973_v13  ;;  %v12384_v59 = vld [vmem:[%s15943_s5 + $0x8] sm:$0xff]  }
 0x354   :  { %v4047_v43 = vadd.f32 %v4041_v5, %v4006_v20  ;;  %v11462_v25 = vpop.f32.mrb[141].mxu1  ;;  %12154 = vmatprep.subr.bf16.mxu0 %v15973_v13  ;;  %v12537_v20 = vld [vmem:[%s15941_s3 + $0xf8] sm:$0xff]  }
 0x355   :  { %11891 = vmatpush3.bf16.msra.mxu1 %v14665_v1  ;;  %v4044_v14 = vpop.f32.mrb[142].mxu1  ;;  %v15090_v36 = vpop.f32.mrb[156].mxu0  ;;  %v12536_v1 = vld [vmem:[%s15941_s3 + $0xf0] sm:$0xff]  }
 0x356   :  { %v11463_v31 = vpop.f32.mrb[143].mxu1  ;;  %v11726_v15 = vpop.f32.mrb[157].mxu0  ;;  %11904 = vmatprep.subr.bf16.mxu1 %v15973_v13  ;;  %v4088_v63 = vadd.f32 %v16049_v35, %v4047_v43 }
 0x357   :  { %12155 = vmatpush3.bf16.msra.mxu0 %v12535_v6  ;;  %v5491_v3 = vpop.f32.mrb[158].mxu0  ;;  %v16054_v6 = vld [vmem:[#allocation7_spill] sm:$0xff] }
 0x358   :  { %v11727_v24 = vpop.f32.mrb[159].mxu0  ;;  %11893 = vmatmul.mubr.msk.bf16.vlgmr.msra.gmra.mrb[248].mxu1 %vm1374_vm4, %v6384_v23  ;;  %12168 = vmatprep.subr.bf16.mxu0 %v15973_v13 }
 0x359   :  { %11905 = vmatpush3.bf16.msra.mxu1 %v14681_v45  ;;  %11908 = vmatprep.mubr.msk.bf16.mxu1 %vm12551_vm2, %v15973_v13 }
 0x35a   :  { %12157 = vmatmul.mubr.msk.bf16.vlgmr.msra.gmra.mrb[8].mxu0 %vm1374_vm4, %v14912_v56  ;;  %11906 = vmatprep.subr.bf16.mxu1 %v15973_v13 }
 0x35b   :  { %12169 = vmatpush3.bf16.msra.mxu0 %v12536_v1  ;;  %v4135_v53 = vpop.f32.mrb[144].mxu1  ;;  %12172 = vmatprep.mubr.msk.bf16.mxu0 %vm12551_vm2, %v15973_v13 }
 0x35c   :  { %v4141_v38 = vadd.f32 %v4135_v53, %v4088_v63  ;;  %v11478_v37 = vpop.f32.mrb[145].mxu1  ;;  %12170 = vmatprep.subr.bf16.mxu0 %v15973_v13  ;;  %v12385_v63 = vld [vmem:[%s15943_s5 + $0x10] sm:$0xff]   ;;  %v12386_v53 = vld [vmem:[%s15943_s5 + $0x18] sm:$0xff]  }
 0x35d   :  { %11907 = vmatpush3.bf16.msra.mxu1 %v14695_v27  ;;  %v4138_v45 = vpop.f32.mrb[146].mxu1  ;;  %v15114_v49 = vpop.f32.mrb[160].mxu0  ;;  %v12383_v27 = vld [vmem:[%s15943_s5] sm:$0xff]  }
 0x35e   :  { %v11479_v56 = vpop.f32.mrb[147].mxu1  ;;  %v11742_v18 = vpop.f32.mrb[161].mxu0  ;;  %11920 = vmatprep.subr.bf16.mxu1 %v15973_v13  ;;  %v4188_v61 = vadd.f32 %v16051_v54, %v4141_v38 }
 0x35f   :  { %12171 = vmatpush3.bf16.msra.mxu0 %v12537_v20  ;;  %v5573_v10 = vpop.f32.mrb[162].mxu0 }
 0x360   :  { %v11743_v52 = vpop.f32.mrb[163].mxu0  ;;  %11909 = vmatmul.mubr.msk.bf16.vlgmr.msra.gmra.mrb[252].mxu1 %vm1374_vm4, %v15119_v40  ;;  %12188 = vmatprep.subr.bf16.mxu0 %v15973_v13  ;;  %v12387_v10 = vld [vmem:[%s15943_s5 + $0x60] sm:$0xff]  }
 0x361   :  { %11921 = vmatpush3.bf16.msra.mxu1 %v14717_v34  ;;  %11924 = vmatprep.mubr.msk.bf16.mxu1 %vm12551_vm2, %v15973_v13  ;;  %v15147_v34 = vld [vmem:[%s15944_s4] ss:$0 sm:$0xff] }
 0x362   :  { %12173 = vmatmul.mubr.msk.bf16.vlgmr.msra.gmra.mrb[12].mxu0 %vm1374_vm4, %v7897_v21  ;;  %11922 = vmatprep.subr.bf16.mxu1 %v15973_v13  ;;  %v2334_v3 = vadd.f32 %v15147_v34, %v16054_v6 }
 0x363   :  { %12189 = vmatpush3.bf16.msra.mxu0 %v12383_v27  ;;  %v4230_v12 = vpop.f32.mrb[148].mxu1  ;;  %12196 = vmatprep.mubr.msk.bf16.mxu0 %vm12551_vm2, %v15973_v13 }
 0x364   :  { %v4236_v5 = vadd.f32 %v4230_v12, %v4188_v61  ;;  %v11494_v43 = vpop.f32.mrb[149].mxu1  ;;  %12190 = vmatprep.subr.bf16.mxu0 %v15973_v13  ;;  %v2335_v38 = vmax.f32 %v2334_v3, 0.0 }
 0x365   :  { %11923 = vmatpush3.bf16.msra.mxu1 %v14737_v16  ;;  %v4233_v25 = vpop.f32.mrb[150].mxu1  ;;  %v15150_v14 = vpop.f32.mrb[164].mxu0  ;;  %v16055_v16 = vld [vmem:[#allocation3_spill] sm:$0xff] }
 0x366   :  { %v11495_v31 = vpop.f32.mrb[151].mxu1  ;;  %v11758_v15 = vpop.f32.mrb[165].mxu0  ;;  %11936 = vmatprep.subr.bf16.mxu1 %v15973_v13  ;;  %v4284_v23 = vadd.f32 %v16053_v62, %v4236_v5  ;;  %v2336_v27 = vpack.c.bf16 %v2335_v38, %v2335_v38 }
 0x367   :  { %12191 = vmatpush3.bf16.msra.mxu0 %v12384_v59  ;;  %v5669_v35 = vpop.f32.mrb[166].mxu0  ;;  %v12389_v15 = vld [vmem:[%s15943_s5 + $0x70] sm:$0xff]  }
 0x368   :  { %v11759_v24 = vpop.f32.mrb[167].mxu0  ;;  %11925 = vmatmul.mubr.msk.bf16.vlgmr.msra.gmra.mrb[0].mxu1 %vm1374_vm4, %v16055_v16  ;;  %12192 = vmatprep.subr.bf16.mxu0 %v15973_v13  ;;  %v12390_v35 = vld [vmem:[%s15943_s5 + $0x78] sm:$0xff]  }
 0x369   :  { %11937 = vmatpush3.bf16.msra.mxu1 %v14936_v46  ;;  %11940 = vmatprep.mubr.msk.bf16.mxu1 %vm12551_vm2, %v15973_v13 }
 0x36a   :  { %11938 = vmatprep.subr.bf16.mxu1 %v15973_v13 }
 0x36b   :  { %12193 = vmatpush3.bf16.msra.mxu0 %v12385_v63  ;;  %v4331_v1 = vpop.f32.mrb[152].mxu1 }
 0x36c   :  { %v4337_v37 = vadd.f32 %v4331_v1, %v4284_v23  ;;  %v11510_v45 = vpop.f32.mrb[153].mxu1  ;;  %12194 = vmatprep.subr.bf16.mxu0 %v15973_v13 }
 0x36d   :  { %11939 = vmatpush3.bf16.msra.mxu1 %v14951_v39  ;;  %v4334_v56 = vpop.f32.mrb[154].mxu1  ;;  %v15171_v18 = vpop.f32.mrb[168].mxu0 }
 0x36e   :  { %v11511_v22 = vpop.f32.mrb[155].mxu1  ;;  %v11774_v54 = vpop.f32.mrb[169].mxu0  ;;  %11952 = vmatprep.subr.bf16.mxu1 %v15973_v13  ;;  %v4384_v61 = vadd.f32 %v14769_v58, %v4337_v37  ;;  %v15231_v56 = vld [vmem:[%s15941_s3 + $0x80] sm:$0xff]  }
 0x36f   :  { %12195 = vmatpush3.bf16.msra.mxu0 %v12386_v53  ;;  %v5751_v20 = vpop.f32.mrb[170].mxu0  ;;  %v12397_v54 = vld [vmem:[%s15943_s5 + $0xa8] sm:$0xff]  }
 0x370   :  { %v11775_v52 = vpop.f32.mrb[171].mxu0  ;;  %11941 = vmatmul.mubr.msk.bf16.vlgmr.msra.gmra.mrb[4].mxu1 %vm1374_vm4, %v14636_v4  ;;  %12212 = vmatprep.subr.bf16.mxu0 %v15973_v13 }
 0x371   :  { %11953 = vmatpush3.bf16.msra.mxu1 %v14965_v32  ;;  %11956 = vmatprep.mubr.msk.bf16.mxu1 %vm12551_vm2, %v15973_v13 }
 0x372   :  { %12197 = vmatmul.mubr.msk.bf16.vlgmr.msra.gmra.mrb[16].mxu0 %vm321_vm1, %v2336_v27  ;;  %11954 = vmatprep.subr.bf16.mxu1 %v15973_v13 }
 0x373   :  { %12213 = vmatpush3.bf16.msra.mxu0 %v12387_v10  ;;  %v4426_v58 = vpop.f32.mrb[156].mxu1  ;;  %12220 = vmatprep.mubr.msk.bf16.mxu0 %vm12551_vm2, %v15973_v13  ;;  %v15247_v10 = vld [vmem:[%s15941_s3 + $0x88] sm:$0xff]  }
 0x374   :  { %v4432_v4 = vadd.f32 %v4426_v58, %v4384_v61  ;;  %v11526_v21 = vpop.f32.mrb[157].mxu1  ;;  %12214 = vmatprep.subr.bf16.mxu0 %v15973_v13 }
 0x375   :  { %11955 = vmatpush3.bf16.msra.mxu1 %v14982_v2  ;;  %v4429_v12 = vpop.f32.mrb[158].mxu1  ;;  %v15193_v59 = vpop.f32.mrb[172].mxu0 }
 0x376   :  { %v4480_v5 = vadd.f32 %v14793_v7, %v4432_v4  ;;  %v11527_v43 = vpop.f32.mrb[159].mxu1  ;;  %v11790_v25 = vpop.f32.mrb[173].mxu0  ;;  %11968 = vmatprep.subr.bf16.mxu1 %v15973_v13  ;;  %v12399_v12 = vld [vmem:[%s15943_s5 + $0xb0] sm:$0xff]  }
 0x377   :  { %12215 = vmatpush3.bf16.msra.mxu0 %v12388_v41  ;;  %v5847_v31 = vpop.f32.mrb[174].mxu0  ;;  %v15263_v43 = vld [vmem:[%s15941_s3 + $0xa0] sm:$0xff]  }
 0x378   :  { %v4481_v62 = vadd.f32 %v15147_v34, %v4480_v5  ;;  %v11791_v23 = vpop.f32.mrb[175].mxu0  ;;  %11957 = vmatmul.mubr.msk.bf16.vlgmr.msra.gmra.mrb[8].mxu1 %vm1374_vm4, %v16041_v11  ;;  %12216 = vmatprep.subr.bf16.mxu0 %v15973_v13  ;;  %v15216_v11 = vld [vmem:[%s15941_s3 + $0x68] sm:$0xff]  }
 0x379   :  { %11969 = vmatpush3.bf16.msra.mxu1 %v15000_v17  ;;  %11972 = vmatprep.mubr.msk.bf16.mxu1 %vm12551_vm2, %v15973_v13 }
 0x37a   :  { %11970 = vmatprep.subr.bf16.mxu1 %v15973_v13  ;;  %v4482_v63 = vmax.f32 %v4481_v62, 0.0 }
 0x37b   :  { %12217 = vmatpush3.bf16.msra.mxu0 %v12389_v15  ;;  %v4518_v7 = vpop.f32.mrb[160].mxu1  ;;  %v15276_v15 = vld [vmem:[%s15941_s3 + $0xa8] sm:$0xff]  }
 0x37c   :  { %v4559_v6 = vadd.f32 %v14815_v19, %v4518_v7  ;;  %v11542_v3 = vpop.f32.mrb[161].mxu1  ;;  %12218 = vmatprep.subr.bf16.mxu0 %v15973_v13  ;;  %v12395_v19 = vld [vmem:[%s15943_s5 + $0xa0] sm:$0xff]   ;;  %v4483_v37 = vpack.c.bf16 %v4482_v63, %v4482_v63  ;;  %v16056_v63 = vld [vmem:[#allocation33_spill] sm:$0xff] }
 0x37d   :  { %11971 = vmatpush3.bf16.msra.mxu1 %v15216_v11  ;;  %v4521_v24 = vpop.f32.mrb[162].mxu1  ;;  %v15219_v16 = vpop.f32.mrb[176].mxu0 }
 0x37e   :  { %v11543_v1 = vpop.f32.mrb[163].mxu1  ;;  %v11806_v53 = vpop.f32.mrb[177].mxu0  ;;  %11984 = vmatprep.subr.bf16.mxu1 %v15973_v13 }
 0x37f   :  { %12219 = vmatpush3.bf16.msra.mxu0 %v12390_v35  ;;  %v5931_v38 = vpop.f32.mrb[178].mxu0  ;;  %v15293_v53 = vld [vmem:[%s15941_s3 + $0xc0] sm:$0xff]  }
 0x380   :  { %v11807_v45 = vpop.f32.mrb[179].mxu0  ;;  %11973 = vmatmul.mubr.msk.bf16.vlgmr.msra.gmra.mrb[12].mxu1 %vm1374_vm4, %v14703_v48  ;;  %12236 = vmatprep.subr.bf16.mxu0 %v15973_v13 }
 0x381   :  { %11985 = vmatpush3.bf16.msra.mxu1 %v15231_v56  ;;  %11988 = vmatprep.mubr.msk.bf16.mxu1 %vm12551_vm2, %v15973_v13 }
 0x382   :  { %12221 = vmatmul.mubr.msk.bf16.vlgmr.msra.gmra.mrb[20].mxu0 %vm321_vm1, %v4483_v37  ;;  %11986 = vmatprep.subr.bf16.mxu1 %v15973_v13  ;;  %v15302_v37 = vld [vmem:[%s15941_s3 + $0xc8] sm:$0xff]  }
 0x383   :  { %v4598_v22 = vpop.f32.mrb[164].mxu1  ;;  %12237 = vmatpush3.bf16.msra.mxu0 %v12395_v19  ;;  %12244 = vmatprep.mubr.msk.bf16.mxu0 %vm12551_vm2, %v15973_v13 }
 0x384   :  { %v4604_v61 = vadd.f32 %v4598_v22, %v4559_v6  ;;  %v11558_v20 = vpop.f32.mrb[165].mxu1  ;;  %12238 = vmatprep.subr.bf16.mxu0 %v15973_v13  ;;  %v15284_v6 = vpack.c.b16 %v16056_v63, %v16056_v63  ;;  %v12547_v63 = vld [vmem:[%s15941_s3 + $0x10] sm:$0xff]  }
 0x385   :  { %11987 = vmatpush3.bf16.msra.mxu1 %v15247_v10  ;;  %v4601_v27 = vpop.f32.mrb[166].mxu1  ;;  %v15250_v52 = vpop.f32.mrb[180].mxu0 }
 0x386   :  { %v11559_v58 = vpop.f32.mrb[167].mxu1  ;;  %v11822_v41 = vpop.f32.mrb[181].mxu0  ;;  %12000 = vmatprep.subr.bf16.mxu1 %v15973_v13  ;;  %v4645_v4 = vadd.f32 %v14833_v9, %v4604_v61 }
 0x387   :  { %v6012_v21 = vpop.f32.mrb[182].mxu0  ;;  %12239 = vmatpush3.bf16.msra.mxu0 %v12397_v54  ;;  %v15314_v41 = vld [vmem:[%s15941_s3 + $0xe0] sm:$0xff]  }
 0x388   :  { %v11823_v5 = vpop.f32.mrb[183].mxu0  ;;  %11989 = vmatmul.mubr.msk.bf16.vlgmr.msra.gmra.mrb[16].mxu1 %vm1374_vm4, %v15067_v42  ;;  %12240 = vmatprep.subr.bf16.mxu0 %v15973_v13  ;;  %v12401_v42 = vld [vmem:[%s15943_s5 + $0xb8] sm:$0xff]  }
 0x389   :  { %12001 = vmatpush3.bf16.msra.mxu1 %v15263_v43  ;;  %12004 = vmatprep.mubr.msk.bf16.mxu1 %vm12551_vm2, %v15973_v13 }
 0x38a   :  { %12002 = vmatprep.subr.bf16.mxu1 %v15973_v13 }
 0x38b   :  { %v4680_v9 = vpop.f32.mrb[168].mxu1  ;;  %12241 = vmatpush3.bf16.msra.mxu0 %v12399_v12  ;;  %v15323_v12 = vld [vmem:[%s15941_s3 + $0xe8] sm:$0xff]  }
 0x38c   :  { %v4686_v25 = vadd.f32 %v4680_v9, %v4645_v4  ;;  %v11574_v31 = vpop.f32.mrb[169].mxu1  ;;  %12242 = vmatprep.subr.bf16.mxu0 %v15973_v13 }
 0x38d   :  { %12003 = vmatpush3.bf16.msra.mxu1 %v15276_v15  ;;  %v4683_v62 = vpop.f32.mrb[170].mxu1  ;;  %v15279_v23 = vpop.f32.mrb[184].mxu0 }
 0x38e   :  { %v11575_v7 = vpop.f32.mrb[171].mxu1  ;;  %v11838_v35 = vpop.f32.mrb[185].mxu0  ;;  %12016 = vmatprep.subr.bf16.mxu1 %v15973_v13  ;;  %v4727_v3 = vadd.f32 %v14852_v0, %v4686_v25  ;;  %v16057_v25 = vld [vmem:[#allocation34_spill] sm:$0xff] }
 0x38f   :  { %v6094_v24 = vpop.f32.mrb[186].mxu0  ;;  %12243 = vmatpush3.bf16.msra.mxu0 %v12401_v42  ;;  %v15331_v31 = vpack.c.b16 %v16057_v25, %v16057_v25 }
 0x390   :  { %v11839_v1 = vpop.f32.mrb[187].mxu0  ;;  %12005 = vmatmul.mubr.msk.bf16.vlgmr.msra.gmra.mrb[20].mxu1 %vm1374_vm4, %v15284_v6  ;;  %12260 = vmatprep.subr.bf16.mxu0 %v15973_v13 }
 0x391   :  { %12017 = vmatpush3.bf16.msra.mxu1 %v15293_v53  ;;  %12020 = vmatprep.mubr.msk.bf16.mxu1 %vm12551_vm2, %v15973_v13 }
 0x392   :  { %12018 = vmatprep.subr.bf16.mxu1 %v15973_v13 }
 0x393   :  { %v4762_v0 = vpop.f32.mrb[172].mxu1 }
 0x394   :  { %v4768_v38 = vadd.f32 %v4762_v0, %v4727_v3  ;;  %v11590_v19 = vpop.f32.mrb[173].mxu1 }
 0x395   :  { %12019 = vmatpush3.bf16.msra.mxu1 %v15302_v37  ;;  %v4765_v45 = vpop.f32.mrb[174].mxu1  ;;  %v15305_v22 = vpop.f32.mrb[188].mxu0 }
 0x396   :  { %v11591_v54 = vpop.f32.mrb[175].mxu1  ;;  %v11854_v61 = vpop.f32.mrb[189].mxu0  ;;  %12032 = vmatprep.subr.bf16.mxu1 %v15973_v13  ;;  %v4809_v20 = vadd.f32 %v14879_v57, %v4768_v38 }
 0x397   :  { %v6176_v27 = vpop.f32.mrb[190].mxu0 }
 0x398   :  { %v11855_v58 = vpop.f32.mrb[191].mxu0  ;;  %12021 = vmatmul.mubr.msk.bf16.vlgmr.msra.gmra.mrb[24].mxu1 %vm1374_vm4, %v15119_v40 }
 0x399   :  { %12033 = vmatpush3.bf16.msra.mxu1 %v15314_v41  ;;  %12036 = vmatprep.mubr.msk.bf16.mxu1 %vm12551_vm2, %v15973_v13 }
 0x39a   :  { %12034 = vmatprep.subr.bf16.mxu1 %v15973_v13 }
 0x39b   :  { %v4844_v4 = vpop.f32.mrb[176].mxu1 }
 0x39c   :  { %v4850_v21 = vadd.f32 %v4844_v4, %v4809_v20  ;;  %v11606_v57 = vpop.f32.mrb[177].mxu1 }
 0x39d   :  { %12035 = vmatpush3.bf16.msra.mxu1 %v15323_v12  ;;  %v4847_v40 = vpop.f32.mrb[178].mxu1  ;;  %v15326_v5 = vpop.f32.mrb[192].mxu0 }
 0x39e   :  { %v11607_v9 = vpop.f32.mrb[179].mxu1  ;;  %v11870_v42 = vpop.f32.mrb[193].mxu0  ;;  %12048 = vmatprep.subr.bf16.mxu1 %v15973_v13  ;;  %v4891_v62 = vadd.f32 %v14898_v51, %v4850_v21  ;;  %v12548_v51 = vld [vmem:[%s15941_s3 + $0x18] sm:$0xff]  }
 0x39f   :  { %v6276_v7 = vpop.f32.mrb[194].mxu0 }
 0x3a0   :  { %v11871_v35 = vpop.f32.mrb[195].mxu0  ;;  %12037 = vmatmul.mubr.msk.bf16.vlgmr.msra.gmra.mrb[28].mxu1 %vm1374_vm4, %v15331_v31 }
 0x3a1   :  { %12049 = vmatpush3.bf16.msra.mxu1 %v12547_v63  ;;  %12052 = vmatprep.mubr.msk.bf16.mxu1 %vm12551_vm2, %v15973_v13 }
 0x3a2   :  { %12050 = vmatprep.subr.bf16.mxu1 %v15973_v13 }
 0x3a3   :  { %v4933_v3 = vpop.f32.mrb[180].mxu1 }
 0x3a4   :  { %v4939_v24 = vadd.f32 %v4933_v3, %v4891_v62  ;;  %v11622_v1 = vpop.f32.mrb[181].mxu1 }
 0x3a5   :  { %12051 = vmatpush3.bf16.msra.mxu1 %v12548_v51  ;;  %v4936_v0 = vpop.f32.mrb[182].mxu1  ;;  %v15345_v38 = vpop.f32.mrb[196].mxu0 }
 0x3a6   :  { %v11623_v19 = vpop.f32.mrb[183].mxu1  ;;  %v11886_v45 = vpop.f32.mrb[197].mxu0  ;;  %12064 = vmatprep.subr.bf16.mxu1 %v15973_v13  ;;  %v4987_v54 = vadd.f32 %v14925_v50, %v4939_v24 }
 0x3a7   :  { %v6372_v61 = vpop.f32.mrb[198].mxu0 }
 0x3a8   :  { %v11887_v20 = vpop.f32.mrb[199].mxu0  ;;  %12053 = vmatmul.mubr.msk.bf16.vlgmr.msra.gmra.mrb[32].mxu1 %vm1374_vm4, %v14201_v47 }
 0x3a9   :  { %12065 = vmatpush3.bf16.msra.mxu1 %v14936_v46  ;;  %12068 = vmatprep.mubr.msk.bf16.mxu1 %vm12551_vm2, %v15973_v13 }
 0x3aa   :  { %12066 = vmatprep.subr.bf16.mxu1 %v15973_v13 }
 0x3ab   :  { %v5022_v27 = vpop.f32.mrb[184].mxu1 }
 0x3ac   :  { %v5028_v58 = vadd.f32 %v5022_v27, %v4987_v54  ;;  %v11638_v4 = vpop.f32.mrb[185].mxu1 }
 0x3ad   :  { %12067 = vmatpush3.bf16.msra.mxu1 %v14951_v39  ;;  %v5025_v21 = vpop.f32.mrb[186].mxu1  ;;  %v15356_v57 = vpop.f32.mrb[200].mxu0 }
 0x3ae   :  { %v11639_v50 = vpop.f32.mrb[187].mxu1  ;;  %v11902_v40 = vpop.f32.mrb[201].mxu0  ;;  %12080 = vmatprep.subr.bf16.mxu1 %v15973_v13  ;;  %v5069_v47 = vadd.f32 %v14954_v30, %v5028_v58 }
 0x3af   :  { %v6472_v46 = vpop.f32.mrb[202].mxu0 }
 0x3b0   :  { %v11903_v9 = vpop.f32.mrb[203].mxu0  ;;  %12069 = vmatmul.mubr.msk.bf16.vlgmr.msra.gmra.mrb[36].mxu1 %vm1374_vm4, %v14857_v8 }
 0x3b1   :  { %12081 = vmatpush3.bf16.msra.mxu1 %v14965_v32  ;;  %12084 = vmatprep.mubr.msk.bf16.mxu1 %vm12551_vm2, %v15973_v13 }
 0x3b2   :  { %12082 = vmatprep.subr.bf16.mxu1 %v15973_v13 }
 0x3b3   :  { %v5111_v39 = vpop.f32.mrb[188].mxu1 }
 0x3b4   :  { %v5117_v42 = vadd.f32 %v5111_v39, %v5069_v47  ;;  %v11654_v25 = vpop.f32.mrb[189].mxu1 }
 0x3b5   :  { %12083 = vmatpush3.bf16.msra.mxu1 %v14982_v2  ;;  %v5114_v62 = vpop.f32.mrb[190].mxu1  ;;  %v15367_v7 = vpop.f32.mrb[204].mxu0 }
 0x3b6   :  { %v15370_v30 = vadd.f32 %v14985_v33, %v5117_v42  ;;  %v11655_v35 = vpop.f32.mrb[191].mxu1  ;;  %v11918_v8 = vpop.f32.mrb[205].mxu0  ;;  %12096 = vmatprep.subr.bf16.mxu1 %v15973_v13 }
 0x3b7   :  { %v6568_v32 = vpop.f32.mrb[206].mxu0 }
 0x3b8   :  { %v11919_v63 = vpop.f32.mrb[207].mxu0  ;;  %12085 = vmatmul.mubr.msk.bf16.vlgmr.msra.gmra.mrb[40].mxu1 %vm1374_vm4, %v14703_v48 }
 0x3b9   :  { %12097 = vmatpush3.bf16.msra.mxu1 %v15000_v17  ;;  %12100 = vmatprep.mubr.msk.bf16.mxu1 %vm12551_vm2, %v15973_v13 }
 0x3ba   :  { %12098 = vmatprep.subr.bf16.mxu1 %v15973_v13 }
 0x3bb   :  { %v5203_v2 = vpop.f32.mrb[192].mxu1 }
 0x3bc   :  { %v5244_v33 = vadd.f32 %v15016_v26, %v5203_v2  ;;  %v11670_v3 = vpop.f32.mrb[193].mxu1 }
 0x3bd   :  { %12099 = vmatpush3.bf16.msra.mxu1 %v15216_v11  ;;  %v5206_v24 = vpop.f32.mrb[194].mxu1  ;;  %v15381_v1 = vpop.f32.mrb[208].mxu0 }
 0x3be   :  { %v11671_v51 = vpop.f32.mrb[195].mxu1  ;;  %v11934_v0 = vpop.f32.mrb[209].mxu0  ;;  %12112 = vmatprep.subr.bf16.mxu1 %v15973_v13 }
 0x3bf   :  { %v6652_v48 = vpop.f32.mrb[210].mxu0 }
 0x3c0   :  { %v11935_v17 = vpop.f32.mrb[211].mxu0  ;;  %12101 = vmatmul.mubr.msk.bf16.vlgmr.msra.gmra.mrb[44].mxu1 %vm1374_vm4, %v14903_v44 }
 0x3c1   :  { %12113 = vmatpush3.bf16.msra.mxu1 %v15231_v56  ;;  %12116 = vmatprep.mubr.msk.bf16.mxu1 %vm12551_vm2, %v15973_v13 }
 0x3c2   :  { %12114 = vmatprep.subr.bf16.mxu1 %v15973_v13 }
 0x3c3   :  { %v5283_v26 = vpop.f32.mrb[196].mxu1 }
 0x3c4   :  { %v5289_v11 = vadd.f32 %v5283_v26, %v5244_v33  ;;  %v11686_v19 = vpop.f32.mrb[197].mxu1 }
 0x3c5   :  { %12115 = vmatpush3.bf16.msra.mxu1 %v15247_v10  ;;  %v5286_v45 = vpop.f32.mrb[198].mxu1  ;;  %v15391_v54 = vpop.f32.mrb[212].mxu0 }
 0x3c6   :  { %v11687_v61 = vpop.f32.mrb[199].mxu1  ;;  %v11950_v20 = vpop.f32.mrb[213].mxu0  ;;  %12128 = vmatprep.subr.bf16.mxu1 %v15973_v13  ;;  %v5330_v44 = vadd.f32 %v15038_v29, %v5289_v11 }
 0x3c7   :  { %v6733_v56 = vpop.f32.mrb[214].mxu0  ;;  %v12393_v61 = vld [vmem:[%s15943_s5 + $0x30] sm:$0xff]   ;;  %v3047_v20 = vadd.f32 %v15147_v34, %v14796_v28 }
 0x3c8   :  { %v11951_v27 = vpop.f32.mrb[215].mxu0  ;;  %12117 = vmatmul.mubr.msk.bf16.vlgmr.msra.gmra.mrb[48].mxu1 %vm1374_vm4, %v15284_v6  ;;  %v16058_v6 = vld [vmem:[#allocation37_spill] sm:$0xff] }
 0x3c9   :  { %12129 = vmatpush3.bf16.msra.mxu1 %v15263_v43  ;;  %12132 = vmatprep.mubr.msk.bf16.mxu1 %vm12551_vm2, %v15973_v13  ;;  %v7671_v43 = vpack.c.b16 %v16058_v6, %v16058_v6 }
 0x3ca   :  { %12130 = vmatprep.subr.bf16.mxu1 %v15973_v13 }
 0x3cb   :  { %v5365_v10 = vpop.f32.mrb[200].mxu1 }
 0x3cc   :  { %v5371_v58 = vadd.f32 %v5365_v10, %v5330_v44  ;;  %v11702_v4 = vpop.f32.mrb[201].mxu1 }
 0x3cd   :  { %12131 = vmatpush3.bf16.msra.mxu1 %v15276_v15  ;;  %v5368_v21 = vpop.f32.mrb[202].mxu1  ;;  %v15402_v50 = vpop.f32.mrb[216].mxu0  ;;  %v12394_v4 = vld [vmem:[%s15943_s5 + $0x38] sm:$0xff]  }
 0x3ce   :  { %v11703_v29 = vpop.f32.mrb[203].mxu1  ;;  %v11966_v40 = vpop.f32.mrb[217].mxu0  ;;  %12144 = vmatprep.subr.bf16.mxu1 %v15973_v13  ;;  %v5412_v47 = vadd.f32 %v15062_v55, %v5371_v58  ;;  %v3048_v21 = vmax.f32 %v3047_v20, 0.0 }
 0x3cf   :  { %v6815_v46 = vpop.f32.mrb[218].mxu0 }
 0x3d0   :  { %v11967_v9 = vpop.f32.mrb[219].mxu0  ;;  %12133 = vmatmul.mubr.msk.bf16.vlgmr.msra.gmra.mrb[52].mxu1 %vm1374_vm4, %v7671_v43 }
 0x3d1   :  { %12145 = vmatpush3.bf16.msra.mxu1 %v15293_v53  ;;  %12148 = vmatprep.mubr.msk.bf16.mxu1 %vm12551_vm2, %v15973_v13 }
 0x3d2   :  { %12146 = vmatprep.subr.bf16.mxu1 %v15973_v13 }
 0x3d3   :  { %v5447_v15 = vpop.f32.mrb[204].mxu1 }
 0x3d4   :  { %v5453_v39 = vadd.f32 %v5447_v15, %v5412_v47  ;;  %v11718_v42 = vpop.f32.mrb[205].mxu1  ;;  %v3049_v47 = vpack.c.bf16 %v3048_v21, %v3048_v21 }
 0x3d5   :  { %12147 = vmatpush3.bf16.msra.mxu1 %v15302_v37  ;;  %v5450_v25 = vpop.f32.mrb[206].mxu1  ;;  %v15414_v62 = vpop.f32.mrb[220].mxu0 }
 0x3d6   :  { %v11719_v55 = vpop.f32.mrb[207].mxu1  ;;  %v11982_v35 = vpop.f32.mrb[221].mxu0  ;;  %12160 = vmatprep.subr.bf16.mxu1 %v15973_v13  ;;  %v5494_v8 = vadd.f32 %v15090_v36, %v5453_v39  ;;  %v12391_v36 = vld [vmem:[%s15943_s5 + $0x20] sm:$0xff]   ;;  %v12398_v25 = vld [vmem:[%s15943_s5 + $0x48] sm:$0xff]  }
 0x3d7   :  { %v6897_v53 = vpop.f32.mrb[222].mxu0 }
 0x3d8   :  { %v11983_v32 = vpop.f32.mrb[223].mxu0  ;;  %12149 = vmatmul.mubr.msk.bf16.vlgmr.msra.gmra.mrb[56].mxu1 %vm1374_vm4, %v15331_v31 }
 0x3d9   :  { %12161 = vmatpush3.bf16.msra.mxu1 %v15314_v41  ;;  %12164 = vmatprep.mubr.msk.bf16.mxu1 %vm12551_vm2, %v15973_v13  ;;  %v16059_v41 = vld [vmem:[#allocation38_spill] sm:$0xff]  ;;  %v12400_v32 = vld [vmem:[%s15943_s5 + $0x50] sm:$0xff]  }
 0x3da   :  { %12162 = vmatprep.subr.bf16.mxu1 %v15973_v13  ;;  %v7849_v51 = vpack.c.b16 %v16059_v41, %v16059_v41  ;;  %v12402_v41 = vld [vmem:[%s15943_s5 + $0x58] sm:$0xff]  }
 0x3db   :  { %v5529_v37 = vpop.f32.mrb[208].mxu1 }
 0x3dc   :  { %v5535_v63 = vadd.f32 %v5529_v37, %v5494_v8  ;;  %v11734_v2 = vpop.f32.mrb[209].mxu1  ;;  %v3760_v37 = vadd.f32 %v15147_v34, %v14988_v60 }
 0x3dd   :  { %12163 = vmatpush3.bf16.msra.mxu1 %v15323_v12  ;;  %v5532_v33 = vpop.f32.mrb[210].mxu1  ;;  %v15425_v3 = vpop.f32.mrb[224].mxu0  ;;  %v12392_v12 = vld [vmem:[%s15943_s5 + $0x28] sm:$0xff]  }
 0x3de   :  { %v11735_v31 = vpop.f32.mrb[211].mxu1  ;;  %v11998_v24 = vpop.f32.mrb[225].mxu0  ;;  %12176 = vmatprep.subr.bf16.mxu1 %v15973_v13  ;;  %v5576_v0 = vadd.f32 %v15114_v49, %v5535_v63 }
 0x3df   :  { %v6979_v48 = vpop.f32.mrb[226].mxu0 }
 0x3e0   :  { %v11999_v17 = vpop.f32.mrb[227].mxu0  ;;  %12165 = vmatmul.mubr.msk.bf16.vlgmr.msra.gmra.mrb[60].mxu1 %vm1374_vm4, %v7849_v51  ;;  %v3761_v51 = vmax.f32 %v3760_v37, 0.0 }
 0x3e1   :  { %12177 = vmatpush3.bf16.msra.mxu1 %v12391_v36  ;;  %12184 = vmatprep.mubr.msk.bf16.mxu1 %vm12551_vm2, %v15973_v13 }
 0x3e2   :  { %12178 = vmatprep.subr.bf16.mxu1 %v15973_v13 }
 0x3e3   :  { %v5618_v26 = vpop.f32.mrb[212].mxu1 }
 0x3e4   :  { %v5624_v11 = vadd.f32 %v5618_v26, %v5576_v0  ;;  %v11750_v19 = vpop.f32.mrb[213].mxu1 }
 0x3e5   :  { %12179 = vmatpush3.bf16.msra.mxu1 %v12392_v12  ;;  %v5621_v45 = vpop.f32.mrb[214].mxu1  ;;  %v15441_v49 = vpop.f32.mrb[228].mxu0  ;;  %v12403_v19 = vld [vmem:[%s15943_s5 + $0x80] sm:$0xff]  }
 0x3e6   :  { %v11751_v44 = vpop.f32.mrb[215].mxu1  ;;  %v12014_v56 = vpop.f32.mrb[229].mxu0  ;;  %12180 = vmatprep.subr.bf16.mxu1 %v15973_v13  ;;  %v5672_v27 = vadd.f32 %v15150_v14, %v5624_v11  ;;  %v12396_v14 = vld [vmem:[%s15943_s5 + $0x40] sm:$0xff]   ;;  %v3762_v45 = vpack.c.bf16 %v3761_v51, %v3761_v51 }
 0x3e7   :  { %v7075_v10 = vpop.f32.mrb[230].mxu0 }
 0x3e8   :  { %v12015_v58 = vpop.f32.mrb[231].mxu0 }
 0x3e9   :  { %12181 = vmatpush3.bf16.msra.mxu1 %v12393_v61  ;;  %v12413_v58 = vld [vmem:[%s15943_s5 + $0xf0] sm:$0xff]  }
 0x3ea   :  { %12182 = vmatprep.subr.bf16.mxu1 %v15973_v13 }
 0x3eb   :  { %v5707_v29 = vpop.f32.mrb[216].mxu1 }
 0x3ec   :  { %v5713_v40 = vadd.f32 %v5707_v29, %v5672_v27  ;;  %v11766_v6 = vpop.f32.mrb[217].mxu1  ;;  %v12404_v27 = vld [vmem:[%s15943_s5 + $0x88] sm:$0xff]  }
 0x3ed   :  { %12183 = vmatpush3.bf16.msra.mxu1 %v12394_v4  ;;  %v5710_v28 = vpop.f32.mrb[218].mxu1  ;;  %v15454_v43 = vpop.f32.mrb[232].mxu0  ;;  %v12405_v6 = vld [vmem:[%s15943_s5 + $0x90] sm:$0xff]  }
 0x3ee   :  { %v11767_v46 = vpop.f32.mrb[219].mxu1  ;;  %v12030_v9 = vpop.f32.mrb[233].mxu0  ;;  %12200 = vmatprep.subr.bf16.mxu1 %v15973_v13  ;;  %v5754_v15 = vadd.f32 %v15171_v18, %v5713_v40  ;;  %v5166_v28 = vadd.f32 %v15147_v34, %v15370_v30  ;;  %v12406_v30 = vld [vmem:[%s15943_s5 + $0x98] sm:$0xff]  }
 0x3ef   :  { %v7157_v39 = vpop.f32.mrb[234].mxu0 }
 0x3f0   :  { %12185 = vmatmul.mubr.msk.bf16.vlgmr.msra.gmra.mrb[64].mxu1 %vm321_vm1, %v3049_v47  ;;  %v12031_v42 = vpop.f32.mrb[235].mxu0 }
 0x3f1   :  { %12201 = vmatpush3.bf16.msra.mxu1 %v12396_v14  ;;  %12208 = vmatprep.mubr.msk.bf16.mxu1 %vm12551_vm2, %v15973_v13  ;;  %v5167_v42 = vmax.f32 %v5166_v28, 0.0 }
 0x3f2   :  { %12202 = vmatprep.subr.bf16.mxu1 %v15973_v13 }
 0x3f3   :  { %v5796_v55 = vpop.f32.mrb[220].mxu1 }
 0x3f4   :  { %v5802_v35 = vadd.f32 %v5796_v55, %v5754_v15  ;;  %v11782_v8 = vpop.f32.mrb[221].mxu1  ;;  %v12414_v15 = vld [vmem:[%s15943_s5 + $0xf8] sm:$0xff]  }
 0x3f5   :  { %12203 = vmatpush3.bf16.msra.mxu1 %v12398_v25  ;;  %v5799_v53 = vpop.f32.mrb[222].mxu1  ;;  %v15468_v18 = vpop.f32.mrb[236].mxu0 }
 0x3f6   :  { %v5850_v63 = vadd.f32 %v15193_v59, %v5802_v35  ;;  %v11783_v2 = vpop.f32.mrb[223].mxu1  ;;  %v12046_v33 = vpop.f32.mrb[237].mxu0  ;;  %12204 = vmatprep.subr.bf16.mxu1 %v15973_v13  ;;  %v12411_v59 = vld [vmem:[%s15943_s5 + $0xe0] sm:$0xff]  }
 0x3f7   :  { %v7253_v36 = vpop.f32.mrb[238].mxu0  ;;  %v12407_v53 = vld [vmem:[%s15943_s5 + $0xc0] sm:$0xff]  }
 0x3f8   :  { %v5851_v31 = vadd.f32 %v15147_v34, %v5850_v63  ;;  %v12047_v24 = vpop.f32.mrb[239].mxu0 }
 0x3f9   :  { %12205 = vmatpush3.bf16.msra.mxu1 %v12400_v32  ;;  %v5168_v32 = vpack.c.bf16 %v5167_v42, %v5167_v42 }
 0x3fa   :  { %v5852_v0 = vmax.f32 %v5851_v31, 0.0  ;;  %12206 = vmatprep.subr.bf16.mxu1 %v15973_v13  ;;  %v12408_v31 = vld [vmem:[%s15943_s5 + $0xc8] sm:$0xff]  }
 0x3fb   :  { %v5888_v60 = vpop.f32.mrb[224].mxu1 }
 0x3fc   :  { %v5853_v48 = vpack.c.bf16 %v5852_v0, %v5852_v0  ;;  %v5929_v17 = vadd.f32 %v15219_v16, %v5888_v60  ;;  %v11798_v12 = vpop.f32.mrb[225].mxu1  ;;  %v12412_v16 = vld [vmem:[%s15943_s5 + $0xe8] sm:$0xff]   ;;  %v12409_v60 = vld [vmem:[%s15943_s5 + $0xd0] sm:$0xff]  }
 0x3fd   :  { %12207 = vmatpush3.bf16.msra.mxu1 %v12402_v41  ;;  %v5891_v26 = vpop.f32.mrb[226].mxu1  ;;  %v15486_v11 = vpop.f32.mrb[240].mxu0 }
 0x3fe   :  { %v11799_v61 = vpop.f32.mrb[227].mxu1  ;;  %v12062_v20 = vpop.f32.mrb[241].mxu0  ;;  %12245 = vmatmul.mubr.msk.bf16.vlgmr.msra.gmra.mrb[24].mxu0 %vm321_vm1, %v5853_v48  ;;  %12224 = vmatprep.subr.bf16.mxu1 %v15973_v13 }
 0x3ff   :  { %v7337_v44 = vpop.f32.mrb[242].mxu0  ;;  %12261 = vmatpush3.bf16.msra.mxu0 %v12411_v59  ;;  %12268 = vmatprep.mubr.msk.bf16.mxu0 %vm12551_vm2, %v15973_v13 }
 0x400   :  { %12209 = vmatmul.mubr.msk.bf16.vlgmr.msra.gmra.mrb[68].mxu1 %vm321_vm1, %v3762_v45  ;;  %v12063_v56 = vpop.f32.mrb[243].mxu0  ;;  %12262 = vmatprep.subr.bf16.mxu0 %v15973_v13 }
 0x401   :  { %12225 = vmatpush3.bf16.msra.mxu1 %v12403_v19  ;;  %12232 = vmatprep.mubr.msk.bf16.mxu1 %vm12551_vm2, %v15973_v13  ;;  %v12410_v19 = vld [vmem:[%s15943_s5 + $0xd8] sm:$0xff]  }
 0x402   :  { %12226 = vmatprep.subr.bf16.mxu1 %v15973_v13 }
 0x403   :  { %v5968_v10 = vpop.f32.mrb[228].mxu1  ;;  %12263 = vmatpush3.bf16.msra.mxu0 %v12412_v16 }
 0x404   :  { %v5974_v4 = vadd.f32 %v5968_v10, %v5929_v17  ;;  %v11814_v21 = vpop.f32.mrb[229].mxu1  ;;  %12264 = vmatprep.subr.bf16.mxu0 %v15973_v13 }
 0x405   :  { %12227 = vmatpush3.bf16.msra.mxu1 %v12404_v27  ;;  %v5971_v29 = vpop.f32.mrb[230].mxu1  ;;  %v15510_v40 = vpop.f32.mrb[244].mxu0 }
 0x406   :  { %v11815_v14 = vpop.f32.mrb[231].mxu1  ;;  %v12078_v47 = vpop.f32.mrb[245].mxu0  ;;  %12228 = vmatprep.subr.bf16.mxu1 %v15973_v13  ;;  %v6015_v46 = vadd.f32 %v15250_v52, %v5974_v4 }
 0x407   :  { %v7418_v9 = vpop.f32.mrb[246].mxu0  ;;  %12265 = vmatpush3.bf16.msra.mxu0 %v12413_v58 }
 0x408   :  { %v12079_v39 = vpop.f32.mrb[247].mxu0  ;;  %12266 = vmatprep.subr.bf16.mxu0 %v15973_v13 }
 0x409   :  { %12229 = vmatpush3.bf16.msra.mxu1 %v12405_v6 }
 0x40a   :  { %12230 = vmatprep.subr.bf16.mxu1 %v15973_v13 }
 0x40b   :  { %v6050_v25 = vpop.f32.mrb[232].mxu1  ;;  %12267 = vmatpush3.bf16.msra.mxu0 %v12414_v15 }
 0x40c   :  { %v6056_v52 = vadd.f32 %v6050_v25, %v6015_v46  ;;  %v11830_v55 = vpop.f32.mrb[233].mxu1 }
 0x40d   :  { %12231 = vmatpush3.bf16.msra.mxu1 %v12406_v30  ;;  %v6053_v35 = vpop.f32.mrb[234].mxu1  ;;  %v15527_v8 = vpop.f32.mrb[248].mxu0 }
 0x40e   :  { %v11831_v37 = vpop.f32.mrb[235].mxu1  ;;  %v12094_v63 = vpop.f32.mrb[249].mxu0  ;;  %v6097_v2 = vadd.f32 %v15279_v23, %v6056_v52  ;;  %12248 = vmatprep.subr.bf16.mxu1 %v15973_v13 }
 0x40f   :  { %v7500_v33 = vpop.f32.mrb[250].mxu0 }
 0x410   :  { %12233 = vmatmul.mubr.msk.bf16.vlgmr.msra.gmra.mrb[72].mxu1 %vm321_vm1, %v5168_v32  ;;  %v12095_v36 = vpop.f32.mrb[251].mxu0 }
 0x411   :  { %12249 = vmatpush3.bf16.msra.mxu1 %v12407_v53  ;;  %12256 = vmatprep.mubr.msk.bf16.mxu1 %vm12551_vm2, %v15973_v13 }
 0x412   :  { %12250 = vmatprep.subr.bf16.mxu1 %v15973_v13 }
 0x413   :  { %v6132_v24 = vpop.f32.mrb[236].mxu1 }
 0x414   :  { %v6138_v41 = vadd.f32 %v6132_v24, %v6097_v2  ;;  %v11846_v51 = vpop.f32.mrb[237].mxu1 }
 0x415   :  { %v6135_v23 = vpop.f32.mrb[238].mxu1  ;;  %v15541_v0 = vpop.f32.mrb[252].mxu0  ;;  %12251 = vmatpush3.bf16.msra.mxu1 %v12408_v31 }
 0x416   :  { %v11847_v59 = vpop.f32.mrb[239].mxu1  ;;  %v12110_v48 = vpop.f32.mrb[253].mxu0  ;;  %v6179_v17 = vadd.f32 %v15305_v22, %v6138_v41  ;;  %12252 = vmatprep.subr.bf16.mxu1 %v15973_v13 }
 0x417   :  { %v7582_v12 = vpop.f32.mrb[254].mxu0 }
 0x418   :  { %v12111_v26 = vpop.f32.mrb[255].mxu0 }
 0x419   :  { %12253 = vmatpush3.bf16.msra.mxu1 %v12409_v60 }
 0x41a   :  { %12254 = vmatprep.subr.bf16.mxu1 %v15973_v13 }
 0x41b   :  { %v6226_v45 = vpop.f32.mrb[240].mxu1 }
 0x41c   :  { %v6232_v61 = vadd.f32 %v6226_v45, %v6179_v17  ;;  %v11862_v20 = vpop.f32.mrb[241].mxu1 }
 0x41d   :  { %v6229_v44 = vpop.f32.mrb[242].mxu1  ;;  %v15552_v16 = vpop.f32.mrb[0].mxu0  ;;  %12255 = vmatpush3.bf16.msra.mxu1 %v12410_v19 }
 0x41e   :  { %v11863_v56 = vpop.f32.mrb[243].mxu1  ;;  %v12126_v22 = vpop.f32.mrb[1].mxu0  ;;  %v6279_v27 = vadd.f32 %v15326_v5, %v6232_v61  ;;  %12272 = vmatprep.subr.bf16.mxu1 %v15973_v13 }
 0x41f   :  { %v7664_v10 = vpop.f32.mrb[2].mxu0 }
 0x420   :  { %v12127_v58 = vpop.f32.mrb[3].mxu0 }
 0x421   :  { %v12418_v58 = vld [vmem:[%s15943_s5 + $0x118] sm:$0xff]  }
 0x423   :  { %v6321_v4 = vpop.f32.mrb[244].mxu1 }
 0x424   :  { %v6327_v21 = vadd.f32 %v6321_v4, %v6279_v27  ;;  %v11878_v29 = vpop.f32.mrb[245].mxu1 }
 0x425   :  { %v6324_v6 = vpop.f32.mrb[246].mxu1  ;;  %v15556_v28 = vpop.f32.mrb[4].mxu0 }
 0x426   :  { %v11879_v14 = vpop.f32.mrb[247].mxu1  ;;  %v12142_v47 = vpop.f32.mrb[5].mxu0  ;;  %v6375_v46 = vadd.f32 %v15345_v38, %v6327_v21 }
 0x427   :  { %v7760_v9 = vpop.f32.mrb[6].mxu0 }
 0x428   :  { %v12143_v15 = vpop.f32.mrb[7].mxu0 }
 0x42b   :  { %v6422_v39 = vpop.f32.mrb[248].mxu1 }
 0x42c   :  { %v6428_v30 = vadd.f32 %v6422_v39, %v6375_v46  ;;  %v11894_v42 = vpop.f32.mrb[249].mxu1 }
 0x42d   :  { %v6425_v5 = vpop.f32.mrb[250].mxu1  ;;  %v15559_v25 = vpop.f32.mrb[8].mxu0 }
 0x42e   :  { %v11895_v52 = vpop.f32.mrb[251].mxu1  ;;  %v12158_v55 = vpop.f32.mrb[9].mxu0  ;;  %v6475_v35 = vadd.f32 %v15356_v57, %v6428_v30  ;;  %v12415_v57 = vld [vmem:[%s15943_s5 + $0x100] sm:$0xff]  }
 0x42f   :  { %v7842_v53 = vpop.f32.mrb[10].mxu0 }
 0x430   :  { %v12159_v32 = vpop.f32.mrb[11].mxu0 }
 0x433   :  { %v6517_v37 = vpop.f32.mrb[252].mxu1 }
 0x434   :  { %v6523_v63 = vadd.f32 %v6517_v37, %v6475_v35  ;;  %v11910_v2 = vpop.f32.mrb[253].mxu1 }
 0x435   :  { %v6520_v33 = vpop.f32.mrb[254].mxu1  ;;  %v15562_v36 = vpop.f32.mrb[12].mxu0 }
 0x436   :  { %v6571_v38 = vadd.f32 %v15367_v7, %v6523_v63  ;;  %v11911_v31 = vpop.f32.mrb[255].mxu1  ;;  %v12174_v24 = vpop.f32.mrb[13].mxu0 }
 0x437   :  { %v7938_v41 = vpop.f32.mrb[14].mxu0 }
 0x438   :  { %v6572_v51 = vadd.f32 %v15147_v34, %v6571_v38  ;;  %v12175_v23 = vpop.f32.mrb[15].mxu0  ;;  %v12416_v34 = vld [vmem:[%s15943_s5 + $0x108] sm:$0xff]  }
 0x43a   :  { %v6573_v60 = vmax.f32 %v6572_v51, 0.0 }
 0x43b   :  { %v6609_v59 = vpop.f32.mrb[0].mxu1 }
 0x43c   :  { %v6574_v48 = vpack.c.bf16 %v6573_v60, %v6573_v60  ;;  %v6650_v17 = vadd.f32 %v15381_v1, %v6609_v59  ;;  %v11926_v12 = vpop.f32.mrb[1].mxu1  ;;  %v12417_v1 = vld [vmem:[%s15943_s5 + $0x110] sm:$0xff]  }
 0x43d   :  { %v6612_v26 = vpop.f32.mrb[2].mxu1 }
 0x43e   :  { %v11927_v19 = vpop.f32.mrb[3].mxu1  ;;  %12257 = vmatmul.mubr.msk.bf16.vlgmr.msra.gmra.mrb[76].mxu1 %vm321_vm1, %v6574_v48 }
 0x43f   :  { %12273 = vmatpush3.bf16.msra.mxu1 %v12415_v57  ;;  %12280 = vmatprep.mubr.msk.bf16.mxu1 %vm12551_vm2, %v15973_v13 }
 0x440   :  { %12274 = vmatprep.subr.bf16.mxu1 %v15973_v13 }
 0x443   :  { %v6689_v7 = vpop.f32.mrb[4].mxu1  ;;  %12275 = vmatpush3.bf16.msra.mxu1 %v12416_v34  ;;  %v12549_v34 = vld [vmem:[%s15944_s4] ss:$0 sm:$0xff] }
 0x444   :  { %v6695_v45 = vadd.f32 %v6689_v7, %v6650_v17  ;;  %v11942_v61 = vpop.f32.mrb[5].mxu1  ;;  %12276 = vmatprep.subr.bf16.mxu1 %v15973_v13 }
 0x445   :  { %v15581_v20 = vpop.f32.mrb[16].mxu0  ;;  %v6692_v44 = vpop.f32.mrb[6].mxu1 }
 0x446   :  { %v12198_v56 = vpop.f32.mrb[17].mxu0  ;;  %v11943_v22 = vpop.f32.mrb[7].mxu1  ;;  %v6736_v27 = vadd.f32 %v15391_v54, %v6695_v45 }
 0x447   :  { %v8157_v10 = vpop.f32.mrb[18].mxu0  ;;  %12277 = vmatpush3.bf16.msra.mxu1 %v12417_v1 }
 0x448   :  { %v12199_v4 = vpop.f32.mrb[19].mxu0  ;;  %12278 = vmatprep.subr.bf16.mxu1 %v15973_v13 }
 0x44b   :  { %v6771_v21 = vpop.f32.mrb[8].mxu1  ;;  %12279 = vmatpush3.bf16.msra.mxu1 %v12418_v58 }
 0x44c   :  { %v6777_v29 = vadd.f32 %v6771_v21, %v6736_v27  ;;  %v11958_v6 = vpop.f32.mrb[9].mxu1 }
 0x44d   :  { %v6774_v14 = vpop.f32.mrb[10].mxu1 }
 0x44e   :  { %v11959_v47 = vpop.f32.mrb[11].mxu1  ;;  %v6818_v46 = vadd.f32 %v15402_v50, %v6777_v29 }
 0x453   :  { %v6853_v9 = vpop.f32.mrb[12].mxu1 }
 0x454   :  { %v6859_v15 = vadd.f32 %v6853_v9, %v6818_v46  ;;  %v11974_v54 = vpop.f32.mrb[13].mxu1 }
 0x455   :  { %v15589_v39 = vpop.f32.mrb[20].mxu0  ;;  %v6856_v30 = vpop.f32.mrb[14].mxu1 }
 0x456   :  { %v12222_v42 = vpop.f32.mrb[21].mxu0  ;;  %v11975_v5 = vpop.f32.mrb[15].mxu1  ;;  %v6900_v52 = vadd.f32 %v15414_v62, %v6859_v15 }
 0x457   :  { %v8292_v55 = vpop.f32.mrb[22].mxu0 }
 0x458   :  { %v12223_v13 = vpop.f32.mrb[23].mxu0 }
 0x45b   :  { %v6935_v35 = vpop.f32.mrb[16].mxu1 }
 0x45c   :  { %v6941_v53 = vadd.f32 %v6935_v35, %v6900_v52  ;;  %v11990_v32 = vpop.f32.mrb[17].mxu1 }
 0x45d   :  { %v6938_v37 = vpop.f32.mrb[18].mxu1 }
 0x45e   :  { %v11991_v63 = vpop.f32.mrb[19].mxu1  ;;  %v6982_v2 = vadd.f32 %v15425_v3, %v6941_v53 }
 0x463   :  { %v7024_v50 = vpop.f32.mrb[20].mxu1 }
 0x464   :  { %v7030_v33 = vadd.f32 %v7024_v50, %v6982_v2  ;;  %v12006_v38 = vpop.f32.mrb[21].mxu1 }
 0x465   :  { %v7027_v31 = vpop.f32.mrb[22].mxu1 }
 0x466   :  { %v12007_v24 = vpop.f32.mrb[23].mxu1  ;;  %v7078_v41 = vadd.f32 %v15441_v49, %v7030_v33 }
 0x46b   :  { %v7113_v51 = vpop.f32.mrb[24].mxu1 }
 0x46c   :  { %v7119_v23 = vadd.f32 %v7113_v51, %v7078_v41  ;;  %v12022_v60 = vpop.f32.mrb[25].mxu1 }
 0x46d   :  { %v7116_v62 = vpop.f32.mrb[26].mxu1 }
 0x46e   :  { %v12023_v59 = vpop.f32.mrb[27].mxu1  ;;  %v7160_v57 = vadd.f32 %v15454_v43, %v7119_v23 }
 0x473   :  { %v7202_v48 = vpop.f32.mrb[28].mxu1 }
 0x474   :  { %v7208_v17 = vadd.f32 %v7202_v48, %v7160_v57  ;;  %v12038_v12 = vpop.f32.mrb[29].mxu1 }
 0x475   :  { %v7205_v26 = vpop.f32.mrb[30].mxu1 }
 0x476   :  { %v7256_v3 = vadd.f32 %v15468_v18, %v7208_v17  ;;  %v12039_v19 = vpop.f32.mrb[31].mxu1 }
 0x478   :  { %v7257_v7 = vadd.f32 %v12549_v34, %v7256_v3 }
 0x47a   :  { %v7258_v49 = vmax.f32 %v7257_v7, 0.0 }
 0x47b   :  { %v7294_v1 = vpop.f32.mrb[32].mxu1 }
 0x47c   :  { %v7259_v45 = vpack.c.bf16 %v7258_v49, %v7258_v49  ;;  %v7335_v61 = vadd.f32 %v15486_v11, %v7294_v1  ;;  %v12054_v44 = vpop.f32.mrb[33].mxu1 }
 0x47d   :  { %v7297_v56 = vpop.f32.mrb[34].mxu1  ;;  %v8649_v44 = vld [vmem:[%s15945_s7 + $0x20] sm:$0xff] }
 0x47e   :  { %v12055_v43 = vpop.f32.mrb[35].mxu1  ;;  %12269 = vmatmul.mubr.msk.bf16.vlgmr.msra.gmra.mrb[28].mxu0 %vm321_vm1, %v7259_v45 }
 0x483   :  { %v7374_v22 = vpop.f32.mrb[36].mxu1 }
 0x484   :  { %v7380_v27 = vadd.f32 %v7374_v22, %v7335_v61  ;;  %v12070_v10 = vpop.f32.mrb[37].mxu1 }
 0x485   :  { %v7377_v18 = vpop.f32.mrb[38].mxu1  ;;  %v8650_v10 = vld [vmem:[%s15945_s7 + $0x28] sm:$0xff] }
 0x486   :  { %v12071_v58 = vpop.f32.mrb[39].mxu1  ;;  %v7421_v4 = vadd.f32 %v15510_v40, %v7380_v27  ;;  %v8653_v18 = vld [vmem:[%s15945_s7 + $0x40] sm:$0xff] }
 0x487   :  { %v8657_v58 = vld [vmem:[%s15945_s7 + $0x60] sm:$0xff] }
 0x48b   :  { %v7456_v21 = vpop.f32.mrb[40].mxu1 }
 0x48c   :  { %v7462_v29 = vadd.f32 %v7456_v21, %v7421_v4  ;;  %v12086_v6 = vpop.f32.mrb[41].mxu1 }
 0x48d   :  { %v7459_v14 = vpop.f32.mrb[42].mxu1  ;;  %v8658_v6 = vld [vmem:[%s15945_s7 + $0x68] sm:$0xff] }
 0x48e   :  { %v12087_v47 = vpop.f32.mrb[43].mxu1  ;;  %v7503_v46 = vadd.f32 %v15527_v8, %v7462_v29  ;;  %v10223_v29 = vcombine.high %v8653_v18, %v8657_v58 }
 0x48f   :  { %v10222_v47 = vcombine.low %v8653_v18, %v8657_v58 }
 0x493   :  { %v7538_v11 = vpop.f32.mrb[44].mxu1 }
 0x494   :  { %v7544_v9 = vadd.f32 %v7538_v11, %v7503_v46  ;;  %v12102_v15 = vpop.f32.mrb[45].mxu1 }
 0x495   :  { %v7541_v54 = vpop.f32.mrb[46].mxu1 }
 0x496   :  { %v12103_v30 = vpop.f32.mrb[47].mxu1  ;;  %v7585_v42 = vadd.f32 %v15541_v0, %v7544_v9 }
 0x49b   :  { %v7620_v5 = vpop.f32.mrb[48].mxu1 }
 0x49c   :  { %v7626_v52 = vadd.f32 %v7620_v5, %v7585_v42  ;;  %v12118_v55 = vpop.f32.mrb[49].mxu1 }
 0x49d   :  { %v7623_v13 = vpop.f32.mrb[50].mxu1 }
 0x49e   :  { %v12119_v35 = vpop.f32.mrb[51].mxu1  ;;  %v7667_v40 = vadd.f32 %v15552_v16, %v7626_v52 }
 0x4a3   :  { %v7709_v53 = vpop.f32.mrb[52].mxu1 }
 0x4a4   :  { %v7715_v32 = vadd.f32 %v7709_v53, %v7667_v40  ;;  %v12134_v37 = vpop.f32.mrb[53].mxu1  ;;  %v8661_v40 = vld [vmem:[%s15945_s7 + $0x80] sm:$0xff] }
 0x4a5   :  { %v7712_v63 = vpop.f32.mrb[54].mxu1  ;;  %v8665_v53 = vld [vmem:[%s15945_s7 + $0xa0] sm:$0xff] }
 0x4a6   :  { %v12135_v2 = vpop.f32.mrb[55].mxu1  ;;  %v7763_v8 = vadd.f32 %v15556_v28, %v7715_v32  ;;  %v8662_v32 = vld [vmem:[%s15945_s7 + $0x88] sm:$0xff]  ;;  %v10230_v37 = vcombine.low %v8661_v40, %v8665_v53  ;;  %v10231_v63 = vcombine.high %v8661_v40, %v8665_v53  ;;  %v12420_v40 = vld [vmem:[%s15946_s9 + $0xc0] sm:$0xff]  }
 0x4a7   :  { %v8666_v2 = vld [vmem:[%s15945_s7 + $0xa8] sm:$0xff]  ;;  %v12421_v53 = vld [vmem:[%s15946_s9] sm:$0xff]  }
 0x4ab   :  { %v7798_v50 = vpop.f32.mrb[56].mxu1 }
 0x4ac   :  { %v7804_v33 = vadd.f32 %v7798_v50, %v7763_v8  ;;  %v12150_v38 = vpop.f32.mrb[57].mxu1  ;;  %v8669_v8 = vld [vmem:[%s15945_s7 + $0xc0] sm:$0xff] }
 0x4ad   :  { %v7801_v31 = vpop.f32.mrb[58].mxu1  ;;  %v8673_v50 = vld [vmem:[%s15945_s7 + $0xe0] sm:$0xff]  ;;  %v10232_v38 = vcombine.low %v8662_v32, %v8666_v2 }
 0x4ae   :  { %v12151_v24 = vpop.f32.mrb[59].mxu1  ;;  %v7845_v0 = vadd.f32 %v15559_v25, %v7804_v33  ;;  %v12552_v33 = vmov 0   ;;  %v10233_v31 = vcombine.high %v8662_v32, %v8666_v2  ;;  %v12422_v32 = vld [vmem:[%s15946_s9 + $0x80] sm:$0xff]   ;;  %v12425_v2 = vld [vmem:[%s15946_s9 + $0x8] sm:$0xff]  }
 0x4af   :  { %8914 = vmatprep.mubr.bf16.mxu0 %v12552_v33  ;;  %v10239_v24 = vcombine.high %v8669_v8, %v8673_v50 }
 0x4b3   :  { %v7887_v41 = vpop.f32.mrb[60].mxu1 }
 0x4b4   :  { %v7893_v51 = vadd.f32 %v7887_v41, %v7845_v0  ;;  %v12166_v23 = vpop.f32.mrb[61].mxu1  ;;  %v8670_v0 = vld [vmem:[%s15945_s7 + $0xc8] sm:$0xff] }
 0x4b5   :  { %v7890_v60 = vpop.f32.mrb[62].mxu1  ;;  %v8674_v41 = vld [vmem:[%s15945_s7 + $0xe8] sm:$0xff] }
 0x4b6   :  { %v7941_v16 = vadd.f32 %v15562_v36, %v7893_v51  ;;  %v12167_v62 = vpop.f32.mrb[63].mxu1  ;;  %v8647_v51 = vld [vmem:[%s15945_s7 + $0x10] sm:$0xff]  ;;  %v10241_v23 = vcombine.high %v8670_v0, %v8674_v41 }
 0x4b7   :  { %v8651_v60 = vld [vmem:[%s15945_s7 + $0x30] sm:$0xff]  ;;  %v8652_v62 = vld [vmem:[%s15945_s7 + $0x38] sm:$0xff] }
 0x4b8   :  { %v7942_v59 = vadd.f32 %v12549_v34, %v7941_v16  ;;  %v8645_v34 = vld [vmem:[%s15945_s7] sm:$0xff]  ;;  %v8648_v16 = vld [vmem:[%s15945_s7 + $0x18] sm:$0xff] }
 0x4b9   :  { %v10214_v22 = vcombine.low %v8645_v34, %v8649_v44  ;;  %v10215_v27 = vcombine.high %v8645_v34, %v8649_v44 }
 0x4ba   :  { %v7943_v57 = vmax.f32 %v7942_v59, 0.0  ;;  %v10238_v59 = vcombine.low %v8669_v8, %v8673_v50  ;;  %v12426_v8 = vld [vmem:[%s15946_s9 + $0x88] sm:$0xff]   ;;  %v12427_v50 = vld [vmem:[%s15946_s9 + $0x50] sm:$0xff]  }
 0x4bb   :  { %8882 = vmatprep.subr.bf16.mxu0 %v10215_v27 }
 0x4bc   :  { %v7944_v48 = vpack.c.bf16 %v7943_v57, %v7943_v57  ;;  %8883 = vmatpush1.bf16.msra.mxu0 %v10214_v22  ;;  %v10218_v57 = vcombine.low %v8647_v51, %v8651_v60  ;;  %v8660_v22 = vld [vmem:[%s15945_s7 + $0x78] sm:$0xff] }
 0x4bd   :  { %8884 = vmatprep.subr.bf16.mxu0 %v10223_v29  ;;  %v8664_v29 = vld [vmem:[%s15945_s7 + $0x98] sm:$0xff] }
 0x4be   :  { %12281 = vmatmul.mubr.msk.bf16.vlgmr.msra.gmra.mrb[80].mxu1 %vm321_vm1, %v7944_v48  ;;  %v10220_v48 = vcombine.low %v8648_v16, %v8652_v62 }
 0x4bf   :  { %8955 = vmatprep.mubr.bf16.mxu1 %v12552_v33 }
 0x4c0   :  { %8885 = vmatpush1.bf16.msra.mxu0 %v10222_v47 }
 0x4c1   :  { %8886 = vmatprep.subr.bf16.mxu0 %v10231_v63  ;;  %v12424_v63 = vld [vmem:[%s15946_s9 + $0xc8] sm:$0xff]  }
 0x4c3   :  { %v8087_v28 = vpop.f32.mrb[64].mxu1 }
 0x4c4   :  { %v8155_v17 = vadd.f32 %v15581_v20, %v8087_v28  ;;  %v12186_v12 = vpop.f32.mrb[65].mxu1  ;;  %v8646_v20 = vld [vmem:[%s15945_s7 + $0x8] sm:$0xff]  ;;  %8887 = vmatpush1.bf16.msra.mxu0 %v10230_v37  ;;  %v10240_v28 = vcombine.low %v8670_v0, %v8674_v41  ;;  %v12432_v0 = vld [vmem:[%s15946_s9 + $0xd8] sm:$0xff]  }
 0x4c5   :  { %v8090_v26 = vpop.f32.mrb[66].mxu1  ;;  %v10216_v4 = vcombine.low %v8646_v20, %v8650_v10  ;;  %v10217_v21 = vcombine.high %v8646_v20, %v8650_v10  ;;  %8888 = vmatprep.subr.bf16.mxu0 %v10239_v24  ;;  %v10221_v12 = vcombine.high %v8648_v16, %v8652_v62  ;;  %v8655_v20 = vld [vmem:[%s15945_s7 + $0x50] sm:$0xff]  ;;  %v12423_v37 = vld [vmem:[%s15946_s9 + $0x48] sm:$0xff]   ;;  %v12431_v24 = vld [vmem:[%s15946_s9 + $0x58] sm:$0xff]  }
 0x4c6   :  { %v12187_v3 = vpop.f32.mrb[67].mxu1  ;;  %v12433_v41 = vld [vmem:[%s15946_s9 + $0x18] sm:$0xff]   ;;  %v12437_v16 = vld [vmem:[%s15946_s9 + $0x20] sm:$0xff]  }
 0x4c7   :  { %8923 = vmatprep.subr.bf16.mxu1 %v10217_v21  ;;  %v8667_v21 = vld [vmem:[%s15945_s7 + $0xb0] sm:$0xff]  ;;  %v12438_v62 = vld [vmem:[%s15946_s9 + $0xa0] sm:$0xff]  }
 0x4c8   :  { %8924 = vmatpush1.bf16.msra.mxu1 %v10216_v4  ;;  %8889 = vmatpush1.bf16.msra.mxu0 %v10238_v59  ;;  %v8663_v4 = vld [vmem:[%s15945_s7 + $0x90] sm:$0xff]  ;;  %v12439_v59 = vld [vmem:[%s15946_s9 + $0x68] sm:$0xff]  }
 0x4c9   :  { %v10235_v47 = vcombine.high %v8663_v4, %v8667_v21 }
 0x4d1   :  { %v8425_v19 = vpop.f32.mrb[24].mxu0 }
 0x4d2   :  { %v12246_v25 = vpop.f32.mrb[25].mxu0 }
 0x4d3   :  { %v8221_v7 = vpop.f32.mrb[68].mxu1  ;;  %v8428_v49 = vpop.f32.mrb[26].mxu0 }
 0x4d4   :  { %v8227_v1 = vadd.f32 %v8221_v7, %v8155_v17  ;;  %v12210_v45 = vpop.f32.mrb[69].mxu1  ;;  %v12247_v61 = vpop.f32.mrb[27].mxu0  ;;  %v10219_v17 = vcombine.high %v8647_v51, %v8651_v60  ;;  %v10213_v49 = vld [vmem:[%s15947_s6] ss:$0 sm:$0xff]  ;;  %v12434_v51 = vld [vmem:[%s15946_s9 + $0x98] sm:$0xff]  }
 0x4d5   :  { %v8224_v36 = vpop.f32.mrb[70].mxu1  ;;  %v12436_v60 = vld [vmem:[%s15946_s9 + $0xe0] sm:$0xff]  }
 0x4d6   :  { %v12211_v56 = vpop.f32.mrb[71].mxu1  ;;  %v8295_v43 = vadd.f32 %v15589_v39, %v8227_v1  ;;  %v8654_v39 = vld [vmem:[%s15945_s7 + $0x48] sm:$0xff]  ;;  %8964 = vmatprep.subr.bf16.mxu0 %v10219_v17  ;;  %v12443_v17 = vld [vmem:[%s15946_s9 + $0x70] sm:$0xff]  }
 0x4d7   :  { %v10225_v14 = vcombine.high %v8654_v39, %v8658_v6  ;;  %v10224_v46 = vcombine.low %v8654_v39, %v8658_v6  ;;  %v8659_v56 = vld [vmem:[%s15945_s7 + $0x70] sm:$0xff]  ;;  %v8668_v39 = vld [vmem:[%s15945_s7 + $0xb8] sm:$0xff] }
 0x4d8   :  { %v10227_v18 = vcombine.high %v8655_v20, %v8659_v56  ;;  %v10226_v6 = vcombine.low %v8655_v20, %v8659_v56  ;;  %v15827_v20 = vld [vmem:[%s15948_s8] sm:$0xff] }
 0x4d9   :  { %8925 = vmatprep.subr.bf16.mxu1 %v10225_v14 }
 0x4da   :  { %8926 = vmatpush1.bf16.msra.mxu1 %v10224_v46  ;;  %v10237_v46 = vcombine.high %v8664_v29, %v8668_v39 }
 0x4db   :  { %8927 = vmatprep.subr.bf16.mxu1 %v10233_v31  ;;  %v12430_v31 = vld [vmem:[%s15946_s9 + $0x90] sm:$0xff]  }
 0x4de   :  { %8928 = vmatpush1.bf16.msra.mxu1 %v10232_v38  ;;  %v12429_v38 = vld [vmem:[%s15946_s9 + $0x10] sm:$0xff]  }
 0x4df   :  { %8929 = vmatprep.subr.bf16.mxu1 %v10241_v23  ;;  %v12435_v23 = vld [vmem:[%s15946_s9 + $0x60] sm:$0xff]  }
 0x4e2   :  { %8930 = vmatpush1.bf16.msra.mxu1 %v10240_v28  ;;  %v12442_v28 = vld [vmem:[%s15946_s9 + $0xa8] sm:$0xff]  }
 0x4e3   :  { %v8357_v11 = vpop.f32.mrb[72].mxu1  ;;  %9005 = vmatprep.subr.bf16.mxu1 %v10221_v12  ;;  %v12444_v12 = vld [vmem:[%s15946_s9 + $0xf0] sm:$0xff]  }
 0x4e4   :  { %v8363_v9 = vadd.f32 %v8357_v11, %v8295_v43  ;;  %v12234_v15 = vpop.f32.mrb[73].mxu1  ;;  %v8656_v43 = vld [vmem:[%s15945_s7 + $0x58] sm:$0xff]  ;;  %v8671_v11 = vld [vmem:[%s15945_s7 + $0xd0] sm:$0xff] }
 0x4e5   :  { %v8360_v54 = vpop.f32.mrb[74].mxu1  ;;  %v10229_v58 = vcombine.high %v8656_v43, %v8660_v22  ;;  %v10228_v14 = vcombine.low %v8656_v43, %v8660_v22  ;;  %v8672_v15 = vld [vmem:[%s15945_s7 + $0xd8] sm:$0xff] }
 0x4e6   :  { %v12235_v30 = vpop.f32.mrb[75].mxu1  ;;  %v8431_v42 = vadd.f32 %v8425_v19, %v8363_v9  ;;  %v8675_v9 = vld [vmem:[%s15945_s7 + $0xf0] sm:$0xff]  ;;  %v8676_v54 = vld [vmem:[%s15945_s7 + $0xf8] sm:$0xff] }
 0x4e7   :  { %v10234_v30 = vcombine.low %v8663_v4, %v8667_v21 }
 0x511   :  { %v8493_v5 = vpop.f32.mrb[76].mxu1 }
 0x512   :  { %v8499_v52 = vadd.f32 %v8493_v5, %v8431_v42  ;;  %v12258_v55 = vpop.f32.mrb[77].mxu1  ;;  %v10236_v42 = vcombine.low %v8664_v29, %v8668_v39  ;;  %v10243_v5 = vcombine.high %v8671_v11, %v8675_v9 }
 0x513   :  { %v8496_v13 = vpop.f32.mrb[78].mxu1  ;;  %v10242_v55 = vcombine.low %v8671_v11, %v8675_v9 }
 0x514   :  { %v12259_v35 = vpop.f32.mrb[79].mxu1  ;;  %v10244_v13 = vcombine.low %v8672_v15, %v8676_v54 }
 0x515   :  { %v12419_v35 = vld [vmem:[%s15946_s9 + $0x40] sm:$0xff]  }
 0x551   :  { %v8561_v26 = vpop.f32.mrb[28].mxu0 }
 0x552   :  { %v8567_v3 = vadd.f32 %v8561_v26, %v8499_v52  ;;  %v12270_v19 = vpop.f32.mrb[29].mxu0  ;;  %v10245_v52 = vcombine.high %v8672_v15, %v8676_v54  ;;  %v12445_v26 = vld [vmem:[%s15946_s9 + $0x30] sm:$0xff]  }
 0x553   :  { %v8564_v25 = vpop.f32.mrb[30].mxu0  ;;  %v12447_v19 = vld [vmem:[%s15946_s9 + $0x78] sm:$0xff]  }
 0x554   :  { %v12271_v7 = vpop.f32.mrb[31].mxu0  ;;  %v12448_v25 = vld [vmem:[%s15946_s9 + $0xf8] sm:$0xff]  }
 0x555   :  { %v12449_v7 = vld [vmem:[%s15946_s9 + $0x38] sm:$0xff]  }
 0x591   :  { %v8629_v1 = vpop.f32.mrb[80].mxu1 }
 0x592   :  { %v8635_v45 = vadd.f32 %v8629_v1, %v8567_v3  ;;  %v12282_v61 = vpop.f32.mrb[81].mxu1  ;;  %v12446_v3 = vld [vmem:[%s15946_s9 + $0xb0] sm:$0xff]   ;;  %v12451_v1 = vld [vmem:[%s15946_s9 + $0x140] sm:$0xff]  }
 0x593   :  { %v8632_v36 = vpop.f32.mrb[82].mxu1  ;;  %v8679_v61 = vlaneseq }
 0x594   :  { %v8642_v34 = vadd.f32 %v10213_v49, %v8635_v45  ;;  %v12283_v44 = vpop.f32.mrb[83].mxu1  ;;  %v12450_v49 = vld [vmem:[%s15946_s9 + $0xb8] sm:$0xff]   ;;  %v12452_v45 = vld [vmem:[%s15946_s9 + $0x1c0] sm:$0xff]  }
 0x595   :  { %v15820_v36 = vshrl.u32 %v8679_v61, 7 }
 0x596   :  { %v8643_v27 = vmax.f32 %v8642_v34, 0.0 }
 0x597   :  { %v8681_v34 = vsub.s32 0, %v15820_v36  ;;  %v8689_v44 = vsub.s32 2, %v15820_v36  ;;  %v8685_v56 = vsub.s32 1, %v15820_v36  ;;  %v8693_v43 = vsub.s32 3, %v15820_v36 }
 0x598   :  { %v8644_v10 = vpack.c.bf16 %v8643_v27, %v8643_v27 }
 0x599   :  { %v8682_v22 = vrot.slane %v15827_v20, %v8681_v34  ;;  %v8690_v27 = vrot.slane %v15827_v20, %v8689_v44  ;;  %v12469_v34 = vld [vmem:[%s15946_s9 + $0x120] sm:$0xff]  }
 0x59a   :  { %10246 = vmatmul.mubr.msk.bf16.vlgmr.msra.gmra.mrb[32].mxu0 %vm321_vm1, %v8644_v10  ;;  %10247 = vmatmul.mubr.msk.bf16.vlgmr.msra.gmra.mrb[84].mxu1 %vm321_vm1, %v8644_v10  ;;  %v12470_v44 = vld [vmem:[%s15946_s9 + $0x1a0] sm:$0xff]  }
 0x59b   :  { %8965 = vmatpush1.bf16.msra.mxu0 %v10218_v57  ;;  %9006 = vmatpush1.bf16.msra.mxu1 %v10220_v48  ;;  %v12440_v57 = vld [vmem:[%s15946_s9 + $0xe8] sm:$0xff]  }
 0x59c   :  { %8966 = vmatprep.subr.bf16.mxu0 %v10227_v18  ;;  %9007 = vmatprep.subr.bf16.mxu1 %v10229_v58  ;;  %v12441_v48 = vld [vmem:[%s15946_s9 + $0x28] sm:$0xff]   ;;  %v8694_v18 = vrot.slane %v15827_v20, %v8693_v43  ;;  %v8705_v43 = vsub.s32 6, %v15820_v36 }
 0x59d   :  { %8996 = vmatprep.mubr.bf16.mxu0 %v12552_v33  ;;  %9037 = vmatprep.mubr.bf16.mxu1 %v12552_v33  ;;  %v12428_v33 = vld [vmem:[%s15946_s9 + $0xd0] sm:$0xff]  }
 0x59f   :  { %8967 = vmatpush1.bf16.msra.mxu0 %v10226_v6  ;;  %9008 = vmatpush1.bf16.msra.mxu1 %v10228_v14 }
 0x5a0   :  { %8968 = vmatprep.subr.bf16.mxu0 %v10235_v47  ;;  %9009 = vmatprep.subr.bf16.mxu1 %v10237_v46 }
 0x5a3   :  { %8969 = vmatpush1.bf16.msra.mxu0 %v10234_v30  ;;  %9010 = vmatpush1.bf16.msra.mxu1 %v10236_v42 }
 0x5a4   :  { %8970 = vmatprep.subr.bf16.mxu0 %v10243_v5  ;;  %9011 = vmatprep.subr.bf16.mxu1 %v10245_v52 }
 0x5a7   :  { %8971 = vmatpush1.bf16.msra.mxu0 %v10242_v55  ;;  %9012 = vmatpush1.bf16.msra.mxu1 %v10244_v13  ;;  %v12453_v13 = vld [vmem:[%s15946_s9 + $0x100] sm:$0xff]  }
 0x5a8   :  { %10840 = vmatprep.subr.bf16.mxu0 %v12419_v35  ;;  %10862 = vmatprep.subr.bf16.mxu1 %v12420_v40  ;;  %v12454_v35 = vld [vmem:[%s15946_s9 + $0x180] sm:$0xff]  }
 0x5aa   :  { %10248 = vmatmul.mubr.msk.bf16.vlgmr.msra.gmra.mrb[36].mxu0 %vm321_vm1, %v8644_v10  ;;  %10249 = vmatmul.mubr.msk.bf16.vlgmr.msra.gmra.mrb[88].mxu1 %vm321_vm1, %v8644_v10  ;;  %v8686_v10 = vrot.slane %v15827_v20, %v8685_v56  ;;  %v8697_v56 = vsub.s32 4, %v15820_v36 }
 0x5ab   :  { %10841 = vmatpush3.bf16.msra.mxu0 %v12421_v53  ;;  %10863 = vmatpush3.bf16.msra.mxu1 %v12422_v32  ;;  %v12455_v32 = vld [vmem:[%s15946_s9 + $0x148] sm:$0xff]  }
 0x5ac   :  { %10842 = vmatprep.subr.bf16.mxu0 %v12423_v37  ;;  %10864 = vmatprep.subr.bf16.mxu1 %v12424_v63  ;;  %v12456_v37 = vld [vmem:[%s15946_s9 + $0x1c8] sm:$0xff]  }
 0x5ad   :  { %v12457_v63 = vld [vmem:[%s15946_s9 + $0x108] sm:$0xff]  }
 0x5af   :  { %10843 = vmatpush3.bf16.msra.mxu0 %v12425_v2  ;;  %10865 = vmatpush3.bf16.msra.mxu1 %v12426_v8  ;;  %v12458_v2 = vld [vmem:[%s15946_s9 + $0x188] sm:$0xff]   ;;  %v8701_v8 = vsub.s32 5, %v15820_v36 }
 0x5b0   :  { %10844 = vmatprep.subr.bf16.mxu0 %v12427_v50  ;;  %10866 = vmatprep.subr.bf16.mxu1 %v12428_v33  ;;  %v8709_v50 = vsub.s32 7, %v15820_v36  ;;  %v12459_v33 = vld [vmem:[%s15946_s9 + $0x150] sm:$0xff]   ;;  %v12474_v36 = vld [vmem:[%s15946_s9 + $0x1a8] sm:$0xff]  }
 0x5b3   :  { %10845 = vmatpush3.bf16.msra.mxu0 %v12429_v38  ;;  %10867 = vmatpush3.bf16.msra.mxu1 %v12430_v31  ;;  %v12460_v38 = vld [vmem:[%s15946_s9 + $0x1d0] sm:$0xff]   ;;  %v8702_v31 = vrot.slane %v15827_v20, %v8701_v8 }
 0x5b4   :  { %10846 = vmatprep.subr.bf16.mxu0 %v12431_v24  ;;  %10868 = vmatprep.subr.bf16.mxu1 %v12432_v0  ;;  %v8710_v24 = vrot.slane %v15827_v20, %v8709_v50  ;;  %v12461_v0 = vld [vmem:[%s15946_s9 + $0x110] sm:$0xff]  }
 0x5b7   :  { %10847 = vmatpush3.bf16.msra.mxu0 %v12433_v41  ;;  %10869 = vmatpush3.bf16.msra.mxu1 %v12434_v51  ;;  %v12462_v41 = vld [vmem:[%s15946_s9 + $0x190] sm:$0xff]   ;;  %v12463_v51 = vld [vmem:[%s15946_s9 + $0x158] sm:$0xff]  }
 0x5b8   :  { %10848 = vmatprep.subr.bf16.mxu0 %v12435_v23  ;;  %10870 = vmatprep.subr.bf16.mxu1 %v12436_v60  ;;  %v12464_v23 = vld [vmem:[%s15946_s9 + $0x1d8] sm:$0xff]  }
 0x5bb   :  { %10849 = vmatpush3.bf16.msra.mxu0 %v12437_v16  ;;  %10871 = vmatpush3.bf16.msra.mxu1 %v12438_v62 }
 0x5bc   :  { %10850 = vmatprep.subr.bf16.mxu0 %v12439_v59  ;;  %10872 = vmatprep.subr.bf16.mxu1 %v12440_v57 }
 0x5bf   :  { %10851 = vmatpush3.bf16.msra.mxu0 %v12441_v48  ;;  %10873 = vmatpush3.bf16.msra.mxu1 %v12442_v28 }
 0x5c0   :  { %10852 = vmatprep.subr.bf16.mxu0 %v12443_v17  ;;  %10874 = vmatprep.subr.bf16.mxu1 %v12444_v12  ;;  %v12465_v12 = vld [vmem:[%s15946_s9 + $0x118] sm:$0xff]  }
 0x5c3   :  { %10853 = vmatpush3.bf16.msra.mxu0 %v12445_v26  ;;  %10875 = vmatpush3.bf16.msra.mxu1 %v12446_v3  ;;  %v12466_v26 = vld [vmem:[%s15946_s9 + $0x198] sm:$0xff]  }
 0x5c4   :  { %10854 = vmatprep.subr.bf16.mxu0 %v12447_v19  ;;  %10876 = vmatprep.subr.bf16.mxu1 %v12448_v25  ;;  %v12467_v25 = vld [vmem:[%s15946_s9 + $0x160] sm:$0xff]  }
 0x5c7   :  { %10855 = vmatpush3.bf16.msra.mxu0 %v12449_v7  ;;  %10877 = vmatpush3.bf16.msra.mxu1 %v12450_v49  ;;  %v12468_v7 = vld [vmem:[%s15946_s9 + $0x1e0] sm:$0xff]  }
 0x5c8   :  { %10884 = vmatprep.subr.bf16.mxu0 %v12451_v1  ;;  %10906 = vmatprep.subr.bf16.mxu1 %v12452_v45 }
 0x66d   :  { %v8916_v58 = vpop.f32.mrb[32].mxu0  ;;  %v8957_v4 = vpop.f32.mrb[84].mxu1 }
 0x66e   :  { %v8917_v21 = vadd.f32 %v8916_v58, %v8682_v22  ;;  %v8958_v29 = vadd.f32 %v8957_v4, %v8690_v27  ;;  %v8918_v39 = vpop.f32.mrb[33].mxu0  ;;  %v8959_v6 = vpop.f32.mrb[85].mxu1  ;;  %v12471_v22 = vld [vmem:[%s15946_s9 + $0x168] sm:$0xff]   ;;  %v8706_v58 = vrot.slane %v15827_v20, %v8705_v43  ;;  %v12475_v4 = vld [vmem:[%s15946_s9 + $0x170] sm:$0xff]  }
 0x66f   :  { %v8919_v14 = vadd.f32 %v8918_v39, %v8686_v10  ;;  %v8960_v47 = vadd.f32 %v8959_v6, %v8694_v18  ;;  %v8920_v46 = vpop.f32.mrb[34].mxu0  ;;  %v8961_v11 = vpop.f32.mrb[86].mxu1  ;;  %v12472_v27 = vld [vmem:[%s15946_s9 + $0x1e8] sm:$0xff]   ;;  %v8698_v18 = vrot.slane %v15827_v20, %v8697_v56  ;;  %v12478_v20 = vld [vmem:[%s15946_s9 + $0x1b0] sm:$0xff]  }
 0x670   :  { %v9046_v9 = vmax.f32 %v8917_v21, 0.0  ;;  %v9048_v15 = vmax.f32 %v8958_v29, 0.0  ;;  %v8921_v54 = vpop.f32.mrb[35].mxu0  ;;  %v8962_v30 = vpop.f32.mrb[87].mxu1  ;;  %v12473_v10 = vld [vmem:[%s15946_s9 + $0x128] sm:$0xff]   ;;  %v12476_v21 = vld [vmem:[%s15946_s9 + $0x1f0] sm:$0xff]  }
 0x671   :  { %v9047_v42 = vmax.f32 %v8919_v14, 0.0  ;;  %v9049_v5 = vmax.f32 %v8960_v47, 0.0  ;;  %v12477_v29 = vld [vmem:[%s15946_s9 + $0x130] sm:$0xff]   ;;  %v12479_v14 = vld [vmem:[%s15946_s9 + $0x178] sm:$0xff]  }
 0x672   :  { %v9054_v40 = vpack.c.bf16 %v9046_v9, %v9046_v9  ;;  %v9056_v53 = vpack.c.bf16 %v9048_v15, %v9048_v15  ;;  %v12480_v47 = vld [vmem:[%s15946_s9 + $0x1f8] sm:$0xff]  }
 0x673   :  { %v9055_v52 = vpack.c.bf16 %v9047_v42, %v9047_v42  ;;  %v9057_v55 = vpack.c.bf16 %v9049_v5, %v9049_v5  ;;  %v12481_v46 = vld [vmem:[%s15946_s9 + $0x138] sm:$0xff]  }
 0x674   :  { %v12482_v11 = vld [vmem:[%s15946_s9 + $0x1b8] sm:$0xff]  }
 0x675   :  { %9613 = vmatprep.mubr.bf16.mxu0 %v9055_v52  ;;  %9653 = vmatprep.mubr.bf16.mxu1 %v9057_v55  ;;  %v10250_v52 = vld [vmem:[%s15949_s10] ss:$0 sm:$0xff] }
 0x676   :  { %9614 = vmatmul.mubr.bf16.vlgmr.msra.gmra.mrb[40].mxu0 %v9054_v40  ;;  %9654 = vmatmul.mubr.bf16.vlgmr.msra.gmra.mrb[92].mxu1 %v9056_v53 }
 0x677   :  { %10885 = vmatpush3.bf16.msra.mxu0 %v12453_v13  ;;  %10907 = vmatpush3.bf16.msra.mxu1 %v12454_v35 }
 0x678   :  { %10886 = vmatprep.subr.bf16.mxu0 %v12455_v32  ;;  %10908 = vmatprep.subr.bf16.mxu1 %v12456_v37 }
 0x67b   :  { %10887 = vmatpush3.bf16.msra.mxu0 %v12457_v63  ;;  %10909 = vmatpush3.bf16.msra.mxu1 %v12458_v2 }
 0x67c   :  { %10888 = vmatprep.subr.bf16.mxu0 %v12459_v33  ;;  %10910 = vmatprep.subr.bf16.mxu1 %v12460_v38 }
 0x67d   :  { %v8998_v60 = vpop.f32.mrb[36].mxu0  ;;  %v9039_v16 = vpop.f32.mrb[88].mxu1 }
 0x67e   :  { %v9000_v62 = vpop.f32.mrb[37].mxu0  ;;  %v9041_v59 = vpop.f32.mrb[89].mxu1  ;;  %v8999_v39 = vadd.f32 %v8998_v60, %v8698_v18  ;;  %v9040_v6 = vadd.f32 %v9039_v16, %v8706_v58 }
 0x67f   :  { %v9001_v57 = vadd.f32 %v9000_v62, %v8702_v31  ;;  %v9042_v48 = vadd.f32 %v9041_v59, %v8710_v24  ;;  %v9002_v28 = vpop.f32.mrb[38].mxu0  ;;  %v9043_v17 = vpop.f32.mrb[90].mxu1  ;;  %10889 = vmatpush3.bf16.msra.mxu0 %v12461_v0  ;;  %10911 = vmatpush3.bf16.msra.mxu1 %v12462_v41 }
 0x680   :  { %v9003_v3 = vpop.f32.mrb[39].mxu0  ;;  %v9044_v19 = vpop.f32.mrb[91].mxu1  ;;  %10890 = vmatprep.subr.bf16.mxu0 %v12463_v51  ;;  %10912 = vmatprep.subr.bf16.mxu1 %v12464_v23  ;;  %v9050_v9 = vmax.f32 %v8999_v39, 0.0  ;;  %v9052_v15 = vmax.f32 %v9040_v6, 0.0 }
 0x681   :  { %v9051_v49 = vmax.f32 %v9001_v57, 0.0  ;;  %v9053_v1 = vmax.f32 %v9042_v48, 0.0 }
 0x682   :  { %v9058_v54 = vpack.c.bf16 %v9050_v9, %v9050_v9  ;;  %v9060_v30 = vpack.c.bf16 %v9052_v15, %v9052_v15 }
 0x683   :  { %v9059_v45 = vpack.c.bf16 %v9051_v49, %v9051_v49  ;;  %v9061_v61 = vpack.c.bf16 %v9053_v1, %v9053_v1  ;;  %10891 = vmatpush3.bf16.msra.mxu0 %v12465_v12  ;;  %10913 = vmatpush3.bf16.msra.mxu1 %v12466_v26 }
 0x684   :  { %10892 = vmatprep.subr.bf16.mxu0 %v12467_v25  ;;  %10914 = vmatprep.subr.bf16.mxu1 %v12468_v7 }
 0x685   :  { %9693 = vmatprep.mubr.bf16.mxu0 %v9059_v45  ;;  %9733 = vmatprep.mubr.bf16.mxu1 %v9061_v61 }
 0x687   :  { %10893 = vmatpush3.bf16.msra.mxu0 %v12469_v34  ;;  %10915 = vmatpush3.bf16.msra.mxu1 %v12470_v44 }
 0x688   :  { %10894 = vmatprep.subr.bf16.mxu0 %v12471_v22  ;;  %10916 = vmatprep.subr.bf16.mxu1 %v12472_v27 }
 0x68b   :  { %10895 = vmatpush3.bf16.msra.mxu0 %v12473_v10  ;;  %10917 = vmatpush3.bf16.msra.mxu1 %v12474_v36 }
 0x68c   :  { %10896 = vmatprep.subr.bf16.mxu0 %v12475_v4  ;;  %10918 = vmatprep.subr.bf16.mxu1 %v12476_v21 }
 0x68f   :  { %10897 = vmatpush3.bf16.msra.mxu0 %v12477_v29  ;;  %10919 = vmatpush3.bf16.msra.mxu1 %v12478_v20 }
 0x690   :  { %10898 = vmatprep.subr.bf16.mxu0 %v12479_v14  ;;  %10920 = vmatprep.subr.bf16.mxu1 %v12480_v47 }
 0x693   :  { %10899 = vmatpush3.bf16.msra.mxu0 %v12481_v46  ;;  %10921 = vmatpush3.bf16.msra.mxu1 %v12482_v11 }
 0x696   :  { %9694 = vmatmul.mubr.bf16.vlgmr.msra.gmra.mrb[44].mxu0 %v9058_v54  ;;  %9734 = vmatmul.mubr.bf16.vlgmr.msra.gmra.mrb[96].mxu1 %v9060_v30 }
 0x749   :  { %v10856_v42 = vpop.f32.mrb[40].mxu0  ;;  %v10878_v5 = vpop.f32.mrb[92].mxu1 }
 0x74a   :  { %v10857_v55 = vpop.f32.mrb[41].mxu0  ;;  %v10879_v13 = vpop.f32.mrb[93].mxu1 }
 0x74b   :  { %v10858_v35 = vadd.f32 %v10857_v55, %v10856_v42  ;;  %v10880_v40 = vadd.f32 %v10879_v13, %v10878_v5  ;;  %v10859_v53 = vpop.f32.mrb[42].mxu0  ;;  %v10881_v32 = vpop.f32.mrb[94].mxu1 }
 0x74c   :  { %v10860_v37 = vpop.f32.mrb[43].mxu0  ;;  %v10882_v63 = vpop.f32.mrb[95].mxu1 }
 0x74d   :  { %v9616_v2 = vadd.f32 %v10858_v35, %v10250_v52 }
 0x74f   :  { %v9656_v8 = vadd.f32 %v10880_v40, %v9616_v2 }
 0x769   :  { %v10900_v50 = vpop.f32.mrb[44].mxu0  ;;  %v10922_v33 = vpop.f32.mrb[96].mxu1 }
 0x76a   :  { %v10901_v38 = vpop.f32.mrb[45].mxu0  ;;  %v10923_v31 = vpop.f32.mrb[97].mxu1 }
 0x76b   :  { %v10902_v24 = vadd.f32 %v10901_v38, %v10900_v50  ;;  %v10924_v0 = vadd.f32 %v10923_v31, %v10922_v33  ;;  %v10903_v41 = vpop.f32.mrb[46].mxu0  ;;  %v10925_v51 = vpop.f32.mrb[98].mxu1 }
 0x76c   :  { %v10904_v23 = vpop.f32.mrb[47].mxu0  ;;  %v10926_v60 = vpop.f32.mrb[99].mxu1 }
 0x76d   :  { %v9696_v16 = vadd.f32 %v10902_v24, %v9656_v8 }
 0x76f   :  { %v9736_v62 = vadd.f32 %v10924_v0, %v9696_v16 }
 0x771   :  { %9741 = vst [vmem:[%s15950_s11] sm:$0x3] %v9736_v62 }

</bundles_post_ra>
